<compile_context>
chip_gen: v6e
topology: v6e:2x2x1
jax: 0.10.0
libtpu: 0.0.40
codegen_flags: <defaults>
</compile_context>

<pallas_src>
import functools

import numpy as np
import jax
import jax.numpy as jnp
from jax.experimental import pallas as pl
from jax.experimental.pallas import tpu as pltpu

NEG_SLOPE = 0.2
KSIZE = 4


# ------------------------------ Pallas kernel --------------------------------
def _matmul_bias_lrelu(x_bf16, w_ref, b_ref):
    """One MXU matmul (bf16 operands, f32 accumulation) + bias + LeakyReLU (f32)."""
    y = jnp.dot(x_bf16, w_ref[...], preferred_element_type=jnp.float32) + b_ref[...]
    return jnp.where(y >= 0.0, y, NEG_SLOPE * y)


def _scatter(s_ref, y_f32, dst_ref):
    """Constant 0/1 scatter matmul: place valid conv outputs at their zero-padded /
    stride-subsampled positions in the next layer's flattened row space (bf16 store)."""
    dst_ref[...] = jnp.dot(s_ref[...], y_f32.astype(jnp.bfloat16),
                           preferred_element_type=jnp.float32).astype(jnp.bfloat16)


def _build_patches(act_ref, patch_ref, wp, q, cin):
    """im2col inside VMEM: tap (ki,kj) is the contiguous row slice starting at ki*wp+kj,
    copied into columns [t*cin, (t+1)*cin) of the patch block (bf16 -> bf16, no casts)."""
    for ki in range(KSIZE):
        for kj in range(KSIZE):
            t = ki * KSIZE + kj
            d = ki * wp + kj
            patch_ref[:, t * cin:(t + 1) * cin] = act_ref[d:d + q, :]


def _classifier_kernel(geom, block_b,
                       x_ref,
                       w1_ref, w2_ref, w3_ref, w4_ref,
                       b1_ref, b2_ref, b3_ref, b4_ref,
                       s1_ref, s2_ref, s3_ref,
                       v_ref, b5_ref,
                       out_ref,
                       x2_scr, p2_scr, x3_scr, p3_scr, x4_scr, p4_scr):
    (wp2, q2, cin2), (wp3, q3, cin3), (wp4, q4, cin4) = geom

    # One grid step == `block_b` samples; intermediates never leave VMEM.
    for b in range(block_b):
        # layer 1: patches built in the wrapper -> one (64,64)@(64,64) matmul
        y1 = _matmul_bias_lrelu(x_ref[b], w1_ref, b1_ref)              # (64, 64) f32
        _scatter(s1_ref, y1, x2_scr)                                   # (100, 64) bf16

        # layer 2
        _build_patches(x2_scr, p2_scr, wp2, q2, cin2)                  # (67, 1024) bf16
        y2 = _matmul_bias_lrelu(p2_scr[...], w2_ref, b2_ref)           # (67, 128) f32
        _scatter(s2_ref, y2, x3_scr)                                   # (36, 128) bf16

        # layer 3
        _build_patches(x3_scr, p3_scr, wp3, q3, cin3)                  # (15, 2048) bf16
        y3 = _matmul_bias_lrelu(p3_scr[...], w3_ref, b3_ref)           # (15, 256) f32
        _scatter(s3_ref, y3, x4_scr)                                   # (25, 256) bf16

        # layer 4
        _build_patches(x4_scr, p4_scr, wp4, q4, cin4)                  # (7, 4096) bf16
        y4 = _matmul_bias_lrelu(p4_scr[...], w4_ref, b4_ref)           # (7, 512) f32

        # conv5 + AdaptiveAvgPool2d((1,1)) constant-folded into V (junk rows of y4 hit
        # zero rows of V and are discarded):  out = sum(V * y4) + b5
        prod = v_ref[...] * y4                                         # (7, 512) f32
        pooled = jnp.sum(prod, axis=1, keepdims=True)                  # (7, 1)
        pooled = jnp.sum(pooled, axis=0, keepdims=True)                # (1, 1)
        out_ref[b] = pooled + b5_ref[...]


# -------------------------- geometry / constant prep --------------------------
def _layer_geometry(h, w, cfgs):
    geos = []
    for (k, s, p) in cfgs:
        hp, wp = h + 2 * p, w + 2 * p
        oh, ow = (hp - k) // s + 1, (wp - k) // s + 1
        geos.append(dict(k=k, s=s, p=p, hp=hp, wp=wp, oh=oh, ow=ow,
                         rows=hp * wp,
                         q=s * (oh - 1) * wp + s * (ow - 1) + 1))
        h, w = oh, ow
    return geos


def _scatter_from_valid(cur, nxt):
    """Valid output rows of `cur` (row = oh*OW+ow) -> flattened padded rows of `nxt`."""
    s = np.zeros((nxt["rows"], cur["oh"] * cur["ow"]), np.float32)
    for oh in range(cur["oh"]):
        for ow in range(cur["ow"]):
            s[(oh + nxt["p"]) * nxt["wp"] + (ow + nxt["p"]), oh * cur["ow"] + ow] = 1.0
    return s


def _scatter_from_qspace(cur, nxt):
    """Valid rows of `cur`'s q-space accumulator -> flattened padded rows of `nxt`."""
    s = np.zeros((nxt["rows"], cur["q"]), np.float32)
    for oh in range(cur["oh"]):
        for ow in range(cur["ow"]):
            s[(oh + nxt["p"]) * nxt["wp"] + (ow + nxt["p"]),
              cur["s"] * oh * cur["wp"] + cur["s"] * ow] = 1.0
    return s


def _fold_conv5_pool(w5, g4, g5):
    """Fold conv5 (C_out=1, no activation) + AdaptiveAvgPool2d((1,1)) into a single
    constant (q4, C_in5) matrix applied to layer-4's q-space output (after LeakyReLU)."""
    w5n = np.asarray(w5, np.float32)         # (1, C_in5, 4, 4)
    _, ic, kh, kw = w5n.shape
    v = np.zeros((g4["q"], ic), np.float32)
    inv = 1.0 / float(g5["oh"] * g5["ow"])
    for oh5 in range(g5["oh"]):
        for ow5 in range(g5["ow"]):
            for ki in range(kh):
                for kj in range(kw):
                    r5 = g5["s"] * oh5 * g5["wp"] + g5["s"] * ow5 + ki * g5["wp"] + kj
                    h5p, w5p = divmod(r5, g5["wp"])
                    oh4, ow4 = h5p - g5["p"], w5p - g5["p"]
                    if 0 <= oh4 < g4["oh"] and 0 <= ow4 < g4["ow"]:
                        qrow = g4["s"] * oh4 * g4["wp"] + g4["s"] * ow4
                        v[qrow, :] += inv * w5n[0, :, ki, kj]
    return v


def _pick_block_batch(n):
    """Largest block <=4 that divides n while keeping >=2 grid steps (v7x megacore)."""
    for b in (4, 2):
        if n % b == 0 and n // b >= 2:
            return b
    return 1


# --------------------------- deterministic params -----------------------------
def init_conv_params(key, oc, ic, kh, kw):
    kw_key, kb_key = jax.random.split(key)
    fan_in = ic * kh * kw
    bound = 1.0 / float(fan_in) ** 0.5  # matches PyTorch default Conv2d init bounds
    w = jax.random.uniform(kw_key, (oc, ic, kh, kw), jnp.float32, -bound, bound)
    b = jax.random.uniform(kb_key, (oc,), jnp.float32, -bound, bound)
    return w, b


def init_classifier_params(key, num_channels, ndf=64):
    keys = jax.random.split(key, 5)
    specs = [(ndf, num_channels), (ndf * 2, ndf), (ndf * 4, ndf * 2),
             (ndf * 8, ndf * 4), (1, ndf * 8)]
    return [init_conv_params(k, oc, ic, 4, 4) for k, (oc, ic) in zip(keys, specs)]


# --------------------------------- builder ------------------------------------
def build_classifier(params, in_h, in_w):
    cfgs = [(4, 2, 1), (4, 2, 1), (4, 1, 1), (4, 1, 1), (4, 1, 1)]
    geos = _layer_geometry(in_h, in_w, cfgs)
    cins = [w.shape[1] for (w, _) in params]

    # Pre-concatenated per-layer im2col weights (16*C_in, C_out), bf16, built ONCE.
    wcats, biases = [], []
    for (w, b) in params[:4]:
        oc, ic, kh, kw = w.shape
        wcats.append(jnp.transpose(w, (2, 3, 1, 0)).reshape(kh * kw * ic, oc)
                     .astype(jnp.bfloat16))
        biases.append(b.reshape(1, -1).astype(jnp.float32))

    w5, b5 = params[4]
    v_fold = jnp.asarray(_fold_conv5_pool(w5, geos[3], geos[4]), jnp.float32)
    b5r = jnp.asarray(b5, jnp.float32).reshape(1, 1)

    smats = [jnp.asarray(_scatter_from_valid(geos[0], geos[1]), jnp.bfloat16),
             jnp.asarray(_scatter_from_qspace(geos[1], geos[2]), jnp.bfloat16),
             jnp.asarray(_scatter_from_qspace(geos[2], geos[3]), jnp.bfloat16)]

    geom = tuple((geos[l]["wp"], geos[l]["q"], cins[l]) for l in (1, 2, 3))

    g0 = geos[0]
    m1 = g0["oh"] * g0["ow"]            # 64 valid layer-1 outputs
    k1 = KSIZE * KSIZE * cins[0]        # 64 = 16 taps * C_in

    def forward(x_nchw):
        n = x_nchw.shape[0]
        bb = _pick_block_batch(n)

        # The only per-call glue: NCHW->NHWC, pad, and layer-1 im2col (tiny, valid
        # positions only), cast once to bf16.
        x = jnp.transpose(x_nchw.astype(jnp.float32), (0, 2, 3, 1))
        xp = jnp.pad(x, ((0, 0), (g0["p"], g0["p"]), (g0["p"], g0["p"]), (0, 0)))
        s0 = g0["s"]
        taps = [xp[:, ki:ki + s0 * (g0["oh"] - 1) + 1:s0,
                   kj:kj + s0 * (g0["ow"] - 1) + 1:s0, :]
                for ki in range(KSIZE) for kj in range(KSIZE)]
        patches = jnp.stack(taps, axis=3).reshape(n, m1, k1).astype(jnp.bfloat16)

        in_specs = [pl.BlockSpec((bb, m1, k1), lambda i: (i, 0, 0))]
        in_specs += [pl.BlockSpec(w.shape, lambda i: (0, 0)) for w in wcats]
        in_specs += [pl.BlockSpec(b.shape, lambda i: (0, 0)) for b in biases]
        in_specs += [pl.BlockSpec(s.shape, lambda i: (0, 0)) for s in smats]
        in_specs += [pl.BlockSpec(v_fold.shape, lambda i: (0, 0)),
                     pl.BlockSpec(b5r.shape, lambda i: (0, 0))]

        scratch = [
            pltpu.VMEM((geos[1]["rows"], cins[1]), jnp.bfloat16),           # x2 (100, 64)
            pltpu.VMEM((geos[1]["q"], KSIZE * KSIZE * cins[1]), jnp.bfloat16),  # p2 (67,1024)
            pltpu.VMEM((geos[2]["rows"], cins[2]), jnp.bfloat16),           # x3 (36, 128)
            pltpu.VMEM((geos[2]["q"], KSIZE * KSIZE * cins[2]), jnp.bfloat16),  # p3 (15,2048)
            pltpu.VMEM((geos[3]["rows"], cins[3]), jnp.bfloat16),           # x4 (25, 256)
            pltpu.VMEM((geos[3]["q"], KSIZE * KSIZE * cins[3]), jnp.bfloat16),  # p4 (7,4096)
        ]

        out3 = pl.pallas_call(
            functools.partial(_classifier_kernel, geom, bb),
            out_shape=jax.ShapeDtypeStruct((n, 1, 1), jnp.float32),
            grid=(n // bb,),
            in_specs=in_specs,
            out_specs=pl.BlockSpec((bb, 1, 1), lambda i: (i, 0, 0)),
            scratch_shapes=scratch,
            compiler_params=pltpu.CompilerParams(
                dimension_semantics=("parallel",),
                vmem_limit_bytes=32 * 1024 * 1024),
        )(patches, *wcats, *biases, *smats, v_fold, b5r)
        return out3.reshape(n, 1)

    return jax.jit(forward)


# ------------------------- pure-JAX reference (check) --------------------------
def reference_forward(params, x_nchw):
    x = x_nchw.astype(jnp.float32)
    strides = [2, 2, 1, 1, 1]
    for idx, (w, b) in enumerate(params):
        x = jax.lax.conv_general_dilated(
            x, w, window_strides=(strides[idx], strides[idx]),
            padding=[(1, 1), (1, 1)],
            dimension_numbers=("NCHW", "OIHW", "NCHW"),
            precision=jax.lax.Precision.HIGHEST)
        x = x + b.reshape(1, -1, 1, 1)
        if idx < 4:
            x = jnp.where(x >= 0, x, NEG_SLOPE * x)
    n = x.shape[0]
    return jnp.mean(x.reshape(n, x.shape[1], -1), axis=2)


if __name__ == "__main__":
    key = jax.random.PRNGKey(0)
    pkey, xkey = jax.random.split(key)
    num_channels, ndf = 4, 64
    params = init_classifier_params(pkey, num_channels, ndf)
    x = jax.random.normal(xkey, (2, num_channels, 16, 16), jnp.float32)

    forward = build_classifier(params, 16, 16)
    out = jax.block_until_ready(forward(x))
    ref = jax.block_until_ready(reference_forward(params, x))

    assert out.shape == (2, 1), out.shape
    assert bool(jnp.all(jnp.isfinite(out)))
    # bf16 MXU operands with f32 accumulation -> compare against the f32 reference.
    assert bool(jnp.allclose(out, ref, rtol=2e-2, atol=2e-2)), (out, ref)
    print("KERNEL_OK")
</pallas_src>

<mosaic_0001>
module attributes {stable_mosaic.version = 11 : i64} {
  func.func @_classifier_kernel(%arg0: i32, %arg1: memref<1x64x64xbf16, #tpu.memory_space<vmem>>, %arg2: memref<64x64xbf16, #tpu.memory_space<vmem>>, %arg3: memref<1024x128xbf16, #tpu.memory_space<vmem>>, %arg4: memref<2048x256xbf16, #tpu.memory_space<vmem>>, %arg5: memref<4096x512xbf16, #tpu.memory_space<vmem>>, %arg6: memref<1x64xf32, #tpu.memory_space<vmem>>, %arg7: memref<1x128xf32, #tpu.memory_space<vmem>>, %arg8: memref<1x256xf32, #tpu.memory_space<vmem>>, %arg9: memref<1x512xf32, #tpu.memory_space<vmem>>, %arg10: memref<100x64xbf16, #tpu.memory_space<vmem>>, %arg11: memref<36x67xbf16, #tpu.memory_space<vmem>>, %arg12: memref<25x15xbf16, #tpu.memory_space<vmem>>, %arg13: memref<7x512xf32, #tpu.memory_space<vmem>>, %arg14: memref<1x1xf32, #tpu.memory_space<vmem>>, %arg15: memref<1x1x1xf32, #tpu.memory_space<vmem>>, %arg16: memref<100x64xbf16, #tpu.memory_space<vmem>>, %arg17: memref<67x1024xbf16, #tpu.memory_space<vmem>>, %arg18: memref<36x128xbf16, #tpu.memory_space<vmem>>, %arg19: memref<15x2048xbf16, #tpu.memory_space<vmem>>, %arg20: memref<25x256xbf16, #tpu.memory_space<vmem>>, %arg21: memref<7x4096xbf16, #tpu.memory_space<vmem>>) attributes {dimension_semantics = [#tpu.dimension_semantics<parallel>], iteration_bounds = array<i64: 2>, scalar_prefetch = 0 : i64, scratch_operands = 6 : i64, tpu.core_type = #tpu.core_type<tc>, window_params = [{transform_indices = @transform_0, window_bounds = array<i64: 1, 64, 64>}, {pipeline_mode = #tpu.pipeline_mode<synchronous>, transform_indices = @transform_1, window_bounds = array<i64: 64, 64>}, {pipeline_mode = #tpu.pipeline_mode<synchronous>, transform_indices = @transform_2, window_bounds = array<i64: 1024, 128>}, {pipeline_mode = #tpu.pipeline_mode<synchronous>, transform_indices = @transform_3, window_bounds = array<i64: 2048, 256>}, {pipeline_mode = #tpu.pipeline_mode<synchronous>, transform_indices = @transform_4, window_bounds = array<i64: 4096, 512>}, {pipeline_mode = #tpu.pipeline_mode<synchronous>, transform_indices = @transform_5, window_bounds = array<i64: 1, 64>}, {pipeline_mode = #tpu.pipeline_mode<synchronous>, transform_indices = @transform_6, window_bounds = array<i64: 1, 128>}, {pipeline_mode = #tpu.pipeline_mode<synchronous>, transform_indices = @transform_7, window_bounds = array<i64: 1, 256>}, {pipeline_mode = #tpu.pipeline_mode<synchronous>, transform_indices = @transform_8, window_bounds = array<i64: 1, 512>}, {pipeline_mode = #tpu.pipeline_mode<synchronous>, transform_indices = @transform_9, window_bounds = array<i64: 100, 64>}, {pipeline_mode = #tpu.pipeline_mode<synchronous>, transform_indices = @transform_10, window_bounds = array<i64: 36, 67>}, {pipeline_mode = #tpu.pipeline_mode<synchronous>, transform_indices = @transform_11, window_bounds = array<i64: 25, 15>}, {pipeline_mode = #tpu.pipeline_mode<synchronous>, transform_indices = @transform_12, window_bounds = array<i64: 7, 512>}, {pipeline_mode = #tpu.pipeline_mode<synchronous>, transform_indices = @transform_13, window_bounds = array<i64: 1, 1>}, {transform_indices = @transform_14, window_bounds = array<i64: 1, 1, 1>}]} {
    %c0 = arith.constant 0 : index
    %c0_0 = arith.constant 0 : index
    %c0_1 = arith.constant 0 : index
    %0 = vector.load %arg1[%c0, %c0_0, %c0_1] : memref<1x64x64xbf16, #tpu.memory_space<vmem>>, vector<1x64x64xbf16>
    %1 = vector.shape_cast %0 : vector<1x64x64xbf16> to vector<64x64xbf16>
    %c0_2 = arith.constant 0 : index
    %c0_3 = arith.constant 0 : index
    %2 = vector.load %arg2[%c0_2, %c0_3] : memref<64x64xbf16, #tpu.memory_space<vmem>>, vector<64x64xbf16>
    %cst = arith.constant dense<0.000000e+00> : vector<64x64xf32>
    %3 = tpu.matmul %1, %2, %cst {dimension_numbers = #tpu.dot_dimension_numbers<[1], [0], [0], [1], [0, 0, 1, 1], [], []>} : vector<64x64xbf16>, vector<64x64xbf16>, vector<64x64xf32> -> vector<64x64xf32>
    %c0_4 = arith.constant 0 : index
    %c0_5 = arith.constant 0 : index
    %4 = vector.load %arg6[%c0_4, %c0_5] : memref<1x64xf32, #tpu.memory_space<vmem>>, vector<1x64xf32>
    %5 = vector.broadcast %4 : vector<1x64xf32> to vector<64x64xf32>
    %6 = arith.addf %3, %5 : vector<64x64xf32>
    %cst_6 = arith.constant 0.000000e+00 : f32
    %7 = vector.broadcast %cst_6 : f32 to vector<64x64xf32>
    %8 = arith.cmpf oge, %6, %7 : vector<64x64xf32>
    %cst_7 = arith.constant 2.000000e-01 : f32
    %9 = vector.broadcast %cst_7 : f32 to vector<64x64xf32>
    %10 = arith.mulf %9, %6 : vector<64x64xf32>
    %11 = arith.select %8, %6, %10 : vector<64x64xi1>, vector<64x64xf32>
    %c0_8 = arith.constant 0 : index
    %c0_9 = arith.constant 0 : index
    %12 = vector.load %arg10[%c0_8, %c0_9] : memref<100x64xbf16, #tpu.memory_space<vmem>>, vector<100x64xbf16>
    %13 = arith.truncf %11 : vector<64x64xf32> to vector<64x64xbf16>
    %cst_10 = arith.constant dense<0.000000e+00> : vector<100x64xf32>
    %14 = tpu.matmul %12, %13, %cst_10 {dimension_numbers = #tpu.dot_dimension_numbers<[1], [0], [0], [1], [0, 0, 1, 1], [], []>} : vector<100x64xbf16>, vector<64x64xbf16>, vector<100x64xf32> -> vector<100x64xf32>
    %15 = arith.truncf %14 : vector<100x64xf32> to vector<100x64xbf16>
    %c0_11 = arith.constant 0 : index
    %c0_12 = arith.constant 0 : index
    %16 = vector.load %arg16[%c0_11, %c0_12] : memref<100x64xbf16, #tpu.memory_space<vmem>>, vector<100x64xbf16>
    tpu.vector_store %arg16[%c0_11, %c0_12], %15 {strides = array<i32>} : memref<100x64xbf16, #tpu.memory_space<vmem>>, vector<100x64xbf16>,
    %c0_13 = arith.constant 0 : index
    %c0_14 = arith.constant 0 : index
    %17 = vector.load %arg16[%c0_13, %c0_14] : memref<100x64xbf16, #tpu.memory_space<vmem>>, vector<67x64xbf16>
    %c0_15 = arith.constant 0 : index
    %c0_16 = arith.constant 0 : index
    %18 = vector.load %arg17[%c0_15, %c0_16] : memref<67x1024xbf16, #tpu.memory_space<vmem>>, vector<67x64xbf16>
    tpu.vector_store %arg17[%c0_15, %c0_16], %17 {strides = array<i32>} : memref<67x1024xbf16, #tpu.memory_space<vmem>>, vector<67x64xbf16>,
    %c1 = arith.constant 1 : index
    %c0_17 = arith.constant 0 : index
    %19 = vector.load %arg16[%c1, %c0_17] : memref<100x64xbf16, #tpu.memory_space<vmem>>, vector<67x64xbf16>
    %c0_18 = arith.constant 0 : index
    %c64 = arith.constant 64 : index
    %20 = vector.load %arg17[%c0_18, %c64] : memref<67x1024xbf16, #tpu.memory_space<vmem>>, vector<67x64xbf16>
    tpu.vector_store %arg17[%c0_18, %c64], %19 {strides = array<i32>} : memref<67x1024xbf16, #tpu.memory_space<vmem>>, vector<67x64xbf16>,
    %c2 = arith.constant 2 : index
    %c0_19 = arith.constant 0 : index
    %21 = vector.load %arg16[%c2, %c0_19] : memref<100x64xbf16, #tpu.memory_space<vmem>>, vector<67x64xbf16>
    %c0_20 = arith.constant 0 : index
    %c128 = arith.constant 128 : index
    %22 = vector.load %arg17[%c0_20, %c128] : memref<67x1024xbf16, #tpu.memory_space<vmem>>, vector<67x64xbf16>
    tpu.vector_store %arg17[%c0_20, %c128], %21 {strides = array<i32>} : memref<67x1024xbf16, #tpu.memory_space<vmem>>, vector<67x64xbf16>,
    %c3 = arith.constant 3 : index
    %c0_21 = arith.constant 0 : index
    %23 = vector.load %arg16[%c3, %c0_21] : memref<100x64xbf16, #tpu.memory_space<vmem>>, vector<67x64xbf16>
    %c0_22 = arith.constant 0 : index
    %c192 = arith.constant 192 : index
    %24 = vector.load %arg17[%c0_22, %c192] : memref<67x1024xbf16, #tpu.memory_space<vmem>>, vector<67x64xbf16>
    tpu.vector_store %arg17[%c0_22, %c192], %23 {strides = array<i32>} : memref<67x1024xbf16, #tpu.memory_space<vmem>>, vector<67x64xbf16>,
    %c10 = arith.constant 10 : index
    %c0_23 = arith.constant 0 : index
    %25 = vector.load %arg16[%c10, %c0_23] : memref<100x64xbf16, #tpu.memory_space<vmem>>, vector<67x64xbf16>
    %c0_24 = arith.constant 0 : index
    %c256 = arith.constant 256 : index
    %26 = vector.load %arg17[%c0_24, %c256] : memref<67x1024xbf16, #tpu.memory_space<vmem>>, vector<67x64xbf16>
    tpu.vector_store %arg17[%c0_24, %c256], %25 {strides = array<i32>} : memref<67x1024xbf16, #tpu.memory_space<vmem>>, vector<67x64xbf16>,
    %c11 = arith.constant 11 : index
    %c0_25 = arith.constant 0 : index
    %27 = vector.load %arg16[%c11, %c0_25] : memref<100x64xbf16, #tpu.memory_space<vmem>>, vector<67x64xbf16>
    %c0_26 = arith.constant 0 : index
    %c320 = arith.constant 320 : index
    %28 = vector.load %arg17[%c0_26, %c320] : memref<67x1024xbf16, #tpu.memory_space<vmem>>, vector<67x64xbf16>
    tpu.vector_store %arg17[%c0_26, %c320], %27 {strides = array<i32>} : memref<67x1024xbf16, #tpu.memory_space<vmem>>, vector<67x64xbf16>,
    %c12 = arith.constant 12 : index
    %c0_27 = arith.constant 0 : index
    %29 = vector.load %arg16[%c12, %c0_27] : memref<100x64xbf16, #tpu.memory_space<vmem>>, vector<67x64xbf16>
    %c0_28 = arith.constant 0 : index
    %c384 = arith.constant 384 : index
    %30 = vector.load %arg17[%c0_28, %c384] : memref<67x1024xbf16, #tpu.memory_space<vmem>>, vector<67x64xbf16>
    tpu.vector_store %arg17[%c0_28, %c384], %29 {strides = array<i32>} : memref<67x1024xbf16, #tpu.memory_space<vmem>>, vector<67x64xbf16>,
    %c13 = arith.constant 13 : index
    %c0_29 = arith.constant 0 : index
    %31 = vector.load %arg16[%c13, %c0_29] : memref<100x64xbf16, #tpu.memory_space<vmem>>, vector<67x64xbf16>
    %c0_30 = arith.constant 0 : index
    %c448 = arith.constant 448 : index
    %32 = vector.load %arg17[%c0_30, %c448] : memref<67x1024xbf16, #tpu.memory_space<vmem>>, vector<67x64xbf16>
    tpu.vector_store %arg17[%c0_30, %c448], %31 {strides = array<i32>} : memref<67x1024xbf16, #tpu.memory_space<vmem>>, vector<67x64xbf16>,
    %c20 = arith.constant 20 : index
    %c0_31 = arith.constant 0 : index
    %33 = vector.load %arg16[%c20, %c0_31] : memref<100x64xbf16, #tpu.memory_space<vmem>>, vector<67x64xbf16>
    %c0_32 = arith.constant 0 : index
    %c512 = arith.constant 512 : index
    %34 = vector.load %arg17[%c0_32, %c512] : memref<67x1024xbf16, #tpu.memory_space<vmem>>, vector<67x64xbf16>
    tpu.vector_store %arg17[%c0_32, %c512], %33 {strides = array<i32>} : memref<67x1024xbf16, #tpu.memory_space<vmem>>, vector<67x64xbf16>,
    %c21 = arith.constant 21 : index
    %c0_33 = arith.constant 0 : index
    %35 = vector.load %arg16[%c21, %c0_33] : memref<100x64xbf16, #tpu.memory_space<vmem>>, vector<67x64xbf16>
    %c0_34 = arith.constant 0 : index
    %c576 = arith.constant 576 : index
    %36 = vector.load %arg17[%c0_34, %c576] : memref<67x1024xbf16, #tpu.memory_space<vmem>>, vector<67x64xbf16>
    tpu.vector_store %arg17[%c0_34, %c576], %35 {strides = array<i32>} : memref<67x1024xbf16, #tpu.memory_space<vmem>>, vector<67x64xbf16>,
    %c22 = arith.constant 22 : index
    %c0_35 = arith.constant 0 : index
    %37 = vector.load %arg16[%c22, %c0_35] : memref<100x64xbf16, #tpu.memory_space<vmem>>, vector<67x64xbf16>
    %c0_36 = arith.constant 0 : index
    %c640 = arith.constant 640 : index
    %38 = vector.load %arg17[%c0_36, %c640] : memref<67x1024xbf16, #tpu.memory_space<vmem>>, vector<67x64xbf16>
    tpu.vector_store %arg17[%c0_36, %c640], %37 {strides = array<i32>} : memref<67x1024xbf16, #tpu.memory_space<vmem>>, vector<67x64xbf16>,
    %c23 = arith.constant 23 : index
    %c0_37 = arith.constant 0 : index
    %39 = vector.load %arg16[%c23, %c0_37] : memref<100x64xbf16, #tpu.memory_space<vmem>>, vector<67x64xbf16>
    %c0_38 = arith.constant 0 : index
    %c704 = arith.constant 704 : index
    %40 = vector.load %arg17[%c0_38, %c704] : memref<67x1024xbf16, #tpu.memory_space<vmem>>, vector<67x64xbf16>
    tpu.vector_store %arg17[%c0_38, %c704], %39 {strides = array<i32>} : memref<67x1024xbf16, #tpu.memory_space<vmem>>, vector<67x64xbf16>,
    %c30 = arith.constant 30 : index
    %c0_39 = arith.constant 0 : index
    %41 = vector.load %arg16[%c30, %c0_39] : memref<100x64xbf16, #tpu.memory_space<vmem>>, vector<67x64xbf16>
    %c0_40 = arith.constant 0 : index
    %c768 = arith.constant 768 : index
    %42 = vector.load %arg17[%c0_40, %c768] : memref<67x1024xbf16, #tpu.memory_space<vmem>>, vector<67x64xbf16>
    tpu.vector_store %arg17[%c0_40, %c768], %41 {strides = array<i32>} : memref<67x1024xbf16, #tpu.memory_space<vmem>>, vector<67x64xbf16>,
    %c31 = arith.constant 31 : index
    %c0_41 = arith.constant 0 : index
    %43 = vector.load %arg16[%c31, %c0_41] : memref<100x64xbf16, #tpu.memory_space<vmem>>, vector<67x64xbf16>
    %c0_42 = arith.constant 0 : index
    %c832 = arith.constant 832 : index
    %44 = vector.load %arg17[%c0_42, %c832] : memref<67x1024xbf16, #tpu.memory_space<vmem>>, vector<67x64xbf16>
    tpu.vector_store %arg17[%c0_42, %c832], %43 {strides = array<i32>} : memref<67x1024xbf16, #tpu.memory_space<vmem>>, vector<67x64xbf16>,
    %c32 = arith.constant 32 : index
    %c0_43 = arith.constant 0 : index
    %45 = vector.load %arg16[%c32, %c0_43] : memref<100x64xbf16, #tpu.memory_space<vmem>>, vector<67x64xbf16>
    %c0_44 = arith.constant 0 : index
    %c896 = arith.constant 896 : index
    %46 = vector.load %arg17[%c0_44, %c896] : memref<67x1024xbf16, #tpu.memory_space<vmem>>, vector<67x64xbf16>
    tpu.vector_store %arg17[%c0_44, %c896], %45 {strides = array<i32>} : memref<67x1024xbf16, #tpu.memory_space<vmem>>, vector<67x64xbf16>,
    %c33 = arith.constant 33 : index
    %c0_45 = arith.constant 0 : index
    %47 = vector.load %arg16[%c33, %c0_45] : memref<100x64xbf16, #tpu.memory_space<vmem>>, vector<67x64xbf16>
    %c0_46 = arith.constant 0 : index
    %c960 = arith.constant 960 : index
    %48 = vector.load %arg17[%c0_46, %c960] : memref<67x1024xbf16, #tpu.memory_space<vmem>>, vector<67x64xbf16>
    tpu.vector_store %arg17[%c0_46, %c960], %47 {strides = array<i32>} : memref<67x1024xbf16, #tpu.memory_space<vmem>>, vector<67x64xbf16>,
    %c0_47 = arith.constant 0 : index
    %c0_48 = arith.constant 0 : index
    %49 = vector.load %arg17[%c0_47, %c0_48] : memref<67x1024xbf16, #tpu.memory_space<vmem>>, vector<67x1024xbf16>
    %c0_49 = arith.constant 0 : index
    %c0_50 = arith.constant 0 : index
    %50 = vector.load %arg3[%c0_49, %c0_50] : memref<1024x128xbf16, #tpu.memory_space<vmem>>, vector<1024x128xbf16>
    %cst_51 = arith.constant dense<0.000000e+00> : vector<67x128xf32>
    %51 = tpu.matmul %49, %50, %cst_51 {dimension_numbers = #tpu.dot_dimension_numbers<[1], [0], [0], [1], [0, 0, 1, 1], [], []>} : vector<67x1024xbf16>, vector<1024x128xbf16>, vector<67x128xf32> -> vector<67x128xf32>
    %c0_52 = arith.constant 0 : index
    %c0_53 = arith.constant 0 : index
    %52 = vector.load %arg7[%c0_52, %c0_53] : memref<1x128xf32, #tpu.memory_space<vmem>>, vector<1x128xf32>
    %53 = vector.broadcast %52 : vector<1x128xf32> to vector<67x128xf32>
    %54 = arith.addf %51, %53 : vector<67x128xf32>
    %cst_54 = arith.constant 0.000000e+00 : f32
    %55 = vector.broadcast %cst_54 : f32 to vector<67x128xf32>
    %56 = arith.cmpf oge, %54, %55 : vector<67x128xf32>
    %cst_55 = arith.constant 2.000000e-01 : f32
    %57 = vector.broadcast %cst_55 : f32 to vector<67x128xf32>
    %58 = arith.mulf %57, %54 : vector<67x128xf32>
    %59 = arith.select %56, %54, %58 : vector<67x128xi1>, vector<67x128xf32>
    %c0_56 = arith.constant 0 : index
    %c0_57 = arith.constant 0 : index
    %60 = vector.load %arg11[%c0_56, %c0_57] : memref<36x67xbf16, #tpu.memory_space<vmem>>, vector<36x67xbf16>
    %61 = arith.truncf %59 : vector<67x128xf32> to vector<67x128xbf16>
    %cst_58 = arith.constant dense<0.000000e+00> : vector<36x128xf32>
    %62 = tpu.matmul %60, %61, %cst_58 {dimension_numbers = #tpu.dot_dimension_numbers<[1], [0], [0], [1], [0, 0, 1, 1], [], []>} : vector<36x67xbf16>, vector<67x128xbf16>, vector<36x128xf32> -> vector<36x128xf32>
    %63 = arith.truncf %62 : vector<36x128xf32> to vector<36x128xbf16>
    %c0_59 = arith.constant 0 : index
    %c0_60 = arith.constant 0 : index
    %64 = vector.load %arg18[%c0_59, %c0_60] : memref<36x128xbf16, #tpu.memory_space<vmem>>, vector<36x128xbf16>
    tpu.vector_store %arg18[%c0_59, %c0_60], %63 {strides = array<i32>} : memref<36x128xbf16, #tpu.memory_space<vmem>>, vector<36x128xbf16>,
    %c0_61 = arith.constant 0 : index
    %c0_62 = arith.constant 0 : index
    %65 = vector.load %arg18[%c0_61, %c0_62] : memref<36x128xbf16, #tpu.memory_space<vmem>>, vector<15x128xbf16>
    %c0_63 = arith.constant 0 : index
    %c0_64 = arith.constant 0 : index
    %66 = vector.load %arg19[%c0_63, %c0_64] : memref<15x2048xbf16, #tpu.memory_space<vmem>>, vector<15x128xbf16>
    tpu.vector_store %arg19[%c0_63, %c0_64], %65 {strides = array<i32>} : memref<15x2048xbf16, #tpu.memory_space<vmem>>, vector<15x128xbf16>,
    %c1_65 = arith.constant 1 : index
    %c0_66 = arith.constant 0 : index
    %67 = vector.load %arg18[%c1_65, %c0_66] : memref<36x128xbf16, #tpu.memory_space<vmem>>, vector<15x128xbf16>
    %c0_67 = arith.constant 0 : index
    %c128_68 = arith.constant 128 : index
    %68 = vector.load %arg19[%c0_67, %c128_68] : memref<15x2048xbf16, #tpu.memory_space<vmem>>, vector<15x128xbf16>
    tpu.vector_store %arg19[%c0_67, %c128_68], %67 {strides = array<i32>} : memref<15x2048xbf16, #tpu.memory_space<vmem>>, vector<15x128xbf16>,
    %c2_69 = arith.constant 2 : index
    %c0_70 = arith.constant 0 : index
    %69 = vector.load %arg18[%c2_69, %c0_70] : memref<36x128xbf16, #tpu.memory_space<vmem>>, vector<15x128xbf16>
    %c0_71 = arith.constant 0 : index
    %c256_72 = arith.constant 256 : index
    %70 = vector.load %arg19[%c0_71, %c256_72] : memref<15x2048xbf16, #tpu.memory_space<vmem>>, vector<15x128xbf16>
    tpu.vector_store %arg19[%c0_71, %c256_72], %69 {strides = array<i32>} : memref<15x2048xbf16, #tpu.memory_space<vmem>>, vector<15x128xbf16>,
    %c3_73 = arith.constant 3 : index
    %c0_74 = arith.constant 0 : index
    %71 = vector.load %arg18[%c3_73, %c0_74] : memref<36x128xbf16, #tpu.memory_space<vmem>>, vector<15x128xbf16>
    %c0_75 = arith.constant 0 : index
    %c384_76 = arith.constant 384 : index
    %72 = vector.load %arg19[%c0_75, %c384_76] : memref<15x2048xbf16, #tpu.memory_space<vmem>>, vector<15x128xbf16>
    tpu.vector_store %arg19[%c0_75, %c384_76], %71 {strides = array<i32>} : memref<15x2048xbf16, #tpu.memory_space<vmem>>, vector<15x128xbf16>,
    %c6 = arith.constant 6 : index
    %c0_77 = arith.constant 0 : index
    %73 = vector.load %arg18[%c6, %c0_77] : memref<36x128xbf16, #tpu.memory_space<vmem>>, vector<15x128xbf16>
    %c0_78 = arith.constant 0 : index
    %c512_79 = arith.constant 512 : index
    %74 = vector.load %arg19[%c0_78, %c512_79] : memref<15x2048xbf16, #tpu.memory_space<vmem>>, vector<15x128xbf16>
    tpu.vector_store %arg19[%c0_78, %c512_79], %73 {strides = array<i32>} : memref<15x2048xbf16, #tpu.memory_space<vmem>>, vector<15x128xbf16>,
    %c7 = arith.constant 7 : index
    %c0_80 = arith.constant 0 : index
    %75 = vector.load %arg18[%c7, %c0_80] : memref<36x128xbf16, #tpu.memory_space<vmem>>, vector<15x128xbf16>
    %c0_81 = arith.constant 0 : index
    %c640_82 = arith.constant 640 : index
    %76 = vector.load %arg19[%c0_81, %c640_82] : memref<15x2048xbf16, #tpu.memory_space<vmem>>, vector<15x128xbf16>
    tpu.vector_store %arg19[%c0_81, %c640_82], %75 {strides = array<i32>} : memref<15x2048xbf16, #tpu.memory_space<vmem>>, vector<15x128xbf16>,
    %c8 = arith.constant 8 : index
    %c0_83 = arith.constant 0 : index
    %77 = vector.load %arg18[%c8, %c0_83] : memref<36x128xbf16, #tpu.memory_space<vmem>>, vector<15x128xbf16>
    %c0_84 = arith.constant 0 : index
    %c768_85 = arith.constant 768 : index
    %78 = vector.load %arg19[%c0_84, %c768_85] : memref<15x2048xbf16, #tpu.memory_space<vmem>>, vector<15x128xbf16>
    tpu.vector_store %arg19[%c0_84, %c768_85], %77 {strides = array<i32>} : memref<15x2048xbf16, #tpu.memory_space<vmem>>, vector<15x128xbf16>,
    %c9 = arith.constant 9 : index
    %c0_86 = arith.constant 0 : index
    %79 = vector.load %arg18[%c9, %c0_86] : memref<36x128xbf16, #tpu.memory_space<vmem>>, vector<15x128xbf16>
    %c0_87 = arith.constant 0 : index
    %c896_88 = arith.constant 896 : index
    %80 = vector.load %arg19[%c0_87, %c896_88] : memref<15x2048xbf16, #tpu.memory_space<vmem>>, vector<15x128xbf16>
    tpu.vector_store %arg19[%c0_87, %c896_88], %79 {strides = array<i32>} : memref<15x2048xbf16, #tpu.memory_space<vmem>>, vector<15x128xbf16>,
    %c12_89 = arith.constant 12 : index
    %c0_90 = arith.constant 0 : index
    %81 = vector.load %arg18[%c12_89, %c0_90] : memref<36x128xbf16, #tpu.memory_space<vmem>>, vector<15x128xbf16>
    %c0_91 = arith.constant 0 : index
    %c1024 = arith.constant 1024 : index
    %82 = vector.load %arg19[%c0_91, %c1024] : memref<15x2048xbf16, #tpu.memory_space<vmem>>, vector<15x128xbf16>
    tpu.vector_store %arg19[%c0_91, %c1024], %81 {strides = array<i32>} : memref<15x2048xbf16, #tpu.memory_space<vmem>>, vector<15x128xbf16>,
    %c13_92 = arith.constant 13 : index
    %c0_93 = arith.constant 0 : index
    %83 = vector.load %arg18[%c13_92, %c0_93] : memref<36x128xbf16, #tpu.memory_space<vmem>>, vector<15x128xbf16>
    %c0_94 = arith.constant 0 : index
    %c1152 = arith.constant 1152 : index
    %84 = vector.load %arg19[%c0_94, %c1152] : memref<15x2048xbf16, #tpu.memory_space<vmem>>, vector<15x128xbf16>
    tpu.vector_store %arg19[%c0_94, %c1152], %83 {strides = array<i32>} : memref<15x2048xbf16, #tpu.memory_space<vmem>>, vector<15x128xbf16>,
    %c14 = arith.constant 14 : index
    %c0_95 = arith.constant 0 : index
    %85 = vector.load %arg18[%c14, %c0_95] : memref<36x128xbf16, #tpu.memory_space<vmem>>, vector<15x128xbf16>
    %c0_96 = arith.constant 0 : index
    %c1280 = arith.constant 1280 : index
    %86 = vector.load %arg19[%c0_96, %c1280] : memref<15x2048xbf16, #tpu.memory_space<vmem>>, vector<15x128xbf16>
    tpu.vector_store %arg19[%c0_96, %c1280], %85 {strides = array<i32>} : memref<15x2048xbf16, #tpu.memory_space<vmem>>, vector<15x128xbf16>,
    %c15 = arith.constant 15 : index
    %c0_97 = arith.constant 0 : index
    %87 = vector.load %arg18[%c15, %c0_97] : memref<36x128xbf16, #tpu.memory_space<vmem>>, vector<15x128xbf16>
    %c0_98 = arith.constant 0 : index
    %c1408 = arith.constant 1408 : index
    %88 = vector.load %arg19[%c0_98, %c1408] : memref<15x2048xbf16, #tpu.memory_space<vmem>>, vector<15x128xbf16>
    tpu.vector_store %arg19[%c0_98, %c1408], %87 {strides = array<i32>} : memref<15x2048xbf16, #tpu.memory_space<vmem>>, vector<15x128xbf16>,
    %c18 = arith.constant 18 : index
    %c0_99 = arith.constant 0 : index
    %89 = vector.load %arg18[%c18, %c0_99] : memref<36x128xbf16, #tpu.memory_space<vmem>>, vector<15x128xbf16>
    %c0_100 = arith.constant 0 : index
    %c1536 = arith.constant 1536 : index
    %90 = vector.load %arg19[%c0_100, %c1536] : memref<15x2048xbf16, #tpu.memory_space<vmem>>, vector<15x128xbf16>
    tpu.vector_store %arg19[%c0_100, %c1536], %89 {strides = array<i32>} : memref<15x2048xbf16, #tpu.memory_space<vmem>>, vector<15x128xbf16>,
    %c19 = arith.constant 19 : index
    %c0_101 = arith.constant 0 : index
    %91 = vector.load %arg18[%c19, %c0_101] : memref<36x128xbf16, #tpu.memory_space<vmem>>, vector<15x128xbf16>
    %c0_102 = arith.constant 0 : index
    %c1664 = arith.constant 1664 : index
    %92 = vector.load %arg19[%c0_102, %c1664] : memref<15x2048xbf16, #tpu.memory_space<vmem>>, vector<15x128xbf16>
    tpu.vector_store %arg19[%c0_102, %c1664], %91 {strides = array<i32>} : memref<15x2048xbf16, #tpu.memory_space<vmem>>, vector<15x128xbf16>,
    %c20_103 = arith.constant 20 : index
    %c0_104 = arith.constant 0 : index
    %93 = vector.load %arg18[%c20_103, %c0_104] : memref<36x128xbf16, #tpu.memory_space<vmem>>, vector<15x128xbf16>
    %c0_105 = arith.constant 0 : index
    %c1792 = arith.constant 1792 : index
    %94 = vector.load %arg19[%c0_105, %c1792] : memref<15x2048xbf16, #tpu.memory_space<vmem>>, vector<15x128xbf16>
    tpu.vector_store %arg19[%c0_105, %c1792], %93 {strides = array<i32>} : memref<15x2048xbf16, #tpu.memory_space<vmem>>, vector<15x128xbf16>,
    %c21_106 = arith.constant 21 : index
    %c0_107 = arith.constant 0 : index
    %95 = vector.load %arg18[%c21_106, %c0_107] : memref<36x128xbf16, #tpu.memory_space<vmem>>, vector<15x128xbf16>
    %c0_108 = arith.constant 0 : index
    %c1920 = arith.constant 1920 : index
    %96 = vector.load %arg19[%c0_108, %c1920] : memref<15x2048xbf16, #tpu.memory_space<vmem>>, vector<15x128xbf16>
    tpu.vector_store %arg19[%c0_108, %c1920], %95 {strides = array<i32>} : memref<15x2048xbf16, #tpu.memory_space<vmem>>, vector<15x128xbf16>,
    %c0_109 = arith.constant 0 : index
    %c0_110 = arith.constant 0 : index
    %97 = vector.load %arg19[%c0_109, %c0_110] : memref<15x2048xbf16, #tpu.memory_space<vmem>>, vector<15x2048xbf16>
    %c0_111 = arith.constant 0 : index
    %c0_112 = arith.constant 0 : index
    %98 = vector.load %arg4[%c0_111, %c0_112] : memref<2048x256xbf16, #tpu.memory_space<vmem>>, vector<2048x256xbf16>
    %cst_113 = arith.constant dense<0.000000e+00> : vector<15x256xf32>
    %99 = tpu.matmul %97, %98, %cst_113 {dimension_numbers = #tpu.dot_dimension_numbers<[1], [0], [0], [1], [0, 0, 1, 1], [], []>} : vector<15x2048xbf16>, vector<2048x256xbf16>, vector<15x256xf32> -> vector<15x256xf32>
    %c0_114 = arith.constant 0 : index
    %c0_115 = arith.constant 0 : index
    %100 = vector.load %arg8[%c0_114, %c0_115] : memref<1x256xf32, #tpu.memory_space<vmem>>, vector<1x256xf32>
    %101 = vector.broadcast %100 : vector<1x256xf32> to vector<15x256xf32>
    %102 = arith.addf %99, %101 : vector<15x256xf32>
    %cst_116 = arith.constant 0.000000e+00 : f32
    %103 = vector.broadcast %cst_116 : f32 to vector<15x256xf32>
    %104 = arith.cmpf oge, %102, %103 : vector<15x256xf32>
    %cst_117 = arith.constant 2.000000e-01 : f32
    %105 = vector.broadcast %cst_117 : f32 to vector<15x256xf32>
    %106 = arith.mulf %105, %102 : vector<15x256xf32>
    %107 = arith.select %104, %102, %106 : vector<15x256xi1>, vector<15x256xf32>
    %c0_118 = arith.constant 0 : index
    %c0_119 = arith.constant 0 : index
    %108 = vector.load %arg12[%c0_118, %c0_119] : memref<25x15xbf16, #tpu.memory_space<vmem>>, vector<25x15xbf16>
    %109 = arith.truncf %107 : vector<15x256xf32> to vector<15x256xbf16>
    %cst_120 = arith.constant dense<0.000000e+00> : vector<25x256xf32>
    %110 = tpu.matmul %108, %109, %cst_120 {dimension_numbers = #tpu.dot_dimension_numbers<[1], [0], [0], [1], [0, 0, 1, 1], [], []>} : vector<25x15xbf16>, vector<15x256xbf16>, vector<25x256xf32> -> vector<25x256xf32>
    %111 = arith.truncf %110 : vector<25x256xf32> to vector<25x256xbf16>
    %c0_121 = arith.constant 0 : index
    %c0_122 = arith.constant 0 : index
    %112 = vector.load %arg20[%c0_121, %c0_122] : memref<25x256xbf16, #tpu.memory_space<vmem>>, vector<25x256xbf16>
    tpu.vector_store %arg20[%c0_121, %c0_122], %111 {strides = array<i32>} : memref<25x256xbf16, #tpu.memory_space<vmem>>, vector<25x256xbf16>,
    %c0_123 = arith.constant 0 : index
    %c0_124 = arith.constant 0 : index
    %113 = vector.load %arg20[%c0_123, %c0_124] : memref<25x256xbf16, #tpu.memory_space<vmem>>, vector<7x256xbf16>
    %c0_125 = arith.constant 0 : index
    %c0_126 = arith.constant 0 : index
    %114 = vector.load %arg21[%c0_125, %c0_126] : memref<7x4096xbf16, #tpu.memory_space<vmem>>, vector<7x256xbf16>
    tpu.vector_store %arg21[%c0_125, %c0_126], %113 {strides = array<i32>} : memref<7x4096xbf16, #tpu.memory_space<vmem>>, vector<7x256xbf16>,
    %c1_127 = arith.constant 1 : index
    %c0_128 = arith.constant 0 : index
    %115 = vector.load %arg20[%c1_127, %c0_128] : memref<25x256xbf16, #tpu.memory_space<vmem>>, vector<7x256xbf16>
    %c0_129 = arith.constant 0 : index
    %c256_130 = arith.constant 256 : index
    %116 = vector.load %arg21[%c0_129, %c256_130] : memref<7x4096xbf16, #tpu.memory_space<vmem>>, vector<7x256xbf16>
    tpu.vector_store %arg21[%c0_129, %c256_130], %115 {strides = array<i32>} : memref<7x4096xbf16, #tpu.memory_space<vmem>>, vector<7x256xbf16>,
    %c2_131 = arith.constant 2 : index
    %c0_132 = arith.constant 0 : index
    %117 = vector.load %arg20[%c2_131, %c0_132] : memref<25x256xbf16, #tpu.memory_space<vmem>>, vector<7x256xbf16>
    %c0_133 = arith.constant 0 : index
    %c512_134 = arith.constant 512 : index
    %118 = vector.load %arg21[%c0_133, %c512_134] : memref<7x4096xbf16, #tpu.memory_space<vmem>>, vector<7x256xbf16>
    tpu.vector_store %arg21[%c0_133, %c512_134], %117 {strides = array<i32>} : memref<7x4096xbf16, #tpu.memory_space<vmem>>, vector<7x256xbf16>,
    %c3_135 = arith.constant 3 : index
    %c0_136 = arith.constant 0 : index
    %119 = vector.load %arg20[%c3_135, %c0_136] : memref<25x256xbf16, #tpu.memory_space<vmem>>, vector<7x256xbf16>
    %c0_137 = arith.constant 0 : index
    %c768_138 = arith.constant 768 : index
    %120 = vector.load %arg21[%c0_137, %c768_138] : memref<7x4096xbf16, #tpu.memory_space<vmem>>, vector<7x256xbf16>
    tpu.vector_store %arg21[%c0_137, %c768_138], %119 {strides = array<i32>} : memref<7x4096xbf16, #tpu.memory_space<vmem>>, vector<7x256xbf16>,
    %c5 = arith.constant 5 : index
    %c0_139 = arith.constant 0 : index
    %121 = vector.load %arg20[%c5, %c0_139] : memref<25x256xbf16, #tpu.memory_space<vmem>>, vector<7x256xbf16>
    %c0_140 = arith.constant 0 : index
    %c1024_141 = arith.constant 1024 : index
    %122 = vector.load %arg21[%c0_140, %c1024_141] : memref<7x4096xbf16, #tpu.memory_space<vmem>>, vector<7x256xbf16>
    tpu.vector_store %arg21[%c0_140, %c1024_141], %121 {strides = array<i32>} : memref<7x4096xbf16, #tpu.memory_space<vmem>>, vector<7x256xbf16>,
    %c6_142 = arith.constant 6 : index
    %c0_143 = arith.constant 0 : index
    %123 = vector.load %arg20[%c6_142, %c0_143] : memref<25x256xbf16, #tpu.memory_space<vmem>>, vector<7x256xbf16>
    %c0_144 = arith.constant 0 : index
    %c1280_145 = arith.constant 1280 : index
    %124 = vector.load %arg21[%c0_144, %c1280_145] : memref<7x4096xbf16, #tpu.memory_space<vmem>>, vector<7x256xbf16>
    tpu.vector_store %arg21[%c0_144, %c1280_145], %123 {strides = array<i32>} : memref<7x4096xbf16, #tpu.memory_space<vmem>>, vector<7x256xbf16>,
    %c7_146 = arith.constant 7 : index
    %c0_147 = arith.constant 0 : index
    %125 = vector.load %arg20[%c7_146, %c0_147] : memref<25x256xbf16, #tpu.memory_space<vmem>>, vector<7x256xbf16>
    %c0_148 = arith.constant 0 : index
    %c1536_149 = arith.constant 1536 : index
    %126 = vector.load %arg21[%c0_148, %c1536_149] : memref<7x4096xbf16, #tpu.memory_space<vmem>>, vector<7x256xbf16>
    tpu.vector_store %arg21[%c0_148, %c1536_149], %125 {strides = array<i32>} : memref<7x4096xbf16, #tpu.memory_space<vmem>>, vector<7x256xbf16>,
    %c8_150 = arith.constant 8 : index
    %c0_151 = arith.constant 0 : index
    %127 = vector.load %arg20[%c8_150, %c0_151] : memref<25x256xbf16, #tpu.memory_space<vmem>>, vector<7x256xbf16>
    %c0_152 = arith.constant 0 : index
    %c1792_153 = arith.constant 1792 : index
    %128 = vector.load %arg21[%c0_152, %c1792_153] : memref<7x4096xbf16, #tpu.memory_space<vmem>>, vector<7x256xbf16>
    tpu.vector_store %arg21[%c0_152, %c1792_153], %127 {strides = array<i32>} : memref<7x4096xbf16, #tpu.memory_space<vmem>>, vector<7x256xbf16>,
    %c10_154 = arith.constant 10 : index
    %c0_155 = arith.constant 0 : index
    %129 = vector.load %arg20[%c10_154, %c0_155] : memref<25x256xbf16, #tpu.memory_space<vmem>>, vector<7x256xbf16>
    %c0_156 = arith.constant 0 : index
    %c2048 = arith.constant 2048 : index
    %130 = vector.load %arg21[%c0_156, %c2048] : memref<7x4096xbf16, #tpu.memory_space<vmem>>, vector<7x256xbf16>
    tpu.vector_store %arg21[%c0_156, %c2048], %129 {strides = array<i32>} : memref<7x4096xbf16, #tpu.memory_space<vmem>>, vector<7x256xbf16>,
    %c11_157 = arith.constant 11 : index
    %c0_158 = arith.constant 0 : index
    %131 = vector.load %arg20[%c11_157, %c0_158] : memref<25x256xbf16, #tpu.memory_space<vmem>>, vector<7x256xbf16>
    %c0_159 = arith.constant 0 : index
    %c2304 = arith.constant 2304 : index
    %132 = vector.load %arg21[%c0_159, %c2304] : memref<7x4096xbf16, #tpu.memory_space<vmem>>, vector<7x256xbf16>
    tpu.vector_store %arg21[%c0_159, %c2304], %131 {strides = array<i32>} : memref<7x4096xbf16, #tpu.memory_space<vmem>>, vector<7x256xbf16>,
    %c12_160 = arith.constant 12 : index
    %c0_161 = arith.constant 0 : index
    %133 = vector.load %arg20[%c12_160, %c0_161] : memref<25x256xbf16, #tpu.memory_space<vmem>>, vector<7x256xbf16>
    %c0_162 = arith.constant 0 : index
    %c2560 = arith.constant 2560 : index
    %134 = vector.load %arg21[%c0_162, %c2560] : memref<7x4096xbf16, #tpu.memory_space<vmem>>, vector<7x256xbf16>
    tpu.vector_store %arg21[%c0_162, %c2560], %133 {strides = array<i32>} : memref<7x4096xbf16, #tpu.memory_space<vmem>>, vector<7x256xbf16>,
    %c13_163 = arith.constant 13 : index
    %c0_164 = arith.constant 0 : index
    %135 = vector.load %arg20[%c13_163, %c0_164] : memref<25x256xbf16, #tpu.memory_space<vmem>>, vector<7x256xbf16>
    %c0_165 = arith.constant 0 : index
    %c2816 = arith.constant 2816 : index
    %136 = vector.load %arg21[%c0_165, %c2816] : memref<7x4096xbf16, #tpu.memory_space<vmem>>, vector<7x256xbf16>
    tpu.vector_store %arg21[%c0_165, %c2816], %135 {strides = array<i32>} : memref<7x4096xbf16, #tpu.memory_space<vmem>>, vector<7x256xbf16>,
    %c15_166 = arith.constant 15 : index
    %c0_167 = arith.constant 0 : index
    %137 = vector.load %arg20[%c15_166, %c0_167] : memref<25x256xbf16, #tpu.memory_space<vmem>>, vector<7x256xbf16>
    %c0_168 = arith.constant 0 : index
    %c3072 = arith.constant 3072 : index
    %138 = vector.load %arg21[%c0_168, %c3072] : memref<7x4096xbf16, #tpu.memory_space<vmem>>, vector<7x256xbf16>
    tpu.vector_store %arg21[%c0_168, %c3072], %137 {strides = array<i32>} : memref<7x4096xbf16, #tpu.memory_space<vmem>>, vector<7x256xbf16>,
    %c16 = arith.constant 16 : index
    %c0_169 = arith.constant 0 : index
    %139 = vector.load %arg20[%c16, %c0_169] : memref<25x256xbf16, #tpu.memory_space<vmem>>, vector<7x256xbf16>
    %c0_170 = arith.constant 0 : index
    %c3328 = arith.constant 3328 : index
    %140 = vector.load %arg21[%c0_170, %c3328] : memref<7x4096xbf16, #tpu.memory_space<vmem>>, vector<7x256xbf16>
    tpu.vector_store %arg21[%c0_170, %c3328], %139 {strides = array<i32>} : memref<7x4096xbf16, #tpu.memory_space<vmem>>, vector<7x256xbf16>,
    %c17 = arith.constant 17 : index
    %c0_171 = arith.constant 0 : index
    %141 = vector.load %arg20[%c17, %c0_171] : memref<25x256xbf16, #tpu.memory_space<vmem>>, vector<7x256xbf16>
    %c0_172 = arith.constant 0 : index
    %c3584 = arith.constant 3584 : index
    %142 = vector.load %arg21[%c0_172, %c3584] : memref<7x4096xbf16, #tpu.memory_space<vmem>>, vector<7x256xbf16>
    tpu.vector_store %arg21[%c0_172, %c3584], %141 {strides = array<i32>} : memref<7x4096xbf16, #tpu.memory_space<vmem>>, vector<7x256xbf16>,
    %c18_173 = arith.constant 18 : index
    %c0_174 = arith.constant 0 : index
    %143 = vector.load %arg20[%c18_173, %c0_174] : memref<25x256xbf16, #tpu.memory_space<vmem>>, vector<7x256xbf16>
    %c0_175 = arith.constant 0 : index
    %c3840 = arith.constant 3840 : index
    %144 = vector.load %arg21[%c0_175, %c3840] : memref<7x4096xbf16, #tpu.memory_space<vmem>>, vector<7x256xbf16>
    tpu.vector_store %arg21[%c0_175, %c3840], %143 {strides = array<i32>} : memref<7x4096xbf16, #tpu.memory_space<vmem>>, vector<7x256xbf16>,
    %c0_176 = arith.constant 0 : index
    %c0_177 = arith.constant 0 : index
    %145 = vector.load %arg21[%c0_176, %c0_177] : memref<7x4096xbf16, #tpu.memory_space<vmem>>, vector<7x4096xbf16>
    %c0_178 = arith.constant 0 : index
    %c0_179 = arith.constant 0 : index
    %146 = vector.load %arg5[%c0_178, %c0_179] : memref<4096x512xbf16, #tpu.memory_space<vmem>>, vector<4096x512xbf16>
    %cst_180 = arith.constant dense<0.000000e+00> : vector<7x512xf32>
    %147 = tpu.matmul %145, %146, %cst_180 {dimension_numbers = #tpu.dot_dimension_numbers<[1], [0], [0], [1], [0, 0, 1, 1], [], []>} : vector<7x4096xbf16>, vector<4096x512xbf16>, vector<7x512xf32> -> vector<7x512xf32>
    %c0_181 = arith.constant 0 : index
    %c0_182 = arith.constant 0 : index
    %148 = vector.load %arg9[%c0_181, %c0_182] : memref<1x512xf32, #tpu.memory_space<vmem>>, vector<1x512xf32>
    %149 = vector.broadcast %148 : vector<1x512xf32> to vector<7x512xf32>
    %150 = arith.addf %147, %149 : vector<7x512xf32>
    %cst_183 = arith.constant 0.000000e+00 : f32
    %151 = vector.broadcast %cst_183 : f32 to vector<7x512xf32>
    %152 = arith.cmpf oge, %150, %151 : vector<7x512xf32>
    %cst_184 = arith.constant 2.000000e-01 : f32
    %153 = vector.broadcast %cst_184 : f32 to vector<7x512xf32>
    %154 = arith.mulf %153, %150 : vector<7x512xf32>
    %155 = arith.select %152, %150, %154 : vector<7x512xi1>, vector<7x512xf32>
    %c0_185 = arith.constant 0 : index
    %c0_186 = arith.constant 0 : index
    %156 = vector.load %arg13[%c0_185, %c0_186] : memref<7x512xf32, #tpu.memory_space<vmem>>, vector<7x512xf32>
    %157 = arith.mulf %156, %155 : vector<7x512xf32>
    %cst_187 = arith.constant dense<0.000000e+00> : vector<7xf32>
    %158 = vector.multi_reduction <add>, %157, %cst_187 [1] : vector<7x512xf32> to vector<7xf32>
    %159 = vector.shape_cast %158 : vector<7xf32> to vector<7x1xf32>
    %cst_188 = arith.constant dense<0.000000e+00> : vector<1xf32>
    %160 = vector.multi_reduction <add>, %159, %cst_188 [0] : vector<7x1xf32> to vector<1xf32>
    %161 = vector.shape_cast %160 : vector<1xf32> to vector<1x1xf32>
    %c0_189 = arith.constant 0 : index
    %c0_190 = arith.constant 0 : index
    %162 = vector.load %arg14[%c0_189, %c0_190] : memref<1x1xf32, #tpu.memory_space<vmem>>, vector<1x1xf32>
    %163 = arith.addf %161, %162 : vector<1x1xf32>
    %c0_191 = arith.constant 0 : index
    %c0_192 = arith.constant 0 : index
    %c0_193 = arith.constant 0 : index
    %164 = vector.load %arg15[%c0_191, %c0_192, %c0_193] : memref<1x1x1xf32, #tpu.memory_space<vmem>>, vector<1x1x1xf32>
    %165 = vector.shape_cast %164 : vector<1x1x1xf32> to vector<1x1xf32>
    %166 = vector.shape_cast %163 : vector<1x1xf32> to vector<1x1x1xf32>
    tpu.vector_store %arg15[%c0_191, %c0_192, %c0_193], %166 {strides = array<i32>} : memref<1x1x1xf32, #tpu.memory_space<vmem>>, vector<1x1x1xf32>,
    return
  }
  func.func @transform_0(%arg0: i32) -> (i32, i32, i32) {
    %c0_i32 = arith.constant 0 : i32
    %c0_i32_0 = arith.constant 0 : i32
    %c0_i32_1 = arith.constant 0 : i32
    return %arg0, %c0_i32, %c0_i32_0 : i32, i32, i32
  }
  func.func @transform_1(%arg0: i32) -> (i32, i32) {
    %c0_i32 = arith.constant 0 : i32
    %c0_i32_0 = arith.constant 0 : i32
    %c0_i32_1 = arith.constant 0 : i32
    return %c0_i32, %c0_i32_0 : i32, i32
  }
  func.func @transform_2(%arg0: i32) -> (i32, i32) {
    %c0_i32 = arith.constant 0 : i32
    %c0_i32_0 = arith.constant 0 : i32
    %c0_i32_1 = arith.constant 0 : i32
    return %c0_i32, %c0_i32_0 : i32, i32
  }
  func.func @transform_3(%arg0: i32) -> (i32, i32) {
    %c0_i32 = arith.constant 0 : i32
    %c0_i32_0 = arith.constant 0 : i32
    %c0_i32_1 = arith.constant 0 : i32
    return %c0_i32, %c0_i32_0 : i32, i32
  }
  func.func @transform_4(%arg0: i32) -> (i32, i32) {
    %c0_i32 = arith.constant 0 : i32
    %c0_i32_0 = arith.constant 0 : i32
    %c0_i32_1 = arith.constant 0 : i32
    return %c0_i32, %c0_i32_0 : i32, i32
  }
  func.func @transform_5(%arg0: i32) -> (i32, i32) {
    %c0_i32 = arith.constant 0 : i32
    %c0_i32_0 = arith.constant 0 : i32
    %c0_i32_1 = arith.constant 0 : i32
    return %c0_i32, %c0_i32_0 : i32, i32
  }
  func.func @transform_6(%arg0: i32) -> (i32, i32) {
    %c0_i32 = arith.constant 0 : i32
    %c0_i32_0 = arith.constant 0 : i32
    %c0_i32_1 = arith.constant 0 : i32
    return %c0_i32, %c0_i32_0 : i32, i32
  }
  func.func @transform_7(%arg0: i32) -> (i32, i32) {
    %c0_i32 = arith.constant 0 : i32
    %c0_i32_0 = arith.constant 0 : i32
    %c0_i32_1 = arith.constant 0 : i32
    return %c0_i32, %c0_i32_0 : i32, i32
  }
  func.func @transform_8(%arg0: i32) -> (i32, i32) {
    %c0_i32 = arith.constant 0 : i32
    %c0_i32_0 = arith.constant 0 : i32
    %c0_i32_1 = arith.constant 0 : i32
    return %c0_i32, %c0_i32_0 : i32, i32
  }
  func.func @transform_9(%arg0: i32) -> (i32, i32) {
    %c0_i32 = arith.constant 0 : i32
    %c0_i32_0 = arith.constant 0 : i32
    %c0_i32_1 = arith.constant 0 : i32
    return %c0_i32, %c0_i32_0 : i32, i32
  }
  func.func @transform_10(%arg0: i32) -> (i32, i32) {
    %c0_i32 = arith.constant 0 : i32
    %c0_i32_0 = arith.constant 0 : i32
    %c0_i32_1 = arith.constant 0 : i32
    return %c0_i32, %c0_i32_0 : i32, i32
  }
  func.func @transform_11(%arg0: i32) -> (i32, i32) {
    %c0_i32 = arith.constant 0 : i32
    %c0_i32_0 = arith.constant 0 : i32
    %c0_i32_1 = arith.constant 0 : i32
    return %c0_i32, %c0_i32_0 : i32, i32
  }
  func.func @transform_12(%arg0: i32) -> (i32, i32) {
    %c0_i32 = arith.constant 0 : i32
    %c0_i32_0 = arith.constant 0 : i32
    %c0_i32_1 = arith.constant 0 : i32
    return %c0_i32, %c0_i32_0 : i32, i32
  }
  func.func @transform_13(%arg0: i32) -> (i32, i32) {
    %c0_i32 = arith.constant 0 : i32
    %c0_i32_0 = arith.constant 0 : i32
    %c0_i32_1 = arith.constant 0 : i32
    return %c0_i32, %c0_i32_0 : i32, i32
  }
  func.func @transform_14(%arg0: i32) -> (i32, i32, i32) {
    %c0_i32 = arith.constant 0 : i32
    %c0_i32_0 = arith.constant 0 : i32
    %c0_i32_1 = arith.constant 0 : i32
    return %arg0, %c0_i32, %c0_i32_0 : i32, i32, i32
  }
}

</mosaic_0001>

<bundles_post_ra>
// kernel: forward.1
= control target key start
LH: loop header
LB: loop body
LE: loop exit
PB: predicated region body
PF: predicated region fallthrough
CT: control target
= control target key end

     0   :  { %s20862_s0 = inlined_call_operand.vmem [shape: bf16[2,64,64], index: 0, kind: input, shape index: {}]   ;;  %s20863_s1 = inlined_call_operand.hbm [shape: bf16[64,64], index: 1, kind: input, shape index: {}]   ;;  %s20864_s2 = inlined_call_operand.hbm [shape: bf16[1024,128], index: 2, kind: input, shape index: {}]   ;;  %s20865_s3 = inlined_call_operand.hbm [shape: bf16[2048,256], index: 3, kind: input, shape index: {}]   ;;  %s20866_s4 = inlined_call_operand.hbm [shape: bf16[4096,512], index: 4, kind: input, shape index: {}]   ;;  %s20867_s5 = inlined_call_operand.hbm [shape: f32[1,64], index: 5, kind: input, shape index: {}]   ;;  %s20868_s6 = inlined_call_operand.hbm [shape: f32[1,128], index: 6, kind: input, shape index: {}]   ;;  %s20869_s7 = inlined_call_operand.hbm [shape: f32[1,256], index: 7, kind: input, shape index: {}]   ;;  %s20870_s8 = inlined_call_operand.hbm [shape: f32[1,512], index: 8, kind: input, shape index: {}]   ;;  %s20871_s9 = inlined_call_operand.hbm [shape: bf16[100,64], index: 9, kind: input, shape index: {}]   ;;  %s20872_s10 = inlined_call_operand.hbm [shape: bf16[36,67], index: 10, kind: input, shape index: {}]   ;;  %s20873_s11 = inlined_call_operand.hbm [shape: bf16[25,15], index: 11, kind: input, shape index: {}]   ;;  %s20874_s12 = inlined_call_operand.hbm [shape: f32[7,512], index: 12, kind: input, shape index: {}]   ;;  %s20875_s13 = inlined_call_operand.<no memory space> [shape: f32[1,1], index: 13, kind: input, shape index: {}]   ;;  %s20876_s14 = inlined_call_operand.vmem [shape: f32[2,1,1], index: 14, kind: output, shape index: {}]  }
   0x1   :  { %20888 = sst [smem:[#allocation35_spill]] %s20863_s1  ;;  %v19_v0 = vstv %s20875_s13 }
   0x2   :  { %20 = vst [vmem:[#allocation8] sm:$0x1] %v19_v0 }
   0x3   :  { %21 = vsyncpa [#allocation10], 0 }
   0x4   :  { %22 = vsyncpa [#allocation12], 0 }
   0x5   :  { %23 = vsyncpa [#allocation15], 0 }
   0x6   :  { %24 = vsyncpa [#allocation18], 0 }
   0x7   :  { %25 = vsyncpa [#allocation21], 0 }
   0x8   :  { %26 = vsyncpa [#allocation24], 0 }
   0x9   :  { %27 = vsyncpa [#allocation27], 0  ;;  %s18787_s15 = smov 0  }
   0xa LB: > { %s18793_s16 = sadd.s32 4294967295, %s18684_s15   ;;  %p14310_p0 = scmp.ge.s32.totalorder %s18684_s15, 1  ;;  %s18684_s15 = sphi %s18787_s15, %s33_s15  }
   0xb   : > { %p363_p1 = scmp.lt.s32.totalorder %s18684_s15, 3  ;;  %p20881_p2 = scmp.eq.s32.totalorder %s18793_s16, 0 }
   0xc   : > { %s18686_s17 = smov [#allocation11]   ;;  %s18687_s19 = smov [#allocation14]  }
   0xd   : > { %p18798_p3 = pnand %p14310_p0, %p363_p1  ;;  %s388_s18 = sshll.u32 %s18686_s17, 4  ;;  %s389_s18 = int_to_ptr.vmem [resolvable:$true] %s388_s18 }
   0xe   : > { %s414_s20 = sshll.u32 %s18687_s19, 4  ;;  %s18688_s22 = smov [#allocation17]   ;;  %s18804_s20 = int_to_ptr.vmem [resolvable:$true] %s414_s20 }
   0xf   : > { %s20889_s13 = scalar_select %p18798_p3, 1, 0 }
  0x10   : > { %p16223_p4 = pneg %p18798_p3  ;;  %s18812_s23 = sshll.u32 %s18688_s22, 4  ;;  %s440_s23 = int_to_ptr.vmem [resolvable:$true] %s18812_s23 }
  0x11   : > { %s18349_s25 = scalar_lea.vmem %s389_s18, 8192  ;;  %p18357_p10 = scmp.lt.s32.totalorder %s389_s18, %s389_s18 }
  0x12   : > { %p18808_p5 = pnand %p20881_p2, %p16223_p4  ;;  %p18350_p7 = scmp.ne.s32.totalorder %s389_s18, %s18349_s25 }
  0x13   : > { %p18358_p11 = scmp.lt.s32.totalorder %s18349_s25, %s18349_s25 }
  0x14   : > { %p18816_p6 = pneg %p18808_p5 }
  0x15   : > { %p18359_p12 = por %p18358_p11, %p18357_p10 }
  0x16   : > { %p18352_p8 = pnand %p18350_p7, %p18816_p6 }
  0x18   : > { %p18353_p9 = pneg %p18352_p8 }
  0x1a   : > { %p18360_p13 = pnand %p18359_p12, %p18353_p9 }
  0x1c   : > { %18363 = shalt.err (!%p18360_p13)
}
  0x1d   : > { %s20877_s26 = smov 64   ;;  %s20879_s27 = smov 4  }
  0x1e   : > { %16229 = dma.hbm_to_vmem [thread:$0]  (!%p18808_p5), %s20864_s2, 8192, %s389_s18, [#allocation12], %s20877_s26, %s20877_s26, %s20879_s27  }
  0x1f   : > { %s18375_s30 = scalar_lea.vmem %s18804_s20, 131072  ;;  %p18383_p7 = scmp.lt.s32.totalorder %s18804_s20, %s18804_s20 }
  0x20   : > { %p18376_p0 = scmp.ne.s32.totalorder %s18804_s20, %s18375_s30  ;;  %p18384_p8 = scmp.lt.s32.totalorder %s18375_s30, %s18375_s30 }
  0x22   : > { %p18378_p1 = pnand %p18376_p0, %p18816_p6  ;;  %p18385_p9 = por %p18384_p8, %p18383_p7 }
  0x24   : > { %p18379_p4 = pneg %p18378_p1 }
  0x26   : > { %p18386_p10 = pnand %p18385_p9, %p18379_p4 }
  0x28   : > { %18389 = shalt.err (!%p18386_p10)
}
  0x29   : > { %s18691_s17 = smov 256   ;;  %s18692_s19 = smov 16  }
  0x2a   : > { %16235 = dma.hbm_to_vmem [thread:$0]  (!%p18808_p5), %s20866_s4, 131072, %s18804_s20, [#allocation15], %s18691_s17, %s18691_s17, %s18692_s19  }
  0x2b   : > { %s18693_s25 = smov [#allocation20]   ;;  %s18401_s29 = scalar_lea.vmem %s440_s23, 16 }
  0x2c   : > { %s461_s28 = sshll.u32 %s18693_s25, 4  ;;  %p18402_p11 = scmp.ne.s32.totalorder %s440_s23, %s18401_s29  ;;  %s462_s28 = int_to_ptr.vmem [resolvable:$true] %s461_s28 }
  0x2d   : > { %s18408_s30 = scalar_lea.vmem %s440_s23, 32  ;;  %p18409_p0 = scmp.lt.s32.totalorder %s440_s23, %s440_s23 }
  0x2e   : > { %p18404_p12 = pnand %p18402_p11, %p18816_p6  ;;  %p18410_p1 = scmp.lt.s32.totalorder %s18408_s30, %s18401_s29 }
  0x30   : > { %p18405_p13 = pneg %p18404_p12  ;;  %p18411_p4 = por %p18410_p1, %p18409_p0 }
  0x32   : > { %p18412_p7 = pnand %p18411_p4, %p18405_p13 }
  0x34   : > { %18415 = shalt.err (!%p18412_p7)
}
  0x35   : > { %16241 = dma.hbm_to_vmem [thread:$0]  (!%p18808_p5), %s20868_s6, 16, %s440_s23, [#allocation18]  }
  0x36   : > { %s18427_s20 = scalar_lea.vmem %s462_s28, 64  ;;  %p18435_p11 = scmp.lt.s32.totalorder %s462_s28, %s462_s28 }
  0x37   : > { %p18428_p8 = scmp.ne.s32.totalorder %s462_s28, %s18427_s20  ;;  %p18436_p12 = scmp.lt.s32.totalorder %s18427_s20, %s18427_s20 }
  0x39   : > { %p18430_p9 = pnand %p18428_p8, %p18816_p6  ;;  %p18437_p2 = por %p18436_p12, %p18435_p11 }
  0x3b   : > { %p18431_p10 = pneg %p18430_p9 }
  0x3d   : > { %p18438_p3 = pnand %p18437_p2, %p18431_p10 }
  0x3f   : > { %18441 = shalt.err (!%p18438_p3)
}
  0x40   : > { %16247 = dma.hbm_to_vmem [thread:$0]  (!%p18808_p5), %s20870_s8, 64, %s462_s28, [#allocation21]  }
  0x41   : > { %s18694_s26 = smov [#allocation23]   ;;  %s18695_s27 = smov [#allocation9]  }
  0x42   : > { %s484_s23 = sshll.u32 %s18694_s26, 4  ;;  %s375_s22 = sshll.u32 %s18695_s27, 4  ;;  %s485_s23 = int_to_ptr.vmem [resolvable:$true] %s484_s23  ;;  %s376_s22 = int_to_ptr.vmem [resolvable:$true] %s375_s22 }
  0x43   : > { %s18453_s18 = scalar_lea.vmem %s485_s23, 320  ;;  %p18461_p4 = scmp.lt.s32.totalorder %s485_s23, %s485_s23 }
  0x44   : > { %p18454_p13 = scmp.ne.s32.totalorder %s485_s23, %s18453_s18  ;;  %p18462_p2 = scmp.lt.s32.totalorder %s18453_s18, %s18453_s18 }
  0x46   : > { %p18456_p0 = pnand %p18454_p13, %p18816_p6  ;;  %p18463_p3 = por %p18462_p2, %p18461_p4 }
  0x48   : > { %p18457_p1 = pneg %p18456_p0 }
  0x4a   : > { %p18464_p7 = pnand %p18463_p3, %p18457_p1 }
  0x4c   : > { %18467 = shalt.err (!%p18464_p7)
}
  0x4d   : > { %s20892_s25 = smov 4   ;;  %s20893_s29 = smov 64  }
  0x4e   : > { %16253 = dma.hbm_to_vmem [thread:$0]  (!%p18808_p5), %s20872_s10, 320, %s485_s23, [#allocation24], %s20893_s29, %s20893_s29, %s20892_s25  }
  0x4f   : > { %s18479_s20 = scalar_lea.vmem %s376_s22, 512  ;;  %p18487_p11 = scmp.lt.s32.totalorder %s376_s22, %s376_s22 }
  0x50   : > { %p18480_p8 = scmp.ne.s32.totalorder %s376_s22, %s18479_s20  ;;  %p18488_p12 = scmp.lt.s32.totalorder %s18479_s20, %s18479_s20 }
  0x52   : > { %p18482_p9 = pnand %p18480_p8, %p18816_p6  ;;  %p18489_p13 = por %p18488_p12, %p18487_p11 }
  0x54   : > { %p18483_p10 = pneg %p18482_p9 }
  0x56   : > { %p18490_p0 = pnand %p18489_p13, %p18483_p10 }
  0x58   : > { %18493 = shalt.err (!%p18490_p0)
}
  0x59   : > { %s20894_s1 = sld [smem:[#allocation35_spill]]  ;;  %s18696_s26 = smov [#allocation13]  }
  0x5a   : > { %s401_s23 = sshll.u32 %s18696_s26, 4  ;;  %s402_s23 = int_to_ptr.vmem [resolvable:$true] %s401_s23 }
  0x5b   : > { %s18505_s27 = scalar_lea.vmem %s402_s23, 32768  ;;  %p18513_p3 = scmp.lt.s32.totalorder %s402_s23, %s402_s23 }
  0x5c   : > { %p18506_p1 = scmp.ne.s32.totalorder %s402_s23, %s18505_s27  ;;  %p18514_p7 = scmp.lt.s32.totalorder %s18505_s27, %s18505_s27 }
  0x5e   : > { %p18508_p4 = pnand %p18506_p1, %p18816_p6  ;;  %p18515_p8 = por %p18514_p7, %p18513_p3 }
  0x5f   : > { %16226 = dma.hbm_to_vmem [thread:$0]  (!%p18808_p5), %s20894_s1, 512, %s376_s22, [#allocation10], %s20893_s29, %s20893_s29, %s20892_s25  }
  0x60   : > { %p18509_p2 = pneg %p18508_p4 }
  0x62   : > { %p18516_p9 = pnand %p18515_p8, %p18509_p2 }
  0x64   : > { %18519 = shalt.err (!%p18516_p9)
}
  0x65   : > { %s18697_s18 = smov 128   ;;  %s18698_s28 = smov 8  }
  0x66   : > { %16232 = dma.hbm_to_vmem [thread:$0]  (!%p18808_p5), %s20865_s3, 32768, %s402_s23, [#allocation12], %s18697_s18, %s18697_s18, %s18698_s28  }
  0x67   : > { %s18699_s20 = smov [#allocation16]   ;;  %s18700_s19 = smov [#allocation19]  }
  0x68   : > { %s428_s17 = sshll.u32 %s18699_s20, 4  ;;  %s450_s26 = sshll.u32 %s18700_s19, 4  ;;  %s429_s17 = int_to_ptr.vmem [resolvable:$true] %s428_s17  ;;  %s451_s26 = int_to_ptr.vmem [resolvable:$true] %s450_s26 }
  0x69   : > { %s18531_s1 = scalar_lea.vmem %s429_s17, 16  ;;  %s18538_s27 = scalar_lea.vmem %s429_s17, 32 }
  0x6a   : > { %p18532_p10 = scmp.ne.s32.totalorder %s429_s17, %s18531_s1  ;;  %p18539_p13 = scmp.lt.s32.totalorder %s429_s17, %s429_s17 }
  0x6b   : > { %p18540_p0 = scmp.lt.s32.totalorder %s18538_s27, %s18531_s1 }
  0x6c   : > { %p18534_p11 = pnand %p18532_p10, %p18816_p6 }
  0x6d   : > { %p18541_p1 = por %p18540_p0, %p18539_p13 }
  0x6e   : > { %p18535_p12 = pneg %p18534_p11 }
  0x70   : > { %p18542_p4 = pnand %p18541_p1, %p18535_p12 }
  0x72   : > { %18545 = shalt.err (!%p18542_p4)
}
  0x73   : > { %16238 = dma.hbm_to_vmem [thread:$0]  (!%p18808_p5), %s20867_s5, 16, %s429_s17, [#allocation15]  }
  0x74   : > { %s18557_s28 = scalar_lea.vmem %s451_s26, 32  ;;  %p18565_p8 = scmp.lt.s32.totalorder %s451_s26, %s451_s26 }
  0x75   : > { %p18558_p2 = scmp.ne.s32.totalorder %s451_s26, %s18557_s28  ;;  %p18566_p9 = scmp.lt.s32.totalorder %s18557_s28, %s18557_s28 }
  0x77   : > { %p18560_p3 = pnand %p18558_p2, %p18816_p6  ;;  %p18567_p10 = por %p18566_p9, %p18565_p8 }
  0x79   : > { %p18561_p7 = pneg %p18560_p3 }
  0x7b   : > { %p18568_p11 = pnand %p18567_p10, %p18561_p7 }
  0x7d   : > { %18571 = shalt.err (!%p18568_p11)
}
  0x7e   : > { %16244 = dma.hbm_to_vmem [thread:$0]  (!%p18808_p5), %s20869_s7, 32, %s451_s26, [#allocation18]  }
  0x7f   : > { %s18701_s22 = smov [#allocation22]   ;;  %s18702_s17 = smov [#allocation25]  }
  0x80   : > { %s471_s20 = sshll.u32 %s18701_s22, 4  ;;  %s497_s19 = sshll.u32 %s18702_s17, 4  ;;  %s472_s20 = int_to_ptr.vmem [resolvable:$true] %s471_s20  ;;  %s498_s19 = int_to_ptr.vmem [resolvable:$true] %s497_s19 }
  0x81   : > { %s18583_s27 = scalar_lea.vmem %s472_s20, 832  ;;  %p18591_p1 = scmp.lt.s32.totalorder %s472_s20, %s472_s20 }
  0x82   : > { %p18584_p12 = scmp.ne.s32.totalorder %s472_s20, %s18583_s27  ;;  %p18592_p4 = scmp.lt.s32.totalorder %s18583_s27, %s18583_s27 }
  0x84   : > { %p18586_p13 = pnand %p18584_p12, %p18816_p6  ;;  %p18593_p2 = por %p18592_p4, %p18591_p1 }
  0x86   : > { %p18587_p0 = pneg %p18586_p13 }
  0x88   : > { %p18594_p3 = pnand %p18593_p2, %p18587_p0 }
  0x8a   : > { %18597 = shalt.err (!%p18594_p3)
}
  0x8b   : > { %16250 = dma.hbm_to_vmem [thread:$0]  (!%p18808_p5), %s20871_s9, 832, %s472_s20, [#allocation21], %s20893_s29, %s20893_s29, %s20892_s25  }
  0x8c   : > { %s18609_s18 = scalar_lea.vmem %s498_s19, 256  ;;  %p18617_p10 = scmp.lt.s32.totalorder %s498_s19, %s498_s19 }
  0x8d   : > { %p18610_p7 = scmp.ne.s32.totalorder %s498_s19, %s18609_s18  ;;  %p18618_p11 = scmp.lt.s32.totalorder %s18609_s18, %s18609_s18 }
  0x8f   : > { %p18612_p8 = pnand %p18610_p7, %p18816_p6  ;;  %p18619_p12 = por %p18618_p11, %p18617_p10 }
  0x91   : > { %p18613_p9 = pneg %p18612_p8 }
  0x93   : > { %p18620_p13 = pnand %p18619_p12, %p18613_p9 }
  0x95   : > { %18623 = shalt.err (!%p18620_p13)
}
  0x96   : > { %16256 = dma.hbm_to_vmem [thread:$0]  (!%p18808_p5), %s20873_s11, 256, %s498_s19, [#allocation24], %s20893_s29, %s20893_s29, %s20892_s25  }
  0x97   : > { %s18703_s30 = smov [#allocation26]  }
  0x98   : > { %s511_s22 = sshll.u32 %s18703_s30, 4  ;;  %s512_s22 = int_to_ptr.vmem [resolvable:$true] %s511_s22 }
  0x99   : > { %s18635_s20 = scalar_lea.vmem %s512_s22, 512  ;;  %p18643_p2 = scmp.lt.s32.totalorder %s512_s22, %s512_s22 }
  0x9a   : > { %p18636_p0 = scmp.ne.s32.totalorder %s512_s22, %s18635_s20  ;;  %p18644_p3 = scmp.lt.s32.totalorder %s18635_s20, %s18635_s20 }
  0x9c   : > { %p18638_p1 = pnand %p18636_p0, %p18816_p6  ;;  %p18645_p7 = por %p18644_p3, %p18643_p2 }
  0x9e   : > { %p18639_p4 = pneg %p18638_p1 }
  0xa0   : > { %p18646_p8 = pnand %p18645_p7, %p18639_p4 }
  0xa2   : > { %18649 = shalt.err (!%p18646_p8)
}
  0xa3   : > { %16259 = dma.hbm_to_vmem [thread:$0]  (!%p18808_p5), %s20874_s12, 512, %s512_s22, [#allocation27]  }
  0xa4   : > { %p20895_p9 = scmp.ne.s32.totalorder %s20889_s13, 0 }
  0xa5   : > { %p20896_p10 = scmp.eq.s32.totalorder (!%p20895_p9), %s18793_s16, 0 }
  0xa6   : > { %535 = sbr.rel (%p20895_p9) target bundleno = 3365 (0xd25), region = 76 }
  0xab   : > { %18655 = dma.done.wait (%p20896_p10), [#allocation10], 512   ;;  %p20897_p6 = pmov %p20896_p10 }
  0xad   : > { %18657 = vsyncadd (%p20897_p6), [#allocation10], 4294966784  ;;  %p20898_p11 = pmov %p20897_p6 }
  0xae   : > { %p20899_p12 = pmov %p20897_p6 }
  0xaf   : > { %18659 = dma.done.wait (%p20898_p11), [#allocation12], 40960  }
  0xb0   : > { %18661 = vsyncadd (%p20899_p12), [#allocation12], 4294926336  ;;  %p20900_p13 = pmov %p20897_p6 }
  0xb1   : > { %p20901_p5 = pmov %p20897_p6 }
  0xb2   : > { %18663 = dma.done.wait (%p20900_p13), [#allocation15], 131088  }
  0xb3   : > { %18665 = vsyncadd (%p20901_p5), [#allocation15], 4294836208  ;;  %p20902_p0 = pmov %p20901_p5 }
  0xb5   : > { %18667 = dma.done.wait (%p20902_p0), [#allocation18], 48   ;;  %p20903_p1 = pmov %p20902_p0 }
  0xb6   : > { %p20904_p4 = pmov %p20902_p0 }
  0xb7   : > { %18669 = vsyncadd (%p20903_p1), [#allocation18], 4294967248 }
  0xb8   : > { %18671 = dma.done.wait (%p20904_p4), [#allocation21], 896   ;;  %p20905_p2 = pmov %p20902_p0 }
  0xb9   : > { %p20906_p3 = pmov %p20902_p0 }
  0xba   : > { %18673 = vsyncadd (%p20905_p2), [#allocation21], 4294966400 }
  0xbb   : > { %18675 = dma.done.wait (%p20906_p3), [#allocation24], 576   ;;  %p20907_p7 = pmov %p20902_p0 }
  0xbc   : > { %p20908_p8 = pmov %p20902_p0 }
  0xbd   : > { %18677 = vsyncadd (%p20907_p7), [#allocation24], 4294966720 }
  0xbe   : > { %18679 = dma.done.wait (%p20908_p8), [#allocation27], 512   ;;  %p20909_p9 = pmov %p20902_p0 }
  0xbf   : > { %p623_p10 = scmp.lt.s32.totalorder %s18793_s16, 1  ;;  %v16315_v1 = vld [vmem:[#allocation9 + $0x18] sm:$0xff]   ;;  %v16316_v2 = vld [vmem:[#allocation9 + $0x10] sm:$0xff]   ;;  %v16317_v3 = vld [vmem:[#allocation9 + $0x8] sm:$0xff]   ;;  %vm699_vm0 = vcmask 523264   ;;  %v18704_v9 = vmov 0.0  }
  0xc0   : > { %18681 = vsyncadd (%p20909_p9), [#allocation27], 4294966784  ;;  %16101 = vmatprep.subr.bf16.mxu0 %v16315_v1  ;;  %v16318_v5 = vld [vmem:[#allocation9] sm:$0xff]   ;;  %16117 = vmatprep.subr.bf16.mxu1 %v18704_v9  ;;  %vm18705_vm1 = vmmov 0   ;;  %v16323_v46 = vld [vmem:[#allocation22] sm:$0xff]   ;;  %vm1013_vm10 = vcmask 519168  }
  0xc1   : > { %s20952_s16 = smov (!%p623_p10, %s18793_s16), 1  ;;  %16102 = vmatpush3.bf16.msra.mxu0 %v16315_v1  ;;  %16125 = vmatprep.mubr.msk.bf16.mxu1 %vm18705_vm1, %v18704_v9  ;;  %v14339_v13 = vld [vmem:[#allocation16] ss:$0 sm:$0xff]  ;;  %v16324_v48 = vld [vmem:[#allocation22 + $0x8] sm:$0xff]   ;;  %v16326_v50 = vld [vmem:[#allocation22 + $0x18] sm:$0xff]   ;;  %s18706_s29 = smov 64  }
  0xc2   : > { %s15856_s13 = sshll.u32 %s20952_s16, 5  ;;  %16103 = vmatprep.subr.bf16.mxu0 %v16316_v2  ;;  %v16325_v49 = vld [vmem:[#allocation22 + $0x10] sm:$0xff]   ;;  %v16327_v51 = vld [vmem:[#allocation22 + $0x20] sm:$0xff]   ;;  %v16328_v52 = vld [vmem:[#allocation22 + $0x28] sm:$0xff]   ;;  %vm1060_vm11 = vsmask.f32 3328  ;;  %s630_s23 = scalar_lea.vmem %s20876_s14, %s20952_s16 }
  0xc3   : > { %s627_s25 = scalar_lea.vmem %s20862_s0, %s15856_s13  ;;  %v16329_v53 = vld [vmem:[#allocation22 + $0x30] ss:$0 sps:$4 sm:$0x33]   ;;  %v16332_v56 = vld [vmem:[#allocation11 + $0x70] sm:$0xff]   ;;  %v16334_v60 = vld [vmem:[#allocation11 + $0x68] sm:$0xff]  }
  0xc4   : > { %v16319_v4 = vld [vmem:[%s627_s25] sm:$0xff]   ;;  %v16320_v6 = vld [vmem:[%s627_s25 + $0x8] sm:$0xff]   ;;  %v16321_v7 = vld [vmem:[%s627_s25 + $0x10] sm:$0xff]   ;;  %vm1061_vm12 = vsmask.f32 7440 }
  0xc5   : > { %16109 = vmatprep.mubr.msk.bf16.mxu0 %vm699_vm0, %v16319_v4  ;;  %16104 = vmatpush3.bf16.msra.mxu0 %v16316_v2  ;;  %v16322_v8 = vld [vmem:[%s627_s25 + $0x18] sm:$0xff]   ;;  %v16330_v54 = vld [vmem:[#allocation11 + $0x78] sm:$0xff]   ;;  %vm1269_vm13 = vsmask.f32 2304  ;;  %vm1270_vm14 = vsmask.f32 6416  ;;  %vm18999_vm15 = vmor %vm1060_vm11, %vm1061_vm12 }
  0xc6   : > { %16105 = vmatprep.subr.bf16.mxu0 %v16317_v3  ;;  %v16331_v55 = vld [vmem:[#allocation11 + $0x38] sm:$0xff]   ;;  %v16333_v57 = vld [vmem:[#allocation11 + $0x30] sm:$0xff]   ;;  %v16336_v63 = vld [vmem:[#allocation11 + $0x28] sm:$0xff]   ;;  %vm1212_vm12 = vcmask 1046532  }
  0xc7   : > { %v16335_v61 = vld [vmem:[#allocation11 + $0xf8] sm:$0xff]   ;;  %v16339_v4 = vld [vmem:[#allocation11 + $0xf0] sm:$0xff]  }
  0xc8   : > { %v16337_v0 = vld [vmem:[#allocation11 + $0xb8] sm:$0xff]  }
  0xc9   : > { %16106 = vmatpush3.bf16.msra.mxu0 %v16317_v3  ;;  %v16338_v3 = vld [vmem:[#allocation11 + $0x60] sm:$0xff]  }
  0xca   : > { %16107 = vmatprep.subr.bf16.mxu0 %v16318_v5 }
  0xcd   : > { %16108 = vmatpush3.bf16.msra.mxu0 %v16318_v5 }
  0xce   : > { %15909 = vmatprep.subr.bf16.mxu0 %v16330_v54 }
  0xd0   : > { %16110 = vmatmul.mubr.msk.bf16.vlgmr.msra.gmra.mxu0 %vm699_vm0, %v16320_v6  ;;  %v16340_v6 = vld [vmem:[#allocation11 + $0x20] sm:$0xff]  }
  0xd1   : > { %16113 = vmatprep.mubr.msk.bf16.mxu0 %vm699_vm0, %v16321_v7  ;;  %15910 = vmatpush3.bf16.msra.mxu0 %v16331_v55  ;;  %v16341_v7 = vld [vmem:[#allocation11 + $0xb0] sm:$0xff]  }
  0xd2   : > { %15911 = vmatprep.subr.bf16.mxu0 %v16332_v56 }
  0xd5   : > { %15912 = vmatpush3.bf16.msra.mxu0 %v16333_v57 }
  0xd6   : > { %15913 = vmatprep.subr.bf16.mxu0 %v16334_v60 }
  0xd8   : > { %16114 = vmatmul.mubr.msk.bf16.gmra.mxu0 %vm699_vm0, %v16322_v8 }
  0xd9   : > { %15914 = vmatpush3.bf16.msra.mxu0 %v16336_v63 }
  0xda   : > { %15915 = vmatprep.subr.bf16.mxu0 %v16338_v3 }
  0xdd   : > { %15916 = vmatpush3.bf16.msra.mxu0 %v16340_v6  ;;  %v16351_v6 = vld [vmem:[#allocation11 + $0xd8] sm:$0xff]  }
 0x190   : > { %v16111_v10 = vpop.f32.mrf.mxu0 }
 0x191   : > { %v755_v26 = vadd.f32 %v16111_v10, %v14339_v13 }
 0x192   : > { %v746_v11 = vpop.f32.mrf.mxu0 }
 0x193   : > { %v787_v35 = vmul.f32 0.2, %v755_v26  ;;  %v747_v36 = vadd.f32 %v14339_v13, %v746_v11  ;;  %vm779_vm7 = vcmp.ge.f32.partialorder %v755_v26, 0.0  ;;  %v16342_v11 = vld [vmem:[#allocation11 + $0x58] sm:$0xff]  }
 0x194   : > { %v16112_v12 = vpop.f32.mrf.mxu0  ;;  %15917 = vmatprep.subr.bf16.mxu0 %v16342_v11 }
 0x195   : > { %v758_v23 = vadd.f32 %v16112_v12, %v14339_v13  ;;  %v785_v41 = vmul.f32 0.2, %v747_v36  ;;  %v795_v42 = vsel %vm779_vm7, %v755_v26, %v787_v35  ;;  %vm777_vm9 = vcmp.ge.f32.partialorder %v747_v36, 0.0  ;;  %v16343_v12 = vld [vmem:[#allocation11 + $0xe8] sm:$0xff]  }
 0x196   : > { %v749_v14 = vpop.f32.mrf.mxu0 }
 0x197   : > { %v788_v32 = vmul.f32 0.2, %v758_v23  ;;  %v750_v33 = vadd.f32 %v14339_v13, %v749_v14  ;;  %vm780_vm6 = vcmp.ge.f32.partialorder %v758_v23, 0.0  ;;  %v793_v45 = vsel %vm777_vm9, %v747_v36, %v785_v41 }
 0x198   : > { %v16115_v15 = vpop.f32.mrf.mxu0  ;;  %vm1211_vm9 = vcmask 1042432  }
 0x199   : > { %v771_v16 = vadd.f32 %v16115_v15, %v14339_v13  ;;  %v786_v39 = vmul.f32 0.2, %v750_v33  ;;  %v796_v40 = vsel %vm780_vm6, %v758_v23, %v788_v32  ;;  %vm778_vm8 = vcmp.ge.f32.partialorder %v750_v33, 0.0  ;;  %v16345_v23 = vld [vmem:[#allocation11 + $0xa8] sm:$0xff]  }
 0x19a   : > { %v762_v17 = vpop.f32.mrf.mxu0  ;;  %v815_v43 = vpack.c.bf16 %v796_v40, %v795_v42  ;;  %vm2086_vm6 = vsmask.f32 4368 }
 0x19b   : > { %v763_v18 = vadd.f32 %v14339_v13, %v762_v17  ;;  %v791_v20 = vmul.f32 0.2, %v771_v16  ;;  %vm783_vm2 = vcmp.ge.f32.partialorder %v771_v16, 0.0  ;;  %v794_v44 = vsel %vm778_vm8, %v750_v33, %v786_v39  ;;  %v16348_v39 = vld [vmem:[#allocation11 + $0x10] sm:$0xff]  }
 0x19c   : > { %v16116_v19 = vpop.f32.mrf.mxu0  ;;  %v814_v47 = vpack.c.bf16 %v794_v44, %v793_v45  ;;  %vm1026_vm8 = vcmask 517120  }
 0x19d   : > { %v774_v21 = vadd.f32 %v16116_v19, %v14339_v13  ;;  %v789_v27 = vmul.f32 0.2, %v763_v18  ;;  %v799_v29 = vsel %vm783_vm2, %v771_v16, %v791_v20  ;;  %vm781_vm5 = vcmp.ge.f32.partialorder %v763_v18, 0.0 }
 0x19e   : > { %v765_v22 = vpop.f32.mrf.mxu0  ;;  %vm1046_vm2 = vsmask.f32 1280 }
 0x19f   : > { %v792_v24 = vmul.f32 0.2, %v774_v21  ;;  %v766_v25 = vadd.f32 %v14339_v13, %v765_v22  ;;  %vm784_vm3 = vcmp.ge.f32.partialorder %v774_v21, 0.0  ;;  %v797_v37 = vsel %vm781_vm5, %v763_v18, %v789_v27  ;;  %v16344_v22 = vld [vmem:[#allocation11 + $0x18] sm:$0xff]  }
 0x1a0   : > { %15918 = vmatpush3.bf16.msra.mxu0 %v16344_v22  ;;  %vm20883_vm5 = vsmask.f32 256 }
 0x1a1   : > { %vm782_vm4 = vcmp.ge.f32.partialorder %v766_v25, 0.0  ;;  %v790_v28 = vmul.f32 0.2, %v766_v25  ;;  %v800_v30 = vsel %vm784_vm3, %v774_v21, %v792_v24  ;;  %vm1675_vm3 = vsmask.f32 5392  ;;  %vm19111_vm7 = vmor %vm20883_vm5, %vm2086_vm6 }
 0x1a2   : > { %v817_v31 = vpack.c.bf16 %v800_v30, %v799_v29  ;;  %v16347_v29 = vld [vmem:[#allocation11 + $0xe0] sm:$0xff]   ;;  %vm1179_vm6 = vcmask 1043968  }
 0x1a3   : > { %v798_v34 = vsel %vm782_vm4, %v766_v25, %v790_v28  ;;  %v16346_v28 = vld [vmem:[#allocation11 + $0x50] sm:$0xff]   ;;  %vm19053_vm4 = vmor %vm1046_vm2, %vm1675_vm3  ;;  %vm1618_vm3 = vcmask 1045508  }
 0x1a4   : > { %16118 = vmatpush3.bf16.msra.mxu1 %v817_v31  ;;  %v816_v38 = vpack.c.bf16 %v798_v34, %v797_v37  ;;  %15919 = vmatprep.subr.bf16.mxu0 %v16346_v28 }
 0x1a5   : > { %16119 = vmatprep.subr.bf16.mxu1 %v18704_v9  ;;  %15920 = vmatpush3.bf16.msra.mxu0 %v16348_v39 }
 0x1a8   : > { %16120 = vmatpush3.bf16.msra.mxu1 %v816_v38 }
 0x1a9   : > { %16121 = vmatprep.subr.bf16.mxu1 %v18704_v9 }
 0x1ac   : > { %16122 = vmatpush3.bf16.msra.mxu1 %v815_v43 }
 0x1ad   : > { %16123 = vmatprep.subr.bf16.mxu1 %v18704_v9 }
 0x1b0   : > { %16124 = vmatpush3.bf16.msra.mxu1 %v814_v47 }
 0x1b1   : > { %15955 = vmatprep.subr.bf16.mxu1 %v16335_v61 }
 0x1b3   : > { %16126 = vmatmul.mubr.msk.bf16.vlgmr.msra.gmra.mxu1 %vm699_vm0, %v16323_v46  ;;  %v16349_v46 = vld [vmem:[#allocation11 + $0xa0] sm:$0xff]  }
 0x1b4   : > { %16129 = vmatprep.mubr.msk.bf16.mxu1 %vm18705_vm1, %v18704_v9  ;;  %15956 = vmatpush3.bf16.msra.mxu1 %v16337_v0 }
 0x1b5   : > { %15957 = vmatprep.subr.bf16.mxu1 %v16339_v4 }
 0x1b8   : > { %15958 = vmatpush3.bf16.msra.mxu1 %v16341_v7 }
 0x1b9   : > { %15959 = vmatprep.subr.bf16.mxu1 %v16343_v12 }
 0x1bb   : > { %16130 = vmatmul.mubr.msk.bf16.gmra.mxu1 %vm699_vm0, %v16324_v48 }
 0x1bc   : > { %16133 = vmatprep.mubr.msk.bf16.mxu1 %vm18705_vm1, %v18704_v9  ;;  %15960 = vmatpush3.bf16.msra.mxu1 %v16345_v23 }
 0x1bd   : > { %15961 = vmatprep.subr.bf16.mxu1 %v16347_v29 }
 0x1c0   : > { %15962 = vmatpush3.bf16.msra.mxu1 %v16349_v46 }
 0x1c1   : > { %15963 = vmatprep.subr.bf16.mxu1 %v16351_v6 }
 0x1c3   : > { %16134 = vmatmul.mubr.msk.bf16.gmra.mxu1 %vm699_vm0, %v16325_v49 }
 0x1c4   : > { %16137 = vmatprep.mubr.msk.bf16.mxu1 %vm18705_vm1, %v18704_v9 }
 0x1cb   : > { %16138 = vmatmul.mubr.msk.bf16.gmra.mxu1 %vm699_vm0, %v16326_v50 }
 0x1cc   : > { %16141 = vmatprep.mubr.msk.bf16.mxu1 %vm18705_vm1, %v18704_v9 }
 0x1d3   : > { %16142 = vmatmul.mubr.msk.bf16.gmra.mxu1 %vm699_vm0, %v16327_v51  ;;  %v16350_v51 = vld [vmem:[#allocation11 + $0x48] sm:$0xff]  }
 0x1d4   : > { %16145 = vmatprep.mubr.msk.bf16.mxu1 %vm18705_vm1, %v18704_v9  ;;  %15921 = vmatprep.subr.bf16.mxu0 %v16350_v51 }
 0x1db   : > { %16146 = vmatmul.mubr.msk.bf16.gmra.mxu1 %vm699_vm0, %v16328_v52 }
 0x1dc   : > { %16149 = vmatprep.mubr.msk.bf16.mxu1 %vm18705_vm1, %v18704_v9 }
 0x1e3   : > { %16150 = vmatmul.mubr.msk.bf16.gmra.mxu1 %vm699_vm0, %v16329_v53  ;;  %vm19010_vm0 = vmor %vm1269_vm13, %vm1270_vm14  ;;  %vm1617_vm14 = vcmask 1041408  }
 0x1e4   : > { %vm19374_vm13 = vmor %vm1211_vm9, %vm1212_vm12  ;;  %vm2024_vm12 = vcmask 1040384  }
 0x1e5   : > { %vm19474_vm9 = vmor %vm1617_vm14, %vm1618_vm3  ;;  %vm20884_vm3 = vcmask 1044484  }
 0x1e6   : > { %vm19584_vm5 = vmor %vm2024_vm12, %vm20884_vm3 }
 0x1e7   : > { %vm19696_vm3 = vmand %vm1026_vm8, %vm1046_vm2 }
 0x273   : > { %v906_v58 = vpop.f32.mrf.mxu1 }
 0x274   : > { %v15857_v59 = vpack.c.bf16 %v906_v58, %v906_v58 }
 0x275   : > { %v16127_v62 = vpop.f32.mrf.mxu1 }
 0x276   : > { %1014 = vst.msk [vmem:[#allocation2] sm:$0xf] %vm1013_vm10, %v15857_v59 }
 0x277   : > { %v909_v1 = vpop.f32.mrf.mxu1 }
 0x278   : > { %v15858_v2 = vpack.c.bf16 %v909_v1, %v909_v1 }
 0x279   : > { %v16128_v5 = vpop.f32.mrf.mxu1 }
 0x27a   : > { %1015 = vst.msk [vmem:[#allocation2 + $0x4] sm:$0xf] %vm1013_vm10, %v15858_v2 }
 0x27b   : > { %v914_v8 = vpop.f32.mrf.mxu1 }
 0x27c   : > { %v15859_v10 = vpack.c.bf16 %v914_v8, %v914_v8 }
 0x27d   : > { %v16131_v13 = vpop.f32.mrf.mxu1  ;;  %v1051_v14 = vld [vmem:[#allocation2] sm:$0xf] }
 0x27e   : > { %v1260_v15 = vld [vmem:[#allocation2] sm:$0xe]  ;;  %1016 = vst.msk [vmem:[#allocation2 + $0x8] sm:$0xf] %vm1013_vm10, %v15859_v10  ;;  %v1064_v17 = vshrl.u32 %v1051_v14, 16  ;;  %v1067_v18 = vshll.u32 %v1051_v14, 16 }
 0x27f   : > { %v1028_v16 = vld [vmem:[#allocation2] sm:$0xf]  ;;  %v1273_v19 = vshrl.u32 %v1260_v15, 16  ;;  %v1276_v20 = vshll.u32 %v1260_v15, 16  ;;  %v917_v21 = vpop.f32.mrf.mxu1  ;;  %v16352_v13 = vld [vmem:[#allocation11 + $0x8] sm:$0xff]  }
 0x280   : > { %1037 = vst.msk [vmem:[#allocation3] sm:$0xf] %vm1013_vm10, %v1028_v16  ;;  %v15860_v24 = vpack.c.bf16 %v917_v21, %v917_v21  ;;  %v1066_v25 = vrot.slane %v1064_v17, 4  ;;  %v1069_v26 = vrot.slane %v1067_v18, 5  ;;  %15922 = vmatpush3.bf16.msra.mxu0 %v16352_v13 }
 0x281   : > { %v1275_v27 = vrot.slane %v1273_v19, 5  ;;  %v16132_v30 = vpop.f32.mrf.mxu1  ;;  %v1052_v31 = vld [vmem:[#allocation2 + $0x4] sm:$0xf]  ;;  %v1278_v33 = vrot.slane %v1276_v20, 6 }
 0x282   : > { %v1261_v32 = vld [vmem:[#allocation2 + $0x4] sm:$0xf]  ;;  %1017 = vst.msk [vmem:[#allocation2 + $0xc] sm:$0xf] %vm1013_vm10, %v15860_v24  ;;  %v1070_v34 = vor.u32 %v1069_v26, %v1066_v25  ;;  %v1073_v35 = vshll.u32 %v1052_v31, 16  ;;  %v1077_v36 = vshrl.u32 %v1052_v31, 16 }
 0x283   : > { %v1282_v37 = vshrl.u32 %v1261_v32, 16  ;;  %v1463_v38 = vld [vmem:[#allocation2 + $0x4] sm:$0xe]  ;;  %v922_v40 = vpop.f32.mrf.mxu1  ;;  %v1279_v42 = vor.u32 %v1278_v33, %v1275_v27  ;;  %v1285_v43 = vshll.u32 %v1261_v32, 16  ;;  %v16354_v31 = vld [vmem:[#allocation11 + $0x40] sm:$0xff]  }
 0x284   : > { %v1473_v44 = vshrl.u32 %v1463_v38, 16  ;;  %v1476_v45 = vshll.u32 %v1463_v38, 16  ;;  %v15861_v47 = vpack.c.bf16 %v922_v40, %v922_v40  ;;  %v1071_v48 = vrot.slane %v1070_v34, 4  ;;  %v1666_v12 = vld [vmem:[#allocation2 + $0x4] sm:$0xc]  ;;  %15923 = vmatprep.subr.bf16.mxu0 %v16354_v31  ;;  %v16361_v31 = vld [vmem:[#allocation11 + $0x80] sm:$0xff]  }
 0x285   : > { %v1075_v49 = vrot.slane %v1073_v35, 5  ;;  %v1079_v50 = vrot.slane %v1077_v36, 4  ;;  %v16135_v52 = vpop.f32.mrf.mxu1  ;;  %v1280_v53 = vrot.slane %v1279_v42, 4  ;;  %v1284_v54 = vrot.slane %v1282_v37, 5  ;;  %v19003_v56 = vld [vmem:[#allocation2 + $0x8] sm:$0xf] }
 0x286   : > { %v1287_v55 = vrot.slane %v1285_v43, 6  ;;  %v1475_v57 = vrot.slane %v1473_v44, 5  ;;  %1018 = vst.msk [vmem:[#allocation2 + $0x10] sm:$0xf] %vm1013_vm10, %v15861_v47  ;;  %v1083_v61 = vshll.u32 %v19003_v56, 16  ;;  %v1087_v62 = vshrl.u32 %v19003_v56, 16 }
 0x287   : > { %v1076_v58 = vsel %vm18999_vm15, %v1071_v48, %v1075_v49  ;;  %v1080_v60 = vor.u32 %v1079_v50, %v1075_v49  ;;  %v1262_v63 = vld [vmem:[#allocation2 + $0x8] sm:$0xf]  ;;  %v925_v1 = vpop.f32.mrf.mxu1  ;;  %v1478_v5 = vrot.slane %v1476_v45, 6  ;;  %v1678_v30 = vshrl.u32 %v1666_v12, 16  ;;  %v16355_v37 = vld [vmem:[#allocation11 + $0xd0] sm:$0xff]  }
 0x288   : > { %v1464_v0 = vld [vmem:[#allocation2 + $0x8] sm:$0xf]  ;;  %1152 = vrot.lane.b32.xlu0 %v1076_v58, %s18706_s29  ;;  %v1288_v2 = vor.u32 %v1287_v55, %v1284_v54  ;;  %v1292_v3 = vshrl.u32 %v1262_v63, 16  ;;  %v1295_v4 = vshll.u32 %v1262_v63, 16  ;;  %v15862_v7 = vpack.c.bf16 %v925_v1, %v925_v1  ;;  %v16357_v49 = vld [vmem:[#allocation11 + $0x90] sm:$0xff]  }
 0x289   : > { %v1081_v8 = vrot.slane %v1080_v60, 4  ;;  %v19017_v10 = vrot.slane %v1083_v61, 5  ;;  %v1482_v11 = vshrl.u32 %v1464_v0, 16  ;;  %v16136_v15 = vpop.f32.mrf.mxu1  ;;  %v1465_v19 = vld [vmem:[#allocation2 + $0xc] sm:$0xf]  ;;  %v16353_v20 = vld [vmem:[#allocation11 + $0x98] sm:$0xff]   ;;  %v1479_v22 = vor.u32 %v1478_v5, %v1475_v57 }
 0x28a   : > { %v1289_v14 = vsel %vm19010_vm0, %v1280_v53, %v1288_v2  ;;  %v1290_v16 = vrot.slane %v1288_v2, 4  ;;  %v1294_v17 = vrot.slane %v1292_v3, 5  ;;  %v1297_v18 = vrot.slane %v1295_v4, 6  ;;  %1019 = vst.msk [vmem:[#allocation2 + $0x14] sm:$0xf] %vm1013_vm10, %v15862_v7  ;;  %15964 = vmatpush3.bf16.msra.mxu1 %v16353_v20  ;;  %v16356_v44 = vld [vmem:[#allocation11] sm:$0xff]  }
 0x28b   : > { %1361 = vrot.lane.b32.xlu1 %v1289_v14, %s18706_s29  ;;  %v1086_v21 = vsel %vm18999_vm15, %v1081_v8, %v19017_v10  ;;  %v1484_v23 = vrot.slane %v1482_v11, 5  ;;  %v1485_v24 = vshll.u32 %v1464_v0, 16  ;;  %v930_v25 = vpop.f32.mrf.mxu1  ;;  %v1492_v27 = vshrl.u32 %v1465_v19, 16  ;;  %v1667_v29 = vld [vmem:[#allocation2 + $0x8] sm:$0xf]  ;;  %15965 = vmatprep.subr.bf16.mxu1 %v16355_v37  ;;  %v16358_v57 = vld [vmem:[#allocation11 + $0xc8] sm:$0xff]  }
 0x28c   : > { %1154 = vrot.lane.b32.xlu0 %v1086_v21, %s18706_s29  ;;  %v19027_v26 = vor.u32 %v1297_v18, %v1294_v17  ;;  %v1495_v28 = vshll.u32 %v1465_v19, 16  ;;  %v15863_v32 = vpack.c.bf16 %v930_v25, %v930_v25  ;;  %v1480_v33 = vrot.slane %v1479_v22, 4  ;;  %v1668_v36 = vld [vmem:[#allocation2 + $0xc] sm:$0xf]  ;;  %15924 = vmatpush3.bf16.msra.mxu0 %v16356_v44  ;;  %v19046_v4 = vld [vmem:[#allocation2] sm:$0xe] }
 0x28d   : > { %v1487_v34 = vrot.slane %v1485_v24, 6  ;;  %v1681_v35 = vshll.u32 %v1666_v12, 16  ;;  %v1494_v39 = vrot.slane %v1492_v27, 5  ;;  %v1680_v42 = vrot.slane %v1678_v30, 6  ;;  %v16139_v43 = vpop.f32.mrf.mxu1  ;;  %v1054_v53 = vld [vmem:[#allocation2 + $0xc] sm:$0xf] }
 0x28e   : > { %v1299_v38 = vsel %vm19010_vm0, %v1290_v16, %v19027_v26  ;;  %v1497_v40 = vrot.slane %v1495_v28, 6  ;;  %1020 = vst.msk [vmem:[#allocation2 + $0x18] sm:$0xf] %vm1013_vm10, %v15863_v32  ;;  %v1687_v47 = vshrl.u32 %v1667_v29, 16  ;;  %v1690_v48 = vshll.u32 %v1667_v29, 16  ;;  %15966 = vmatpush3.bf16.msra.mxu1 %v16357_v49  ;;  %v16359_v5 = vld [vmem:[#allocation11 + $0x88] sm:$0xff]  }
 0x28f   : > { %1363 = vrot.lane.b32.xlu1 %v1299_v38, %s18706_s29  ;;  %v1488_v45 = vor.u32 %v1487_v34, %v1484_v23  ;;  %v1683_v46 = vrot.slane %v1681_v35, 7  ;;  %v1697_v51 = vshrl.u32 %v1668_v36, 16  ;;  %v1700_v52 = vshll.u32 %v1668_v36, 16  ;;  %v19038_v55 = vpop.f32.mrf.mxu1  ;;  %v19042_v0 = vld [vmem:[#allocation2 + $0x10] sm:$0xf]  ;;  %15967 = vmatprep.subr.bf16.mxu1 %v16358_v57 }
 0x290   : > { %v19034_v50 = vor.u32 %v1497_v40, %v1494_v39  ;;  %v1089_v54 = vrot.slane %v1087_v62, 4  ;;  %v1689_v63 = vrot.slane %v1687_v47, 6  ;;  %v1692_v1 = vrot.slane %v1690_v48, 7  ;;  %v1263_v13 = vld [vmem:[#allocation2 + $0xc] sm:$0xf] }
 0x291   : > { %v1489_v58 = vsel %vm19010_vm0, %v1480_v33, %v1488_v45  ;;  %v1490_v60 = vrot.slane %v1488_v45, 4  ;;  %v1684_v61 = vor.u32 %v1683_v46, %v1680_v42  ;;  %v1699_v2 = vrot.slane %v1697_v51, 6  ;;  %v16140_v62 = vpop.f32.mrf.mxu1  ;;  %v1264_v18 = vld [vmem:[#allocation2 + $0x10] sm:$0xf]  ;;  %v1868_v23 = vld [vmem:[#allocation2 + $0x8] sm:$0xc] }
 0x292   : > { %1561 = vrot.lane.b32.xlu0 %v1489_v58, %s18706_s29  ;;  %v1702_v3 = vrot.slane %v1700_v52, 7  ;;  %v1090_v56 = vor.u32 %v1089_v54, %v19017_v10  ;;  %v1093_v11 = vshll.u32 %v1054_v53, 16  ;;  %v1097_v12 = vshrl.u32 %v1054_v53, 16  ;;  %v16360_v10 = vld [vmem:[#allocation11 + $0xc0] sm:$0xff]   ;;  %15968 = vmatpush3.bf16.msra.mxu1 %v16359_v5 }
 0x293   : > { %v1499_v6 = vsel %vm19010_vm0, %v1490_v60, %v19034_v50  ;;  %v1685_v8 = vrot.slane %v1684_v61, 4  ;;  %v1693_v14 = vor.u32 %v1692_v1, %v1689_v63  ;;  %v1103_v17 = vshll.u32 %v19042_v0, 16  ;;  %v19061_v19 = vpop.f32.mrf.mxu1  ;;  %15969 = vmatprep.subr.bf16.mxu1 %v16360_v10  ;;  %v1869_v35 = vld [vmem:[#allocation2 + $0xc] sm:$0xf]  ;;  %v1870_v40 = vld [vmem:[#allocation2 + $0x10] sm:$0xf] }
 0x294   : > { %1563 = vrot.lane.b32.xlu1 %v1499_v6, %s18706_s29  ;;  %v19058_v15 = vor.u32 %v1702_v3, %v1699_v2  ;;  %v1091_v16 = vrot.slane %v1090_v56, 4  ;;  %v1095_v20 = vrot.slane %v1093_v11, 5  ;;  %v1099_v21 = vrot.slane %v1097_v12, 4  ;;  %v2075_v60 = vld [vmem:[#allocation2 + $0x8] sm:$0x8] }
 0x295   : > { %v1300_v22 = vrot.slane %v19027_v26, 4  ;;  %v14379_v24 = vrot.slane %v19046_v4, 9  ;;  %v1694_v25 = vsel %vm19053_vm4, %v1685_v8, %v1693_v14  ;;  %v1695_v27 = vrot.slane %v1693_v14, 4  ;;  %v16143_v30 = vpop.f32.mrf.mxu1  ;;  %v2076_v3 = vld [vmem:[#allocation2 + $0xc] sm:$0xf] }
 0x296   : > { %v19067_v28 = vrot.slane %v1103_v17, 5  ;;  %v1302_v29 = vshrl.u32 %v1263_v13, 16  ;;  %1766 = vrot.lane.b32.xlu0 %v1694_v25, %s18706_s29  ;;  %v1096_v32 = vsel %vm18999_vm15, %v1091_v16, %v1095_v20  ;;  %v1100_v26 = vor.u32 %v1099_v21, %v1095_v20  ;;  %15970 = vmatpush3.bf16.msra.mxu1 %v16361_v31  ;;  %v2077_v11 = vld [vmem:[#allocation2 + $0x10] sm:$0xf]  ;;  %v16913_v7 = vld [vmem:[#allocation14 + $0x680] ss:$16 sps:$4 sm:$0xff]  }
 0x297   : > { %v1305_v33 = vshll.u32 %v1263_v13, 16  ;;  %v1312_v34 = vshrl.u32 %v1264_v18, 16  ;;  %v1704_v36 = vsel %vm19053_vm4, %v1695_v27, %v19058_v15  ;;  %v1315_v38 = vshll.u32 %v1264_v18, 16  ;;  %v19075_v42 = vpop.f32.mrf.mxu1 }
 0x298   : > { %v1304_v37 = vrot.slane %v1302_v29, 5  ;;  %v1878_v39 = vshrl.u32 %v1868_v23, 16  ;;  %1768 = vrot.lane.b32.xlu1 %v1704_v36, %s18706_s29  ;;  %v1101_v43 = vrot.slane %v1100_v26, 4  ;;  %v1881_v46 = vshll.u32 %v1868_v23, 16  ;;  %v1467_v29 = vld [vmem:[#allocation2 + $0x14] sm:$0xf] }
 0x299   : > { %v1307_v44 = vrot.slane %v1305_v33, 6  ;;  %v1314_v45 = vrot.slane %v1312_v34, 5  ;;  %v1317_v47 = vrot.slane %v1315_v38, 6  ;;  %v1887_v49 = vshrl.u32 %v1869_v35, 16  ;;  %v16144_v52 = vpop.f32.mrf.mxu1  ;;  %v1669_v34 = vld [vmem:[#allocation2 + $0x10] sm:$0xf] }
 0x29a   : > { %v1880_v48 = vrot.slane %v1878_v39, 6  ;;  %v1890_v51 = vshll.u32 %v1869_v35, 16  ;;  %1156 = vrot.lane.b32.xlu0 %v1096_v32, %s18706_s29  ;;  %v1106_v53 = vsel %vm18999_vm15, %v1101_v43, %v19067_v28  ;;  %v1883_v57 = vrot.slane %v1881_v46, 7  ;;  %v1029_v43 = vld [vmem:[#allocation2 + $0x4] sm:$0xf] }
 0x29b   : > { %v1308_v54 = vor.u32 %v1307_v44, %v1304_v37  ;;  %v1897_v58 = vshrl.u32 %v1870_v40, 16  ;;  %v19082_v61 = vor.u32 %v1317_v47, %v1314_v45  ;;  %v1889_v63 = vrot.slane %v1887_v49, 6  ;;  %v19084_v56 = vpop.f32.mrf.mxu1  ;;  %v1670_v47 = vld [vmem:[#allocation2 + $0x14] sm:$0xf]  ;;  %1038 = vst.msk [vmem:[#allocation3 + $0x20] sm:$0xf] %vm1013_vm10, %v1029_v43 }
 0x29c   : > { %v1892_v1 = vrot.slane %v1890_v51, 7  ;;  %v1900_v2 = vshll.u32 %v1870_v40, 16  ;;  %1158 = vrot.lane.b32.xlu1 %v1106_v53, %s18706_s29  ;;  %v1884_v6 = vor.u32 %v1883_v57, %v1880_v48  ;;  %v15864_v10 = vpack.c.bf16 %v19038_v55, %v19038_v55  ;;  %v2279_v53 = vld [vmem:[#allocation2 + $0xc] sm:$0x8] }
 0x29d   : > { %v1309_v62 = vsel %vm19010_vm0, %v1300_v22, %v1308_v54  ;;  %v1310_v5 = vrot.slane %v1308_v54, 4  ;;  %v1899_v8 = vrot.slane %v1897_v58, 6  ;;  %v2089_v14 = vshrl.u32 %v2075_v60, 16  ;;  %v16147_v16 = vpop.f32.mrf.mxu1  ;;  %v1466_v22 = vld [vmem:[#allocation2 + $0x10] sm:$0xf] }
 0x29e   : > { %v1893_v12 = vor.u32 %v1892_v1, %v1889_v63  ;;  %v1902_v13 = vrot.slane %v1900_v2, 7  ;;  %v1107_v17 = vshrl.u32 %v19042_v0, 16  ;;  %1365 = vrot.lane.b32.xlu0 %v1309_v62, %s18706_s29  ;;  %v1885_v20 = vrot.slane %v1884_v6, 4  ;;  %1021 = vst.msk [vmem:[#allocation2 + $0x1c] sm:$0xf] %vm1013_vm10, %v15864_v10 }
 0x29f   : > { %v1319_v18 = vsel %vm19010_vm0, %v1310_v5, %v19082_v61  ;;  %v2094_v21 = vshrl.u32 %v2076_v3, 16  ;;  %v2097_v27 = vshll.u32 %v2076_v3, 16  ;;  %v2103_v55 = vshrl.u32 %v2077_v11, 16  ;;  %v19099_v30 = vpop.f32.mrf.mxu1  ;;  %v2280_v63 = vld [vmem:[#allocation2 + $0x10] sm:$0xf] }
 0x2a0   : > { %v1895_v23 = vrot.slane %v1893_v12, 4  ;;  %v19096_v25 = vor.u32 %v1902_v13, %v1899_v8  ;;  %1367 = vrot.lane.b32.xlu1 %v1319_v18, %s18706_s29  ;;  %v14384_v31 = vrot.slane %v2089_v14, 11  ;;  %v2106_v26 = vshll.u32 %v2077_v11, 16  ;;  %v2281_v13 = vld [vmem:[#allocation2 + $0x14] sm:$0xf] }
 0x2a1   : > { %v2096_v32 = vrot.slane %v2094_v21, 7  ;;  %v15865_v33 = vpack.c.bf16 %v19061_v19, %v19061_v19  ;;  %v1894_v35 = vsel %vm19053_vm4, %v1885_v20, %v1893_v12  ;;  %v19115_v38 = vrot.slane %v2103_v55, 7  ;;  %v16148_v40 = vpop.f32.mrf.mxu1  ;;  %v2433_v0 = vld [vmem:[#allocation2 + $0x14] sm:$0xf]  ;;  %v16921_v37 = vld [vmem:[#allocation14 + $0x664] ss:$16 sps:$4 sm:$0xff]  }
 0x2a2   : > { %v1904_v36 = vsel %vm19053_vm4, %v1895_v23, %v19096_v25  ;;  %v1502_v39 = vshrl.u32 %v1466_v22, 16  ;;  %1966 = vrot.lane.b32.xlu0 %v1894_v35, %s18706_s29  ;;  %v1500_v44 = vrot.slane %v19034_v50, 4  ;;  %v1505_v45 = vshll.u32 %v1466_v22, 16  ;;  %v19141_v40 = vld [vmem:[#allocation2 + $0x18] sm:$0xf] }
 0x2a3   : > { %v2099_v19 = vor.u32 %v2097_v27, %v2096_v32  ;;  %1022 = vst.msk [vmem:[#allocation2 + $0x20] sm:$0xf] %vm1013_vm10, %v15865_v33  ;;  %v1512_v46 = vshrl.u32 %v1467_v29, 16  ;;  %v2101_v48 = vrot.slane %v2096_v32, 4  ;;  %v2108_v49 = vor.u32 %v2106_v26, %v19115_v38  ;;  %v19122_v54 = vpop.f32.mrf.mxu1  ;;  %v1056_v26 = vld [vmem:[#allocation2 + $0x14] sm:$0xf] }
 0x2a4   : > { %v1504_v51 = vrot.slane %v1502_v39, 5  ;;  %v1515_v52 = vshll.u32 %v1467_v29, 16  ;;  %1968 = vrot.lane.b32.xlu1 %v1904_v36, %s18706_s29  ;;  %v1507_v58 = vrot.slane %v1505_v45, 6  ;;  %v1707_v60 = vshrl.u32 %v1669_v34, 16  ;;  %v2432_v45 = vld [vmem:[#allocation2 + $0x10] sm:$0xf] }
 0x2a5   : > { %v2100_v57 = vsel %vm19111_vm7, %v14384_v31, %v2099_v19  ;;  %v1514_v50 = vrot.slane %v1512_v46, 5  ;;  %v2109_v1 = vsel %vm19111_vm7, %v2101_v48, %v2108_v49  ;;  %v1710_v3 = vshll.u32 %v1669_v34, 16  ;;  %v16151_v5 = vpop.f32.mrf.mxu1 }
 0x2a6   : > { %v1517_v2 = vrot.slane %v1515_v52, 6  ;;  %v1717_v62 = vshrl.u32 %v1670_v47, 16  ;;  %2173 = vrot.lane.b32.xlu0 %v2100_v57, %s18706_s29  ;;  %v1508_v6 = vor.u32 %v1507_v58, %v1504_v51  ;;  %v1709_v8 = vrot.slane %v1707_v60, 6  ;;  %v19160_v60 = vld [vmem:[#allocation2 + $0x18] sm:$0xf] }
 0x2a7   : > { %v1720_v11 = vshll.u32 %v1670_v47, 16  ;;  %v2290_v12 = vshrl.u32 %v2279_v53, 16  ;;  %v1712_v14 = vrot.slane %v1710_v3, 7  ;;  %v2295_v18 = vshrl.u32 %v2280_v63, 16  ;;  %v957_v20 = vpop.f32.mrf.mxu1 }
 0x2a8   : > { %v19130_v10 = vor.u32 %v1517_v2, %v1514_v50  ;;  %v1719_v16 = vrot.slane %v1717_v62, 6  ;;  %2175 = vrot.lane.b32.xlu1 %v2109_v1, %s18706_s29  ;;  %v1509_v21 = vsel %vm19010_vm0, %v1500_v44, %v1508_v6  ;;  %v1510_v22 = vrot.slane %v1508_v6, 4 }
 0x2a9   : > { %v1705_v23 = vrot.slane %v19058_v15, 4  ;;  %v1722_v27 = vrot.slane %v1720_v11, 7  ;;  %v1713_v55 = vor.u32 %v1712_v14, %v1709_v8  ;;  %v2297_v29 = vrot.slane %v2295_v18, 7  ;;  %v16152_v33 = vpop.f32.mrf.mxu1  ;;  %v1265_v11 = vld [vmem:[#allocation2 + $0x14] sm:$0xf] }
 0x2aa   : > { %v2298_v31 = vshll.u32 %v2280_v63, 16  ;;  %v2304_v32 = vshrl.u32 %v2281_v13, 16  ;;  %1565 = vrot.lane.b32.xlu0 %v1509_v21, %s18706_s29  ;;  %v14386_v35 = vrot.slane %v2290_v12, 11  ;;  %v2307_v36 = vshll.u32 %v2281_v13, 16  ;;  %v1266_v18 = vld [vmem:[#allocation2 + $0x18] sm:$0xf] }
 0x2ab   : > { %v19137_v34 = vor.u32 %v1722_v27, %v1719_v16  ;;  %v1109_v39 = vrot.slane %v1107_v17, 4  ;;  %v1519_v15 = vsel %vm19010_vm0, %v1510_v22, %v19130_v10  ;;  %v1715_v43 = vrot.slane %v1713_v55, 4  ;;  %v1871_v27 = vld [vmem:[#allocation2 + $0x14] sm:$0xf] }
 0x2ac   : > { %v2300_v19 = vor.u32 %v2298_v31, %v2297_v29  ;;  %v2302_v44 = vrot.slane %v2297_v29, 4  ;;  %1567 = vrot.lane.b32.xlu1 %v1519_v15, %s18706_s29  ;;  %v19147_v46 = vrot.slane %v2304_v32, 7  ;;  %v1113_v48 = vshll.u32 %v1056_v26, 16  ;;  %v1030_v15 = vld [vmem:[#allocation2 + $0x8] sm:$0xf] }
 0x2ad   : > { %v1110_v47 = vor.u32 %v1109_v39, %v19067_v28  ;;  %v1117_v49 = vshrl.u32 %v1056_v26, 16  ;;  %v1714_v17 = vsel %vm19053_vm4, %v1705_v23, %v1713_v55  ;;  %v1724_v51 = vsel %vm19053_vm4, %v1715_v43, %v19137_v34  ;;  %v1872_v26 = vld [vmem:[#allocation2 + $0x18] sm:$0xf]  ;;  %1039 = vst.msk [vmem:[#allocation3 + $0x40] sm:$0xf] %vm1013_vm10, %v1030_v15 }
 0x2ae   : > { %v2301_v52 = vsel %vm19111_vm7, %v14386_v35, %v2300_v19  ;;  %v1123_v53 = vshll.u32 %v19141_v40, 16  ;;  %1770 = vrot.lane.b32.xlu0 %v1714_v17, %s18706_s29  ;;  %v2309_v57 = vor.u32 %v2307_v36, %v19147_v46  ;;  %v1115_v58 = vrot.slane %v1113_v48, 5 }
 0x2af   : > { %v1111_v28 = vrot.slane %v1110_v47, 4  ;;  %v1119_v50 = vrot.slane %v1117_v49, 4  ;;  %v1127_v63 = vshrl.u32 %v19141_v40, 16  ;;  %v2442_v1 = vshrl.u32 %v2432_v45, 16  ;;  %v19248_v40 = vld [vmem:[#allocation2 + $0x1c] sm:$0xf] }
 0x2b0   : > { %v2445_v2 = vshll.u32 %v2432_v45, 16  ;;  %v2451_v3 = vshll.u32 %v2433_v0, 16  ;;  %1772 = vrot.lane.b32.xlu1 %v1724_v51, %s18706_s29  ;;  %v2310_v62 = vsel %vm19111_vm7, %v2302_v44, %v2309_v57  ;;  %v19166_v6 = vrot.slane %v1123_v53, 5  ;;  %v2078_v57 = vld [vmem:[#allocation2 + $0x14] sm:$0xf] }
 0x2b1   : > { %v1120_v5 = vor.u32 %v1119_v50, %v1115_v58  ;;  %v2455_v8 = vshrl.u32 %v2433_v0, 16  ;;  %v2444_v12 = vrot.slane %v2442_v1, 4  ;;  %v2461_v16 = vshll.u32 %v19160_v60, 16 }
 0x2b2   : > { %v2447_v13 = vrot.slane %v2445_v2, 5  ;;  %v2453_v14 = vrot.slane %v2451_v3, 5  ;;  %2374 = vrot.lane.b32.xlu0 %v2301_v52, %s18706_s29  ;;  %v1116_v20 = vsel %vm18999_vm15, %v1111_v28, %v1115_v58  ;;  %v2465_v23 = vshrl.u32 %v19160_v60, 16  ;;  %v2079_v2 = vld [vmem:[#allocation2 + $0x18] sm:$0xf] }
 0x2b3   : > { %v1121_v21 = vrot.slane %v1120_v5, 4  ;;  %v2457_v22 = vrot.slane %v2455_v8, 4  ;;  %v1320_v29 = vrot.slane %v19082_v61, 4  ;;  %v1322_v31 = vshrl.u32 %v1265_v11, 16  ;;  %v1031_v61 = vld [vmem:[#allocation2 + $0xc] sm:$0xf] }
 0x2b4   : > { %v2448_v55 = vor.u32 %v2447_v13, %v2444_v12  ;;  %v1325_v32 = vshll.u32 %v1265_v11, 16  ;;  %2376 = vrot.lane.b32.xlu1 %v2310_v62, %s18706_s29  ;;  %v19175_v35 = vrot.slane %v2461_v16, 5  ;;  %v1332_v36 = vshrl.u32 %v1266_v18, 16  ;;  %1040 = vst.msk [vmem:[#allocation3 + $0x60] sm:$0xf] %vm1013_vm10, %v1031_v61 }
 0x2b5   : > { %v2458_v33 = vor.u32 %v2457_v22, %v2453_v14  ;;  %v1335_v39 = vshll.u32 %v1266_v18, 16  ;;  %v1126_v43 = vsel %vm18999_vm15, %v1121_v21, %v19166_v6  ;;  %v1324_v44 = vrot.slane %v1322_v31, 5  ;;  %v1468_v21 = vld [vmem:[#allocation2 + $0x18] sm:$0xf]  ;;  %v1469_v31 = vld [vmem:[#allocation2 + $0x1c] sm:$0xf] }
 0x2b6   : > { %v2449_v19 = vrot.slane %v2448_v55, 4  ;;  %v1327_v45 = vrot.slane %v1325_v32, 6  ;;  %1160 = vrot.lane.b32.xlu0 %v1116_v20, %s18706_s29  ;;  %v1334_v48 = vrot.slane %v1332_v36, 5  ;;  %v1907_v0 = vshrl.u32 %v1871_v27, 16 }
 0x2b7   : > { %v2459_v47 = vrot.slane %v2458_v33, 4  ;;  %v1337_v49 = vrot.slane %v1335_v39, 6  ;;  %v1905_v51 = vrot.slane %v19096_v25, 4  ;;  %v1910_v52 = vshll.u32 %v1871_v27, 16  ;;  %v1671_v33 = vld [vmem:[#allocation2 + $0x18] sm:$0xf] }
 0x2b8   : > { %v1328_v17 = vor.u32 %v1327_v45, %v1324_v44  ;;  %v1917_v53 = vshrl.u32 %v1872_v26, 16  ;;  %1162 = vrot.lane.b32.xlu1 %v1126_v43, %s18706_s29  ;;  %v2454_v28 = vsel %vm18999_vm15, %v2449_v19, %v2453_v14  ;;  %v1909_v50 = vrot.slane %v1907_v0, 6  ;;  %v2282_v43 = vld [vmem:[#allocation2 + $0x18] sm:$0xf] }
 0x2b9   : > { %v2464_v58 = vsel %vm18999_vm15, %v2459_v47, %v19175_v35  ;;  %v1920_v1 = vshll.u32 %v1872_v26, 16  ;;  %v19190_v62 = vor.u32 %v1337_v49, %v1334_v48  ;;  %v1912_v5 = vrot.slane %v1910_v52, 7  ;;  %v1672_v47 = vld [vmem:[#allocation2 + $0x1c] sm:$0xf] }
 0x2ba   : > { %v1330_v3 = vrot.slane %v1328_v17, 4  ;;  %v1919_v25 = vrot.slane %v1917_v53, 6  ;;  %2530 = vrot.lane.b32.xlu0 %v2454_v28, %s18706_s29  ;;  %v1329_v8 = vsel %vm19010_vm0, %v1320_v29, %v1328_v17  ;;  %v15866_v12 = vpack.c.bf16 %v19075_v42, %v19075_v42 }
 0x2bb   : > { %v1922_v11 = vrot.slane %v1920_v1, 7  ;;  %v2112_v13 = vshrl.u32 %v2078_v57, 16  ;;  %v1913_v14 = vor.u32 %v1912_v5, %v1909_v50  ;;  %v2110_v16 = vrot.slane %v19115_v38, 4 }
 0x2bc   : > { %v2115_v18 = vshll.u32 %v2078_v57, 16  ;;  %v2121_v20 = vshrl.u32 %v2079_v2, 16  ;;  %2532 = vrot.lane.b32.xlu1 %v2464_v58, %s18706_s29  ;;  %1023 = vst.msk [vmem:[#allocation2 + $0x24] sm:$0xf] %vm1013_vm10, %v15866_v12  ;;  %v2124_v55 = vshll.u32 %v2079_v2, 16  ;;  %v15867_v29 = vpack.c.bf16 %v19084_v56, %v19084_v56 }
 0x2bd   : > { %v19199_v22 = vor.u32 %v1922_v11, %v1919_v25  ;;  %v2114_v27 = vrot.slane %v2112_v13, 7  ;;  %v1339_v42 = vsel %vm19010_vm0, %v1330_v3, %v19190_v62  ;;  %v1914_v38 = vsel %vm19053_vm4, %v1905_v51, %v1913_v14  ;;  %v1032_v51 = vld [vmem:[#allocation2 + $0x10] sm:$0xf]  ;;  %v1033_v58 = vld [vmem:[#allocation2 + $0x14] sm:$0xf] }
 0x2be   : > { %v1915_v32 = vrot.slane %v1913_v14, 4  ;;  %v19209_v26 = vrot.slane %v2121_v20, 7  ;;  %1369 = vrot.lane.b32.xlu0 %v1329_v8, %s18706_s29  ;;  %1024 = vst.msk [vmem:[#allocation2 + $0x28] sm:$0xf] %vm1013_vm10, %v15867_v29  ;;  %v1520_v39 = vrot.slane %v19130_v10, 4  ;;  %v1522_v56 = vshrl.u32 %v1468_v21, 16 }
 0x2bf   : > { %v2117_v36 = vor.u32 %v2115_v18, %v2114_v27  ;;  %v1525_v15 = vshll.u32 %v1468_v21, 16  ;;  %v2119_v19 = vrot.slane %v2114_v27, 4  ;;  %v1532_v45 = vshrl.u32 %v1469_v31, 16  ;;  %v2283_v10 = vld [vmem:[#allocation2 + $0x1c] sm:$0xf] }
 0x2c0   : > { %v2126_v44 = vor.u32 %v2124_v55, %v19209_v26  ;;  %v1535_v61 = vshll.u32 %v1469_v31, 16  ;;  %1371 = vrot.lane.b32.xlu1 %v1339_v42, %s18706_s29  ;;  %v1924_v48 = vsel %vm19053_vm4, %v1915_v32, %v19199_v22  ;;  %v1524_v49 = vrot.slane %v1522_v56, 5  ;;  %1041 = vst.msk [vmem:[#allocation3 + $0x80] sm:$0xf] %vm1013_vm10, %v1032_v51  ;;  %1042 = vst.msk [vmem:[#allocation3 + $0xa0] sm:$0xf] %vm1013_vm10, %v1033_v58 }
 0x2c1   : > { %v1527_v0 = vrot.slane %v1525_v15, 6  ;;  %v1725_v17 = vrot.slane %v19137_v34, 4  ;;  %v2118_v52 = vsel %vm19111_vm7, %v2110_v16, %v2117_v36  ;;  %v1534_v53 = vrot.slane %v1532_v45, 5  ;;  %v2412_v34 = vld [vmem:[#allocation2 + $0x10] sm:$0xf] }
 0x2c2   : > { %v1537_v57 = vrot.slane %v1535_v61, 6  ;;  %v1727_v28 = vshrl.u32 %v1671_v33, 16  ;;  %1970 = vrot.lane.b32.xlu0 %v1914_v38, %s18706_s29  ;;  %v1730_v1 = vshll.u32 %v1671_v33, 16  ;;  %v1737_v2 = vshrl.u32 %v1672_v47, 16  ;;  %2421 = vst.msk [vmem:[#allocation3 + $0x1c] sm:$0xf] %vm1013_vm10, %v2412_v34 }
 0x2c3   : > { %v1528_v50 = vor.u32 %v1527_v0, %v1524_v49  ;;  %v1740_v3 = vshll.u32 %v1672_v47, 16  ;;  %v2127_v5 = vsel %vm19111_vm7, %v2119_v19, %v2126_v44  ;;  %v2313_v11 = vshrl.u32 %v2282_v43, 16  ;;  %v1058_v55 = vld [vmem:[#allocation2 + $0x1c] sm:$0xf]  ;;  %v19237_v32 = vld [vmem:[#allocation2 + $0x20] sm:$0x3] }
 0x2c4   : > { %v19227_v25 = vor.u32 %v1537_v57, %v1534_v53  ;;  %v1729_v8 = vrot.slane %v1727_v28, 6  ;;  %1972 = vrot.lane.b32.xlu1 %v1924_v48, %s18706_s29  ;;  %v1732_v13 = vrot.slane %v1730_v1, 7  ;;  %v1739_v14 = vrot.slane %v1737_v2, 6  ;;  %v1267_v47 = vld [vmem:[#allocation2 + $0x1c] sm:$0xf] }
 0x2c5   : > { %v1530_v12 = vrot.slane %v1528_v50, 4  ;;  %v2311_v16 = vrot.slane %v19147_v46, 4  ;;  %v1742_v18 = vrot.slane %v1740_v3, 7  ;;  %v2315_v20 = vrot.slane %v2313_v11, 7  ;;  %v2413_v48 = vld [vmem:[#allocation2 + $0x14] sm:$0xf] }
 0x2c6   : > { %v2316_v21 = vshll.u32 %v2282_v43, 16  ;;  %v2322_v27 = vshrl.u32 %v2283_v10, 16  ;;  %2177 = vrot.lane.b32.xlu0 %v2118_v52, %s18706_s29  ;;  %v1529_v29 = vsel %vm19010_vm0, %v1520_v39, %v1528_v50  ;;  %v1733_v31 = vor.u32 %v1732_v13, %v1729_v8  ;;  %2422 = vst.msk [vmem:[#allocation3 + $0x3c] sm:$0xf] %vm1013_vm10, %v2413_v48  ;;  %v1470_v34 = vld [vmem:[#allocation2 + $0x20] sm:$0xf] }
 0x2c7   : > { %v2325_v42 = vshll.u32 %v2283_v10, 16  ;;  %v1129_v38 = vrot.slane %v1127_v63, 4  ;;  %v19239_v33 = vor.u32 %v1742_v18, %v1739_v14  ;;  %v2320_v36 = vrot.slane %v2315_v20, 4  ;;  %v1471_v13 = vld [vmem:[#allocation2 + $0x24] sm:$0x7] }
 0x2c8   : > { %v2318_v46 = vor.u32 %v2316_v21, %v2315_v20  ;;  %v19241_v56 = vrot.slane %v2322_v27, 7  ;;  %2179 = vrot.lane.b32.xlu1 %v2127_v5, %s18706_s29  ;;  %v1539_v15 = vsel %vm19010_vm0, %v1530_v12, %v19227_v25  ;;  %v1735_v39 = vrot.slane %v1733_v31, 4 }
 0x2c9   : > { %v1130_v43 = vor.u32 %v1129_v38, %v19166_v6  ;;  %v1133_v19 = vshll.u32 %v1058_v55, 16  ;;  %v1734_v63 = vsel %vm19053_vm4, %v1725_v17, %v1733_v31  ;;  %v1137_v45 = vshrl.u32 %v1058_v55, 16  ;;  %v1268_v17 = vld [vmem:[#allocation2 + $0x20] sm:$0x7] }
 0x2ca   : > { %v2327_v44 = vor.u32 %v2325_v42, %v19241_v56  ;;  %v1143_v61 = vshll.u32 %v19237_v32, 16  ;;  %1569 = vrot.lane.b32.xlu0 %v1529_v29, %s18706_s29  ;;  %v2319_v49 = vsel %vm19111_vm7, %v2311_v16, %v2318_v46  ;;  %v2467_v10 = vrot.slane %v2465_v23, 4  ;;  %v1673_v46 = vld [vmem:[#allocation2 + $0x20] sm:$0xf] }
 0x2cb   : > { %v19257_v0 = vrot.slane %v1130_v43, 4  ;;  %v19259_v6 = vrot.slane %v1133_v19, 5  ;;  %v1744_v51 = vsel %vm19053_vm4, %v1735_v39, %v19239_v33  ;;  %v1139_v53 = vrot.slane %v1137_v45, 4  ;;  %v1674_v39 = vld [vmem:[#allocation2 + $0x24] sm:$0xf] }
 0x2cc   : > { %v2328_v52 = vsel %vm19111_vm7, %v2320_v36, %v2327_v44  ;;  %v2471_v57 = vshll.u32 %v19248_v40, 16  ;;  %1571 = vrot.lane.b32.xlu1 %v1539_v15, %s18706_s29  ;;  %v19275_v23 = vrot.slane %v1143_v61, 5  ;;  %v2468_v28 = vor.u32 %v2467_v10, %v19175_v35  ;;  %v16362_v43 = vld [vmem:[#allocation11 + $0x178] sm:$0xff]  }
 0x2cd   : > { %v1136_v60 = vsel %vm18999_vm15, %v19257_v0, %v19259_v6  ;;  %v1342_v58 = vshrl.u32 %v1267_v47, 16  ;;  %v1140_v50 = vor.u32 %v1139_v53, %v19259_v6  ;;  %v1345_v2 = vshll.u32 %v1267_v47, 16  ;;  %v19299_v45 = vld [vmem:[#allocation2 + $0x20] sm:$0xf]  ;;  %v1034_v0 = vld [vmem:[#allocation2 + $0x18] sm:$0xf]  ;;  %16001 = vmatprep.subr.bf16.mxu0 %v16362_v43 }
 0x2ce   : > { %v19279_v1 = vrot.slane %v2471_v57, 5  ;;  %v1352_v3 = vshrl.u32 %v1268_v17, 16  ;;  %1774 = vrot.lane.b32.xlu0 %v1734_v63, %s18706_s29  ;;  %v19282_v5 = vrot.slane %v2468_v28, 4  ;;  %v2475_v8 = vshrl.u32 %v19248_v40, 16  ;;  %1043 = vst.msk [vmem:[#allocation3 + $0xc0] sm:$0xf] %vm1013_vm10, %v1034_v0 }
 0x2cf   : > { %v1344_v11 = vrot.slane %v1342_v58, 5  ;;  %v1355_v12 = vshll.u32 %v1268_v17, 16  ;;  %v1141_v14 = vrot.slane %v1140_v50, 4  ;;  %v1347_v16 = vrot.slane %v1345_v2, 6  ;;  %v2414_v53 = vld [vmem:[#allocation2 + $0x18] sm:$0xf] }
 0x2d0   : > { %v1354_v35 = vrot.slane %v1352_v3, 5  ;;  %v1340_v18 = vrot.slane %v19190_v62, 4  ;;  %1776 = vrot.lane.b32.xlu1 %v1744_v51, %s18706_s29  ;;  %v1540_v21 = vrot.slane %v19227_v25, 4  ;;  %v1542_v27 = vshrl.u32 %v1470_v34, 16  ;;  %2423 = vst.msk [vmem:[#allocation3 + $0x5c] sm:$0xf] %vm1013_vm10, %v2414_v53 }
 0x2d1   : > { %v1357_v20 = vrot.slane %v1355_v12, 6  ;;  %v1545_v55 = vshll.u32 %v1470_v34, 16  ;;  %v2474_v29 = vsel %vm18999_vm15, %v19282_v5, %v19279_v1  ;;  %v1348_v31 = vor.u32 %v1347_v16, %v1344_v11  ;;  %v1873_v16 = vld [vmem:[#allocation2 + $0x1c] sm:$0xf] }
 0x2d2   : > { %v1552_v42 = vshrl.u32 %v1471_v13, 16  ;;  %v1555_v38 = vshll.u32 %v1471_v13, 16  ;;  %2378 = vrot.lane.b32.xlu0 %v2319_v49, %s18706_s29  ;;  %v1146_v62 = vsel %vm18999_vm15, %v1141_v14, %v19275_v23  ;;  %v1544_v25 = vrot.slane %v1542_v27, 5  ;;  %v2415_v53 = vld [vmem:[#allocation2 + $0x1c] sm:$0xf] }
 0x2d3   : > { %v19296_v36 = vor.u32 %v1357_v20, %v1354_v35  ;;  %v1547_v15 = vrot.slane %v1545_v55, 6  ;;  %v1350_v19 = vrot.slane %v1348_v31, 4  ;;  %v1745_v44 = vrot.slane %v19239_v33, 4  ;;  %v1035_v33 = vld [vmem:[#allocation2 + $0x1c] sm:$0xf]  ;;  %v16366_v35 = vld [vmem:[#allocation11 + $0x1f8] sm:$0xff]  }
 0x2d4   : > { %v1554_v40 = vrot.slane %v1552_v42, 5  ;;  %v1557_v63 = vrot.slane %v1555_v38, 6  ;;  %2380 = vrot.lane.b32.xlu1 %v2328_v52, %s18706_s29  ;;  %v1747_v48 = vshrl.u32 %v1673_v46, 16  ;;  %v1750_v49 = vshll.u32 %v1673_v46, 16  ;;  %1044 = vst.msk [vmem:[#allocation3 + $0xe0] sm:$0xf] %vm1013_vm10, %v1035_v33  ;;  %16047 = vmatprep.subr.bf16.mxu1 %v16366_v35 }
 0x2d5   : > { %v1360_v61 = vrot.slane %v19296_v36, 4  ;;  %v1548_v47 = vor.u32 %v1547_v15, %v1544_v25  ;;  %v1349_v6 = vsel %vm19010_vm0, %v1340_v18, %v1348_v31  ;;  %v1757_v17 = vshrl.u32 %v1674_v39, 16  ;;  %v1874_v55 = vld [vmem:[#allocation2 + $0x20] sm:$0xf]  ;;  %v2080_v42 = vld [vmem:[#allocation2 + $0x1c] sm:$0xf] }
 0x2d6   : > { %v19305_v10 = vor.u32 %v1557_v63, %v1554_v40  ;;  %v1760_v51 = vshll.u32 %v1674_v39, 16  ;;  %1164 = vrot.lane.b32.xlu0 %v1136_v60, %s18706_s29  ;;  %v1359_v52 = vsel %vm19010_vm0, %v1350_v19, %v19296_v36  ;;  %v1749_v28 = vrot.slane %v1747_v48, 6  ;;  %v2081_v25 = vld [vmem:[#allocation2 + $0x20] sm:$0xf]  ;;  %2424 = vst.msk [vmem:[#allocation3 + $0x7c] sm:$0xf] %vm1013_vm10, %v2415_v53 }
 0x2d7   : > { %v1550_v57 = vrot.slane %v1548_v47, 4  ;;  %v1752_v58 = vrot.slane %v1750_v49, 7  ;;  %v1759_v50 = vrot.slane %v1757_v17, 6  ;;  %v1147_v3 = vshrl.u32 %v19237_v32, 16  ;;  %v2285_v17 = vld [vmem:[#allocation2 + $0x24] sm:$0xf] }
 0x2d8   : > { %v1762_v2 = vrot.slane %v1760_v51, 7  ;;  %v2477_v34 = vrot.slane %v2475_v8, 4  ;;  %1166 = vrot.lane.b32.xlu1 %v1146_v62, %s18706_s29  ;;  %v1549_v60 = vsel %vm19010_vm0, %v1540_v21, %v1548_v47  ;;  %v2481_v12 = vshll.u32 %v19299_v45, 16  ;;  %v19389_v35 = vld [vmem:[#allocation2 + $0x28] sm:$0xf] }
 0x2d9   : > { %v19321_v5 = vsel %vm19010_vm0, %v1550_v57, %v19305_v10  ;;  %v1753_v11 = vor.u32 %v1752_v58, %v1749_v28  ;;  %v1149_v14 = vrot.slane %v1147_v3, 4  ;;  %v15868_v8 = vpack.c.bf16 %v19099_v30, %v19099_v30 }
 0x2da   : > { %v19324_v13 = vor.u32 %v1762_v2, %v1759_v50  ;;  %v2478_v32 = vor.u32 %v2477_v34, %v19279_v1  ;;  %2534 = vrot.lane.b32.xlu0 %v2474_v29, %s18706_s29  ;;  %v19334_v21 = vrot.slane %v2481_v12, 5  ;;  %v2485_v27 = vshrl.u32 %v19299_v45, 16  ;;  %v2284_v45 = vld [vmem:[#allocation2 + $0x20] sm:$0xf]  ;;  %v1194_v50 = vld [vmem:[#allocation2 + $0x4] sm:$0xf] }
 0x2db   : > { %v19332_v18 = vsel %vm19053_vm4, %v1745_v44, %v1753_v11  ;;  %v1755_v20 = vrot.slane %v1753_v11, 4  ;;  %v1150_v31 = vor.u32 %v1149_v14, %v19275_v23  ;;  %1025 = vst.msk [vmem:[#allocation2 + $0x2c] sm:$0xf] %vm1013_vm10, %v15868_v8  ;;  %v1560_v30 = vrot.slane %v19305_v10, 4  ;;  %v17133_v14 = vld [vmem:[#allocation14 + $0xe04] ss:$16 sps:$4 sm:$0xff]  }
 0x2dc   : > { %v19338_v1 = vrot.slane %v2478_v32, 4  ;;  %v15869_v29 = vpack.c.bf16 %v19122_v54, %v19122_v54  ;;  %1375 = vrot.lane.b32.xlu1 %v1359_v52, %s18706_s29  ;;  %v1765_v23 = vrot.slane %v19324_v13, 4  ;;  %v1927_v46 = vshrl.u32 %v1873_v16, 16  ;;  %v2437_v32 = vld [vmem:[#allocation2 + $0x24] sm:$0xf] }
 0x2dd   : > { %v19348_v38 = vsel %vm19053_vm4, %v1755_v20, %v19324_v13  ;;  %v1930_v62 = vshll.u32 %v1873_v16, 16  ;;  %v19351_v15 = vrot.slane %v1150_v31, 4  ;;  %v1925_v54 = vrot.slane %v19199_v22, 4 }
 0x2de   : > { %1027 = vst.msk [vmem:[#allocation2 + $0x30] sm:$0x3] %vm1026_vm8, %v15869_v29  ;;  %v1937_v39 = vshrl.u32 %v1874_v55, 16  ;;  %v1940_v43 = vshll.u32 %v1874_v55, 16  ;;  %1373 = vrot.lane.b32.xlu0 %v1349_v6, %s18706_s29  ;;  %v2484_v19 = vsel %vm18999_vm15, %v19338_v1, %v19334_v21  ;;  %v1929_v40 = vrot.slane %v1927_v46, 6 }
 0x2df   : > { %v1932_v63 = vrot.slane %v1930_v62, 7  ;;  %v2130_v44 = vshrl.u32 %v2080_v42, 16  ;;  %v2133_v49 = vshll.u32 %v2080_v42, 16  ;;  %v2139_v0 = vshrl.u32 %v2081_v25, 16  ;;  %v19397_v29 = vld [vmem:[#allocation2 + $0x8] sm:$0xf] }
 0x2e0   : > { %v1939_v47 = vrot.slane %v1937_v39, 6  ;;  %v1942_v48 = vrot.slane %v1940_v43, 7  ;;  %1377 = vrot.lane.b32.xlu1 %v1360_v61, %s18706_s29  ;;  %v2128_v6 = vrot.slane %v19209_v26, 4  ;;  %v2142_v33 = vshll.u32 %v2081_v25, 16  ;;  %v1399_v25 = vld [vmem:[#allocation2 + $0x4] sm:$0xe] }
 0x2e1   : > { %v1933_v22 = vor.u32 %v1932_v63, %v1929_v40  ;;  %v2132_v51 = vrot.slane %v2130_v44, 7  ;;  %v19366_v57 = vrot.slane %v2139_v0, 7  ;;  %v2331_v28 = vshrl.u32 %v2284_v45, 16  ;;  %v1876_v40 = vld [vmem:[#allocation2 + $0x28] sm:$0xf] }
 0x2e2   : > { %v19364_v52 = vor.u32 %v1942_v48, %v1939_v47  ;;  %v2334_v58 = vshll.u32 %v2284_v45, 16  ;;  %1573 = vrot.lane.b32.xlu0 %v1549_v60, %s18706_s29  ;;  %v2329_v3 = vrot.slane %v19241_v56, 4  ;;  %v2340_v11 = vshrl.u32 %v2285_v17, 16 }
 0x2e3   : > { %v1935_v2 = vrot.slane %v1933_v22, 4  ;;  %v2135_v36 = vor.u32 %v2133_v49, %v2132_v51  ;;  %v2137_v61 = vrot.slane %v2132_v51, 4  ;;  %v2144_v26 = vor.u32 %v2142_v33, %v19366_v57  ;;  %v19435_v33 = vld [vmem:[#allocation2 + $0xc] sm:$0xf] }
 0x2e4   : > { %v2333_v34 = vrot.slane %v2331_v28, 7  ;;  %v2343_v12 = vshll.u32 %v2285_v17, 16  ;;  %1575 = vrot.lane.b32.xlu1 %v19321_v5, %s18706_s29  ;;  %v19382_v60 = vsel %vm19053_vm4, %v1925_v54, %v1933_v22  ;;  %v1216_v8 = vrot.slane %v1194_v50, 5  ;;  %v1400_v54 = vld [vmem:[#allocation2 + $0x8] sm:$0xf] }
 0x2e5   : > { %v19387_v56 = vsel %vm19053_vm4, %v1935_v2, %v19364_v52  ;;  %v2487_v16 = vrot.slane %v2485_v27, 4  ;;  %v19393_v20 = vsel %vm19111_vm7, %v2128_v6, %v2135_v36  ;;  %v19395_v31 = vrot.slane %v2340_v11, 7  ;;  %v1599_v2 = vld [vmem:[#allocation2 + $0x4] sm:$0xc]  ;;  %v1600_v36 = vld [vmem:[#allocation2 + $0x8] sm:$0xf] }
 0x2e6   : > { %v2336_v5 = vor.u32 %v2334_v58, %v2333_v34  ;;  %v2338_v55 = vrot.slane %v2333_v34, 4  ;;  %1778 = vrot.lane.b32.xlu0 %v19332_v18, %s18706_s29  ;;  %v1217_v27 = vsel %vm19374_vm13, %v14379_v24, %v1216_v8  ;;  %v2491_v46 = vshll.u32 %v2437_v32, 16  ;;  %v1875_v24 = vld [vmem:[#allocation2 + $0x24] sm:$0xf] }
 0x2e7   : > { %v2488_v42 = vor.u32 %v2487_v16, %v19334_v21  ;;  %v2495_v62 = vshrl.u32 %v2437_v32, 16  ;;  %v19408_v39 = vsel %vm19111_vm7, %v2137_v61, %v2144_v26  ;;  %v2345_v18 = vor.u32 %v2343_v12, %v19395_v31  ;;  %1249 = vst.msk [vmem:[#allocation3 + $0x4] sm:$0xf] %vm1013_vm10, %v1217_v27  ;;  %v2082_v26 = vld [vmem:[#allocation2 + $0x24] sm:$0xf] }
 0x2e8   : > { %v19412_v43 = vsel %vm19111_vm7, %v2329_v3, %v2336_v5  ;;  %v2501_v4 = vshll.u32 %v19389_v35, 16  ;;  %1780 = vrot.lane.b32.xlu1 %v19348_v38, %s18706_s29  ;;  %v19421_v44 = vrot.slane %v2491_v46, 5  ;;  %v2505_v47 = vshrl.u32 %v19389_v35, 16  ;;  %v2083_v5 = vld [vmem:[#allocation2 + $0x28] sm:$0xf] }
 0x2e9   : > { %v19419_v63 = vrot.slane %v2488_v42, 4  ;;  %v2497_v45 = vrot.slane %v2495_v62, 4  ;;  %v19426_v48 = vsel %vm19111_vm7, %v2338_v55, %v2345_v18  ;;  %v1218_v0 = vrot.slane %v1216_v8, 4  ;;  %v19453_v8 = vld [vmem:[#allocation2 + $0xc] sm:$0xf] }
 0x2ea   : > { %v19428_v49 = vrot.slane %v2501_v4, 5  ;;  %v1219_v17 = vrot.slane %v19397_v29, 5  ;;  %1168 = vrot.lane.b32.xlu0 %v19351_v15, %s18706_s29  ;;  %v1945_v22 = vrot.slane %v19364_v52, 4  ;;  %v1947_v6 = vshrl.u32 %v1875_v24, 16  ;;  %v2416_v55 = vld [vmem:[#allocation2 + $0x20] sm:$0xf] }
 0x2eb   : > { %v2498_v38 = vor.u32 %v2497_v45, %v19421_v44  ;;  %v1950_v51 = vshll.u32 %v1875_v24, 16  ;;  %v14380_v28 = vrot.slane %v1399_v25, 9  ;;  %v1419_v58 = vrot.slane %v1400_v54, 5  ;;  %v2286_v62 = vld [vmem:[#allocation2 + $0x28] sm:$0xf] }
 0x2ec   : > { %v1220_v53 = vsel %vm19374_vm13, %v1218_v0, %v1219_v17  ;;  %v1957_v50 = vshrl.u32 %v1876_v40, 16  ;;  %2536 = vrot.lane.b32.xlu1 %v2484_v19, %s18706_s29  ;;  %v1949_v52 = vrot.slane %v1947_v6, 6  ;;  %v1960_v3 = vshll.u32 %v1876_v40, 16  ;;  %2425 = vst.msk [vmem:[#allocation3 + $0x9c] sm:$0xf] %vm1013_vm10, %v2416_v55 }
 0x2ed   : > { %v19447_v15 = vrot.slane %v2498_v38, 4  ;;  %1250 = vst.msk [vmem:[#allocation3 + $0x24] sm:$0xf] %vm1013_vm10, %v1220_v53  ;;  %v1952_v61 = vrot.slane %v1950_v51, 7  ;;  %v1420_v34 = vsel %vm19374_vm13, %v14380_v28, %v1419_v58  ;;  %v1421_v12 = vrot.slane %v1419_v58, 4 }
 0x2ee   : > { %v1959_v11 = vrot.slane %v1957_v50, 6  ;;  %v1422_v32 = vrot.slane %v19435_v33, 5  ;;  %1577 = vrot.lane.b32.xlu0 %v1560_v30, %s18706_s29  ;;  %v2494_v21 = vsel %vm18999_vm15, %v19419_v63, %v19421_v44  ;;  %1452 = vst.msk [vmem:[#allocation3 + $0x8] sm:$0xf] %vm1013_vm10, %v1420_v34  ;;  %v1962_v16 = vrot.slane %v1960_v3, 7 }
 0x2ef   : > { %v2504_v1 = vsel %vm18999_vm15, %v19447_v15, %v19428_v49  ;;  %v1953_v19 = vor.u32 %v1952_v61, %v1949_v52  ;;  %v2146_v30 = vrot.slane %v19366_v57, 4  ;;  %v2148_v27 = vshrl.u32 %v2082_v26, 16  ;;  %v2417_v4 = vld [vmem:[#allocation2 + $0x24] sm:$0xf]  ;;  %v2287_v38 = vld [vmem:[#allocation2 + $0x2c] sm:$0xf] }
 0x2f0   : > { %v1423_v10 = vsel %vm19374_vm13, %v1421_v12, %v1422_v32  ;;  %v2151_v42 = vshll.u32 %v2082_v26, 16  ;;  %1782 = vrot.lane.b32.xlu1 %v1765_v23, %s18706_s29  ;;  %v19482_v54 = vor.u32 %v1962_v16, %v1959_v11  ;;  %v14381_v57 = vrot.slane %v1599_v2, 10  ;;  %2426 = vst.msk [vmem:[#allocation3 + $0xbc] sm:$0xf] %vm1013_vm10, %v2417_v4  ;;  %v2439_v58 = vld [vmem:[#allocation2 + $0x2c] sm:$0xf] }
 0x2f1   : > { %v1955_v25 = vrot.slane %v1953_v19, 4  ;;  %1453 = vst.msk [vmem:[#allocation3 + $0x28] sm:$0xf] %vm1013_vm10, %v1423_v10  ;;  %v1622_v18 = vrot.slane %v1600_v36, 6  ;;  %v2150_v24 = vrot.slane %v2148_v27, 7  ;;  %v2157_v40 = vshrl.u32 %v2083_v5, 16 }
 0x2f2   : > { %v2160_v45 = vshll.u32 %v2083_v5, 16  ;;  %v1625_v0 = vrot.slane %v19453_v8, 6  ;;  %1974 = vrot.lane.b32.xlu0 %v19382_v60, %s18706_s29  ;;  %v19491_v13 = vsel %vm19053_vm4, %v1945_v22, %v1953_v19  ;;  %v2347_v60 = vrot.slane %v19395_v31, 4  ;;  %v1196_v50 = vld [vmem:[#allocation2 + $0xc] sm:$0xf] }
 0x2f3   : > { %v19496_v23 = vsel %vm19053_vm4, %v1955_v25, %v19482_v54  ;;  %v1623_v6 = vsel %vm19474_vm9, %v14381_v57, %v1622_v18  ;;  %v1624_v51 = vrot.slane %v1622_v18, 4  ;;  %v2153_v53 = vor.u32 %v2151_v42, %v2150_v24  ;;  %v19510_v3 = vld [vmem:[#allocation2 + $0x30] sm:$0x3]  ;;  %v2418_v12 = vld [vmem:[#allocation2 + $0x28] sm:$0xf] }
 0x2f4   : > { %1655 = vst.msk [vmem:[#allocation3 + $0xc] sm:$0xf] %vm1013_vm10, %v1623_v6  ;;  %v19501_v28 = vrot.slane %v2157_v40, 7  ;;  %v2349_v22 = vshrl.u32 %v2286_v62, 16  ;;  %1976 = vrot.lane.b32.xlu1 %v19387_v56, %s18706_s29  ;;  %v2352_v36 = vshll.u32 %v2286_v62, 16  ;;  %v2358_v52 = vshrl.u32 %v2287_v38, 16 }
 0x2f5   : > { %v1626_v2 = vsel %vm19474_vm9, %v1624_v51, %v1625_v0  ;;  %v2361_v61 = vshll.u32 %v2287_v38, 16  ;;  %v19512_v26 = vld [vmem:[#allocation2 + $0x10] sm:$0xf]  ;;  %v2155_v34 = vrot.slane %v2150_v24, 4  ;;  %v2507_v56 = vrot.slane %v2505_v47, 4 }
 0x2f6   : > { %v2162_v31 = vor.u32 %v2160_v45, %v19501_v28  ;;  %1656 = vst.msk [vmem:[#allocation3 + $0x2c] sm:$0xf] %vm1013_vm10, %v1626_v2  ;;  %v2351_v11 = vrot.slane %v2349_v22, 7  ;;  %2181 = vrot.lane.b32.xlu0 %v19393_v20, %s18706_s29  ;;  %v19522_v19 = vsel %vm19111_vm7, %v2146_v30, %v2153_v53  ;;  %v19524_v16 = vrot.slane %v2358_v52, 7  ;;  %2427 = vst.msk [vmem:[#allocation3 + $0xdc] sm:$0xf] %vm1013_vm10, %v2418_v12 }
 0x2f7   : > { %v2511_v5 = vshll.u32 %v2439_v58, 16  ;;  %v2515_v55 = vshrl.u32 %v2439_v58, 16  ;;  %v2419_v10 = vld [vmem:[#allocation2 + $0x2c] sm:$0xf]  ;;  %v2508_v35 = vor.u32 %v2507_v56, %v19428_v49  ;;  %v1221_v47 = vrot.slane %v1219_v17, 4 }
 0x2f8   : > { %v2354_v27 = vor.u32 %v2352_v36, %v2351_v11  ;;  %v2356_v42 = vrot.slane %v2351_v11, 4  ;;  %v1804_v62 = vld [vmem:[#allocation2 + $0x8] sm:$0xc]  ;;  %v1805_v20 = vld [vmem:[#allocation2 + $0xc] sm:$0xf]  ;;  %2183 = vrot.lane.b32.xlu1 %v19408_v39, %s18706_s29  ;;  %v2363_v30 = vor.u32 %v2361_v61, %v19524_v16  ;;  %v1222_v57 = vrot.slane %v1196_v50, 5 }
 0x2f9   : > { %2428 = vst.msk [vmem:[#allocation3 + $0xfc] sm:$0xf] %vm1013_vm10, %v2419_v10  ;;  %v19534_v25 = vrot.slane %v2511_v5, 5  ;;  %v2517_v18 = vrot.slane %v2515_v55, 4  ;;  %v19536_v4 = vld [vmem:[#allocation2 + $0x10] sm:$0xf]  ;;  %v19540_v29 = vsel %vm19111_vm7, %v2155_v34, %v2162_v31 }
 0x2fa   : > { %v1153_v24 = vpop.permute.xlu0 %1152  ;;  %v19542_v17 = vrot.slane %v2508_v35, 4  ;;  %v2521_v40 = vshll.u32 %v19510_v3, 16  ;;  %v1225_v45 = vrot.slane %v19512_v26, 5  ;;  %v2084_v39 = vld [vmem:[#allocation2 + $0x2c] sm:$0x1]  ;;  %2382 = vrot.lane.b32.xlu0 %v19412_v43, %s18706_s29  ;;  %v19551_v38 = vsel %vm19111_vm7, %v2347_v60, %v2354_v27  ;;  %v6291_v27 = vld [vmem:[#allocation7 + $0x78] sm:$0xff] }
 0x2fb   : > { %1180 = vst.msk [vmem:[#allocation3] sm:$0xf] %vm1179_vm6, %v1153_v24  ;;  %v1223_v6 = vsel %vm19374_vm13, %v1221_v47, %v1222_v57  ;;  %v2518_v51 = vor.u32 %v2517_v18, %v19534_v25  ;;  %v1224_v53 = vrot.slane %v1222_v57, 4  ;;  %v2288_v22 = vld [vmem:[#allocation2 + $0x30] sm:$0x1]  ;;  %v19558_v2 = vsel %vm19111_vm7, %v2356_v42, %v2363_v30 }
 0x2fc   : > { %v2004_v58 = vld [vmem:[#allocation2 + $0x8] sm:$0x8]  ;;  %v2005_v50 = vld [vmem:[#allocation2 + $0xc] sm:$0xf]  ;;  %v2514_v43 = vsel %vm18999_vm15, %v19542_v17, %v19534_v25  ;;  %1251 = vst.msk [vmem:[#allocation3 + $0x44] sm:$0xf] %vm1013_vm10, %v1223_v6  ;;  %2384 = vrot.lane.b32.xlu1 %v19426_v48, %s18706_s29 }
 0x2fd   : > { %v19565_v60 = vrot.slane %v2521_v40, 5  ;;  %v1965_v36 = vrot.slane %v19482_v54, 4  ;;  %v19568_v52 = vld [vmem:[#allocation2 + $0x10] sm:$0xf]  ;;  %v1362_v61 = vpop.permute.xlu1 %1361  ;;  %v19572_v34 = vrot.slane %v2518_v51, 4  ;;  %v1226_v31 = vsel %vm19374_vm13, %v1224_v53, %v1225_v45 }
 0x2fe   : > { %v14382_v11 = vrot.slane %v1804_v62, 10  ;;  %v1824_v56 = vrot.slane %v1805_v20, 6  ;;  %1388 = vst.msk [vmem:[#allocation3 + $0x4] sm:$0xf] %vm1179_vm6, %v1362_v61  ;;  %v1155_v12 = vpop.permute.xlu0 %1154  ;;  %v2164_v5 = vrot.slane %v19501_v28, 4  ;;  %v2166_v55 = vshrl.u32 %v2084_v39, 16  ;;  %2538 = vrot.lane.b32.xlu0 %v2494_v21, %s18706_s29 }
 0x2ff   : > { %1252 = vst.msk [vmem:[#allocation3 + $0x64] sm:$0xf] %vm1013_vm10, %v1226_v31  ;;  %v2169_v10 = vshll.u32 %v2084_v39, 16  ;;  %v1827_v48 = vrot.slane %v19536_v4, 6  ;;  %v1402_v42 = vld [vmem:[#allocation2 + $0x10] sm:$0xf]  ;;  %v2524_v49 = vsel %vm18999_vm15, %v19572_v34, %v19565_v60 }
 0x300   : > { %v19588_v35 = vld [vmem:[#allocation2 + $0x14] sm:$0xf]  ;;  %1181 = vst.msk [vmem:[#allocation3 + $0x20] sm:$0xf] %vm1179_vm6, %v1155_v12  ;;  %v1825_v28 = vsel %vm19474_vm9, %v14382_v11, %v1824_v56  ;;  %v1826_v47 = vrot.slane %v1824_v56, 4  ;;  %v2365_v62 = vrot.slane %v19524_v16, 4  ;;  %2540 = vrot.lane.b32.xlu1 %v2504_v1, %s18706_s29 }
 0x301   : > { %v2367_v20 = vshrl.u32 %v2288_v22, 16  ;;  %v1602_v30 = vld [vmem:[#allocation2 + $0x10] sm:$0xf]  ;;  %1857 = vst.msk [vmem:[#allocation3 + $0x10] sm:$0xf] %vm1013_vm10, %v1825_v28  ;;  %v2168_v57 = vrot.slane %v2166_v55, 7  ;;  %v1364_v63 = vpop.permute.xlu1 %1363 }
 0x302   : > { %v2370_v18 = vshll.u32 %v2288_v22, 16  ;;  %v14383_v24 = vrot.slane %v2004_v58, 11  ;;  %v2029_v40 = vrot.slane %v2005_v50, 7  ;;  %v1828_v44 = vsel %vm19474_vm9, %v1826_v47, %v1827_v48  ;;  %v19613_v51 = vld [vmem:[#allocation2 + $0x14] sm:$0xf]  ;;  %1978 = vrot.lane.b32.xlu0 %v19491_v13, %s18706_s29 }
 0x303   : > { %v2369_v21 = vrot.slane %v2367_v20, 7  ;;  %v2525_v39 = vshrl.u32 %v19510_v3, 16  ;;  %v2032_v6 = vrot.slane %v19568_v52, 7  ;;  %v2211_v53 = vld [vmem:[#allocation2 + $0xc] sm:$0x8]  ;;  %v2171_v15 = vor.u32 %v2169_v10, %v2168_v57 }
 0x304   : > { %1389 = vst.msk [vmem:[#allocation3 + $0x24] sm:$0xf] %vm1179_vm6, %v1364_v63  ;;  %v2030_v1 = vsel %vm19584_vm5, %v14383_v24, %v2029_v40  ;;  %v2031_v22 = vrot.slane %v2029_v40, 4  ;;  %v2212_v3 = vld [vmem:[#allocation2 + $0x10] sm:$0xf]  ;;  %v1424_v61 = vrot.slane %v1422_v32, 4  ;;  %v1562_v12 = vpop.permute.xlu0 %1561  ;;  %1980 = vrot.lane.b32.xlu1 %v19496_v23, %s18706_s29 }
 0x305   : > { %1858 = vst.msk [vmem:[#allocation3 + $0x30] sm:$0xf] %vm1013_vm10, %v1828_v44  ;;  %v19623_v58 = vld [vmem:[#allocation2 + $0x14] sm:$0xf]  ;;  %2064 = vst.msk [vmem:[#allocation3 + $0x14] sm:$0xf] %vm1013_vm10, %v2030_v1  ;;  %v19631_v55 = vor.u32 %v2370_v18, %v2369_v21  ;;  %v19646_v33 = vsel %vm19111_vm7, %v2164_v5, %v2171_v15 }
 0x306   : > { %v2527_v50 = vrot.slane %v2525_v39, 4  ;;  %v1425_v31 = vrot.slane %v1402_v42, 5  ;;  %v1428_v11 = vrot.slane %v19588_v35, 5  ;;  %v1198_v56 = vld [vmem:[#allocation2 + $0x14] sm:$0xf]  ;;  %v2033_v10 = vsel %vm19584_vm5, %v2031_v22, %v2032_v6  ;;  %v1564_v20 = vpop.permute.xlu1 %1563  ;;  %2185 = vrot.lane.b32.xlu0 %v19522_v19, %s18706_s29 }
 0x307   : > { %v1627_v13 = vrot.slane %v1625_v0, 4  ;;  %v1628_v28 = vrot.slane %v1602_v30, 6  ;;  %v19639_v47 = vld [vmem:[#allocation2 + $0x18] sm:$0xf]  ;;  %1588 = vst.msk [vmem:[#allocation3 + $0x8] sm:$0xf] %vm1179_vm6, %v1562_v12 }
 0x308   : > { %v2528_v32 = vor.u32 %v2527_v50, %v19565_v60  ;;  %2065 = vst.msk [vmem:[#allocation3 + $0x34] sm:$0xf] %vm1013_vm10, %v2033_v10  ;;  %v1426_v8 = vsel %vm19374_vm13, %v1424_v61, %v1425_v31  ;;  %v1427_v0 = vrot.slane %v1425_v31, 4  ;;  %v1807_v42 = vld [vmem:[#allocation2 + $0x14] sm:$0xf]  ;;  %v1631_v57 = vrot.slane %v19613_v51, 6  ;;  %v1767_v31 = vpop.permute.xlu0 %1766  ;;  %2187 = vrot.lane.b32.xlu1 %v19540_v29, %s18706_s29 }
 0x309   : > { %1454 = vst.msk [vmem:[#allocation3 + $0x48] sm:$0xf] %vm1013_vm10, %v1426_v8  ;;  %v1629_v30 = vsel %vm19474_vm9, %v1627_v13, %v1628_v28  ;;  %v1630_v23 = vrot.slane %v1628_v28, 4  ;;  %v14385_v5 = vrot.slane %v2211_v53, 11  ;;  %v19656_v18 = vld [vmem:[#allocation2 + $0x18] sm:$0xf] }
 0x30a   : > { %1589 = vst.msk [vmem:[#allocation3 + $0x28] sm:$0xf] %vm1179_vm6, %v1564_v20  ;;  %v2568_v24 = vld [vmem:[#allocation3] sm:$0xff]  ;;  %v19661_v40 = vrot.slane %v2528_v32, 4  ;;  %v1429_v63 = vsel %vm19374_vm13, %v1427_v0, %v1428_v11  ;;  %v2233_v44 = vrot.slane %v2212_v3, 7  ;;  %v2236_v21 = vrot.slane %v19623_v58, 7  ;;  %2386 = vrot.lane.b32.xlu0 %v19551_v38, %s18706_s29 }
 0x30b   : > { %1657 = vst.msk [vmem:[#allocation3 + $0x4c] sm:$0xf] %vm1013_vm10, %v1629_v30  ;;  %v2007_v39 = vld [vmem:[#allocation2 + $0x14] sm:$0xf]  ;;  %v19669_v53 = vld [vmem:[#allocation2 + $0x18] sm:$0xf]  ;;  %v1632_v19 = vsel %vm19474_vm9, %v1630_v23, %v1631_v57 }
 0x30c   : > { %1455 = vst.msk [vmem:[#allocation3 + $0x68] sm:$0xf] %vm1013_vm10, %v1429_v63  ;;  %v1227_v15 = vrot.slane %v1225_v45, 4  ;;  %v1228_v1 = vrot.slane %v1198_v56, 5  ;;  %v1231_v22 = vrot.slane %v19639_v47, 5  ;;  %v16363_v61 = vld [vmem:[#allocation11 + $0x138] sm:$0xff]   ;;  %v2234_v10 = vsel %vm19584_vm5, %v14385_v5, %v2233_v44  ;;  %2388 = vrot.lane.b32.xlu1 %v19558_v2, %s18706_s29 }
 0x30d   : > { %v1404_v50 = vld [vmem:[#allocation2 + $0x18] sm:$0xf]  ;;  %v19679_v3 = vld [vmem:[#allocation2 + $0x1c] sm:$0xf]  ;;  %1658 = vst.msk [vmem:[#allocation3 + $0x6c] sm:$0xf] %vm1013_vm10, %v1632_v19 }
 0x30e   : > { %v2572_v12 = vld [vmem:[#allocation3 + $0x20] sm:$0xff]  ;;  %v2235_v13 = vrot.slane %v2233_v44, 4  ;;  %v1829_v26 = vrot.slane %v1827_v48, 4  ;;  %v1830_v45 = vrot.slane %v1807_v42, 6  ;;  %1793 = vst.msk [vmem:[#allocation3 + $0xc] sm:$0xf] %vm1179_vm6, %v1767_v31  ;;  %v1229_v29 = vsel %vm19374_vm13, %v1227_v15, %v1228_v1  ;;  %v1769_v48 = vpop.permute.xlu1 %1768  ;;  %2542 = vrot.lane.b32.xlu0 %v2514_v43, %s18706_s29 }
 0x30f   : > { %v1604_v56 = vld [vmem:[#allocation2 + $0x18] sm:$0xf]  ;;  %v14388_v32 = vcombine.low %v2568_v24, %v2572_v12  ;;  %v14389_v8 = vcombine.high %v2568_v24, %v2572_v12  ;;  %2268 = vst.msk [vmem:[#allocation3 + $0x18] sm:$0xf] %vm1013_vm10, %v2234_v10  ;;  %v1230_v0 = vrot.slane %v1228_v1, 4  ;;  %v1833_v5 = vrot.slane %v19656_v18, 6  ;;  %v1157_v10 = vpop.permute.xlu0 %1156 }
 0x310   : > { %v16364_v28 = vld [vmem:[#allocation11 + $0x170] sm:$0xff]   ;;  %v2237_v42 = vsel %vm19584_vm5, %v2235_v13, %v2236_v21  ;;  %1253 = vst.msk [vmem:[#allocation3 + $0x84] sm:$0xf] %vm1013_vm10, %v1229_v29  ;;  %v1831_v30 = vsel %vm19474_vm9, %v1829_v26, %v1830_v45  ;;  %v1832_v23 = vrot.slane %v1830_v45, 4  ;;  %v2034_v63 = vrot.slane %v2032_v6, 4  ;;  %v16368_v26 = vld [vmem:[#allocation11 + $0x168] sm:$0xff]   ;;  %2544 = vrot.lane.b32.xlu1 %v2524_v49, %s18706_s29 }
 0x311   : > { %v19692_v20 = vld [vmem:[#allocation2 + $0x1c] sm:$0xf]  ;;  %v19710_v24 = vld [vmem:[#allocation2 + $0x18] sm:$0xf]  ;;  %1794 = vst.msk [vmem:[#allocation3 + $0x2c] sm:$0xf] %vm1179_vm6, %v1769_v48  ;;  %3343 = vmatprep.mubr.bf16.mxu0 %v14389_v8  ;;  %v1232_v38 = vsel %vm19374_vm13, %v1230_v0, %v1231_v22 }
 0x312   : > { %2269 = vst.msk [vmem:[#allocation3 + $0x38] sm:$0xf] %vm1013_vm10, %v2237_v42  ;;  %1859 = vst.msk [vmem:[#allocation3 + $0x50] sm:$0xf] %vm1013_vm10, %v1831_v30  ;;  %v2035_v44 = vrot.slane %v2007_v39, 7  ;;  %v2038_v19 = vrot.slane %v19669_v53, 7  ;;  %3344 = vmatmul.mubr.bf16.vlgmr.msra.gmra.mxu0 %v14388_v32  ;;  %v1834_v52 = vsel %vm19474_vm9, %v1832_v23, %v1833_v5  ;;  %v1159_v29 = vpop.permute.xlu1 %1158  ;;  %1982 = vrot.lane.b32.xlu0 %v1965_v36, %s18706_s29 }
 0x313   : > { %v19722_v15 = vld [vmem:[#allocation2 + $0x1c] sm:$0xf]  ;;  %v19726_v31 = vld [vmem:[#allocation2 + $0x20] sm:$0x7]  ;;  %1254 = vst.msk [vmem:[#allocation3 + $0xa4] sm:$0xf] %vm1013_vm10, %v1232_v38  ;;  %16002 = vmatpush3.bf16.msra.mxu0 %v16363_v61 }
 0x314   : > { %v19724_v1 = vld [vmem:[#allocation2 + $0x1c] sm:$0xf]  ;;  %v1430_v6 = vrot.slane %v1428_v11, 4  ;;  %v1431_v39 = vrot.slane %v1404_v50, 5  ;;  %v1434_v13 = vrot.slane %v19679_v3, 5  ;;  %v2036_v2 = vsel %vm19584_vm5, %v2034_v63, %v2035_v44  ;;  %16003 = vmatprep.subr.bf16.mxu0 %v16364_v28  ;;  %v16369_v30 = vld [vmem:[#allocation11 + $0x128] sm:$0xff]   ;;  %2189 = vrot.lane.b32.xlu1 %v19646_v33, %s18706_s29 }
 0x315   : > { %v16365_v12 = vld [vmem:[#allocation11 + $0x130] sm:$0xff]   ;;  %1182 = vst.msk [vmem:[#allocation3 + $0x40] sm:$0xf] %vm1179_vm6, %v1157_v10  ;;  %v2037_v45 = vrot.slane %v2035_v44, 4  ;;  %v1633_v32 = vrot.slane %v1631_v57, 4  ;;  %v1634_v8 = vrot.slane %v1604_v56, 6 }
 0x316   : > { %1860 = vst.msk [vmem:[#allocation3 + $0x70] sm:$0xf] %vm1013_vm10, %v1834_v52  ;;  %2066 = vst.msk [vmem:[#allocation3 + $0x54] sm:$0xf] %vm1013_vm10, %v2036_v2  ;;  %v1432_v35 = vsel %vm19374_vm13, %v1430_v6, %v1431_v39  ;;  %v1433_v11 = vrot.slane %v1431_v39, 4  ;;  %v1637_v50 = vrot.slane %v19692_v20, 6  ;;  %v2373_v6 = vsel %vm19111_vm7, %v2365_v62, %v19631_v55 }
 0x317   : > { %v2238_v51 = vrot.slane %v2236_v21, 4  ;;  %1183 = vst.msk [vmem:[#allocation3 + $0x60] sm:$0xf] %vm1179_vm6, %v1159_v29  ;;  %v2039_v25 = vsel %vm19584_vm5, %v2037_v45, %v2038_v19  ;;  %v1635_v17 = vsel %vm19474_vm9, %v1633_v32, %v1634_v8  ;;  %v1636_v43 = vrot.slane %v1634_v8, 4  ;;  %v1257_v3 = vld [vmem:[#allocation3 + $0x104] sm:$0x3]  ;;  %v1366_v21 = vpop.permute.xlu0 %1365  ;;  %16004 = vmatpush3.bf16.msra.mxu0 %v16365_v12  ;;  %2390 = vrot.lane.b32.xlu0 %v2373_v6, %s18706_s29 }
 0x318   : > { %1456 = vst.msk [vmem:[#allocation3 + $0x88] sm:$0xf] %vm1013_vm10, %v1432_v35  ;;  %v2239_v57 = vrot.slane %v19710_v24, 7  ;;  %v19765_v61 = vld [vmem:[#allocation2 + $0x20] sm:$0xf]  ;;  %v1435_v56 = vsel %vm19374_vm13, %v1433_v11, %v1434_v13  ;;  %v2242_v28 = vrot.slane %v19722_v15, 7  ;;  %16005 = vmatprep.subr.bf16.mxu0 %v16368_v26  ;;  %2546 = vrot.lane.b32.xlu1 %v19661_v40, %s18706_s29 }
 0x319   : > { %v19767_v58 = vld [vmem:[#allocation2 + $0x24] sm:$0x7]  ;;  %2067 = vst.msk [vmem:[#allocation3 + $0x74] sm:$0xf] %vm1013_vm10, %v2039_v25  ;;  %1659 = vst.msk [vmem:[#allocation3 + $0x8c] sm:$0xf] %vm1013_vm10, %v1635_v17  ;;  %v1638_v49 = vsel %vm19474_vm9, %v1636_v43, %v1637_v50 }
 0x31a   : > { %v1234_v0 = vrot.slane %v19724_v1, 5  ;;  %v1237_v48 = vrot.slane %v19726_v31, 5  ;;  %v19782_v42 = vld [vmem:[#allocation2 + $0x20] sm:$0xf]  ;;  %v19784_v23 = vld [vmem:[#allocation2 + $0x24] sm:$0xf]  ;;  %v2240_v24 = vsel %vm19584_vm5, %v2238_v51, %v2239_v57  ;;  %v1368_v31 = vpop.permute.xlu1 %1367 }
 0x31b   : > { %v1048_v60 = vld [vmem:[#allocation3 + $0x100] sm:$0x3]  ;;  %v1036_v34 = vld [vmem:[#allocation2 + $0x20] sm:$0x3]  ;;  %1390 = vst.msk [vmem:[#allocation3 + $0x44] sm:$0xf] %vm1179_vm6, %v1366_v21  ;;  %16006 = vmatpush3.bf16.msra.mxu0 %v16369_v30 }
 0x31c   : > { %1457 = vst.msk [vmem:[#allocation3 + $0xa8] sm:$0xf] %vm1013_vm10, %v1435_v56  ;;  %v2241_v38 = vrot.slane %v2239_v57, 4  ;;  %v1233_v63 = vrot.slane %v1231_v22, 4  ;;  %v16367_v44 = vld [vmem:[#allocation11 + $0x1b8] sm:$0xff]   ;;  %v16372_v1 = vld [vmem:[#allocation11 + $0x160] sm:$0xff]   ;;  %v1049_v57 = vsel %vm19696_vm3, %v1036_v34, %v1048_v60 }
 0x31d   : > { %v2569_v10 = vld [vmem:[#allocation3 + $0x8] sm:$0xff]  ;;  %1660 = vst.msk [vmem:[#allocation3 + $0xac] sm:$0xf] %vm1013_vm10, %v1638_v49  ;;  %2270 = vst.msk [vmem:[#allocation3 + $0x58] sm:$0xf] %vm1013_vm10, %v2240_v24  ;;  %v1236_v47 = vrot.slane %v1234_v0, 4  ;;  %16007 = vmatprep.subr.bf16.mxu0 %v16372_v1 }
 0x31e   : > { %v2573_v52 = vld [vmem:[#allocation3 + $0x28] sm:$0xff]  ;;  %v1239_v22 = vrot.slane %v1237_v48, 4  ;;  %v1436_v12 = vrot.slane %v1434_v13, 4  ;;  %1391 = vst.msk [vmem:[#allocation3 + $0x64] sm:$0xf] %vm1179_vm6, %v1368_v31  ;;  %v2243_v16 = vsel %vm19584_vm5, %v2241_v38, %v2242_v28  ;;  %v1235_v62 = vsel %vm19374_vm13, %v1233_v63, %v1234_v0  ;;  %v16373_v55 = vld [vmem:[#allocation11 + $0x120] sm:$0xff]   ;;  %v1967_v13 = vpop.permute.xlu0 %1966  ;;  %v1969_v21 = vpop.permute.xlu1 %1968 }
 0x31f   : > { %v16370_v39 = vld [vmem:[#allocation11 + $0x1f0] sm:$0xff]   ;;  %v14390_v54 = vcombine.low %v2569_v10, %v2573_v52  ;;  %v14391_v36 = vcombine.high %v2569_v10, %v2573_v52  ;;  %2271 = vst.msk [vmem:[#allocation3 + $0x78] sm:$0xf] %vm1013_vm10, %v2243_v16  ;;  %v1238_v26 = vsel %vm19374_vm13, %v1236_v47, %v1237_v48  ;;  %1255 = vst.msk [vmem:[#allocation3 + $0xc4] sm:$0xf] %vm1013_vm10, %v1235_v62  ;;  %v1437_v29 = vrot.slane %v19765_v61, 5 }
 0x320   : > { %v19806_v2 = vld [vmem:[#allocation2 + $0x1c] sm:$0xf]  ;;  %v19815_v32 = vld [vmem:[#allocation2 + $0x20] sm:$0xf]  ;;  %v1258_v8 = vsel %vm19696_vm3, %v1239_v22, %v1257_v3  ;;  %v1440_v35 = vrot.slane %v19767_v58, 5  ;;  %v1639_v33 = vrot.slane %v1637_v50, 4  ;;  %16008 = vmatpush3.bf16.msra.mxu0 %v16373_v55 }
 0x321   : > { %v1460_v45 = vld [vmem:[#allocation3 + $0x108] sm:$0x3]  ;;  %v16376_v11 = vld [vmem:[#allocation11 + $0x158] sm:$0xff]   ;;  %1993 = vst.msk [vmem:[#allocation3 + $0x10] sm:$0xf] %vm1179_vm6, %v1967_v13  ;;  %3415 = vmatprep.mubr.bf16.mxu1 %v14391_v36  ;;  %v1640_v25 = vrot.slane %v19782_v42, 6  ;;  %v1438_v20 = vsel %vm19374_vm13, %v1436_v12, %v1437_v29 }
 0x322   : > { %v1663_v51 = vld [vmem:[#allocation3 + $0x10c] sm:$0x3]  ;;  %1256 = vst.msk [vmem:[#allocation3 + $0xe4] sm:$0xf] %vm1013_vm10, %v1238_v26  ;;  %1259 = vst [vmem:[#allocation3 + $0x104] sm:$0x3] %v1258_v8  ;;  %3416 = vmatmul.mubr.bf16.vlgmr.msra.gmra.mxu1 %v14390_v54  ;;  %v2174_v24 = vpop.permute.xlu0 %2173  ;;  %v2176_v12 = vpop.permute.xlu1 %2175  ;;  %16009 = vmatprep.subr.bf16.mxu0 %v16376_v11 }
 0x323   : > { %v1643_v17 = vrot.slane %v19784_v23, 6  ;;  %v16371_v43 = vld [vmem:[#allocation11 + $0x1b0] sm:$0xff]   ;;  %v1439_v50 = vrot.slane %v1437_v29, 4  ;;  %v1442_v56 = vrot.slane %v1440_v35, 4  ;;  %1050 = vst [vmem:[#allocation3 + $0x100] sm:$0x3] %v1049_v57  ;;  %16048 = vmatpush3.bf16.msra.mxu1 %v16367_v44  ;;  %v1641_v30 = vsel %vm19474_vm9, %v1639_v33, %v1640_v25 }
 0x324   : > { %v19835_v3 = vld [vmem:[#allocation2 + $0x1c] sm:$0xf]  ;;  %v19837_v61 = vld [vmem:[#allocation2 + $0x20] sm:$0xf]  ;;  %v16374_v0 = vld [vmem:[#allocation11 + $0x1e8] sm:$0xff]   ;;  %v1835_v48 = vrot.slane %v1833_v5, 4  ;;  %16049 = vmatprep.subr.bf16.mxu1 %v16370_v39 }
 0x325   : > { %v19839_v58 = vld [vmem:[#allocation2 + $0x20] sm:$0xf]  ;;  %v19846_v42 = vld [vmem:[#allocation2 + $0x24] sm:$0xf]  ;;  %1994 = vst.msk [vmem:[#allocation3 + $0x30] sm:$0xf] %vm1179_vm6, %v1969_v21  ;;  %v1441_v5 = vsel %vm19374_vm13, %v1439_v50, %v1440_v35  ;;  %v1461_v38 = vsel %vm19696_vm3, %v1442_v56, %v1460_v45 }
 0x326   : > { %1458 = vst.msk [vmem:[#allocation3 + $0xc8] sm:$0xf] %vm1013_vm10, %v1438_v20  ;;  %v1642_v23 = vrot.slane %v1640_v25, 4  ;;  %v1645_v60 = vrot.slane %v1643_v17, 4  ;;  %v16377_v34 = vld [vmem:[#allocation11 + $0x118] sm:$0xff]   ;;  %v1836_v49 = vrot.slane %v19806_v2, 6  ;;  %v1566_v29 = vpop.permute.xlu0 %1565  ;;  %v1568_v20 = vpop.permute.xlu1 %1567 }
 0x327   : > { %v2576_v18 = vld [vmem:[#allocation3 + $0x40] sm:$0xff]  ;;  %1661 = vst.msk [vmem:[#allocation3 + $0xcc] sm:$0xf] %vm1013_vm10, %v1641_v30  ;;  %v1839_v44 = vrot.slane %v19815_v32, 6  ;;  %v2040_v1 = vrot.slane %v2038_v19, 4  ;;  %v16378_v2 = vld [vmem:[#allocation11 + $0x1e0] sm:$0xff]   ;;  %16050 = vmatpush3.bf16.msra.mxu1 %v16371_v43  ;;  %16010 = vmatpush3.bf16.msra.mxu0 %v16377_v34 }
 0x328   : > { %v16380_v63 = vld [vmem:[#allocation11 + $0x150] sm:$0xff]   ;;  %v19863_v31 = vld [vmem:[#allocation2 + $0x24] sm:$0xf]  ;;  %v19865_v10 = vld [vmem:[#allocation2 + $0x28] sm:$0xf]  ;;  %v1644_v40 = vsel %vm19474_vm9, %v1642_v23, %v1643_v17  ;;  %v1664_v6 = vsel %vm19696_vm3, %v1645_v60, %v1663_v51  ;;  %v1837_v53 = vsel %vm19474_vm9, %v1835_v48, %v1836_v49  ;;  %v1838_v19 = vrot.slane %v1836_v49, 4  ;;  %16051 = vmatprep.subr.bf16.mxu1 %v16374_v0 }
 0x329   : > { %2200 = vst.msk [vmem:[#allocation3 + $0x14] sm:$0xf] %vm1179_vm6, %v2174_v24  ;;  %v16375_v52 = vld [vmem:[#allocation11 + $0x1a8] sm:$0xff]   ;;  %1462 = vst [vmem:[#allocation3 + $0x108] sm:$0x3] %v1461_v38  ;;  %v2041_v54 = vrot.slane %v19835_v3, 7  ;;  %16011 = vmatprep.subr.bf16.mxu0 %v16380_v63 }
 0x32a   : > { %1459 = vst.msk [vmem:[#allocation3 + $0xe8] sm:$0xf] %vm1013_vm10, %v1441_v5  ;;  %v19875_v47 = vld [vmem:[#allocation2 + $0x24] sm:$0xf]  ;;  %v19877_v22 = vld [vmem:[#allocation2 + $0x28] sm:$0xf]  ;;  %v1840_v13 = vsel %vm19474_vm9, %v1838_v19, %v1839_v44 }
 0x32b   : > { %v2580_v39 = vld [vmem:[#allocation3 + $0x60] sm:$0xff]  ;;  %1662 = vst.msk [vmem:[#allocation3 + $0xec] sm:$0xf] %vm1013_vm10, %v1644_v40  ;;  %1665 = vst [vmem:[#allocation3 + $0x10c] sm:$0x3] %v1664_v6  ;;  %v2044_v36 = vrot.slane %v19837_v61, 7  ;;  %v2042_v15 = vsel %vm19584_vm5, %v2040_v1, %v2041_v54  ;;  %16052 = vmatpush3.bf16.msra.mxu1 %v16375_v52 }
 0x32c   : > { %1861 = vst.msk [vmem:[#allocation3 + $0x90] sm:$0xf] %vm1013_vm10, %v1837_v53  ;;  %v2244_v16 = vrot.slane %v2242_v28, 4  ;;  %v2245_v62 = vrot.slane %v19839_v58, 7  ;;  %v14397_v55 = vcombine.high %v2576_v18, %v2580_v39  ;;  %v14396_v45 = vcombine.low %v2576_v18, %v2580_v39  ;;  %v16381_v32 = vld [vmem:[#allocation11 + $0x110] sm:$0xff]   ;;  %v16385_v28 = vld [vmem:[#allocation11 + $0x148] sm:$0xff]   ;;  %v1771_v18 = vpop.permute.xlu0 %1770  ;;  %16053 = vmatprep.subr.bf16.mxu1 %v16378_v2 }
 0x32d   : > { %2201 = vst.msk [vmem:[#allocation3 + $0x34] sm:$0xf] %vm1179_vm6, %v2176_v12  ;;  %v2248_v26 = vrot.slane %v19846_v42, 7  ;;  %v19890_v8 = vld [vmem:[#allocation2 + $0x28] sm:$0xf]  ;;  %v2043_v35 = vrot.slane %v2041_v54, 4  ;;  %16012 = vmatpush3.bf16.msra.mxu0 %v16381_v32 }
 0x32e   : > { %1862 = vst.msk [vmem:[#allocation3 + $0xb0] sm:$0xf] %vm1013_vm10, %v1840_v13  ;;  %v2246_v11 = vsel %vm19584_vm5, %v2244_v16, %v2245_v62  ;;  %v2247_v51 = vrot.slane %v2245_v62, 4  ;;  %v19897_v33 = vld [vmem:[#allocation2 + $0x2c] sm:$0xf]  ;;  %3351 = vmatprep.mubr.bf16.mxu0 %v14397_v55  ;;  %v1841_v57 = vrot.slane %v1839_v44, 4  ;;  %16013 = vmatprep.subr.bf16.mxu0 %v16385_v28 }
 0x32f   : > { %v1865_v25 = vld [vmem:[#allocation3 + $0x110] sm:$0x3]  ;;  %v19899_v17 = vld [vmem:[#allocation2 + $0x2c] sm:$0x1]  ;;  %1590 = vst.msk [vmem:[#allocation3 + $0x48] sm:$0xf] %vm1179_vm6, %v1566_v29  ;;  %3352 = vmatmul.mubr.bf16.gmra.mxu0 %v14396_v45  ;;  %v2045_v56 = vsel %vm19584_vm5, %v2043_v35, %v2044_v36 }
 0x330   : > { %v16379_v43 = vld [vmem:[#allocation11 + $0x1a0] sm:$0xff]   ;;  %2068 = vst.msk [vmem:[#allocation3 + $0x94] sm:$0xf] %vm1013_vm10, %v2042_v15  ;;  %2272 = vst.msk [vmem:[#allocation3 + $0x98] sm:$0xf] %vm1013_vm10, %v2246_v11  ;;  %v1842_v3 = vrot.slane %v19863_v31, 6  ;;  %v2249_v0 = vsel %vm19584_vm5, %v2247_v51, %v2248_v26  ;;  %v2375_v62 = vpop.permute.xlu0 %2374 }
 0x331   : > { %v1845_v61 = vrot.slane %v19865_v10, 6  ;;  %v2046_v58 = vrot.slane %v2044_v36, 4  ;;  %v19906_v21 = vld [vmem:[#allocation2 + $0x30] sm:$0x1]  ;;  %v16382_v50 = vld [vmem:[#allocation11 + $0x1d8] sm:$0xff]   ;;  %v2047_v48 = vrot.slane %v19875_v47, 7  ;;  %v1773_v47 = vpop.permute.xlu1 %1772  ;;  %16054 = vmatpush3.bf16.msra.mxu1 %v16379_v43 }
 0x332   : > { %v2050_v42 = vrot.slane %v19877_v22, 7  ;;  %1591 = vst.msk [vmem:[#allocation3 + $0x68] sm:$0xf] %vm1179_vm6, %v1568_v20  ;;  %v16386_v30 = vld [vmem:[#allocation11 + $0x108] sm:$0xff]   ;;  %v1843_v23 = vsel %vm19474_vm9, %v1841_v57, %v1842_v3  ;;  %v1844_v60 = vrot.slane %v1842_v3, 4  ;;  %v2250_v49 = vrot.slane %v2248_v26, 4  ;;  %16055 = vmatprep.subr.bf16.mxu1 %v16382_v50 }
 0x333   : > { %2069 = vst.msk [vmem:[#allocation3 + $0xb4] sm:$0xf] %vm1013_vm10, %v2045_v56  ;;  %2273 = vst.msk [vmem:[#allocation3 + $0xb8] sm:$0xf] %vm1013_vm10, %v2249_v0  ;;  %v1847_v34 = vrot.slane %v1845_v61, 4  ;;  %v16389_v5 = vld [vmem:[#allocation11 + $0x140] sm:$0xff]   ;;  %v2048_v38 = vsel %vm19584_vm5, %v2046_v58, %v2047_v48  ;;  %16014 = vmatpush3.bf16.msra.mxu0 %v16386_v30 }
 0x334   : > { %v2072_v24 = vld [vmem:[#allocation3 + $0x114] sm:$0x3]  ;;  %1863 = vst.msk [vmem:[#allocation3 + $0xd0] sm:$0xf] %vm1013_vm10, %v1843_v23  ;;  %v2049_v63 = vrot.slane %v2047_v48, 4  ;;  %v2052_v44 = vrot.slane %v2050_v42, 4  ;;  %v1846_v40 = vsel %vm19474_vm9, %v1844_v60, %v1845_v61  ;;  %16015 = vmatprep.subr.bf16.mxu0 %v16389_v5  ;;  %v1161_v35 = vpop.permute.xlu0 %1160 }
 0x335   : > { %v2251_v1 = vrot.slane %v19890_v8, 7  ;;  %v2429_v31 = vld [vmem:[#allocation3 + $0x11c] sm:$0x3]  ;;  %1795 = vst.msk [vmem:[#allocation3 + $0x4c] sm:$0xf] %vm1179_vm6, %v1771_v18  ;;  %v16384_v10 = vld [vmem:[#allocation11 + $0x198] sm:$0xff]   ;;  %v1866_v6 = vsel %vm19696_vm3, %v1847_v34, %v1865_v25  ;;  %v2377_v29 = vpop.permute.xlu1 %2376 }
 0x336   : > { %2070 = vst.msk [vmem:[#allocation3 + $0xd4] sm:$0xf] %vm1013_vm10, %v2048_v38  ;;  %v2254_v52 = vrot.slane %v19897_v33, 7  ;;  %v2053_v53 = vrot.slane %v19899_v17, 7  ;;  %v2420_v19 = vld [vmem:[#allocation2 + $0x30] sm:$0x3]  ;;  %v2051_v22 = vsel %vm19584_vm5, %v2049_v63, %v2050_v42  ;;  %16056 = vmatpush3.bf16.msra.mxu1 %v16384_v10 }
 0x337   : > { %1864 = vst.msk [vmem:[#allocation3 + $0xf0] sm:$0xf] %vm1013_vm10, %v1846_v40  ;;  %v2252_v12 = vsel %vm19584_vm5, %v2250_v49, %v2251_v1  ;;  %v2253_v39 = vrot.slane %v2251_v1, 4  ;;  %1867 = vst [vmem:[#allocation3 + $0x110] sm:$0x3] %v1866_v6  ;;  %v2257_v54 = vrot.slane %v19906_v21, 7  ;;  %v2430_v13 = vsel %vm19696_vm3, %v2420_v19, %v2429_v31 }
 0x338   : > { %v2276_v2 = vld [vmem:[#allocation3 + $0x118] sm:$0x3]  ;;  %1796 = vst.msk [vmem:[#allocation3 + $0x6c] sm:$0xf] %vm1179_vm6, %v1773_v47  ;;  %v2256_v36 = vrot.slane %v2254_v52, 4  ;;  %v2054_v16 = vsel %vm19584_vm5, %v2052_v44, %v2053_v53  ;;  %v16387_v55 = vld [vmem:[#allocation11 + $0x1d0] sm:$0xff]   ;;  %v2531_v57 = vpop.permute.xlu0 %2530 }
 0x339   : > { %2071 = vst.msk [vmem:[#allocation3 + $0xf4] sm:$0xf] %vm1013_vm10, %v2051_v22  ;;  %2274 = vst.msk [vmem:[#allocation3 + $0xd8] sm:$0xf] %vm1013_vm10, %v2252_v12  ;;  %v2255_v45 = vsel %vm19584_vm5, %v2253_v39, %v2254_v52  ;;  %v2073_v32 = vsel %vm19696_vm3, %v2054_v16, %v2072_v24  ;;  %v16390_v26 = vld [vmem:[#allocation11 + $0x100] sm:$0xff]   ;;  %v16388_v28 = vld [vmem:[#allocation11 + $0x190] sm:$0xff]   ;;  %16057 = vmatprep.subr.bf16.mxu1 %v16387_v55  ;;  %v1163_v51 = vpop.permute.xlu1 %1162 }
 0x33a   : > { %2401 = vst.msk [vmem:[#allocation3 + $0x18] sm:$0xf] %vm1179_vm6, %v2375_v62  ;;  %2074 = vst [vmem:[#allocation3 + $0x114] sm:$0x3] %v2073_v32  ;;  %v2258_v8 = vsel %vm19584_vm5, %v2256_v36, %v2257_v54  ;;  %v16393_v11 = vld [vmem:[#allocation11 + $0x1c8] sm:$0xff]   ;;  %16016 = vmatpush3.bf16.msra.mxu0 %v16390_v26  ;;  %16058 = vmatpush3.bf16.msra.mxu1 %v16388_v28  ;;  %v16395_v3 = vld [vmem:[#allocation11 + $0x1c0] sm:$0xff]  }
 0x33b   : > { %2275 = vst.msk [vmem:[#allocation3 + $0xf8] sm:$0xf] %vm1013_vm10, %v2255_v45  ;;  %2431 = vst [vmem:[#allocation3 + $0x11c] sm:$0x3] %v2430_v13  ;;  %v2277_v15 = vsel %vm19696_vm3, %v2258_v8, %v2276_v2  ;;  %16153 = vmatprep.subr.bf16.mxu0 %v18704_v9  ;;  %v16394_v43 = vld [vmem:[#allocation11 + $0x188] sm:$0xff]   ;;  %16059 = vmatprep.subr.bf16.mxu1 %v16393_v11  ;;  %v16396_v58 = vld [vmem:[#allocation11 + $0x180] sm:$0xff]  }
 0x33c   : > { %2402 = vst.msk [vmem:[#allocation3 + $0x38] sm:$0xf] %vm1179_vm6, %v2377_v29  ;;  %2278 = vst [vmem:[#allocation3 + $0x118] sm:$0x3] %v2277_v15  ;;  %v2577_v33 = vld [vmem:[#allocation3 + $0x48] sm:$0xff]  ;;  %v1370_v21 = vpop.permute.xlu0 %1369  ;;  %vm1188_vm10 = vcmask 1041920  }
 0x33d   : > { %1184 = vst.msk [vmem:[#allocation3 + $0x80] sm:$0xf] %vm1179_vm6, %v1161_v35  ;;  %1185 = vst.msk [vmem:[#allocation3 + $0xa0] sm:$0xf] %vm1179_vm6, %v1163_v51  ;;  %v2533_v61 = vpop.permute.xlu1 %2532  ;;  %v1396_v47 = vld [vmem:[#allocation3 + $0x104] sm:$0x3] }
 0x33e   : > { %2557 = vst.msk [vmem:[#allocation3 + $0x1c] sm:$0xf] %vm1179_vm6, %v2531_v57  ;;  %2558 = vst.msk [vmem:[#allocation3 + $0x3c] sm:$0xf] %vm1179_vm6, %v2533_v61  ;;  %16060 = vmatpush3.bf16.msra.mxu1 %v16394_v43  ;;  %v1190_v13 = vld [vmem:[#allocation3 + $0x100] sm:$0x3] }
 0x33f   : > { %v2581_v25 = vld [vmem:[#allocation3 + $0x68] sm:$0xff]  ;;  %16061 = vmatprep.subr.bf16.mxu1 %v16395_v3  ;;  %1392 = vst.msk [vmem:[#allocation3 + $0x84] sm:$0xf] %vm1179_vm6, %v1370_v21  ;;  %vm19977_vm8 = vmand %vm1188_vm10, %vm1046_vm2  ;;  %v2574_v3 = vld [vmem:[#allocation3 + $0x30] sm:$0xff] }
 0x340   : > { %v14399_v4 = vcombine.high %v2577_v33, %v2581_v25  ;;  %v14398_v17 = vcombine.low %v2577_v33, %v2581_v25  ;;  %v1971_v50 = vpop.permute.xlu0 %1970  ;;  %v1596_v15 = vld [vmem:[#allocation3 + $0x108] sm:$0x3]  ;;  %v1801_v35 = vld [vmem:[#allocation3 + $0x10c] sm:$0x3] }
 0x341   : > { %v1372_v20 = vpop.permute.xlu1 %1371  ;;  %1995 = vst.msk [vmem:[#allocation3 + $0x50] sm:$0xf] %vm1179_vm6, %v1971_v50 }
 0x342   : > { %3423 = vmatprep.mubr.bf16.mxu1 %v14399_v4  ;;  %1393 = vst.msk [vmem:[#allocation3 + $0xa4] sm:$0xf] %vm1179_vm6, %v1372_v20  ;;  %16062 = vmatpush3.bf16.msra.mxu1 %v16396_v58  ;;  %v2570_v20 = vld [vmem:[#allocation3 + $0x10] sm:$0xff] }
 0x343   : > { %3424 = vmatmul.mubr.bf16.gmra.mxu1 %v14398_v17 }
 0x344   : > { %v2178_v0 = vpop.permute.xlu0 %2177 }
 0x345   : > { %v1973_v56 = vpop.permute.xlu1 %1972  ;;  %2202 = vst.msk [vmem:[#allocation3 + $0x54] sm:$0xf] %vm1179_vm6, %v2178_v0 }
 0x346   : > { %1996 = vst.msk [vmem:[#allocation3 + $0x70] sm:$0xf] %vm1179_vm6, %v1973_v56  ;;  %v2584_v42 = vld [vmem:[#allocation3 + $0x80] sm:$0xff]  ;;  %v14393_v56 = vcombine.high %v2570_v20, %v2574_v3 }
 0x348   : > { %v1570_v34 = vpop.permute.xlu0 %1569 }
 0x349   : > { %v2180_v48 = vpop.permute.xlu1 %2179  ;;  %v2588_v30 = vld [vmem:[#allocation3 + $0xa0] sm:$0xff]  ;;  %1592 = vst.msk [vmem:[#allocation3 + $0x88] sm:$0xf] %vm1179_vm6, %v1570_v34  ;;  %v2571_v34 = vld [vmem:[#allocation3 + $0x18] sm:$0xff] }
 0x34a   : > { %2203 = vst.msk [vmem:[#allocation3 + $0x74] sm:$0xf] %vm1179_vm6, %v2180_v48  ;;  %v14405_v23 = vcombine.high %v2584_v42, %v2588_v30  ;;  %v14404_v60 = vcombine.low %v2584_v42, %v2588_v30  ;;  %v2575_v42 = vld [vmem:[#allocation3 + $0x38] sm:$0xff] }
 0x34c   : > { %3359 = vmatprep.mubr.bf16.mxu0 %v14405_v23  ;;  %v1775_v24 = vpop.permute.xlu0 %1774 }
 0x34d   : > { %3360 = vmatmul.mubr.bf16.gmra.mxu0 %v14404_v60  ;;  %v1572_v49 = vpop.permute.xlu1 %1571  ;;  %1797 = vst.msk [vmem:[#allocation3 + $0x8c] sm:$0xf] %vm1179_vm6, %v1775_v24 }
 0x34e   : > { %1593 = vst.msk [vmem:[#allocation3 + $0xa8] sm:$0xf] %vm1179_vm6, %v1572_v49 }
 0x350   : > { %v2379_v5 = vpop.permute.xlu0 %2378 }
 0x351   : > { %v1777_v18 = vpop.permute.xlu1 %1776  ;;  %2403 = vst.msk [vmem:[#allocation3 + $0x58] sm:$0xf] %vm1179_vm6, %v2379_v5  ;;  %v2582_v49 = vld [vmem:[#allocation3 + $0x70] sm:$0xff]  ;;  %v14392_v5 = vcombine.low %v2570_v20, %v2574_v3  ;;  %v2409_v3 = vld [vmem:[#allocation3 + $0x118] sm:$0x3] }
 0x352   : > { %1798 = vst.msk [vmem:[#allocation3 + $0xac] sm:$0xf] %vm1179_vm6, %v1777_v18  ;;  %v14395_v18 = vcombine.high %v2571_v34, %v2575_v42 }
 0x354   : > { %v1165_v63 = vpop.permute.xlu0 %1164  ;;  %v2585_v1 = vld [vmem:[#allocation3 + $0x88] sm:$0xff] }
 0x355   : > { %v2381_v38 = vpop.permute.xlu1 %2380  ;;  %1186 = vst.msk [vmem:[#allocation3 + $0xc0] sm:$0xf] %vm1179_vm6, %v1165_v63 }
 0x356   : > { %2404 = vst.msk [vmem:[#allocation3 + $0x78] sm:$0xf] %vm1179_vm6, %v2381_v38  ;;  %v2578_v38 = vld [vmem:[#allocation3 + $0x50] sm:$0xff] }
 0x358   : > { %v2535_v52 = vpop.permute.xlu0 %2534 }
 0x359   : > { %v1167_v44 = vpop.permute.xlu1 %1166  ;;  %v2589_v31 = vld [vmem:[#allocation3 + $0xa8] sm:$0xff]  ;;  %2559 = vst.msk [vmem:[#allocation3 + $0x5c] sm:$0xf] %vm1179_vm6, %v2535_v52 }
 0x35a   : > { %1187 = vst.msk [vmem:[#allocation3 + $0xe0] sm:$0xf] %vm1179_vm6, %v1167_v44  ;;  %v14407_v10 = vcombine.high %v2585_v1, %v2589_v31  ;;  %v14406_v40 = vcombine.low %v2585_v1, %v2589_v31  ;;  %v14401_v44 = vcombine.high %v2578_v38, %v2582_v49 }
 0x35c   : > { %3431 = vmatprep.mubr.bf16.mxu1 %v14407_v10  ;;  %v1374_v53 = vpop.permute.xlu0 %1373 }
 0x35d   : > { %3432 = vmatmul.mubr.bf16.gmra.mxu1 %v14406_v40  ;;  %v1376_v6 = vpop.permute.xlu1 %1375  ;;  %1394 = vst.msk [vmem:[#allocation3 + $0xc4] sm:$0xf] %vm1179_vm6, %v1374_v53  ;;  %v14394_v40 = vcombine.low %v2571_v34, %v2575_v42 }
 0x35e   : > { %1395 = vst.msk [vmem:[#allocation3 + $0xe4] sm:$0xf] %vm1179_vm6, %v1376_v6 }
 0x360   : > { %v1574_v39 = vpop.permute.xlu0 %1573  ;;  %v2579_v52 = vld [vmem:[#allocation3 + $0x58] sm:$0xff] }
 0x361   : > { %v1378_v22 = vpop.permute.xlu1 %1377  ;;  %1594 = vst.msk [vmem:[#allocation3 + $0xc8] sm:$0xf] %vm1179_vm6, %v1574_v39 }
 0x362   : > { %v1397_v12 = vsel %vm19977_vm8, %v1378_v22, %v1396_v47  ;;  %v14400_v22 = vcombine.low %v2578_v38, %v2582_v49  ;;  %v20021_v38 = vld [vmem:[#allocation17] ss:$0 sm:$0xff] }
 0x363   : > { %1398 = vst [vmem:[#allocation3 + $0x104] sm:$0x3] %v1397_v12 }
 0x364   : > { %v1779_v54 = vpop.permute.xlu0 %1778  ;;  %v2592_v36 = vld [vmem:[#allocation3 + $0xc0] sm:$0xff] }
 0x365   : > { %v1576_v2 = vpop.permute.xlu1 %1575  ;;  %v2596_v16 = vld [vmem:[#allocation3 + $0xe0] sm:$0xff]  ;;  %1799 = vst.msk [vmem:[#allocation3 + $0xcc] sm:$0xf] %vm1179_vm6, %v1779_v54 }
 0x366   : > { %1595 = vst.msk [vmem:[#allocation3 + $0xe8] sm:$0xf] %vm1179_vm6, %v1576_v2  ;;  %v14413_v62 = vcombine.high %v2592_v36, %v2596_v16  ;;  %v14412_v55 = vcombine.low %v2592_v36, %v2596_v16 }
 0x368   : > { %3367 = vmatprep.mubr.bf16.mxu0 %v14413_v62  ;;  %v1169_v32 = vpop.permute.xlu0 %1168 }
 0x369   : > { %v1781_v45 = vpop.permute.xlu1 %1780  ;;  %3368 = vmatmul.mubr.bf16.gmra.mxu0 %v14412_v55  ;;  %v1191_v26 = vsel %vm19977_vm8, %v1169_v32, %v1190_v13 }
 0x36a   : > { %1800 = vst.msk [vmem:[#allocation3 + $0xec] sm:$0xf] %vm1179_vm6, %v1781_v45  ;;  %1192 = vst [vmem:[#allocation3 + $0x100] sm:$0x3] %v1191_v26 }
 0x36c   : > { %v1578_v29 = vpop.permute.xlu0 %1577  ;;  %v2593_v51 = vld [vmem:[#allocation3 + $0xc8] sm:$0xff] }
 0x36d   : > { %v2537_v8 = vpop.permute.xlu1 %2536  ;;  %v1597_v28 = vsel %vm19977_vm8, %v1578_v29, %v1596_v15 }
 0x36e   : > { %2560 = vst.msk [vmem:[#allocation3 + $0x7c] sm:$0xf] %vm1179_vm6, %v2537_v8  ;;  %1598 = vst [vmem:[#allocation3 + $0x108] sm:$0x3] %v1597_v28 }
 0x370   : > { %v1975_v43 = vpop.permute.xlu0 %1974 }
 0x371   : > { %v1783_v11 = vpop.permute.xlu1 %1782  ;;  %v2597_v33 = vld [vmem:[#allocation3 + $0xe8] sm:$0xff]  ;;  %1997 = vst.msk [vmem:[#allocation3 + $0x90] sm:$0xf] %vm1179_vm6, %v1975_v43  ;;  %v2600_v57 = vld [vmem:[#allocation3 + $0x100] sm:$0x33] }
 0x372   : > { %v1802_v25 = vsel %vm19977_vm8, %v1783_v11, %v1801_v35  ;;  %v14415_v4 = vcombine.high %v2593_v51, %v2597_v33  ;;  %v14414_v17 = vcombine.low %v2593_v51, %v2597_v33  ;;  %v14421_v58 = vcombine.high %v2600_v57, %v2600_v57  ;;  %v2001_v35 = vld [vmem:[#allocation3 + $0x110] sm:$0x3] }
 0x373   : > { %1803 = vst [vmem:[#allocation3 + $0x10c] sm:$0x3] %v1802_v25  ;;  %v14420_v21 = vcombine.low %v2600_v57, %v2600_v57  ;;  %v2208_v25 = vld [vmem:[#allocation3 + $0x114] sm:$0x3] }
 0x374   : > { %3439 = vmatprep.mubr.bf16.mxu1 %v14415_v4  ;;  %3375 = vmatprep.mubr.bf16.mxu0 %v14421_v58  ;;  %v2182_v50 = vpop.permute.xlu0 %2181 }
 0x375   : > { %v1977_v61 = vpop.permute.xlu1 %1976  ;;  %3440 = vmatmul.mubr.bf16.gmra.mxu1 %v14414_v17  ;;  %2204 = vst.msk [vmem:[#allocation3 + $0x94] sm:$0xf] %vm1179_vm6, %v2182_v50  ;;  %3376 = vmatmul.mubr.bf16.gmra.mxu0 %v14420_v21  ;;  %v2583_v31 = vld [vmem:[#allocation3 + $0x78] sm:$0xff] }
 0x376   : > { %1998 = vst.msk [vmem:[#allocation3 + $0xb0] sm:$0xf] %vm1179_vm6, %v1977_v61  ;;  %3487 = vmatprep.mubr.bf16.mxu0 %v14393_v56  ;;  %v14403_v47 = vcombine.high %v2579_v52, %v2583_v31  ;;  %v14402_v62 = vcombine.low %v2579_v52, %v2583_v31  ;;  %v2565_v21 = vld [vmem:[#allocation3 + $0x11c] sm:$0x3] }
 0x378   : > { %v2383_v30 = vpop.permute.xlu0 %2382 }
 0x379   : > { %v2184_v0 = vpop.permute.xlu1 %2183  ;;  %2405 = vst.msk [vmem:[#allocation3 + $0x98] sm:$0xf] %vm1179_vm6, %v2383_v30 }
 0x37a   : > { %2205 = vst.msk [vmem:[#allocation3 + $0xb4] sm:$0xf] %vm1179_vm6, %v2184_v0  ;;  %v2601_v48 = vld [vmem:[#allocation3 + $0x108] sm:$0x33] }
 0x37b   : > { %v14423_v23 = vcombine.high %v2601_v48, %v2601_v48  ;;  %v14422_v60 = vcombine.low %v2601_v48, %v2601_v48 }
 0x37c   : > { %v2539_v63 = vpop.permute.xlu0 %2538  ;;  %v2586_v12 = vld [vmem:[#allocation3 + $0x90] sm:$0xff] }
 0x37d   : > { %v2385_v24 = vpop.permute.xlu1 %2384  ;;  %3447 = vmatprep.mubr.bf16.mxu1 %v14423_v23  ;;  %2561 = vst.msk [vmem:[#allocation3 + $0x9c] sm:$0xf] %vm1179_vm6, %v2539_v63  ;;  %3488 = vmatmul.mubr.bf16.vlgmr.msra.gmra.mxu0 %v14392_v5 }
 0x37e   : > { %2406 = vst.msk [vmem:[#allocation3 + $0xb8] sm:$0xf] %vm1179_vm6, %v2385_v24  ;;  %3448 = vmatmul.mubr.bf16.gmra.mxu1 %v14422_v60  ;;  %3495 = vmatprep.mubr.bf16.mxu0 %v14401_v44 }
 0x37f   : > { %3559 = vmatprep.mubr.bf16.mxu1 %v14395_v18 }
 0x380   : > { %v1979_v10 = vpop.permute.xlu0 %1978 }
 0x381   : > { %v2541_v1 = vpop.permute.xlu1 %2540  ;;  %1999 = vst.msk [vmem:[#allocation3 + $0xd0] sm:$0xf] %vm1179_vm6, %v1979_v10  ;;  %v2590_v6 = vld [vmem:[#allocation3 + $0xb0] sm:$0xff] }
 0x382   : > { %2562 = vst.msk [vmem:[#allocation3 + $0xbc] sm:$0xf] %vm1179_vm6, %v2541_v1  ;;  %v14409_v2 = vcombine.high %v2586_v12, %v2590_v6  ;;  %v14408_v13 = vcombine.low %v2586_v12, %v2590_v6 }
 0x384   : > { %v2186_v39 = vpop.permute.xlu0 %2185  ;;  %v2587_v55 = vld [vmem:[#allocation3 + $0x98] sm:$0xff] }
 0x385   : > { %v1981_v53 = vpop.permute.xlu1 %1980  ;;  %2206 = vst.msk [vmem:[#allocation3 + $0xd4] sm:$0xf] %vm1179_vm6, %v2186_v39  ;;  %3496 = vmatmul.mubr.bf16.gmra.mxu0 %v14400_v22 }
 0x386   : > { %2000 = vst.msk [vmem:[#allocation3 + $0xf0] sm:$0xf] %vm1179_vm6, %v1981_v53  ;;  %3560 = vmatmul.mubr.bf16.vlgmr.msra.gmra.mxu1 %v14394_v40  ;;  %3503 = vmatprep.mubr.bf16.mxu0 %v14409_v2 }
 0x387   : > { %3567 = vmatprep.mubr.bf16.mxu1 %v14403_v47 }
 0x388   : > { %v2387_v16 = vpop.permute.xlu0 %2386 }
 0x389   : > { %v2188_v54 = vpop.permute.xlu1 %2187  ;;  %v2591_v36 = vld [vmem:[#allocation3 + $0xb8] sm:$0xff]  ;;  %2407 = vst.msk [vmem:[#allocation3 + $0xd8] sm:$0xf] %vm1179_vm6, %v2387_v16 }
 0x38a   : > { %2207 = vst.msk [vmem:[#allocation3 + $0xf4] sm:$0xf] %vm1179_vm6, %v2188_v54  ;;  %v14411_v32 = vcombine.high %v2587_v55, %v2591_v36  ;;  %v14410_v33 = vcombine.low %v2587_v55, %v2591_v36 }
 0x38c   : > { %v2543_v26 = vpop.permute.xlu0 %2542  ;;  %v2594_v29 = vld [vmem:[#allocation3 + $0xd0] sm:$0xff] }
 0x38d   : > { %v2389_v45 = vpop.permute.xlu1 %2388  ;;  %2563 = vst.msk [vmem:[#allocation3 + $0xdc] sm:$0xf] %vm1179_vm6, %v2543_v26  ;;  %3504 = vmatmul.mubr.bf16.gmra.mxu0 %v14408_v13 }
 0x38e   : > { %2408 = vst.msk [vmem:[#allocation3 + $0xf8] sm:$0xf] %vm1179_vm6, %v2389_v45  ;;  %3568 = vmatmul.mubr.bf16.gmra.mxu1 %v14402_v62 }
 0x38f   : > { %3575 = vmatprep.mubr.bf16.mxu1 %v14411_v32 }
 0x390   : > { %v1983_v11 = vpop.permute.xlu0 %1982 }
 0x391   : > { %v2545_v8 = vpop.permute.xlu1 %2544  ;;  %v2598_v15 = vld [vmem:[#allocation3 + $0xf0] sm:$0xff]  ;;  %v2002_v51 = vsel %vm19977_vm8, %v1983_v11, %v2001_v35 }
 0x392   : > { %2564 = vst.msk [vmem:[#allocation3 + $0xfc] sm:$0xf] %vm1179_vm6, %v2545_v8  ;;  %v14417_v28 = vcombine.high %v2594_v29, %v2598_v15  ;;  %2003 = vst [vmem:[#allocation3 + $0x110] sm:$0x3] %v2002_v51  ;;  %v14416_v43 = vcombine.low %v2594_v29, %v2598_v15 }
 0x394   : > { %3511 = vmatprep.mubr.bf16.mxu0 %v14417_v28  ;;  %v2391_v57 = vpop.permute.xlu0 %2390  ;;  %v2595_v20 = vld [vmem:[#allocation3 + $0xd8] sm:$0xff] }
 0x395   : > { %v2190_v4 = vpop.permute.xlu1 %2189  ;;  %v2410_v61 = vsel %vm19977_vm8, %v2391_v57, %v2409_v3  ;;  %3512 = vmatmul.mubr.bf16.gmra.mxu0 %v14416_v43  ;;  %v16407_v43 = vld [vmem:[#allocation13 + $0x60] ss:$8 sps:$4 sm:$0xff]   ;;  %v16415_v57 = vld [vmem:[#allocation13 + $0x54] ss:$8 sps:$4 sm:$0xff]  }
 0x396   : > { %v2209_v17 = vsel %vm19977_vm8, %v2190_v4, %v2208_v25  ;;  %3576 = vmatmul.mubr.bf16.gmra.mxu1 %v14410_v33  ;;  %2411 = vst [vmem:[#allocation3 + $0x118] sm:$0x3] %v2410_v61  ;;  %v16404_v25 = vld [vmem:[#allocation13 + $0x70] ss:$8 sps:$4 sm:$0xff]   ;;  %v16406_v4 = vld [vmem:[#allocation13 + $0x74] ss:$8 sps:$4 sm:$0xff]  }
 0x397   : > { %2210 = vst [vmem:[#allocation3 + $0x114] sm:$0x3] %v2209_v17  ;;  %v16409_v17 = vld [vmem:[#allocation13 + $0x64] ss:$8 sps:$4 sm:$0xff]   ;;  %5784 = vmatprep.subr.bf16.mxu1 %v16406_v4  ;;  %v16413_v61 = vld [vmem:[#allocation13 + $0x50] ss:$8 sps:$4 sm:$0xff]  }
 0x398   : > { %5785 = vmatpush1.bf16.msra.mxu1 %v16404_v25 }
 0x399   : > { %v2547_v58 = vpop.permute.xlu1 %2546  ;;  %v2599_v50 = vld [vmem:[#allocation3 + $0xf8] sm:$0xff]  ;;  %5786 = vmatprep.subr.bf16.mxu1 %v16409_v17 }
 0x39a   : > { %v2566_v56 = vsel %vm19977_vm8, %v2547_v58, %v2565_v21  ;;  %v14419_v0 = vcombine.high %v2595_v20, %v2599_v50  ;;  %v14418_v48 = vcombine.low %v2595_v20, %v2599_v50  ;;  %v16421_v21 = vld [vmem:[#allocation13 + $0x44] ss:$8 sps:$4 sm:$0xff]  }
 0x39b   : > { %2567 = vst [vmem:[#allocation3 + $0x11c] sm:$0x3] %v2566_v56 }
 0x39c   : > { %3583 = vmatprep.mubr.bf16.mxu1 %v14419_v0  ;;  %5787 = vmatpush1.bf16.msra.mxu1 %v16407_v43  ;;  %v16419_v0 = vld [vmem:[#allocation13 + $0x40] ss:$8 sps:$4 sm:$0xff]  }
 0x39d   : > { %5788 = vmatprep.subr.bf16.mxu1 %v16415_v57 }
 0x39e   : > { %3584 = vmatmul.mubr.bf16.gmra.mxu1 %v14418_v48  ;;  %v2602_v42 = vld [vmem:[#allocation3 + $0x110] sm:$0x33] }
 0x39f   : > { %v14425_v30 = vcombine.high %v2602_v42, %v2602_v42  ;;  %v14424_v23 = vcombine.low %v2602_v42, %v2602_v42  ;;  %v16427_v48 = vld [vmem:[#allocation13 + $0x34] ss:$8 sps:$4 sm:$0xff]  }
 0x3a0   : > { %5789 = vmatpush1.bf16.msra.mxu1 %v16413_v61 }
 0x3a1   : > { %3519 = vmatprep.mubr.bf16.mxu0 %v14425_v30  ;;  %5790 = vmatprep.subr.bf16.mxu1 %v16421_v21  ;;  %v16425_v30 = vld [vmem:[#allocation13 + $0x30] ss:$8 sps:$4 sm:$0xff]  }
 0x3a2   : > { %3520 = vmatmul.mubr.bf16.gmra.mxu0 %v14424_v23  ;;  %v2603_v60 = vld [vmem:[#allocation3 + $0x118] sm:$0x33] }
 0x3a3   : > { %v14427_v34 = vcombine.high %v2603_v60, %v2603_v60  ;;  %v14426_v49 = vcombine.low %v2603_v60, %v2603_v60  ;;  %16163 = vmatprep.mubr.msk.bf16.mxu0 %vm18705_vm1, %v18704_v9  ;;  %v16433_v23 = vld [vmem:[#allocation13 + $0x24] ss:$8 sps:$4 sm:$0xff]  }
 0x3a4   : > { %5791 = vmatpush1.bf16.msra.mxu1 %v16419_v0 }
 0x3a5   : > { %3591 = vmatprep.mubr.bf16.mxu1 %v14427_v34  ;;  %5792 = vmatprep.subr.bf16.mxu1 %v16427_v48  ;;  %v16431_v34 = vld [vmem:[#allocation13 + $0x20] ss:$8 sps:$4 sm:$0xff]  }
 0x3a6   : > { %3592 = vmatmul.mubr.bf16.gmra.mxu1 %v14426_v49 }
 0x3a8   : > { %5793 = vmatpush1.bf16.msra.mxu1 %v16425_v30 }
 0x3a9   : > { %5794 = vmatprep.subr.bf16.mxu1 %v16433_v23 }
 0x3ac   : > { %5795 = vmatpush1.bf16.msra.mxu1 %v16431_v34 }
 0x3d2   : > { %v15925_v19 = vpop.f32.mrf.mxu0 }
 0x3d4   : > { %v15926_v24 = vpop.f32.mrf.mxu0 }
 0x3d5   : > { %v15927_v18 = vadd.f32 %v15926_v24, %v15925_v19  ;;  %v16439_v19 = vld [vmem:[#allocation13 + $0x14] ss:$8 sps:$4 sm:$0xff]  }
 0x3d6   : > { %v15928_v5 = vpop.f32.mrf.mxu0  ;;  %5796 = vmatprep.subr.bf16.mxu1 %v16439_v19 }
 0x3d7   : > { %v3346_v31 = vadd.f32 %v15927_v18, %v20021_v38  ;;  %v16437_v18 = vld [vmem:[#allocation13 + $0x10] ss:$8 sps:$4 sm:$0xff]  }
 0x3d8   : > { %v15929_v63 = vpop.f32.mrf.mxu0  ;;  %5797 = vmatpush1.bf16.msra.mxu1 %v16437_v18 }
 0x3d9   : > { %v15930_v10 = vadd.f32 %v15929_v63, %v15928_v5  ;;  %v16445_v63 = vld [vmem:[#allocation13 + $0x4] ss:$8 sps:$4 sm:$0xff]  }
 0x3da   : > { %5798 = vmatprep.subr.bf16.mxu1 %v16445_v63 }
 0x3db   : > { %v3349_v47 = vadd.f32 %v15930_v10, %v20021_v38 }
 0x3e2   : > { %v15971_v44 = vpop.f32.mrf.mxu1 }
 0x3e4   : > { %v15972_v1 = vpop.f32.mrf.mxu1 }
 0x3e5   : > { %v15973_v40 = vadd.f32 %v15972_v1, %v15971_v44  ;;  %v16443_v1 = vld [vmem:[#allocation13] ss:$8 sps:$4 sm:$0xff]  }
 0x3e6   : > { %v15974_v52 = vpop.f32.mrf.mxu1  ;;  %5799 = vmatpush1.bf16.msra.mxu1 %v16443_v1 }
 0x3e7   : > { %v20024_v6 = vadd.f32 %v15973_v40, %v3346_v31 }
 0x3e8   : > { %v15975_v53 = vpop.f32.mrf.mxu1 }
 0x3e9   : > { %v15976_v22 = vadd.f32 %v15975_v53, %v15974_v52 }
 0x3eb   : > { %v20027_v39 = vadd.f32 %v15976_v22, %v3349_v47 }
 0x3ef   : > { %v15931_v12 = vpop.f32.mrf.mxu0 }
 0x3f1   : > { %v15932_v2 = vpop.f32.mrf.mxu0 }
 0x3f2   : > { %v15933_v54 = vadd.f32 %v15932_v2, %v15931_v12 }
 0x3f3   : > { %v15934_v36 = vpop.f32.mrf.mxu0 }
 0x3f4   : > { %v3354_v45 = vadd.f32 %v15933_v54, %v20021_v38 }
 0x3f5   : > { %v15935_v16 = vpop.f32.mrf.mxu0 }
 0x3f6   : > { %v15936_v32 = vadd.f32 %v15935_v16, %v15934_v36 }
 0x3f8   : > { %v3357_v15 = vadd.f32 %v15936_v32, %v20021_v38 }
 0x403   : > { %v15977_v62 = vpop.f32.mrf.mxu1 }
 0x405   : > { %v15978_v55 = vpop.f32.mrf.mxu1 }
 0x406   : > { %v15979_v13 = vadd.f32 %v15978_v55, %v15977_v62 }
 0x407   : > { %v15980_v26 = vpop.f32.mrf.mxu1 }
 0x408   : > { %v20030_v8 = vadd.f32 %v15979_v13, %v3354_v45 }
 0x409   : > { %v15981_v29 = vpop.f32.mrf.mxu1 }
 0x40a   : > { %v15982_v28 = vadd.f32 %v15981_v29, %v15980_v26 }
 0x40c   : > { %v20033_v35 = vadd.f32 %v15982_v28, %v3357_v15 }
 0x40d   : > { %v15937_v11 = vpop.f32.mrf.mxu0 }
 0x40f   : > { %v15938_v51 = vpop.f32.mrf.mxu0 }
 0x410   : > { %v15939_v33 = vadd.f32 %v15938_v51, %v15937_v11 }
 0x411   : > { %v20038_v42 = vpop.f32.mrf.mxu0 }
 0x412   : > { %v3362_v20 = vadd.f32 %v15939_v33, %v20021_v38 }
 0x413   : > { %v20040_v60 = vpop.f32.mrf.mxu0 }
 0x41d   : > { %v15983_v3 = vpop.f32.mrf.mxu1 }
 0x41f   : > { %v15984_v58 = vpop.f32.mrf.mxu1 }
 0x420   : > { %v15985_v50 = vadd.f32 %v15984_v58, %v15983_v3 }
 0x421   : > { %v20046_v5 = vpop.f32.mrf.mxu1 }
 0x422   : > { %v20036_v56 = vadd.f32 %v15985_v50, %v3362_v20 }
 0x423   : > { %v15987_v31 = vpop.f32.mrf.mxu1 }
 0x429   : > { %v20042_v49 = vpop.f32.mrf.mxu0 }
 0x42b   : > { %v20044_v24 = vpop.f32.mrf.mxu0 }
 0x42d   : > { %v20048_v44 = vpop.f32.mrf.mxu0 }
 0x42f   : > { %v20052_v40 = vpop.f32.mrf.mxu0 }
 0x435   : > { %v20050_v10 = vpop.f32.mrf.mxu1  ;;  %v20056_v53 = vpop.f32.mrf.mxu0 }
 0x437   : > { %v20054_v52 = vpop.f32.mrf.mxu1  ;;  %v20060_v22 = vpop.f32.mrf.mxu0 }
 0x439   : > { %v20058_v47 = vpop.f32.mrf.mxu1  ;;  %v15952_v2 = vpop.f32.mrf.mxu0 }
 0x43b   : > { %v20062_v12 = vpop.f32.mrf.mxu1  ;;  %v15953_v54 = vpop.f32.mrf.mxu0 }
 0x43d   : > { %v16017_v62 = vpop.f32.mrf.mxu0 }
 0x43e   : > { %v20064_v36 = vpop.f32.mrf.mxu1 }
 0x43f   : > { %v16018_v45 = vpop.f32.mrf.mxu0 }
 0x440   : > { %v20066_v16 = vpop.f32.mrf.mxu1  ;;  %v16019_v26 = vadd.f32 %v16018_v45, %v16017_v62  ;;  %v15942_v62 = vadd.f32 %v20040_v60, %v20038_v42 }
 0x441   : > { %v16020_v13 = vpop.f32.mrf.mxu0 }
 0x442   : > { %v15998_v55 = vpop.f32.mrf.mxu1  ;;  %v3490_v51 = vadd.f32 %v16019_v26, %v20024_v6 }
 0x443   : > { %v16021_v29 = vpop.f32.mrf.mxu0 }
 0x444   : > { %v15999_v32 = vpop.f32.mrf.mxu1  ;;  %v16022_v33 = vadd.f32 %v16021_v29, %v16020_v13 }
 0x445   : > { %v16023_v28 = vpop.f32.mrf.mxu0 }
 0x446   : > { %v16063_v15 = vpop.f32.mrf.mxu1  ;;  %v3493_v58 = vadd.f32 %v16022_v33, %v20027_v39  ;;  %v3365_v33 = vadd.f32 %v15942_v62, %v20021_v38  ;;  %v15994_v62 = vadd.f32 %v20062_v12, %v20058_v47 }
 0x447   : > { %v16024_v4 = vpop.f32.mrf.mxu0 }
 0x448   : > { %v16064_v11 = vpop.f32.mrf.mxu1  ;;  %v16025_v57 = vadd.f32 %v16024_v4, %v16023_v28  ;;  %v15988_v28 = vadd.f32 %v15987_v31, %v20046_v5 }
 0x449   : > { %v16065_v25 = vadd.f32 %v16064_v11, %v16063_v15  ;;  %v16026_v3 = vpop.f32.mrf.mxu0 }
 0x44a   : > { %v16066_v17 = vpop.f32.mrf.mxu1  ;;  %v3498_v30 = vadd.f32 %v16025_v57, %v20030_v8 }
 0x44b   : > { %v3562_v43 = vadd.f32 %v16065_v25, %v3490_v51  ;;  %v16027_v20 = vpop.f32.mrf.mxu0 }
 0x44c   : > { %v16067_v61 = vpop.f32.mrf.mxu1  ;;  %v16028_v19 = vadd.f32 %v16027_v20, %v16026_v3  ;;  %v3437_v3 = vadd.f32 %v15988_v28, %v3365_v33 }
 0x44d   : > { %v16068_v21 = vadd.f32 %v16067_v61, %v16066_v17  ;;  %v3608_v0 = vmul.f32 0.2, %v3562_v43  ;;  %vm3599_vm2 = vcmp.ge.f32.partialorder %v3562_v43, 0.0  ;;  %v16029_v23 = vpop.f32.mrf.mxu0 }
 0x44e   : > { %v16069_v50 = vpop.f32.mrf.mxu1  ;;  %v3501_v13 = vadd.f32 %v16028_v19, %v20033_v35  ;;  %v15951_v19 = vadd.f32 %v20060_v22, %v20056_v53 }
 0x44f   : > { %v3565_v48 = vadd.f32 %v16068_v21, %v3493_v58  ;;  %v16030_v63 = vpop.f32.mrf.mxu0  ;;  %v20071_v2 = vsel %vm3599_vm2, %v3562_v43, %v3608_v0 }
 0x450   : > { %v16070_v6 = vpop.f32.mrf.mxu1  ;;  %v16031_v55 = vadd.f32 %v16030_v63, %v16029_v23  ;;  %v15945_v63 = vadd.f32 %v20044_v24, %v20042_v49  ;;  %v3378_v49 = vadd.f32 %v15951_v19, %v20021_v38  ;;  %v16401_v19 = vld [vmem:[#allocation23] sm:$0xff]  }
 0x451   : > { %vm3600_vm6 = vcmp.ge.f32.partialorder %v3565_v48, 0.0  ;;  %v3609_v34 = vmul.f32 0.2, %v3565_v48  ;;  %v16071_v18 = vadd.f32 %v16070_v6, %v16069_v50  ;;  %v16032_v45 = vpop.f32.mrf.mxu0 }
 0x452   : > { %v16072_v1 = vpop.f32.mrf.mxu1  ;;  %v3506_v42 = vadd.f32 %v16031_v55, %v20036_v56  ;;  %v15997_v55 = vadd.f32 %v20066_v16, %v20064_v36 }
 0x453   : > { %v20073_v54 = vsel %vm3600_vm6, %v3565_v48, %v3609_v34  ;;  %v3570_v39 = vadd.f32 %v16071_v18, %v3498_v30  ;;  %v16033_v29 = vpop.f32.mrf.mxu0  ;;  %v15948_v34 = vadd.f32 %v20052_v40, %v20048_v44  ;;  %v15991_v44 = vadd.f32 %v20054_v52, %v20050_v10 }
 0x454   : > { %v16073_v32 = vpop.f32.mrf.mxu1  ;;  %v3631_v8 = vpack.c.bf16 %v20073_v54, %v20071_v2  ;;  %v16034_v17 = vadd.f32 %v16033_v29, %v16032_v45  ;;  %v3370_v29 = vadd.f32 %v15945_v63, %v20021_v38  ;;  %v3450_v36 = vadd.f32 %v15997_v55, %v3378_v49  ;;  %v16418_v63 = vld [vmem:[#allocation13 + $0x164] ss:$8 sps:$4 sm:$0xff]   ;;  %v16428_v2 = vld [vmem:[#allocation13 + $0x140] ss:$8 sps:$4 sm:$0xff]   ;;  %v16436_v54 = vld [vmem:[#allocation13 + $0x134] ss:$8 sps:$4 sm:$0xff]  }
 0x455   : > { %v16074_v26 = vadd.f32 %v16073_v32, %v16072_v1  ;;  %v3610_v11 = vmul.f32 0.2, %v3570_v39  ;;  %vm3601_vm3 = vcmp.ge.f32.partialorder %v3570_v39, 0.0  ;;  %v16035_v60 = vpop.f32.mrf.mxu0  ;;  %v16442_v55 = vld [vmem:[#allocation13 + $0x124] ss:$8 sps:$4 sm:$0xff]  }
 0x456   : > { %v16075_v15 = vpop.f32.mrf.mxu1  ;;  %v3509_v56 = vadd.f32 %v16034_v17, %v3437_v3  ;;  %v16457_v49 = vld [vmem:[#allocation13 + $0xe4] ss:$8 sps:$4 sm:$0xff]  }
 0x457   : > { %v3573_v51 = vadd.f32 %v16074_v26, %v3501_v13  ;;  %v16036_v57 = vpop.f32.mrf.mxu0  ;;  %v20083_v61 = vsel %vm3601_vm3, %v3570_v39, %v3610_v11  ;;  %v3373_v13 = vadd.f32 %v15948_v34, %v20021_v38  ;;  %v3442_v11 = vadd.f32 %v15991_v44, %v3370_v29  ;;  %v16412_v34 = vld [vmem:[#allocation13 + $0x174] ss:$8 sps:$4 sm:$0xff]   ;;  %v16458_v29 = vld [vmem:[#allocation13 + $0x1f0] ss:$8 sps:$4 sm:$0xff]  }
 0x458   : > { %v16076_v25 = vpop.f32.mrf.mxu1  ;;  %v16037_v16 = vadd.f32 %v16036_v57, %v16035_v60  ;;  %v16448_v44 = vld [vmem:[#allocation13 + $0x114] ss:$8 sps:$4 sm:$0xff]  }
 0x459   : > { %vm3602_vm10 = vcmp.ge.f32.partialorder %v3573_v51, 0.0  ;;  %v3611_v4 = vmul.f32 0.2, %v3573_v51  ;;  %v16077_v43 = vadd.f32 %v16076_v25, %v16075_v15  ;;  %v16038_v31 = vpop.f32.mrf.mxu0  ;;  %v3445_v15 = vadd.f32 %v15994_v62, %v3373_v13  ;;  %v16434_v62 = vld [vmem:[#allocation13 + $0x130] ss:$8 sps:$4 sm:$0xff]  }
 0x45a   : > { %v16078_v35 = vpop.f32.mrf.mxu1  ;;  %v3514_v17 = vadd.f32 %v16037_v16, %v3442_v11  ;;  %v16455_v13 = vld [vmem:[#allocation13 + $0xe0] ss:$8 sps:$4 sm:$0xff]   ;;  %v16469_v16 = vld [vmem:[#allocation13 + $0xc4] ss:$8 sps:$4 sm:$0xff]   ;;  %v16475_v11 = vld [vmem:[#allocation13 + $0xb4] ss:$8 sps:$4 sm:$0xff]  }
 0x45b   : > { %v20085_v58 = vsel %vm3602_vm10, %v3573_v51, %v3611_v4  ;;  %v3578_v5 = vadd.f32 %v16077_v43, %v3506_v42  ;;  %v16039_v23 = vpop.f32.mrf.mxu0 }
 0x45c   : > { %v16079_v21 = vpop.f32.mrf.mxu1  ;;  %v3632_v20 = vpack.c.bf16 %v20085_v58, %v20083_v61  ;;  %v16040_v24 = vadd.f32 %v16039_v23, %v16038_v31  ;;  %v16416_v61 = vld [vmem:[#allocation13 + $0x160] ss:$8 sps:$4 sm:$0xff]   ;;  %v16424_v58 = vld [vmem:[#allocation13 + $0x154] ss:$8 sps:$4 sm:$0xff]  }
 0x45d   : > { %v16080_v50 = vadd.f32 %v16079_v21, %v16078_v35  ;;  %v3612_v48 = vmul.f32 0.2, %v3578_v5  ;;  %vm3603_vm8 = vcmp.ge.f32.partialorder %v3578_v5, 0.0 }
 0x45e   : > { %v16081_v0 = vpop.f32.mrf.mxu1  ;;  %v3517_v52 = vadd.f32 %v16040_v24, %v3445_v15  ;;  %v16460_v24 = vld [vmem:[#allocation13 + $0x1f4] ss:$8 sps:$4 sm:$0xff]   ;;  %v16466_v15 = vld [vmem:[#allocation13 + $0x1e4] ss:$8 sps:$4 sm:$0xff]  }
 0x45f   : > { %v3581_v30 = vadd.f32 %v16080_v50, %v3509_v56  ;;  %v3621_v45 = vsel %vm3603_vm8, %v3578_v5, %v3612_v48  ;;  %v20885_v5 = vmov 65535  }
 0x460   : > { %v16082_v6 = vpop.f32.mrf.mxu1  ;;  %v3661_v38 = vsel %vm2024_vm12, 4294967295, %v20885_v5 }
 0x461   : > { %vm3604_vm2 = vcmp.ge.f32.partialorder %v3581_v30, 0.0  ;;  %v3613_v18 = vmul.f32 0.2, %v3581_v30  ;;  %v16083_v33 = vadd.f32 %v16082_v6, %v16081_v0  ;;  %v3662_v56 = vsel %vm1617_vm14, %v3661_v38, 0  ;;  %v16493_v38 = vld [vmem:[#allocation13 + $0x84] ss:$8 sps:$4 sm:$0xff]  }
 0x462   : > { %v16041_v1 = vpop.f32.mrf.mxu0  ;;  %v16084_v39 = vpop.f32.mrf.mxu1  ;;  %vm3649_vm14 = vcmask 547840  }
 0x463   : > { %v3622_v32 = vsel %vm3604_vm2, %v3581_v30, %v3613_v18  ;;  %v3586_v31 = vadd.f32 %v16083_v33, %v3514_v17  ;;  %v16410_v18 = vld [vmem:[#allocation13 + $0x170] ss:$8 sps:$4 sm:$0xff]   ;;  %v16481_v33 = vld [vmem:[#allocation13 + $0xa4] ss:$8 sps:$4 sm:$0xff]   ;;  %v16487_v17 = vld [vmem:[#allocation13 + $0x94] ss:$8 sps:$4 sm:$0xff]  }
 0x464   : > { %v16042_v40 = vpop.f32.mrf.mxu0  ;;  %v16085_v53 = vpop.f32.mrf.mxu1  ;;  %v3633_v22 = vpack.c.bf16 %v3622_v32, %v3621_v45  ;;  %v16440_v45 = vld [vmem:[#allocation13 + $0x120] ss:$8 sps:$4 sm:$0xff]   ;;  %v16446_v32 = vld [vmem:[#allocation13 + $0x110] ss:$8 sps:$4 sm:$0xff]  }
 0x465   : > { %v16043_v26 = vadd.f32 %v16042_v40, %v16041_v1  ;;  %v16086_v28 = vadd.f32 %v16085_v53, %v16084_v39  ;;  %v3614_v0 = vmul.f32 0.2, %v3586_v31  ;;  %vm3605_vm10 = vcmp.ge.f32.partialorder %v3586_v31, 0.0  ;;  %v16422_v1 = vld [vmem:[#allocation13 + $0x150] ss:$8 sps:$4 sm:$0xff]  }
 0x466   : > { %v16044_v47 = vpop.f32.mrf.mxu0  ;;  %v16087_v12 = vpop.f32.mrf.mxu1  ;;  %v16430_v39 = vld [vmem:[#allocation13 + $0x144] ss:$8 sps:$4 sm:$0xff]   ;;  %v16449_v40 = vld [vmem:[#allocation13 + $0xf0] ss:$8 sps:$4 sm:$0xff]   ;;  %v16452_v53 = vld [vmem:[#allocation13 + $0x100] ss:$8 sps:$4 sm:$0xff]  }
 0x467   : > { %v3522_v42 = vadd.f32 %v16043_v26, %v3450_v36  ;;  %v3589_v43 = vadd.f32 %v16086_v28, %v3517_v52  ;;  %v3623_v23 = vsel %vm3605_vm10, %v3586_v31, %v3614_v0  ;;  %v16463_v26 = vld [vmem:[#allocation13 + $0xd4] ss:$8 sps:$4 sm:$0xff]   ;;  %v16461_v47 = vld [vmem:[#allocation13 + $0xd0] ss:$8 sps:$4 sm:$0xff]   ;;  %v16467_v36 = vld [vmem:[#allocation13 + $0xc0] ss:$8 sps:$4 sm:$0xff]  }
 0x468   : > { %v16045_v51 = vpop.f32.mrf.mxu0  ;;  %v16088_v10 = vpop.f32.mrf.mxu1  ;;  %v16472_v28 = vld [vmem:[#allocation13 + $0x1d4] ss:$8 sps:$4 sm:$0xff]   ;;  %v16478_v52 = vld [vmem:[#allocation13 + $0x1c4] ss:$8 sps:$4 sm:$0xff]   ;;  %v16488_v31 = vld [vmem:[#allocation13 + $0x1a0] ss:$8 sps:$4 sm:$0xff]  }
 0x469   : > { %v16089_v25 = vadd.f32 %v16088_v10, %v16087_v12  ;;  %v3615_v57 = vmul.f32 0.2, %v3589_v43  ;;  %vm3606_vm3 = vcmp.ge.f32.partialorder %v3589_v43, 0.0  ;;  %v16464_v12 = vld [vmem:[#allocation13 + $0x1e0] ss:$8 sps:$4 sm:$0xff]  }
 0x46a   : > { %v16090_v4 = vpop.f32.mrf.mxu1  ;;  %v16470_v51 = vld [vmem:[#allocation13 + $0x1d0] ss:$8 sps:$4 sm:$0xff]   ;;  %v16500_v0 = vld [vmem:[#allocation13 + $0x180] ss:$8 sps:$4 sm:$0xff]  }
 0x46b   : > { %v3594_v35 = vadd.f32 %v16089_v25, %v3522_v42  ;;  %v3624_v30 = vsel %vm3606_vm3, %v3589_v43, %v3615_v57  ;;  %v16473_v10 = vld [vmem:[#allocation13 + $0xb0] ss:$8 sps:$4 sm:$0xff]   ;;  %v16476_v42 = vld [vmem:[#allocation13 + $0x1c0] ss:$8 sps:$4 sm:$0xff]   ;;  %v16484_v4 = vld [vmem:[#allocation13 + $0x1b4] ss:$8 sps:$4 sm:$0xff]  }
 0x46c   : > { %v16091_v3 = vpop.f32.mrf.mxu1  ;;  %v3634_v6 = vpack.c.bf16 %v3624_v30, %v3623_v23  ;;  %v16479_v25 = vld [vmem:[#allocation13 + $0xa0] ss:$8 sps:$4 sm:$0xff]   ;;  %v16482_v43 = vld [vmem:[#allocation13 + $0x1b0] ss:$8 sps:$4 sm:$0xff]   ;;  %v16496_v57 = vld [vmem:[#allocation13 + $0x194] ss:$8 sps:$4 sm:$0xff]  }
 0x46d   : > { %vm3607_vm6 = vcmp.ge.f32.partialorder %v3594_v35, 0.0  ;;  %v3616_v60 = vmul.f32 0.2, %v3594_v35  ;;  %v16490_v3 = vld [vmem:[#allocation13 + $0x1a4] ss:$8 sps:$4 sm:$0xff]   ;;  %vm6164_vm3 = vcmask 1047552  }
 0x46f   : > { %v3625_v21 = vsel %vm3607_vm6, %v3594_v35, %v3616_v60  ;;  %v16485_v35 = vld [vmem:[#allocation13 + $0x90] ss:$8 sps:$4 sm:$0xff]   ;;  %v16491_v60 = vld [vmem:[#allocation13 + $0x80] ss:$8 sps:$4 sm:$0xff]  }
 0x470   : > { %v3635_v50 = vpack.c.bf16 %v3625_v21, %v3625_v21  ;;  %v16499_v21 = vld [vmem:[#allocation13 + $0x274] ss:$8 sps:$4 sm:$0xff]  }
 0x472   : > { %v3664_v48 = vand.u32 %v3662_v56, %v3635_v50  ;;  %v16494_v56 = vld [vmem:[#allocation13 + $0x190] ss:$8 sps:$4 sm:$0xff]   ;;  %v16502_v50 = vld [vmem:[#allocation13 + $0x184] ss:$8 sps:$4 sm:$0xff]  }
 0x474   : > { %16154 = vmatpush3.bf16.msra.mxu0 %v3664_v48  ;;  %v16508_v48 = vld [vmem:[#allocation13 + $0x374] ss:$8 sps:$4 sm:$0xff]  }
 0x475   : > { %16155 = vmatprep.subr.bf16.mxu0 %v18704_v9 }
 0x478   : > { %16156 = vmatpush3.bf16.msra.mxu0 %v3634_v6 }
 0x479   : > { %16157 = vmatprep.subr.bf16.mxu0 %v18704_v9 }
 0x47c   : > { %16158 = vmatpush3.bf16.msra.mxu0 %v3633_v22  ;;  %v16454_v22 = vld [vmem:[#allocation13 + $0x104] ss:$8 sps:$4 sm:$0xff]  }
 0x47d   : > { %16159 = vmatprep.subr.bf16.mxu0 %v18704_v9 }
 0x480   : > { %16160 = vmatpush3.bf16.msra.mxu0 %v3632_v20  ;;  %v16402_v20 = vld [vmem:[#allocation23 + $0x8] sm:$0xff]  }
 0x481   : > { %16161 = vmatprep.subr.bf16.mxu0 %v18704_v9 }
 0x484   : > { %16162 = vmatpush3.bf16.msra.mxu0 %v3631_v8  ;;  %v16403_v8 = vld [vmem:[#allocation23 + $0x10] ss:$0 sps:$4 sm:$0x33]  }
 0x485   : > { %5827 = vmatprep.subr.bf16.mxu0 %v16412_v34 }
 0x487   : > { %16164 = vmatmul.mubr.msk.bf16.vlgmr.msra.gmra.mxu0 %vm3649_vm14, %v16401_v19 }
 0x488   : > { %16167 = vmatprep.mubr.msk.bf16.mxu0 %vm18705_vm1, %v18704_v9  ;;  %5828 = vmatpush1.bf16.msra.mxu0 %v16410_v18 }
 0x489   : > { %5829 = vmatprep.subr.bf16.mxu0 %v16418_v63 }
 0x48c   : > { %5830 = vmatpush1.bf16.msra.mxu0 %v16416_v61  ;;  %v16883_v61 = vld [vmem:[#allocation14 + $0x4e0] ss:$16 sps:$4 sm:$0xff]  }
 0x48d   : > { %5831 = vmatprep.subr.bf16.mxu0 %v16424_v58  ;;  %v3753_v58 = vld [vmem:[#allocation5 + $0x40] sm:$0xf] }
 0x48f   : > { %16168 = vmatmul.mubr.msk.bf16.gmra.mxu0 %vm3649_vm14, %v16402_v20 }
 0x490   : > { %16171 = vmatprep.mubr.msk.bf16.mxu0 %vm18705_vm1, %v18704_v9  ;;  %5832 = vmatpush1.bf16.msra.mxu0 %v16422_v1  ;;  %v16451_v9 = vld [vmem:[#allocation13 + $0xf4] ss:$8 sps:$4 sm:$0xff]   ;;  %vm3751_vm1 = vcmask 1043456  }
 0x491   : > { %5833 = vmatprep.subr.bf16.mxu0 %v16430_v39  ;;  %5800 = vmatprep.subr.bf16.mxu1 %v16451_v9  ;;  %vm20125_vm8 = vmand %vm3751_vm1, %vm1060_vm11  ;;  %vm6261_vm1 = vcmask 1047556  }
 0x492   : > { %5801 = vmatpush2.bf16.msra.mxu1 %v16449_v40 }
 0x493   : > { %5802 = vmatprep.subr.bf16.mxu1 %v16457_v49 }
 0x494   : > { %5834 = vmatpush1.bf16.msra.mxu0 %v16428_v2 }
 0x495   : > { %5835 = vmatprep.subr.bf16.mxu0 %v16436_v54 }
 0x496   : > { %5803 = vmatpush2.bf16.msra.mxu1 %v16455_v13 }
 0x497   : > { %16172 = vmatmul.mubr.msk.bf16.gmra.mxu0 %vm3649_vm14, %v16403_v8  ;;  %5804 = vmatprep.subr.bf16.mxu1 %v16463_v26  ;;  %vm6156_vm14 = vcmask 121856  }
 0x498   : > { %5836 = vmatpush1.bf16.msra.mxu0 %v16434_v62 }
 0x499   : > { %5837 = vmatprep.subr.bf16.mxu0 %v16442_v55 }
 0x49a   : > { %5805 = vmatpush2.bf16.msra.mxu1 %v16461_v47 }
 0x49b   : > { %5806 = vmatprep.subr.bf16.mxu1 %v16469_v16 }
 0x49c   : > { %5838 = vmatpush1.bf16.msra.mxu0 %v16440_v45 }
 0x49d   : > { %5839 = vmatprep.subr.bf16.mxu0 %v16448_v44 }
 0x49e   : > { %5807 = vmatpush2.bf16.msra.mxu1 %v16467_v36 }
 0x49f   : > { %5808 = vmatprep.subr.bf16.mxu1 %v16475_v11 }
 0x4a0   : > { %5840 = vmatpush1.bf16.msra.mxu0 %v16446_v32 }
 0x4a1   : > { %5841 = vmatprep.subr.bf16.mxu0 %v16454_v22 }
 0x4a2   : > { %5809 = vmatpush2.bf16.msra.mxu1 %v16473_v10 }
 0x4a3   : > { %5810 = vmatprep.subr.bf16.mxu1 %v16481_v33 }
 0x4a4   : > { %5842 = vmatpush1.bf16.msra.mxu0 %v16452_v53 }
 0x4a5   : > { %5843 = vmatprep.subr.bf16.mxu0 %v16460_v24 }
 0x4a6   : > { %5811 = vmatpush2.bf16.msra.mxu1 %v16479_v25 }
 0x4a7   : > { %5812 = vmatprep.subr.bf16.mxu1 %v16487_v17 }
 0x4a8   : > { %5844 = vmatpush2.bf16.msra.mxu0 %v16458_v29 }
 0x4a9   : > { %5845 = vmatprep.subr.bf16.mxu0 %v16466_v15 }
 0x4aa   : > { %5813 = vmatpush2.bf16.msra.mxu1 %v16485_v35 }
 0x4ab   : > { %5814 = vmatprep.subr.bf16.mxu1 %v16493_v38 }
 0x4ac   : > { %5846 = vmatpush2.bf16.msra.mxu0 %v16464_v12 }
 0x4ad   : > { %5847 = vmatprep.subr.bf16.mxu0 %v16472_v28 }
 0x4ae   : > { %5815 = vmatpush2.bf16.msra.mxu1 %v16491_v60 }
 0x4af   : > { %5870 = vmatprep.subr.bf16.mxu1 %v16499_v21 }
 0x4b0   : > { %5848 = vmatpush2.bf16.msra.mxu0 %v16470_v51 }
 0x4b1   : > { %5849 = vmatprep.subr.bf16.mxu0 %v16478_v52 }
 0x4b4   : > { %5850 = vmatpush2.bf16.msra.mxu0 %v16476_v42 }
 0x4b5   : > { %5851 = vmatprep.subr.bf16.mxu0 %v16484_v4 }
 0x4b8   : > { %5852 = vmatpush2.bf16.msra.mxu0 %v16482_v43 }
 0x4b9   : > { %5853 = vmatprep.subr.bf16.mxu0 %v16490_v3 }
 0x4bc   : > { %5854 = vmatpush2.bf16.msra.mxu0 %v16488_v31 }
 0x4bd   : > { %5855 = vmatprep.subr.bf16.mxu0 %v16496_v57 }
 0x4c0   : > { %5856 = vmatpush2.bf16.msra.mxu0 %v16494_v56 }
 0x4c1   : > { %5857 = vmatprep.subr.bf16.mxu0 %v16502_v50 }
 0x4c4   : > { %5858 = vmatpush2.bf16.msra.mxu0 %v16500_v0 }
 0x4c5   : > { %5913 = vmatprep.subr.bf16.mxu0 %v16508_v48 }
 0x547   : > { %v3700_v30 = vpop.f32.mrf.mxu0 }
 0x549   : > { %v16165_v23 = vpop.f32.mrf.mxu0 }
 0x54b   : > { %v3703_v6 = vpop.f32.mrf.mxu0 }
 0x54c   : > { %v15882_v34 = vpack.c.bf16 %v3703_v6, %v3700_v30 }
 0x54d   : > { %v16166_v19 = vpop.f32.mrf.mxu0 }
 0x54e   : > { %15883 = vst [vmem:[#allocation4] sm:$0xff] %v15882_v34   ;;  %v3780_v19 = vld [vmem:[#allocation5 + $0x44] sm:$0xf] }
 0x54f   : > { %v3708_v18 = vpop.f32.mrf.mxu0 }
 0x551   : > { %v16169_v63 = vpop.f32.mrf.mxu0 }
 0x553   : > { %v3711_v20 = vpop.f32.mrf.mxu0 }
 0x554   : > { %v15887_v1 = vpack.c.bf16 %v3711_v20, %v3708_v18 }
 0x555   : > { %v3748_v39 = vld [vmem:[#allocation4] sm:$0xf]  ;;  %v3749_v2 = vld [vmem:[#allocation4 + $0x4] sm:$0xf]  ;;  %v16170_v8 = vpop.f32.mrf.mxu0 }
 0x556   : > { %v3756_v54 = vld [vmem:[#allocation4] sm:$0xf]  ;;  %3750 = vst [vmem:[#allocation5] sm:$0xf] %v3748_v39  ;;  %v3754_v62 = vsel %vm20125_vm8, %v3749_v2, %v3753_v58  ;;  %v3757_v55 = vld [vmem:[#allocation4 + $0x4] sm:$0xf] }
 0x557   : > { %v3759_v45 = vshrl.u32 %v3756_v54, 16  ;;  %v3762_v32 = vshll.u32 %v3756_v54, 16  ;;  %v3783_v44 = vld [vmem:[#allocation4] sm:$0xe]  ;;  %15889 = vst [vmem:[#allocation4 + $0x8] sm:$0xff] %v15887_v1   ;;  %v3768_v40 = vshll.u32 %v3757_v55, 16  ;;  %v3716_v13 = vpop.f32.mrf.mxu0 }
 0x558   : > { %v3772_v9 = vshrl.u32 %v3757_v55, 16  ;;  %v3784_v53 = vld [vmem:[#allocation4 + $0x4] sm:$0xf]  ;;  %v14503_v22 = vrot.slane %v3783_v44, 9  ;;  %3755 = vst [vmem:[#allocation5 + $0x40] sm:$0xf] %v3754_v62  ;;  %v15874_v47 = vpack.c.bf16 %v3716_v13, %v3716_v13 }
 0x559   : > { %v3761_v49 = vrot.slane %v3759_v45, 4  ;;  %v3764_v24 = vrot.slane %v3762_v32, 5  ;;  %v3791_v26 = vrot.slane %v3784_v53, 5  ;;  %v3802_v29 = vld [vmem:[#allocation4] sm:$0xe]  ;;  %v3770_v12 = vrot.slane %v3768_v40, 5  ;;  %v16173_v11 = vpop.f32.mrf.mxu0 }
 0x55a   : > { %v3774_v15 = vrot.slane %v3772_v9, 4  ;;  %v3803_v36 = vld [vmem:[#allocation4 + $0x4] sm:$0xf]  ;;  %v3806_v16 = vshrl.u32 %v3802_v29, 16  ;;  %v3809_v28 = vshll.u32 %v3802_v29, 16 }
 0x55b   : > { %v3765_v51 = vor.u32 %v3764_v24, %v3761_v49  ;;  %v3815_v10 = vshrl.u32 %v3803_v36, 16  ;;  %v3818_v52 = vshll.u32 %v3803_v36, 16  ;;  %3747 = vst [vmem:[#allocation4 + $0x10] sm:$0x3] %v15874_v47  ;;  %v20131_v4 = vld [vmem:[#allocation4 + $0x4] sm:$0xf]  ;;  %v3719_v17 = vpop.f32.mrf.mxu0  ;;  %v3792_v56 = vsel %vm19374_vm13, %v14503_v22, %v3791_v26 }
 0x55c   : > { %v3775_v33 = vor.u32 %v3774_v15, %v3770_v12  ;;  %v3808_v42 = vrot.slane %v3806_v16, 5  ;;  %v3811_v25 = vrot.slane %v3809_v28, 6  ;;  %v3858_v38 = vld [vmem:[#allocation4] sm:$0x8]  ;;  %v20135_v57 = vld [vmem:[#allocation4 + $0x4] sm:$0xf] }
 0x55d   : > { %v3766_v43 = vrot.slane %v3765_v51, 4  ;;  %v3817_v35 = vrot.slane %v3815_v10, 5  ;;  %v3820_v3 = vrot.slane %v3818_v52, 6  ;;  %v20133_v60 = vld [vmem:[#allocation4] sm:$0x8]  ;;  %v16174_v50 = vpop.f32.mrf.mxu0  ;;  %v3847_v48 = vrot.slane %v20131_v4, 7 }
 0x55e   : > { %v3812_v31 = vor.u32 %v3811_v25, %v3808_v42  ;;  %v3889_v21 = vld [vmem:[#allocation4 + $0x4] sm:$0xf]  ;;  %v3776_v0 = vrot.slane %v3775_v33, 4  ;;  %v3867_v30 = vshrl.u32 %v20135_v57, 16  ;;  %3798 = vst [vmem:[#allocation5 + $0x8] sm:$0xf] %v3792_v56 }
 0x55f   : > { %3891 = vst [vmem:[#allocation5 + $0x18] sm:$0xf] %v3889_v21  ;;  %v3895_v23 = vld [vmem:[#allocation4 + $0x4] sm:$0xf]  ;;  %v20141_v6 = vor.u32 %v3820_v3, %v3817_v35  ;;  %v3862_v34 = vshrl.u32 %v3858_v38, 16  ;;  %v3771_v1 = vsel %vm18999_vm15, %v3766_v43, %v3770_v12  ;;  %v3793_v39 = vrot.slane %v3791_v26, 4 }
 0x560   : > { %v3813_v18 = vrot.slane %v3812_v31, 4  ;;  %v3898_v63 = vshrl.u32 %v3895_v23, 16  ;;  %v3901_v58 = vshll.u32 %v3895_v23, 16  ;;  %v3941_v20 = vld [vmem:[#allocation4 + $0x4] sm:$0xc]  ;;  %v14504_v2 = vrot.slane %v20133_v60, 11 }
 0x561   : > { %v3945_v54 = vshrl.u32 %v3941_v20, 16  ;;  %v3948_v8 = vshll.u32 %v3941_v20, 16  ;;  %3779 = vst [vmem:[#allocation5 + $0x4] sm:$0xf] %v3771_v1  ;;  %v20146_v62 = vrot.slane %v3847_v48, 4  ;;  %v20148_v55 = vrot.slane %v3867_v30, 7 }
 0x562   : > { %v3870_v45 = vshll.u32 %v20135_v57, 16  ;;  %v3785_v32 = vld [vmem:[#allocation4 + $0x8] sm:$0x1]  ;;  %v3892_v44 = vld [vmem:[#allocation5 + $0x58] sm:$0xf]  ;;  %v3781_v40 = vsel %vm20125_vm8, %v3776_v0, %v3780_v19  ;;  %v20154_v53 = vrot.slane %v3862_v34, 11  ;;  %v3822_v12 = vsel %vm19010_vm0, %v3813_v18, %v20141_v6 }
 0x563   : > { %v20156_v22 = vld [vmem:[#allocation4 + $0x4] sm:$0xc]  ;;  %v3804_v13 = vld [vmem:[#allocation4 + $0x8] sm:$0x1]  ;;  %3782 = vst [vmem:[#allocation5 + $0x44] sm:$0xf] %v3781_v40  ;;  %v3848_v23 = vsel %vm19584_vm5, %v14504_v2, %v3847_v48 }
 0x564   : > { %v3900_v49 = vrot.slane %v3898_v63, 4  ;;  %v3903_v24 = vrot.slane %v3901_v58, 5  ;;  %v20158_v26 = vld [vmem:[#allocation4 + $0x4] sm:$0x8]  ;;  %v3794_v29 = vrot.slane %v3785_v32, 5  ;;  %v3947_v15 = vrot.slane %v3945_v54, 6 }
 0x565   : > { %v3799_v47 = vld [vmem:[#allocation5 + $0x48] sm:$0xf]  ;;  %v3950_v36 = vrot.slane %v3948_v8, 7  ;;  %v3997_v16 = vld [vmem:[#allocation4 + $0x4] sm:$0x8]  ;;  %v3825_v52 = vshrl.u32 %v3804_v13, 16 }
 0x566   : > { %v3860_v28 = vld [vmem:[#allocation4 + $0x8] sm:$0x7]  ;;  %3835 = vst [vmem:[#allocation5 + $0xc] sm:$0xf] %v3822_v12  ;;  %v3795_v10 = vsel %vm19374_vm13, %v3793_v39, %v3794_v29  ;;  %v3828_v42 = vshll.u32 %v3804_v13, 16  ;;  %v4001_v3 = vshrl.u32 %v3997_v16, 16  ;;  %v3904_v60 = vor.u32 %v3903_v24, %v3900_v49 }
 0x567   : > { %v3890_v33 = vld [vmem:[#allocation4 + $0x8] sm:$0xf]  ;;  %v3876_v4 = vshrl.u32 %v3860_v28, 16  ;;  %v3951_v21 = vor.u32 %v3950_v36, %v3947_v15  ;;  %v3943_v0 = vld [vmem:[#allocation4 + $0xc] sm:$0x3]  ;;  %v3800_v30 = vsel %vm20125_vm8, %v3795_v10, %v3799_v47  ;;  %v20176_v34 = vrot.slane %v3825_v52, 5 }
 0x568   : > { %v3841_v25 = vld [vmem:[#allocation4 + $0x8] sm:$0x7]  ;;  %v3893_v17 = vsel %vm20125_vm8, %v3890_v33, %v3892_v44  ;;  %3801 = vst [vmem:[#allocation5 + $0x48] sm:$0xf] %v3800_v30  ;;  %3854 = vst [vmem:[#allocation5 + $0x10] sm:$0xf] %v3848_v23  ;;  %v20196_v15 = vor.u32 %v3870_v45, %v20148_v55 }
 0x569   : > { %v3896_v43 = vld [vmem:[#allocation4 + $0x8] sm:$0xf]  ;;  %3894 = vst [vmem:[#allocation5 + $0x58] sm:$0xf] %v3893_v17  ;;  %v3850_v19 = vrot.slane %v3841_v25, 7  ;;  %v20180_v58 = vrot.slane %v3828_v42, 6 }
 0x56a   : > { %v3907_v38 = vshll.u32 %v3896_v43, 16  ;;  %v3911_v31 = vshrl.u32 %v3896_v43, 16  ;;  %v20170_v56 = vld [vmem:[#allocation4 + $0x8] sm:$0xf]  ;;  %v3878_v20 = vrot.slane %v3876_v4, 7  ;;  %v3964_v44 = vshrl.u32 %v3943_v0, 16 }
 0x56b   : > { %v3942_v50 = vld [vmem:[#allocation4 + $0x8] sm:$0xf]  ;;  %v3924_v1 = vld [vmem:[#allocation4 + $0xc] sm:$0x3]  ;;  %v20887_v54 = vrot.slane %v20170_v56, 6  ;;  %v20185_v48 = vrot.slane %v3904_v60, 4  ;;  %v20203_v16 = vsel %vm19584_vm5, %v20146_v62, %v3850_v19 }
 0x56c   : > { %v20178_v18 = vrot.slane %v3907_v38, 5  ;;  %v3913_v63 = vrot.slane %v3911_v31, 4  ;;  %v20182_v39 = vld [vmem:[#allocation4 + $0x8] sm:$0xf]  ;;  %v3954_v8 = vshrl.u32 %v3942_v50, 16  ;;  %v3957_v32 = vshll.u32 %v3942_v50, 16 }
 0x56d   : > { %v20187_v2 = vrot.slane %v4001_v3, 11  ;;  %v3879_v40 = vshll.u32 %v3860_v28, 16  ;;  %v3967_v13 = vshll.u32 %v3943_v0, 16  ;;  %v20189_v49 = vrot.slane %v3951_v21, 4  ;;  %v3998_v12 = vld [vmem:[#allocation4 + $0x8] sm:$0xf] }
 0x56e   : > { %v3914_v24 = vor.u32 %v3913_v63, %v20178_v18  ;;  %v3933_v29 = vrot.slane %v3924_v1, 6  ;;  %v20886_v47 = vrot.slane %v20182_v39, 7  ;;  %v3980_v10 = vld [vmem:[#allocation4 + $0xc] sm:$0x7]  ;;  %v4047_v33 = vld [vmem:[#allocation4 + $0x8] sm:$0xe] }
 0x56f   : > { %v20205_v28 = vor.u32 %v3879_v40, %v3878_v20  ;;  %v3999_v52 = vld [vmem:[#allocation4 + $0xc] sm:$0x7]  ;;  %v3932_v42 = vrot.slane %v20887_v54, 4  ;;  %v3956_v25 = vrot.slane %v3954_v8, 6  ;;  %v3959_v57 = vrot.slane %v3957_v32, 7  ;;  %v4148_v51 = vld [vmem:[#allocation5 + $0x40] sm:$0xff] }
 0x570   : > { %v20209_v45 = vrot.slane %v3964_v44, 6  ;;  %v4048_v4 = vld [vmem:[#allocation4 + $0xc] sm:$0xf]  ;;  %v20211_v17 = vrot.slane %v3967_v13, 7  ;;  %v4006_v43 = vshrl.u32 %v3998_v12, 16  ;;  %v4051_v3 = vshrl.u32 %v4047_v33, 16 }
 0x571   : > { %v4054_v38 = vshll.u32 %v4047_v33, 16  ;;  %v20213_v62 = vrot.slane %v3914_v24, 4  ;;  %v3988_v31 = vrot.slane %v20886_v47, 4  ;;  %v3989_v60 = vrot.slane %v3980_v10, 7  ;;  %v4103_v19 = vld [vmem:[#allocation4 + $0x8] sm:$0xc] }
 0x572   : > { %v4015_v21 = vshrl.u32 %v3999_v52, 16  ;;  %v4053_v50 = vrot.slane %v4051_v3, 5  ;;  %v4060_v30 = vshrl.u32 %v4048_v4, 16  ;;  %v4063_v23 = vshll.u32 %v4048_v4, 16  ;;  %v20223_v8 = vld [vmem:[#allocation4 + $0x8] sm:$0xe] }
 0x573   : > { %v4056_v0 = vrot.slane %v4054_v38, 6  ;;  %v20219_v63 = vsel %vm19474_vm9, %v3932_v42, %v3933_v29  ;;  %v20221_v20 = vor.u32 %v3959_v57, %v3956_v25  ;;  %v4009_v1 = vshll.u32 %v3998_v12, 16  ;;  %v4104_v32 = vld [vmem:[#allocation4 + $0xc] sm:$0xf]  ;;  %v20231_v29 = vld [vmem:[#allocation4 + $0x8] sm:$0xc] }
 0x574   : > { %v4107_v44 = vshrl.u32 %v4103_v19, 16  ;;  %v20227_v13 = vrot.slane %v4006_v43, 7  ;;  %v20229_v24 = vld [vmem:[#allocation4 + $0xc] sm:$0xf]  ;;  %v4110_v10 = vshll.u32 %v4103_v19, 16  ;;  %v4116_v33 = vshrl.u32 %v4104_v32, 16 }
 0x575   : > { %v4017_v4 = vrot.slane %v4015_v21, 7  ;;  %v4018_v3 = vshll.u32 %v3999_v52, 16  ;;  %v4119_v25 = vshll.u32 %v4104_v32, 16  ;;  %v4057_v12 = vor.u32 %v4056_v0, %v4053_v50  ;;  %v20233_v5 = vld [vmem:[#allocation4 + $0xc] sm:$0xf]  ;;  %v4140_v47 = vld [vmem:[#allocation5] sm:$0xff] }
 0x576   : > { %v4109_v42 = vrot.slane %v4107_v44, 6  ;;  %v4062_v57 = vrot.slane %v4060_v30, 5  ;;  %v4065_v38 = vrot.slane %v4063_v23, 6  ;;  %v4112_v35 = vrot.slane %v4110_v10, 7  ;;  %v20240_v52 = vld [vmem:[#allocation4 + $0x10] sm:$0x1] }
 0x577   : > { %v20237_v43 = vsel %vm19584_vm5, %v3988_v31, %v3989_v60  ;;  %v4118_v40 = vrot.slane %v4116_v33, 6  ;;  %v4121_v21 = vrot.slane %v4119_v25, 7  ;;  %v3962_v32 = vrot.slane %v20221_v20, 4  ;;  %v20246_v23 = vld [vmem:[#allocation4 + $0x10] sm:$0x3] }
 0x578   : > { %v4011_v50 = vor.u32 %v4009_v1, %v20227_v13  ;;  %v4013_v0 = vrot.slane %v20227_v13, 4  ;;  %v4020_v44 = vor.u32 %v4018_v3, %v4017_v4  ;;  %v4113_v10 = vor.u32 %v4112_v35, %v4109_v42  ;;  %v16497_v33 = vld [vmem:[#allocation13 + $0x270] ss:$8 sps:$4 sm:$0xff]   ;;  %v3836_v9 = vld [vmem:[#allocation5 + $0x4c] sm:$0xf] }
 0x579   : > { %v3855_v25 = vld [vmem:[#allocation5 + $0x50] sm:$0xf]  ;;  %v4058_v19 = vrot.slane %v4057_v12, 4  ;;  %v20250_v54 = vor.u32 %v4065_v38, %v4062_v57  ;;  %v4070_v11 = vshrl.u32 %v20240_v52, 16  ;;  %v14511_v1 = vcombine.low %v4140_v47, %v4148_v51  ;;  %v3886_v13 = vld [vmem:[#allocation5 + $0x54] sm:$0xf] }
 0x57a   : > { %v20253_v36 = vor.u32 %v4121_v21, %v4118_v40  ;;  %v4073_v30 = vshll.u32 %v20240_v52, 16  ;;  %v4126_v4 = vshrl.u32 %v20246_v23, 16  ;;  %v14512_v3 = vcombine.high %v4140_v47, %v4148_v51  ;;  %v3919_v31 = vld [vmem:[#allocation5 + $0x5c] sm:$0xf]  ;;  %v3938_v60 = vld [vmem:[#allocation5 + $0x60] sm:$0xf] }
 0x57b   : > { %v16505_v35 = vld [vmem:[#allocation13 + $0x264] ss:$8 sps:$4 sm:$0xff]   ;;  %v20930_v42 = vor.u32 %v20180_v58, %v20176_v34  ;;  %v20931_v12 = vrot.slane %v20141_v6, 4  ;;  %v3856_v40 = vsel %vm20125_vm8, %v20203_v16, %v3855_v25  ;;  %v3873_v51 = vsel %vm19111_vm7, %v20154_v53, %v20196_v15  ;;  %v16503_v52 = vld [vmem:[#allocation13 + $0x260] ss:$8 sps:$4 sm:$0xff]  }
 0x57c   : > { %v20932_v47 = vrot.slane %v20148_v55, 4  ;;  %v3994_v58 = vld [vmem:[#allocation5 + $0x68] sm:$0xf]  ;;  %v4114_v6 = vrot.slane %v4113_v10, 4  ;;  %5816 = vmatprep.mubr.bf16.mxu1 %v14512_v3  ;;  %3857 = vst [vmem:[#allocation5 + $0x50] sm:$0xf] %v3856_v40  ;;  %v3910_v53 = vsel %vm18999_vm15, %v20185_v48, %v20178_v18  ;;  %v3920_v15 = vsel %vm20125_vm8, %v20213_v62, %v3919_v31 }
 0x57d   : > { %v3832_v57 = vsel %vm19010_vm0, %v20931_v12, %v20930_v42  ;;  %3885 = vst [vmem:[#allocation5 + $0x14] sm:$0xf] %v3873_v51  ;;  %v3975_v55 = vld [vmem:[#allocation5 + $0x64] sm:$0xf]  ;;  %5817 = vmatmul.mubr.bf16.vlgmr.msra.gmra.mxu1 %v14511_v1  ;;  %3918 = vst [vmem:[#allocation5 + $0x1c] sm:$0xf] %v3910_v53  ;;  %v3939_v41 = vsel %vm20125_vm8, %v20219_v63, %v3938_v60  ;;  %v3961_v18 = vsel %vm19053_vm4, %v20189_v49, %v20221_v20 }
 0x57e   : > { %v3882_v34 = vsel %vm19111_vm7, %v20932_v47, %v20205_v28  ;;  %v3837_v38 = vsel %vm20125_vm8, %v3832_v57, %v3836_v9  ;;  %v20933_v9 = vrot.slane %v20170_v56, 6  ;;  %v20934_v28 = vrot.slane %v20156_v22, 10  ;;  %v4025_v48 = vld [vmem:[#allocation5 + $0x6c] sm:$0xf]  ;;  %5871 = vmatpush1.bf16.msra.mxu1 %v16497_v33  ;;  %3921 = vst [vmem:[#allocation5 + $0x5c] sm:$0xf] %v3920_v15 }
 0x57f   : > { %v3887_v16 = vsel %vm20125_vm8, %v3882_v34, %v3886_v13  ;;  %3838 = vst [vmem:[#allocation5 + $0x4c] sm:$0xf] %v3837_v38  ;;  %3940 = vst [vmem:[#allocation5 + $0x60] sm:$0xf] %v3939_v41  ;;  %v20935_v22 = vor.u32 %v20211_v17, %v20209_v45  ;;  %v20936_v62 = vrot.slane %v20182_v39, 7  ;;  %v20937_v63 = vrot.slane %v20158_v26, 11  ;;  %5872 = vmatprep.subr.bf16.mxu1 %v16505_v35 }
 0x580   : > { %3888 = vst [vmem:[#allocation5 + $0x54] sm:$0xf] %v3887_v16  ;;  %v3931_v21 = vsel %vm19474_vm9, %v20934_v28, %v20933_v9  ;;  %3974 = vst [vmem:[#allocation5 + $0x24] sm:$0xf] %v3961_v18  ;;  %v3995_v20 = vsel %vm20125_vm8, %v20237_v43, %v3994_v58  ;;  %v4012_v31 = vsel %vm19111_vm7, %v20187_v2, %v4011_v50  ;;  %v16511_v45 = vld [vmem:[#allocation13 + $0x254] ss:$8 sps:$4 sm:$0xff]  }
 0x581   : > { %3937 = vst [vmem:[#allocation5 + $0x20] sm:$0xf] %v3931_v21  ;;  %v3971_v56 = vsel %vm19053_vm4, %v3962_v32, %v20935_v22  ;;  %v3987_v49 = vsel %vm19584_vm5, %v20937_v63, %v20936_v62  ;;  %3996 = vst [vmem:[#allocation5 + $0x68] sm:$0xf] %v3995_v20  ;;  %v4021_v26 = vsel %vm19111_vm7, %v4013_v0, %v4020_v44  ;;  %v20938_v39 = vrot.slane %v20229_v24, 5  ;;  %v4141_v13 = vld [vmem:[#allocation5 + $0x8] sm:$0xff] }
 0x582   : > { %v3976_v17 = vsel %vm20125_vm8, %v3971_v56, %v3975_v55  ;;  %3993 = vst [vmem:[#allocation5 + $0x28] sm:$0xf] %v3987_v49  ;;  %4024 = vst [vmem:[#allocation5 + $0x2c] sm:$0xf] %v4012_v31  ;;  %v20939_v32 = vrot.slane %v20223_v8, 9  ;;  %v4067_v2 = vsel %vm19010_vm0, %v4058_v19, %v20250_v54  ;;  %v4129_v50 = vshll.u32 %v20246_v23, 16  ;;  %5873 = vmatpush1.bf16.msra.mxu1 %v16503_v52 }
 0x583   : > { %3977 = vst [vmem:[#allocation5 + $0x64] sm:$0xf] %v3976_v17  ;;  %v4026_v60 = vsel %vm20125_vm8, %v4021_v26, %v4025_v48  ;;  %4080 = vst [vmem:[#allocation5 + $0x34] sm:$0xf] %v4067_v2  ;;  %v20940_v0 = vrot.slane %v20233_v5, 6  ;;  %v20941_v44 = vrot.slane %v20231_v29, 10  ;;  %v4123_v10 = vsel %vm19053_vm4, %v4114_v6, %v20253_v36  ;;  %5874 = vmatprep.subr.bf16.mxu1 %v16511_v45 }
 0x584   : > { %v4037_v43 = vsel %vm19374_vm13, %v20939_v32, %v20938_v39  ;;  %v4030_v19 = vld [vmem:[#allocation4 + $0x10] sm:$0x1]  ;;  %v4072_v33 = vrot.slane %v4070_v11, 5  ;;  %v4075_v25 = vrot.slane %v4073_v30, 6  ;;  %4027 = vst [vmem:[#allocation5 + $0x6c] sm:$0xf] %v4026_v60  ;;  %v20942_v23 = vmov %v20938_v39 }
 0x585   : > { %4043 = vst [vmem:[#allocation5 + $0x30] sm:$0xf] %v4037_v43  ;;  %v4093_v8 = vsel %vm19474_vm9, %v20941_v44, %v20940_v0  ;;  %4136 = vst [vmem:[#allocation5 + $0x3c] sm:$0xf] %v4123_v10  ;;  %v16509_v1 = vld [vmem:[#allocation13 + $0x250] ss:$8 sps:$4 sm:$0xff]   ;;  %v20943_v52 = vmov %v20940_v0 }
 0x586   : > { %4099 = vst [vmem:[#allocation5 + $0x38] sm:$0xf] %v4093_v8  ;;  %v16506_v3 = vld [vmem:[#allocation13 + $0x370] ss:$8 sps:$4 sm:$0xff]   ;;  %v16517_v35 = vld [vmem:[#allocation13 + $0x244] ss:$8 sps:$4 sm:$0xff]   ;;  %v4076_v11 = vor.u32 %v4075_v25, %v4072_v33  ;;  %5875 = vmatpush1.bf16.msra.mxu1 %v16509_v1 }
 0x587   : > { %v4039_v29 = vrot.slane %v4030_v19, 5  ;;  %v4128_v42 = vrot.slane %v4126_v4, 6  ;;  %v4131_v12 = vrot.slane %v4129_v50, 7  ;;  %v4149_v57 = vld [vmem:[#allocation5 + $0x48] sm:$0xff]  ;;  %v20344_v40 = vld [vmem:[#allocation5 + $0x10] sm:$0xff]  ;;  %v20350_v6 = vld [vmem:[#allocation5 + $0x18] sm:$0xff]  ;;  %5876 = vmatprep.subr.bf16.mxu1 %v16517_v35 }
 0x588   : > { %v20346_v51 = vld [vmem:[#allocation5 + $0x50] sm:$0xff]  ;;  %v4086_v30 = vld [vmem:[#allocation4 + $0x10] sm:$0x3]  ;;  %v14513_v47 = vcombine.low %v4141_v13, %v4149_v57  ;;  %v14514_v34 = vcombine.high %v4141_v13, %v4149_v57  ;;  %v4038_v4 = vrot.slane %v20942_v23, 4  ;;  %v16515_v55 = vld [vmem:[#allocation13 + $0x240] ss:$8 sps:$4 sm:$0xff]  }
 0x589   : > { %v14516_v58 = vcombine.high %v20344_v40, %v20346_v51  ;;  %v20352_v38 = vld [vmem:[#allocation5 + $0x58] sm:$0xff]  ;;  %v16514_v53 = vld [vmem:[#allocation13 + $0x364] ss:$8 sps:$4 sm:$0xff]   ;;  %v4068_v15 = vrot.slane %v20250_v54, 4  ;;  %v4095_v21 = vrot.slane %v4086_v30, 6  ;;  %v4132_v41 = vor.u32 %v4131_v12, %v4128_v42 }
 0x58a   : > { %v14518_v16 = vcombine.high %v20350_v6, %v20352_v38  ;;  %5859 = vmatprep.mubr.bf16.mxu0 %v14514_v34  ;;  %v16523_v9 = vld [vmem:[#allocation13 + $0x234] ss:$8 sps:$4 sm:$0xff]   ;;  %v4040_v28 = vsel %vm19374_vm13, %v4038_v4, %v4039_v29  ;;  %v16512_v24 = vld [vmem:[#allocation13 + $0x360] ss:$8 sps:$4 sm:$0xff]   ;;  %v4094_v54 = vrot.slane %v20943_v52, 4  ;;  %v4124_v22 = vrot.slane %v20253_v36, 4  ;;  %5877 = vmatpush1.bf16.msra.mxu1 %v16515_v55 }
 0x58b   : > { %5902 = vmatprep.mubr.bf16.mxu1 %v14516_v58  ;;  %5860 = vmatmul.mubr.bf16.vlgmr.msra.gmra.mxu0 %v14513_v47  ;;  %v16520_v18 = vld [vmem:[#allocation13 + $0x354] ss:$8 sps:$4 sm:$0xff]   ;;  %v4077_v48 = vsel %vm19010_vm0, %v4068_v15, %v4076_v11  ;;  %v16521_v56 = vld [vmem:[#allocation13 + $0x230] ss:$8 sps:$4 sm:$0xff]   ;;  %v16529_v63 = vld [vmem:[#allocation13 + $0x224] ss:$8 sps:$4 sm:$0xff]  }
 0x58c   : > { %5914 = vmatpush1.bf16.msra.mxu0 %v16506_v3  ;;  %5945 = vmatprep.mubr.bf16.mxu0 %v14518_v16  ;;  %v4044_v62 = vld [vmem:[#allocation5 + $0x70] sm:$0xf]  ;;  %v4081_v20 = vld [vmem:[#allocation5 + $0x74] sm:$0xf]  ;;  %v4096_v31 = vsel %vm19474_vm9, %v4094_v54, %v4095_v21  ;;  %v4133_v36 = vsel %vm19053_vm4, %v4124_v22, %v4132_v41  ;;  %v16527_v26 = vld [vmem:[#allocation13 + $0x220] ss:$8 sps:$4 sm:$0xff]  }
 0x58d   : > { %5915 = vmatprep.subr.bf16.mxu0 %v16514_v53  ;;  %5878 = vmatprep.subr.bf16.mxu1 %v16523_v9  ;;  %v4045_v49 = vsel %vm20125_vm8, %v4040_v28, %v4044_v62  ;;  %v4082_v5 = vsel %vm20125_vm8, %v4077_v48, %v4081_v20  ;;  %v16518_v45 = vld [vmem:[#allocation13 + $0x350] ss:$8 sps:$4 sm:$0xff]   ;;  %v16526_v17 = vld [vmem:[#allocation13 + $0x344] ss:$8 sps:$4 sm:$0xff]   ;;  %v16535_v43 = vld [vmem:[#allocation13 + $0x214] ss:$8 sps:$4 sm:$0xff]  }
 0x58e   : > { %4046 = vst [vmem:[#allocation5 + $0x70] sm:$0xf] %v4045_v49  ;;  %4083 = vst [vmem:[#allocation5 + $0x74] sm:$0xf] %v4082_v5  ;;  %5879 = vmatpush1.bf16.msra.mxu1 %v16521_v56  ;;  %v4100_v39 = vld [vmem:[#allocation5 + $0x78] sm:$0xf] }
 0x58f   : > { %v4137_v32 = vld [vmem:[#allocation5 + $0x7c] sm:$0xf]  ;;  %5880 = vmatprep.subr.bf16.mxu1 %v16529_v63  ;;  %v4101_v2 = vsel %vm20125_vm8, %v4096_v31, %v4100_v39  ;;  %v16524_v60 = vld [vmem:[#allocation13 + $0x340] ss:$8 sps:$4 sm:$0xff]   ;;  %v16541_v8 = vld [vmem:[#allocation13 + $0x204] ss:$8 sps:$4 sm:$0xff]  }
 0x590   : > { %5916 = vmatpush1.bf16.msra.mxu0 %v16512_v24  ;;  %v4138_v50 = vsel %vm20125_vm8, %v4133_v36, %v4137_v32  ;;  %4102 = vst [vmem:[#allocation5 + $0x78] sm:$0xf] %v4101_v2  ;;  %v16532_v0 = vld [vmem:[#allocation13 + $0x334] ss:$8 sps:$4 sm:$0xff]   ;;  %v16533_v44 = vld [vmem:[#allocation13 + $0x210] ss:$8 sps:$4 sm:$0xff]   ;;  %v14515_v36 = vcombine.low %v20344_v40, %v20346_v51 }
 0x591   : > { %5917 = vmatprep.subr.bf16.mxu0 %v16520_v18  ;;  %4139 = vst [vmem:[#allocation5 + $0x7c] sm:$0xf] %v4138_v50  ;;  %v16530_v10 = vld [vmem:[#allocation13 + $0x330] ss:$8 sps:$4 sm:$0xff]   ;;  %v16538_v19 = vld [vmem:[#allocation13 + $0x324] ss:$8 sps:$4 sm:$0xff]  }
 0x592   : > { %5881 = vmatpush1.bf16.msra.mxu1 %v16527_v26  ;;  %v16539_v33 = vld [vmem:[#allocation13 + $0x200] ss:$8 sps:$4 sm:$0xff]   ;;  %v16547_v25 = vld [vmem:[#allocation13 + $0x2f4] ss:$8 sps:$4 sm:$0xff]   ;;  %v16545_v3 = vld [vmem:[#allocation13 + $0x2f0] ss:$8 sps:$4 sm:$0xff]  }
 0x593   : > { %5882 = vmatprep.subr.bf16.mxu1 %v16535_v43  ;;  %v16536_v1 = vld [vmem:[#allocation13 + $0x320] ss:$8 sps:$4 sm:$0xff]   ;;  %v16544_v13 = vld [vmem:[#allocation13 + $0x314] ss:$8 sps:$4 sm:$0xff]   ;;  %v16553_v35 = vld [vmem:[#allocation13 + $0x2e4] ss:$8 sps:$4 sm:$0xff]  }
 0x594   : > { %5918 = vmatpush1.bf16.msra.mxu0 %v16518_v45  ;;  %v16542_v29 = vld [vmem:[#allocation13 + $0x310] ss:$8 sps:$4 sm:$0xff]   ;;  %v16550_v42 = vld [vmem:[#allocation13 + $0x304] ss:$8 sps:$4 sm:$0xff]   ;;  %v16551_v12 = vld [vmem:[#allocation13 + $0x2e0] ss:$8 sps:$4 sm:$0xff]  }
 0x595   : > { %5919 = vmatprep.subr.bf16.mxu0 %v16526_v17  ;;  %v16559_v57 = vld [vmem:[#allocation13 + $0x2d4] ss:$8 sps:$4 sm:$0xff]   ;;  %v16548_v11 = vld [vmem:[#allocation13 + $0x300] ss:$8 sps:$4 sm:$0xff]   ;;  %v16557_v47 = vld [vmem:[#allocation13 + $0x2d0] ss:$8 sps:$4 sm:$0xff]  }
 0x596   : > { %5883 = vmatpush1.bf16.msra.mxu1 %v16533_v44  ;;  %v16556_v30 = vld [vmem:[#allocation13 + $0x3f4] ss:$8 sps:$4 sm:$0xff]   ;;  %v16565_v34 = vld [vmem:[#allocation13 + $0x2c4] ss:$8 sps:$4 sm:$0xff]   ;;  %v16554_v58 = vld [vmem:[#allocation13 + $0x3f0] ss:$8 sps:$4 sm:$0xff]  }
 0x597   : > { %5884 = vmatprep.subr.bf16.mxu1 %v16541_v8  ;;  %v16562_v23 = vld [vmem:[#allocation13 + $0x3e4] ss:$8 sps:$4 sm:$0xff]   ;;  %v16563_v4 = vld [vmem:[#allocation13 + $0x2c0] ss:$8 sps:$4 sm:$0xff]   ;;  %v16571_v16 = vld [vmem:[#allocation13 + $0x2b4] ss:$8 sps:$4 sm:$0xff]  }
 0x598   : > { %5920 = vmatpush1.bf16.msra.mxu0 %v16524_v60  ;;  %v16560_v53 = vld [vmem:[#allocation13 + $0x3e0] ss:$8 sps:$4 sm:$0xff]   ;;  %v16568_v55 = vld [vmem:[#allocation13 + $0x3d4] ss:$8 sps:$4 sm:$0xff]   ;;  %v16569_v15 = vld [vmem:[#allocation13 + $0x2b0] ss:$8 sps:$4 sm:$0xff]  }
 0x599   : > { %5921 = vmatprep.subr.bf16.mxu0 %v16532_v0  ;;  %v16577_v9 = vld [vmem:[#allocation13 + $0x2a4] ss:$8 sps:$4 sm:$0xff]   ;;  %v16566_v28 = vld [vmem:[#allocation13 + $0x3d0] ss:$8 sps:$4 sm:$0xff]   ;;  %v16575_v41 = vld [vmem:[#allocation13 + $0x2a0] ss:$8 sps:$4 sm:$0xff]  }
 0x59a   : > { %5885 = vmatpush1.bf16.msra.mxu1 %v16539_v33  ;;  %v16574_v21 = vld [vmem:[#allocation13 + $0x3c4] ss:$8 sps:$4 sm:$0xff]   ;;  %v16583_v24 = vld [vmem:[#allocation13 + $0x294] ss:$8 sps:$4 sm:$0xff]   ;;  %v16572_v18 = vld [vmem:[#allocation13 + $0x3c0] ss:$8 sps:$4 sm:$0xff]  }
 0x59b   : > { %5886 = vmatprep.subr.bf16.mxu1 %v16547_v25  ;;  %v16580_v48 = vld [vmem:[#allocation13 + $0x3b4] ss:$8 sps:$4 sm:$0xff]   ;;  %v16581_v52 = vld [vmem:[#allocation13 + $0x290] ss:$8 sps:$4 sm:$0xff]   ;;  %v16589_v54 = vld [vmem:[#allocation13 + $0x284] ss:$8 sps:$4 sm:$0xff]  }
 0x59c   : > { %5922 = vmatpush1.bf16.msra.mxu0 %v16530_v10  ;;  %v16578_v22 = vld [vmem:[#allocation13 + $0x3b0] ss:$8 sps:$4 sm:$0xff]   ;;  %v16586_v56 = vld [vmem:[#allocation13 + $0x3a4] ss:$8 sps:$4 sm:$0xff]   ;;  %v16587_v62 = vld [vmem:[#allocation13 + $0x280] ss:$8 sps:$4 sm:$0xff]   ;;  %v14517_v10 = vcombine.low %v20350_v6, %v20352_v38 }
 0x59d   : > { %5923 = vmatprep.subr.bf16.mxu0 %v16538_v19  ;;  %v16595_v63 = vld [vmem:[#allocation13 + $0x474] ss:$8 sps:$4 sm:$0xff]   ;;  %v16584_v49 = vld [vmem:[#allocation13 + $0x3a0] ss:$8 sps:$4 sm:$0xff]   ;;  %v16593_v31 = vld [vmem:[#allocation13 + $0x470] ss:$8 sps:$4 sm:$0xff]  }
 0x59e   : > { %5887 = vmatpush2.bf16.msra.mxu1 %v16545_v3  ;;  %v16592_v20 = vld [vmem:[#allocation13 + $0x394] ss:$8 sps:$4 sm:$0xff]   ;;  %v16601_v45 = vld [vmem:[#allocation13 + $0x464] ss:$8 sps:$4 sm:$0xff]   ;;  %v16590_v26 = vld [vmem:[#allocation13 + $0x390] ss:$8 sps:$4 sm:$0xff]  }
 0x59f   : > { %5888 = vmatprep.subr.bf16.mxu1 %v16553_v35  ;;  %v20378_v5 = vld [vmem:[#allocation5 + $0x60] sm:$0xff]  ;;  %v16605_v51 = vld [vmem:[#allocation13 + $0x450] ss:$8 sps:$4 sm:$0xff]   ;;  %v20386_v0 = vld [vmem:[#allocation5 + $0x28] sm:$0xff]  ;;  %vm6163_vm15 = vcmask 1046528  }
 0x5a0   : > { %5924 = vmatpush1.bf16.msra.mxu0 %v16536_v1  ;;  %v20382_v17 = vld [vmem:[#allocation5 + $0x20] sm:$0xff]  ;;  %v20388_v44 = vld [vmem:[#allocation5 + $0x68] sm:$0xff]  ;;  %v16602_v8 = vld [vmem:[#allocation13 + $0x570] ss:$8 sps:$4 sm:$0xff]  }
 0x5a1   : > { %5925 = vmatprep.subr.bf16.mxu0 %v16544_v13  ;;  %v14520_v39 = vcombine.high %v20382_v17, %v20378_v5  ;;  %v16598_v32 = vld [vmem:[#allocation13 + $0x384] ss:$8 sps:$4 sm:$0xff]   ;;  %v16599_v43 = vld [vmem:[#allocation13 + $0x460] ss:$8 sps:$4 sm:$0xff]   ;;  %v16607_v2 = vld [vmem:[#allocation13 + $0x454] ss:$8 sps:$4 sm:$0xff]   ;;  %v14522_v25 = vcombine.high %v20386_v0, %v20388_v44 }
 0x5a2   : > { %5889 = vmatpush2.bf16.msra.mxu1 %v16551_v12  ;;  %v16596_v50 = vld [vmem:[#allocation13 + $0x380] ss:$8 sps:$4 sm:$0xff]   ;;  %v16604_v40 = vld [vmem:[#allocation13 + $0x574] ss:$8 sps:$4 sm:$0xff]   ;;  %v16613_v60 = vld [vmem:[#allocation13 + $0x444] ss:$8 sps:$4 sm:$0xff]  }
 0x5a3   : > { %5890 = vmatprep.subr.bf16.mxu1 %v16559_v57  ;;  %v16610_v19 = vld [vmem:[#allocation13 + $0x564] ss:$8 sps:$4 sm:$0xff]   ;;  %v16611_v33 = vld [vmem:[#allocation13 + $0x440] ss:$8 sps:$4 sm:$0xff]   ;;  %v16619_v1 = vld [vmem:[#allocation13 + $0x434] ss:$8 sps:$4 sm:$0xff]  }
 0x5a4   : > { %5926 = vmatpush1.bf16.msra.mxu0 %v16542_v29  ;;  %v16608_v13 = vld [vmem:[#allocation13 + $0x560] ss:$8 sps:$4 sm:$0xff]   ;;  %v16616_v3 = vld [vmem:[#allocation13 + $0x554] ss:$8 sps:$4 sm:$0xff]   ;;  %v16617_v35 = vld [vmem:[#allocation13 + $0x430] ss:$8 sps:$4 sm:$0xff]  }
 0x5a5   : > { %5927 = vmatprep.subr.bf16.mxu0 %v16550_v42  ;;  %v16625_v29 = vld [vmem:[#allocation13 + $0x424] ss:$8 sps:$4 sm:$0xff]   ;;  %v16614_v6 = vld [vmem:[#allocation13 + $0x550] ss:$8 sps:$4 sm:$0xff]   ;;  %v16623_v42 = vld [vmem:[#allocation13 + $0x420] ss:$8 sps:$4 sm:$0xff]  }
 0x5a6   : > { %5891 = vmatpush2.bf16.msra.mxu1 %v16557_v47  ;;  %v16622_v38 = vld [vmem:[#allocation13 + $0x544] ss:$8 sps:$4 sm:$0xff]   ;;  %v16631_v12 = vld [vmem:[#allocation13 + $0x414] ss:$8 sps:$4 sm:$0xff]   ;;  %v16620_v57 = vld [vmem:[#allocation13 + $0x540] ss:$8 sps:$4 sm:$0xff]  }
 0x5a7   : > { %5892 = vmatprep.subr.bf16.mxu1 %v16565_v34  ;;  %v16637_v47 = vld [vmem:[#allocation13 + $0x404] ss:$8 sps:$4 sm:$0xff]   ;;  %v16626_v34 = vld [vmem:[#allocation13 + $0x530] ss:$8 sps:$4 sm:$0xff]  }
 0x5a8   : > { %5928 = vmatpush1.bf16.msra.mxu0 %v16548_v11  ;;  %v16628_v11 = vld [vmem:[#allocation13 + $0x534] ss:$8 sps:$4 sm:$0xff]  }
 0x5a9   : > { %5929 = vmatprep.subr.bf16.mxu0 %v16556_v30  ;;  %v16629_v30 = vld [vmem:[#allocation13 + $0x410] ss:$8 sps:$4 sm:$0xff]  }
 0x5aa   : > { %5893 = vmatpush2.bf16.msra.mxu1 %v16563_v4  ;;  %v16643_v4 = vld [vmem:[#allocation13 + $0x4f4] ss:$8 sps:$4 sm:$0xff]  }
 0x5ab   : > { %5894 = vmatprep.subr.bf16.mxu1 %v16571_v16  ;;  %v16632_v16 = vld [vmem:[#allocation13 + $0x520] ss:$8 sps:$4 sm:$0xff]  }
 0x5ac   : > { %5930 = vmatpush2.bf16.msra.mxu0 %v16554_v58  ;;  %v16634_v58 = vld [vmem:[#allocation13 + $0x524] ss:$8 sps:$4 sm:$0xff]  }
 0x5ad   : > { %5931 = vmatprep.subr.bf16.mxu0 %v16562_v23  ;;  %v16635_v23 = vld [vmem:[#allocation13 + $0x400] ss:$8 sps:$4 sm:$0xff]  }
 0x5ae   : > { %5895 = vmatpush2.bf16.msra.mxu1 %v16569_v15  ;;  %v16649_v15 = vld [vmem:[#allocation13 + $0x4e4] ss:$8 sps:$4 sm:$0xff]  }
 0x5af   : > { %5896 = vmatprep.subr.bf16.mxu1 %v16577_v9  ;;  %v16638_v9 = vld [vmem:[#allocation13 + $0x510] ss:$8 sps:$4 sm:$0xff]  }
 0x5b0   : > { %5932 = vmatpush2.bf16.msra.mxu0 %v16560_v53  ;;  %v16640_v53 = vld [vmem:[#allocation13 + $0x514] ss:$8 sps:$4 sm:$0xff]  }
 0x5b1   : > { %5933 = vmatprep.subr.bf16.mxu0 %v16568_v55  ;;  %v16641_v55 = vld [vmem:[#allocation13 + $0x4f0] ss:$8 sps:$4 sm:$0xff]  }
 0x5b2   : > { %5897 = vmatpush2.bf16.msra.mxu1 %v16575_v41  ;;  %v16655_v41 = vld [vmem:[#allocation13 + $0x4d4] ss:$8 sps:$4 sm:$0xff]  }
 0x5b3   : > { %5898 = vmatprep.subr.bf16.mxu1 %v16583_v24  ;;  %v16644_v24 = vld [vmem:[#allocation13 + $0x500] ss:$8 sps:$4 sm:$0xff]  }
 0x5b4   : > { %5934 = vmatpush2.bf16.msra.mxu0 %v16566_v28  ;;  %v16646_v28 = vld [vmem:[#allocation13 + $0x504] ss:$8 sps:$4 sm:$0xff]  }
 0x5b5   : > { %5935 = vmatprep.subr.bf16.mxu0 %v16574_v21  ;;  %v16647_v21 = vld [vmem:[#allocation13 + $0x4e0] ss:$8 sps:$4 sm:$0xff]  }
 0x5b6   : > { %5899 = vmatpush2.bf16.msra.mxu1 %v16581_v52  ;;  %v16661_v52 = vld [vmem:[#allocation13 + $0x4c4] ss:$8 sps:$4 sm:$0xff]  }
 0x5b7   : > { %5900 = vmatprep.subr.bf16.mxu1 %v16589_v54  ;;  %v16650_v54 = vld [vmem:[#allocation13 + $0x5f0] ss:$8 sps:$4 sm:$0xff]  }
 0x5b8   : > { %5936 = vmatpush2.bf16.msra.mxu0 %v16572_v18  ;;  %v16652_v18 = vld [vmem:[#allocation13 + $0x5f4] ss:$8 sps:$4 sm:$0xff]  }
 0x5b9   : > { %5937 = vmatprep.subr.bf16.mxu0 %v16580_v48  ;;  %v16653_v48 = vld [vmem:[#allocation13 + $0x4d0] ss:$8 sps:$4 sm:$0xff]  }
 0x5ba   : > { %5901 = vmatpush2.bf16.msra.mxu1 %v16587_v62  ;;  %v16667_v62 = vld [vmem:[#allocation13 + $0x4b4] ss:$8 sps:$4 sm:$0xff]  }
 0x5bb   : > { %5956 = vmatprep.subr.bf16.mxu1 %v16595_v63  ;;  %v16656_v63 = vld [vmem:[#allocation13 + $0x5e0] ss:$8 sps:$4 sm:$0xff]  }
 0x5bc   : > { %5938 = vmatpush2.bf16.msra.mxu0 %v16578_v22  ;;  %v16658_v22 = vld [vmem:[#allocation13 + $0x5e4] ss:$8 sps:$4 sm:$0xff]  }
 0x5bd   : > { %5939 = vmatprep.subr.bf16.mxu0 %v16586_v56  ;;  %5903 = vmatmul.mubr.bf16.vlgmr.msra.gmra.mxu1 %v14515_v36  ;;  %v16659_v56 = vld [vmem:[#allocation13 + $0x4c0] ss:$8 sps:$4 sm:$0xff]   ;;  %v16662_v36 = vld [vmem:[#allocation13 + $0x5d0] ss:$8 sps:$4 sm:$0xff]  }
 0x5be   : > { %5957 = vmatpush1.bf16.msra.mxu1 %v16593_v31  ;;  %5988 = vmatprep.mubr.bf16.mxu1 %v14520_v39  ;;  %v16673_v31 = vld [vmem:[#allocation13 + $0x4a4] ss:$8 sps:$4 sm:$0xff]   ;;  %v16679_v39 = vld [vmem:[#allocation13 + $0x494] ss:$8 sps:$4 sm:$0xff]  }
 0x5bf   : > { %5958 = vmatprep.subr.bf16.mxu1 %v16601_v45  ;;  %v16670_v45 = vld [vmem:[#allocation13 + $0x5c4] ss:$8 sps:$4 sm:$0xff]  }
 0x5c0   : > { %5940 = vmatpush2.bf16.msra.mxu0 %v16584_v49  ;;  %v16664_v49 = vld [vmem:[#allocation13 + $0x5d4] ss:$8 sps:$4 sm:$0xff]  }
 0x5c1   : > { %5941 = vmatprep.subr.bf16.mxu0 %v16592_v20  ;;  %v16665_v20 = vld [vmem:[#allocation13 + $0x4b0] ss:$8 sps:$4 sm:$0xff]  }
 0x5c2   : > { %5959 = vmatpush1.bf16.msra.mxu1 %v16599_v43  ;;  %v16676_v43 = vld [vmem:[#allocation13 + $0x5b4] ss:$8 sps:$4 sm:$0xff]  }
 0x5c3   : > { %5960 = vmatprep.subr.bf16.mxu1 %v16607_v2  ;;  %v16677_v2 = vld [vmem:[#allocation13 + $0x490] ss:$8 sps:$4 sm:$0xff]  }
 0x5c4   : > { %5942 = vmatpush2.bf16.msra.mxu0 %v16590_v26  ;;  %v16671_v26 = vld [vmem:[#allocation13 + $0x4a0] ss:$8 sps:$4 sm:$0xff]  }
 0x5c5   : > { %5943 = vmatprep.subr.bf16.mxu0 %v16598_v32  ;;  %v16668_v32 = vld [vmem:[#allocation13 + $0x5c0] ss:$8 sps:$4 sm:$0xff]  }
 0x5c6   : > { %5961 = vmatpush1.bf16.msra.mxu1 %v16605_v51  ;;  %v16682_v51 = vld [vmem:[#allocation13 + $0x5a4] ss:$8 sps:$4 sm:$0xff]  }
 0x5c7   : > { %5962 = vmatprep.subr.bf16.mxu1 %v16613_v60  ;;  %v16683_v60 = vld [vmem:[#allocation13 + $0x480] ss:$8 sps:$4 sm:$0xff]  }
 0x5c8   : > { %5944 = vmatpush2.bf16.msra.mxu0 %v16596_v50  ;;  %v16685_v50 = vld [vmem:[#allocation13 + $0x484] ss:$8 sps:$4 sm:$0xff]  }
 0x5c9   : > { %5999 = vmatprep.subr.bf16.mxu0 %v16604_v40  ;;  %v16674_v40 = vld [vmem:[#allocation13 + $0x5b0] ss:$8 sps:$4 sm:$0xff]  }
 0x5ca   : > { %5963 = vmatpush1.bf16.msra.mxu1 %v16611_v33  ;;  %v16689_v33 = vld [vmem:[#allocation13 + $0x670] ss:$8 sps:$4 sm:$0xff]  }
 0x5cb   : > { %5946 = vmatmul.mubr.bf16.vlgmr.msra.gmra.mxu0 %v14517_v10  ;;  %5964 = vmatprep.subr.bf16.mxu1 %v16619_v1  ;;  %v16680_v10 = vld [vmem:[#allocation13 + $0x5a0] ss:$8 sps:$4 sm:$0xff]   ;;  %v14519_v1 = vcombine.low %v20382_v17, %v20378_v5  ;;  %v16700_v5 = vld [vmem:[#allocation13 + $0x774] ss:$8 sps:$4 sm:$0xff]   ;;  %v16701_v17 = vld [vmem:[#allocation13 + $0x650] ss:$8 sps:$4 sm:$0xff]  }
 0x5cc   : > { %6000 = vmatpush1.bf16.msra.mxu0 %v16602_v8  ;;  %6031 = vmatprep.mubr.bf16.mxu0 %v14522_v25  ;;  %v16691_v8 = vld [vmem:[#allocation13 + $0x674] ss:$8 sps:$4 sm:$0xff]  }
 0x5cd   : > { %6001 = vmatprep.subr.bf16.mxu0 %v16610_v19  ;;  %v16688_v19 = vld [vmem:[#allocation13 + $0x594] ss:$8 sps:$4 sm:$0xff]  }
 0x5ce   : > { %5965 = vmatpush1.bf16.msra.mxu1 %v16617_v35  ;;  %v20394_v25 = vld [vmem:[#allocation5 + $0x70] sm:$0xff] }
 0x5cf   : > { %5966 = vmatprep.subr.bf16.mxu1 %v16625_v29  ;;  %v16686_v35 = vld [vmem:[#allocation13 + $0x590] ss:$8 sps:$4 sm:$0xff]  }
 0x5d0   : > { %6002 = vmatpush1.bf16.msra.mxu0 %v16608_v13  ;;  %v16697_v13 = vld [vmem:[#allocation13 + $0x664] ss:$8 sps:$4 sm:$0xff]  }
 0x5d1   : > { %6003 = vmatprep.subr.bf16.mxu0 %v16616_v3  ;;  %v20398_v3 = vld [vmem:[#allocation5 + $0x30] sm:$0xff] }
 0x5d2   : > { %5967 = vmatpush1.bf16.msra.mxu1 %v16623_v42  ;;  %v14524_v29 = vcombine.high %v20398_v3, %v20394_v25  ;;  %v16703_v42 = vld [vmem:[#allocation13 + $0x654] ss:$8 sps:$4 sm:$0xff]  }
 0x5d3   : > { %5968 = vmatprep.subr.bf16.mxu1 %v16631_v12  ;;  %v16692_v12 = vld [vmem:[#allocation13 + $0x580] ss:$8 sps:$4 sm:$0xff]  }
 0x5d4   : > { %6004 = vmatpush1.bf16.msra.mxu0 %v16614_v6  ;;  %v16694_v6 = vld [vmem:[#allocation13 + $0x584] ss:$8 sps:$4 sm:$0xff]  }
 0x5d5   : > { %6005 = vmatprep.subr.bf16.mxu0 %v16622_v38  ;;  %v16695_v38 = vld [vmem:[#allocation13 + $0x660] ss:$8 sps:$4 sm:$0xff]  }
 0x5d6   : > { %5969 = vmatpush1.bf16.msra.mxu1 %v16629_v30  ;;  %v16698_v30 = vld [vmem:[#allocation13 + $0x770] ss:$8 sps:$4 sm:$0xff]  }
 0x5d7   : > { %5970 = vmatprep.subr.bf16.mxu1 %v16637_v47  ;;  %v14521_v47 = vcombine.low %v20386_v0, %v20388_v44  ;;  %v16721_v0 = vld [vmem:[#allocation13 + $0x624] ss:$8 sps:$4 sm:$0xff]   ;;  %v16710_v44 = vld [vmem:[#allocation13 + $0x750] ss:$8 sps:$4 sm:$0xff]  }
 0x5d8   : > { %6006 = vmatpush1.bf16.msra.mxu0 %v16620_v57  ;;  %v16709_v57 = vld [vmem:[#allocation13 + $0x644] ss:$8 sps:$4 sm:$0xff]  }
 0x5d9   : > { %6007 = vmatprep.subr.bf16.mxu0 %v16628_v11  ;;  %v20402_v11 = vld [vmem:[#allocation5 + $0x78] sm:$0xff] }
 0x5da   : > { %5971 = vmatpush1.bf16.msra.mxu1 %v16635_v23  ;;  %v16707_v23 = vld [vmem:[#allocation13 + $0x640] ss:$8 sps:$4 sm:$0xff]  }
 0x5db   : > { %5972 = vmatprep.subr.bf16.mxu1 %v16643_v4 }
 0x5dc   : > { %6008 = vmatpush1.bf16.msra.mxu0 %v16626_v34  ;;  %v20406_v34 = vld [vmem:[#allocation5 + $0x38] sm:$0xff] }
 0x5dd   : > { %6009 = vmatprep.subr.bf16.mxu0 %v16634_v58  ;;  %v16706_v58 = vld [vmem:[#allocation13 + $0x764] ss:$8 sps:$4 sm:$0xff]   ;;  %v14526_v4 = vcombine.high %v20406_v34, %v20402_v11 }
 0x5de   : > { %5973 = vmatpush2.bf16.msra.mxu1 %v16641_v55  ;;  %v16712_v55 = vld [vmem:[#allocation13 + $0x754] ss:$8 sps:$4 sm:$0xff]  }
 0x5df   : > { %5974 = vmatprep.subr.bf16.mxu1 %v16649_v15  ;;  %v16713_v15 = vld [vmem:[#allocation13 + $0x630] ss:$8 sps:$4 sm:$0xff]  }
 0x5e0   : > { %6010 = vmatpush1.bf16.msra.mxu0 %v16632_v16  ;;  %v16715_v16 = vld [vmem:[#allocation13 + $0x634] ss:$8 sps:$4 sm:$0xff]  }
 0x5e1   : > { %6011 = vmatprep.subr.bf16.mxu0 %v16640_v53  ;;  %v16704_v53 = vld [vmem:[#allocation13 + $0x760] ss:$8 sps:$4 sm:$0xff]  }
 0x5e2   : > { %5975 = vmatpush2.bf16.msra.mxu1 %v16647_v21  ;;  %v16727_v21 = vld [vmem:[#allocation13 + $0x614] ss:$8 sps:$4 sm:$0xff]  }
 0x5e3   : > { %5976 = vmatprep.subr.bf16.mxu1 %v16655_v41  ;;  %v16716_v41 = vld [vmem:[#allocation13 + $0x740] ss:$8 sps:$4 sm:$0xff]  }
 0x5e4   : > { %6012 = vmatpush1.bf16.msra.mxu0 %v16638_v9  ;;  %v16718_v9 = vld [vmem:[#allocation13 + $0x744] ss:$8 sps:$4 sm:$0xff]  }
 0x5e5   : > { %6013 = vmatprep.subr.bf16.mxu0 %v16646_v28  ;;  %v16719_v28 = vld [vmem:[#allocation13 + $0x620] ss:$8 sps:$4 sm:$0xff]  }
 0x5e6   : > { %5977 = vmatpush2.bf16.msra.mxu1 %v16653_v48  ;;  %v16733_v48 = vld [vmem:[#allocation13 + $0x604] ss:$8 sps:$4 sm:$0xff]  }
 0x5e7   : > { %5978 = vmatprep.subr.bf16.mxu1 %v16661_v52  ;;  %v16722_v52 = vld [vmem:[#allocation13 + $0x730] ss:$8 sps:$4 sm:$0xff]  }
 0x5e8   : > { %6014 = vmatpush1.bf16.msra.mxu0 %v16644_v24  ;;  %v16724_v24 = vld [vmem:[#allocation13 + $0x734] ss:$8 sps:$4 sm:$0xff]  }
 0x5e9   : > { %6015 = vmatprep.subr.bf16.mxu0 %v16652_v18  ;;  %v16725_v18 = vld [vmem:[#allocation13 + $0x610] ss:$8 sps:$4 sm:$0xff]  }
 0x5ea   : > { %5979 = vmatpush2.bf16.msra.mxu1 %v16659_v56  ;;  %v16739_v56 = vld [vmem:[#allocation13 + $0x6f4] ss:$8 sps:$4 sm:$0xff]  }
 0x5eb   : > { %5980 = vmatprep.subr.bf16.mxu1 %v16667_v62  ;;  %v16728_v62 = vld [vmem:[#allocation13 + $0x720] ss:$8 sps:$4 sm:$0xff]  }
 0x5ec   : > { %6016 = vmatpush2.bf16.msra.mxu0 %v16650_v54  ;;  %v16730_v54 = vld [vmem:[#allocation13 + $0x724] ss:$8 sps:$4 sm:$0xff]  }
 0x5ed   : > { %6017 = vmatprep.subr.bf16.mxu0 %v16658_v22  ;;  %v16731_v22 = vld [vmem:[#allocation13 + $0x600] ss:$8 sps:$4 sm:$0xff]  }
 0x5ee   : > { %5981 = vmatpush2.bf16.msra.mxu1 %v16665_v20  ;;  %v16745_v20 = vld [vmem:[#allocation13 + $0x6e4] ss:$8 sps:$4 sm:$0xff]  }
 0x5ef   : > { %5982 = vmatprep.subr.bf16.mxu1 %v16673_v31  ;;  %v16734_v31 = vld [vmem:[#allocation13 + $0x710] ss:$8 sps:$4 sm:$0xff]  }
 0x5f0   : > { %6018 = vmatpush2.bf16.msra.mxu0 %v16656_v63  ;;  %v16736_v63 = vld [vmem:[#allocation13 + $0x714] ss:$8 sps:$4 sm:$0xff]  }
 0x5f1   : > { %6019 = vmatprep.subr.bf16.mxu0 %v16664_v49  ;;  %v16737_v49 = vld [vmem:[#allocation13 + $0x6f0] ss:$8 sps:$4 sm:$0xff]  }
 0x5f2   : > { %5983 = vmatpush2.bf16.msra.mxu1 %v16671_v26  ;;  %v16751_v26 = vld [vmem:[#allocation13 + $0x6d4] ss:$8 sps:$4 sm:$0xff]  }
 0x5f3   : > { %5984 = vmatprep.subr.bf16.mxu1 %v16679_v39  ;;  %v16740_v39 = vld [vmem:[#allocation13 + $0x700] ss:$8 sps:$4 sm:$0xff]  }
 0x5f4   : > { %6020 = vmatpush2.bf16.msra.mxu0 %v16662_v36  ;;  %v16742_v36 = vld [vmem:[#allocation13 + $0x704] ss:$8 sps:$4 sm:$0xff]  }
 0x5f5   : > { %6021 = vmatprep.subr.bf16.mxu0 %v16670_v45  ;;  %v16743_v45 = vld [vmem:[#allocation13 + $0x6e0] ss:$8 sps:$4 sm:$0xff]  }
 0x5f6   : > { %5985 = vmatpush2.bf16.msra.mxu1 %v16677_v2  ;;  %v16757_v2 = vld [vmem:[#allocation13 + $0x6c4] ss:$8 sps:$4 sm:$0xff]  }
 0x5f7   : > { %5986 = vmatprep.subr.bf16.mxu1 %v16685_v50  ;;  %v16746_v50 = vld [vmem:[#allocation13 + $0x7f0] ss:$8 sps:$4 sm:$0xff]  }
 0x5f8   : > { %6022 = vmatpush2.bf16.msra.mxu0 %v16668_v32  ;;  %v16748_v32 = vld [vmem:[#allocation13 + $0x7f4] ss:$8 sps:$4 sm:$0xff]  }
 0x5f9   : > { %6023 = vmatprep.subr.bf16.mxu0 %v16676_v43  ;;  %v16749_v43 = vld [vmem:[#allocation13 + $0x6d0] ss:$8 sps:$4 sm:$0xff]  }
 0x5fa   : > { %5987 = vmatpush2.bf16.msra.mxu1 %v16683_v60  ;;  %v16763_v60 = vld [vmem:[#allocation13 + $0x6b4] ss:$8 sps:$4 sm:$0xff]  }
 0x5fb   : > { %6042 = vmatprep.subr.bf16.mxu1 %v16691_v8  ;;  %v16752_v8 = vld [vmem:[#allocation13 + $0x7e0] ss:$8 sps:$4 sm:$0xff]  }
 0x5fc   : > { %6024 = vmatpush2.bf16.msra.mxu0 %v16674_v40  ;;  %v16754_v40 = vld [vmem:[#allocation13 + $0x7e4] ss:$8 sps:$4 sm:$0xff]  }
 0x5fd   : > { %6025 = vmatprep.subr.bf16.mxu0 %v16682_v51  ;;  %5989 = vmatmul.mubr.bf16.vlgmr.msra.gmra.mxu1 %v14519_v1  ;;  %v16755_v51 = vld [vmem:[#allocation13 + $0x6c0] ss:$8 sps:$4 sm:$0xff]   ;;  %v16758_v1 = vld [vmem:[#allocation13 + $0x7d0] ss:$8 sps:$4 sm:$0xff]  }
 0x5fe   : > { %6043 = vmatpush1.bf16.msra.mxu1 %v16689_v33  ;;  %6074 = vmatprep.mubr.bf16.mxu1 %v14524_v29  ;;  %v16769_v33 = vld [vmem:[#allocation13 + $0x6a4] ss:$8 sps:$4 sm:$0xff]   ;;  %v16775_v29 = vld [vmem:[#allocation13 + $0x694] ss:$8 sps:$4 sm:$0xff]  }
 0x5ff   : > { %6044 = vmatprep.subr.bf16.mxu1 %v16697_v13  ;;  %v16766_v13 = vld [vmem:[#allocation13 + $0x7c4] ss:$8 sps:$4 sm:$0xff]  }
 0x600   : > { %6026 = vmatpush2.bf16.msra.mxu0 %v16680_v10  ;;  %v16760_v10 = vld [vmem:[#allocation13 + $0x7d4] ss:$8 sps:$4 sm:$0xff]  }
 0x601   : > { %6027 = vmatprep.subr.bf16.mxu0 %v16688_v19  ;;  %v16761_v19 = vld [vmem:[#allocation13 + $0x6b0] ss:$8 sps:$4 sm:$0xff]  }
 0x602   : > { %6045 = vmatpush1.bf16.msra.mxu1 %v16695_v38  ;;  %v16772_v38 = vld [vmem:[#allocation13 + $0x7b4] ss:$8 sps:$4 sm:$0xff]  }
 0x603   : > { %6046 = vmatprep.subr.bf16.mxu1 %v16703_v42  ;;  %v16773_v42 = vld [vmem:[#allocation13 + $0x690] ss:$8 sps:$4 sm:$0xff]  }
 0x604   : > { %6028 = vmatpush2.bf16.msra.mxu0 %v16686_v35  ;;  %v16767_v35 = vld [vmem:[#allocation13 + $0x6a0] ss:$8 sps:$4 sm:$0xff]  }
 0x605   : > { %6029 = vmatprep.subr.bf16.mxu0 %v16694_v6  ;;  %v16764_v6 = vld [vmem:[#allocation13 + $0x7c0] ss:$8 sps:$4 sm:$0xff]  }
 0x606   : > { %6047 = vmatpush1.bf16.msra.mxu1 %v16701_v17  ;;  %v16778_v17 = vld [vmem:[#allocation13 + $0x7a4] ss:$8 sps:$4 sm:$0xff]  }
 0x607   : > { %6048 = vmatprep.subr.bf16.mxu1 %v16709_v57  ;;  %v16779_v57 = vld [vmem:[#allocation13 + $0x680] ss:$8 sps:$4 sm:$0xff]  }
 0x608   : > { %6030 = vmatpush2.bf16.msra.mxu0 %v16692_v12  ;;  %v16781_v12 = vld [vmem:[#allocation13 + $0x684] ss:$8 sps:$4 sm:$0xff]  }
 0x609   : > { %6085 = vmatprep.subr.bf16.mxu0 %v16700_v5  ;;  %v16770_v5 = vld [vmem:[#allocation13 + $0x7b0] ss:$8 sps:$4 sm:$0xff]  }
 0x60a   : > { %6049 = vmatpush1.bf16.msra.mxu1 %v16707_v23  ;;  %v16782_v23 = vld [vmem:[#allocation13 + $0x790] ss:$8 sps:$4 sm:$0xff]  }
 0x60b   : > { %6032 = vmatmul.mubr.bf16.vlgmr.msra.gmra.mxu0 %v14521_v47  ;;  %6050 = vmatprep.subr.bf16.mxu1 %v16715_v16  ;;  %v16784_v47 = vld [vmem:[#allocation13 + $0x794] ss:$8 sps:$4 sm:$0xff]   ;;  %v16785_v16 = vld [vmem:[#allocation13 + $0x780] ss:$8 sps:$4 sm:$0xff]  }
 0x60c   : > { %6086 = vmatpush1.bf16.msra.mxu0 %v16698_v30  ;;  %6117 = vmatprep.mubr.bf16.mxu0 %v14526_v4  ;;  %v16776_v30 = vld [vmem:[#allocation13 + $0x7a0] ss:$8 sps:$4 sm:$0xff]   ;;  %v16787_v4 = vld [vmem:[#allocation13 + $0x784] ss:$8 sps:$4 sm:$0xff]  }
 0x60d   : > { %6087 = vmatprep.subr.bf16.mxu0 %v16706_v58  ;;  %v14523_v58 = vcombine.low %v20398_v3, %v20394_v25  ;;  %v16805_v25 = vld [vmem:[#allocation14 + $0x2c0] ss:$16 sps:$4 sm:$0xff]   ;;  %v16813_v3 = vld [vmem:[#allocation14 + $0x2a4] ss:$16 sps:$4 sm:$0xff]  }
 0x60e   : > { %6051 = vmatpush1.bf16.msra.mxu1 %v16713_v15  ;;  %v16799_v15 = vld [vmem:[#allocation14 + $0x2e0] ss:$16 sps:$4 sm:$0xff]  }
 0x60f   : > { %6052 = vmatprep.subr.bf16.mxu1 %v16721_v0  ;;  %v16801_v0 = vld [vmem:[#allocation14 + $0x2e4] ss:$16 sps:$4 sm:$0xff]  }
 0x610   : > { %6088 = vmatpush1.bf16.msra.mxu0 %v16704_v53  ;;  %v14525_v53 = vcombine.low %v20406_v34, %v20402_v11  ;;  %v16825_v11 = vld [vmem:[#allocation14 + $0x264] ss:$16 sps:$4 sm:$0xff]   ;;  %v16823_v34 = vld [vmem:[#allocation14 + $0x260] ss:$16 sps:$4 sm:$0xff]  }
 0x611   : > { %6089 = vmatprep.subr.bf16.mxu0 %v16712_v55  ;;  %v18708_v55 = vmov 0  }
 0x612   : > { %6053 = vmatpush1.bf16.msra.mxu1 %v16719_v28  ;;  %v16819_v28 = vld [vmem:[#allocation14 + $0x284] ss:$16 sps:$4 sm:$0xff]  }
 0x613   : > { %6054 = vmatprep.subr.bf16.mxu1 %v16727_v21  ;;  %v16817_v21 = vld [vmem:[#allocation14 + $0x280] ss:$16 sps:$4 sm:$0xff]  }
 0x614   : > { %6090 = vmatpush1.bf16.msra.mxu0 %v16710_v44  ;;  %v16807_v44 = vld [vmem:[#allocation14 + $0x2c4] ss:$16 sps:$4 sm:$0xff]  }
 0x615   : > { %6091 = vmatprep.subr.bf16.mxu0 %v16718_v9  ;;  %v16811_v9 = vld [vmem:[#allocation14 + $0x2a0] ss:$16 sps:$4 sm:$0xff]  }
 0x616   : > { %6055 = vmatpush1.bf16.msra.mxu1 %v16725_v18  ;;  %v16837_v18 = vld [vmem:[#allocation14 + $0x224] ss:$16 sps:$4 sm:$0xff]  }
 0x617   : > { %6056 = vmatprep.subr.bf16.mxu1 %v16733_v48  ;;  %v16835_v48 = vld [vmem:[#allocation14 + $0x220] ss:$16 sps:$4 sm:$0xff]  }
 0x618   : > { %6092 = vmatpush1.bf16.msra.mxu0 %v16716_v41  ;;  %v16831_v41 = vld [vmem:[#allocation14 + $0x244] ss:$16 sps:$4 sm:$0xff]  }
 0x619   : > { %6093 = vmatprep.subr.bf16.mxu0 %v16724_v24  ;;  %v16829_v24 = vld [vmem:[#allocation14 + $0x240] ss:$16 sps:$4 sm:$0xff]  }
 0x61a   : > { %6057 = vmatpush1.bf16.msra.mxu1 %v16731_v22 }
 0x61b   : > { %6058 = vmatprep.subr.bf16.mxu1 %v16739_v56 }
 0x61c   : > { %6094 = vmatpush1.bf16.msra.mxu0 %v16722_v52  ;;  %v16843_v52 = vld [vmem:[#allocation14 + $0x204] ss:$16 sps:$4 sm:$0xff]  }
 0x61d   : > { %6095 = vmatprep.subr.bf16.mxu0 %v16730_v54  ;;  %v16841_v54 = vld [vmem:[#allocation14 + $0x200] ss:$16 sps:$4 sm:$0xff]  }
 0x61e   : > { %6059 = vmatpush2.bf16.msra.mxu1 %v16737_v49 }
 0x61f   : > { %6060 = vmatprep.subr.bf16.mxu1 %v16745_v20 }
 0x620   : > { %6096 = vmatpush1.bf16.msra.mxu0 %v16728_v62 }
 0x621   : > { %6097 = vmatprep.subr.bf16.mxu0 %v16736_v63 }
 0x622   : > { %6061 = vmatpush2.bf16.msra.mxu1 %v16743_v45 }
 0x623   : > { %6062 = vmatprep.subr.bf16.mxu1 %v16751_v26 }
 0x624   : > { %6098 = vmatpush1.bf16.msra.mxu0 %v16734_v31 }
 0x625   : > { %6099 = vmatprep.subr.bf16.mxu0 %v16742_v36 }
 0x626   : > { %6063 = vmatpush2.bf16.msra.mxu1 %v16749_v43 }
 0x627   : > { %6064 = vmatprep.subr.bf16.mxu1 %v16757_v2 }
 0x628   : > { %6100 = vmatpush1.bf16.msra.mxu0 %v16740_v39 }
 0x629   : > { %6101 = vmatprep.subr.bf16.mxu0 %v16748_v32  ;;  %v4414_v32 = vlaneseq }
 0x62a   : > { %6065 = vmatpush2.bf16.msra.mxu1 %v16755_v51 }
 0x62b   : > { %6066 = vmatprep.subr.bf16.mxu1 %v16763_v60 }
 0x62c   : > { %6102 = vmatpush2.bf16.msra.mxu0 %v16746_v50  ;;  %v20415_v50 = vshrl.u32 %v4414_v32, 7 }
 0x62d   : > { %6103 = vmatprep.subr.bf16.mxu0 %v16754_v40 }
 0x62e   : > { %6067 = vmatpush2.bf16.msra.mxu1 %v16761_v19  ;;  %v4416_v60 = vsub.s32 0, %v20415_v50  ;;  %v4412_v19 = vld [vmem:[#allocation19] sm:$0x3] }
 0x62f   : > { %6068 = vmatprep.subr.bf16.mxu1 %v16769_v33  ;;  %v4420_v33 = vsub.s32 1, %v20415_v50 }
 0x630   : > { %6104 = vmatpush2.bf16.msra.mxu0 %v16752_v8 }
 0x631   : > { %6105 = vmatprep.subr.bf16.mxu0 %v16760_v10 }
 0x632   : > { %6069 = vmatpush2.bf16.msra.mxu1 %v16767_v35 }
 0x633   : > { %6070 = vmatprep.subr.bf16.mxu1 %v16775_v29  ;;  %v4421_v29 = vrot.slane %v4412_v19, %v4420_v33 }
 0x634   : > { %6106 = vmatpush2.bf16.msra.mxu0 %v16758_v1  ;;  %v4417_v1 = vrot.slane %v4412_v19, %v4416_v60 }
 0x635   : > { %6107 = vmatprep.subr.bf16.mxu0 %v16766_v13 }
 0x636   : > { %6071 = vmatpush2.bf16.msra.mxu1 %v16773_v42 }
 0x637   : > { %6072 = vmatprep.subr.bf16.mxu1 %v16781_v12 }
 0x638   : > { %6108 = vmatpush2.bf16.msra.mxu0 %v16764_v6 }
 0x639   : > { %6109 = vmatprep.subr.bf16.mxu0 %v16772_v38 }
 0x63a   : > { %6073 = vmatpush2.bf16.msra.mxu1 %v16779_v57 }
 0x63c   : > { %6110 = vmatpush2.bf16.msra.mxu0 %v16770_v5 }
 0x63d   : > { %6111 = vmatprep.subr.bf16.mxu0 %v16778_v17  ;;  %6075 = vmatmul.mubr.bf16.vlgmr.msra.gmra.mxu1 %v14523_v58  ;;  %v5818_v22 = vpop.f32.mrf.mxu1 }
 0x63e   : > { %6205 = vmatprep.mubr.bf16.mxu1 %v18708_v55  ;;  %v5819_v38 = vadd.f32 %v5818_v22, %v4417_v1 }
 0x63f   : > { %v5820_v56 = vpop.f32.mrf.mxu1 }
 0x640   : > { %6112 = vmatpush2.bf16.msra.mxu0 %v16776_v30  ;;  %v5821_v12 = vadd.f32 %v5820_v56, %v4421_v29 }
 0x641   : > { %6113 = vmatprep.subr.bf16.mxu0 %v16784_v47  ;;  %v5822_v62 = vpop.f32.mrf.mxu1 }
 0x642   : > { %v5823_v30 = vadd.f32 %v5822_v62, %v4417_v1 }
 0x643   : > { %v5824_v49 = vpop.f32.mrf.mxu1 }
 0x644   : > { %6114 = vmatpush2.bf16.msra.mxu0 %v16782_v23  ;;  %v5825_v23 = vadd.f32 %v5824_v49, %v4421_v29 }
 0x645   : > { %6115 = vmatprep.subr.bf16.mxu0 %v16787_v4 }
 0x648   : > { %6116 = vmatpush2.bf16.msra.mxu0 %v16785_v16 }
 0x649   : > { %12833 = vmatprep.subr.bf16.mxu0 %v16801_v0 }
 0x64b   : > { %6118 = vmatmul.mubr.bf16.vlgmr.msra.gmra.mxu0 %v14525_v53  ;;  %v5861_v63 = vpop.f32.mrf.mxu0 }
 0x64c   : > { %12834 = vmatpush1.bf16.msra.mxu0 %v16799_v15  ;;  %v5862_v5 = vadd.f32 %v5861_v63, %v5819_v38 }
 0x64d   : > { %12835 = vmatprep.subr.bf16.mxu0 %v16807_v44  ;;  %v5863_v20 = vpop.f32.mrf.mxu0 }
 0x64e   : > { %v5864_v47 = vadd.f32 %v5863_v20, %v5821_v12 }
 0x64f   : > { %v5865_v36 = vpop.f32.mrf.mxu0 }
 0x650   : > { %12836 = vmatpush1.bf16.msra.mxu0 %v16805_v25  ;;  %v5866_v4 = vadd.f32 %v5865_v36, %v5823_v30 }
 0x651   : > { %12837 = vmatprep.subr.bf16.mxu0 %v16813_v3  ;;  %v5867_v26 = vpop.f32.mrf.mxu0 }
 0x652   : > { %v5868_v44 = vadd.f32 %v5867_v26, %v5825_v23  ;;  %v16795_v23 = vld [vmem:[#allocation14 + $0xc4] ss:$16 sps:$4 sm:$0xff]  }
 0x654   : > { %12838 = vmatpush1.bf16.msra.mxu0 %v16811_v9 }
 0x655   : > { %12839 = vmatprep.subr.bf16.mxu0 %v16819_v28 }
 0x658   : > { %12840 = vmatpush1.bf16.msra.mxu0 %v16817_v21 }
 0x659   : > { %12841 = vmatprep.subr.bf16.mxu0 %v16825_v11 }
 0x65c   : > { %12842 = vmatpush1.bf16.msra.mxu0 %v16823_v34 }
 0x65d   : > { %12843 = vmatprep.subr.bf16.mxu0 %v16831_v41 }
 0x660   : > { %12844 = vmatpush1.bf16.msra.mxu0 %v16829_v24 }
 0x661   : > { %12845 = vmatprep.subr.bf16.mxu0 %v16837_v18 }
 0x664   : > { %12846 = vmatpush1.bf16.msra.mxu0 %v16835_v48 }
 0x665   : > { %12847 = vmatprep.subr.bf16.mxu0 %v16843_v52 }
 0x668   : > { %12848 = vmatpush1.bf16.msra.mxu0 %v16841_v54 }
 0x67d   : > { %v5904_v31 = vpop.f32.mrf.mxu1 }
 0x67e   : > { %v5905_v58 = vadd.f32 %v5904_v31, %v5862_v5 }
 0x67f   : > { %v5906_v45 = vpop.f32.mrf.mxu1 }
 0x680   : > { %v5907_v16 = vadd.f32 %v5906_v45, %v5864_v47  ;;  %v16788_v47 = vld [vmem:[#allocation25] sm:$0xff]  }
 0x681   : > { %v5908_v39 = vpop.f32.mrf.mxu1 }
 0x682   : > { %v5909_v25 = vadd.f32 %v5908_v39, %v5866_v4  ;;  %v16793_v4 = vld [vmem:[#allocation14 + $0xc0] ss:$16 sps:$4 sm:$0xff]  }
 0x683   : > { %v5910_v2 = vpop.f32.mrf.mxu1 }
 0x684   : > { %v5911_v28 = vadd.f32 %v5910_v2, %v5868_v44  ;;  %v16802_v44 = vld [vmem:[#allocation14 + $0x80] ss:$16 sps:$4 sm:$0xff]  }
 0x68b   : > { %v5947_v43 = vpop.f32.mrf.mxu0 }
 0x68c   : > { %v5948_v53 = vadd.f32 %v5947_v43, %v5905_v58  ;;  %v16790_v58 = vld [vmem:[#allocation14 + $0xe0] ss:$16 sps:$4 sm:$0xff]  }
 0x68d   : > { %v5949_v40 = vpop.f32.mrf.mxu0 }
 0x68e   : > { %v5950_v3 = vadd.f32 %v5949_v40, %v5907_v16  ;;  %v16798_v16 = vld [vmem:[#allocation14 + $0xa4] ss:$16 sps:$4 sm:$0xff]  }
 0x68f   : > { %v5951_v8 = vpop.f32.mrf.mxu0 }
 0x690   : > { %v5952_v21 = vadd.f32 %v5951_v8, %v5909_v25  ;;  %v16810_v25 = vld [vmem:[#allocation14 + $0x64] ss:$16 sps:$4 sm:$0xff]  }
 0x691   : > { %v5953_v13 = vpop.f32.mrf.mxu0 }
 0x692   : > { %v5954_v18 = vadd.f32 %v5953_v13, %v5911_v28  ;;  %v20944_v13 = vmov 65535   ;;  %v16822_v28 = vld [vmem:[#allocation14 + $0x24] ss:$16 sps:$4 sm:$0xff]  }
 0x6bd   : > { %v5990_v51 = vpop.f32.mrf.mxu1 }
 0x6be   : > { %v5991_v9 = vadd.f32 %v5990_v51, %v5948_v53  ;;  %v16789_v53 = vld [vmem:[#allocation25 + $0x8] sm:$0x1f]  }
 0x6bf   : > { %v5992_v10 = vpop.f32.mrf.mxu1 }
 0x6c0   : > { %v5993_v11 = vadd.f32 %v5992_v10, %v5950_v3  ;;  %v16808_v3 = vld [vmem:[#allocation14 + $0x60] ss:$16 sps:$4 sm:$0xff]  }
 0x6c1   : > { %v5994_v35 = vpop.f32.mrf.mxu1 }
 0x6c2   : > { %v5995_v48 = vadd.f32 %v5994_v35, %v5952_v21  ;;  %v6165_v35 = vsel %vm6163_vm15, 4294967295, %v20944_v13  ;;  %v16820_v21 = vld [vmem:[#allocation14 + $0x20] ss:$16 sps:$4 sm:$0xff]  }
 0x6c3   : > { %v5996_v42 = vpop.f32.mrf.mxu1  ;;  %v6166_v5 = vsel %vm6164_vm3, %v6165_v35, 0  ;;  %v16874_v13 = vld [vmem:[#allocation14 + $0x100] ss:$16 sps:$4 sm:$0xff]  }
 0x6c4   : > { %v5997_v56 = vadd.f32 %v5996_v42, %v5954_v18  ;;  %v16840_v18 = vld [vmem:[#allocation14 + $0x1c4] ss:$16 sps:$4 sm:$0xff]   ;;  %v16877_v35 = vld [vmem:[#allocation14 + $0x340] ss:$16 sps:$4 sm:$0xff]  }
 0x6cb   : > { %v6033_v6 = vpop.f32.mrf.mxu0 }
 0x6cc   : > { %v6034_v34 = vadd.f32 %v6033_v6, %v5991_v9  ;;  %v16816_v9 = vld [vmem:[#allocation14 + $0x44] ss:$16 sps:$4 sm:$0xff]  }
 0x6cd   : > { %v6035_v17 = vpop.f32.mrf.mxu0 }
 0x6ce   : > { %v6036_v52 = vadd.f32 %v6035_v17, %v5993_v11  ;;  %v16828_v11 = vld [vmem:[#allocation14 + $0x4] ss:$16 sps:$4 sm:$0xff]  }
 0x6cf   : > { %v6037_v15 = vpop.f32.mrf.mxu0 }
 0x6d0   : > { %v6038_v62 = vadd.f32 %v6037_v15, %v5995_v48  ;;  %v16796_v15 = vld [vmem:[#allocation14 + $0xa0] ss:$16 sps:$4 sm:$0xff]  }
 0x6d1   : > { %v6039_v41 = vpop.f32.mrf.mxu0  ;;  %v16838_v48 = vld [vmem:[#allocation14 + $0x1c0] ss:$16 sps:$4 sm:$0xff]  }
 0x6d2   : > { %v6040_v36 = vadd.f32 %v6039_v41, %v5997_v56  ;;  %v16834_v41 = vld [vmem:[#allocation14 + $0x1e4] ss:$16 sps:$4 sm:$0xff]  }
 0x6d3   : > { %v16849_v56 = vld [vmem:[#allocation14 + $0x3e4] ss:$16 sps:$4 sm:$0xff]  }
 0x6d4   : > { %12849 = vmatprep.subr.bf16.mxu0 %v16849_v56 }
 0x6fd   : > { %v6076_v57 = vpop.f32.mrf.mxu1 }
 0x6fe   : > { %v6077_v54 = vadd.f32 %v6076_v57, %v6034_v34  ;;  %v16792_v57 = vld [vmem:[#allocation14 + $0xe4] ss:$16 sps:$4 sm:$0xff]   ;;  %v16826_v34 = vld [vmem:[#allocation14] ss:$16 sps:$4 sm:$0xff]  }
 0x6ff   : > { %v6078_v0 = vpop.f32.mrf.mxu1 }
 0x700   : > { %v6079_v63 = vadd.f32 %v6078_v0, %v6036_v52  ;;  %v16804_v0 = vld [vmem:[#allocation14 + $0x84] ss:$16 sps:$4 sm:$0xff]   ;;  %v16844_v52 = vld [vmem:[#allocation14 + $0x1a0] ss:$16 sps:$4 sm:$0xff]  }
 0x701   : > { %v6080_v24 = vpop.f32.mrf.mxu1 }
 0x702   : > { %v6081_v45 = vadd.f32 %v6080_v24, %v6038_v62  ;;  %v16832_v24 = vld [vmem:[#allocation14 + $0x1e0] ss:$16 sps:$4 sm:$0xff]  }
 0x703   : > { %v6082_v49 = vpop.f32.mrf.mxu1  ;;  %v16850_v62 = vld [vmem:[#allocation14 + $0x180] ss:$16 sps:$4 sm:$0xff]  }
 0x704   : > { %v6083_v32 = vadd.f32 %v6082_v49, %v6040_v36  ;;  %v16853_v49 = vld [vmem:[#allocation14 + $0x3c0] ss:$16 sps:$4 sm:$0xff]   ;;  %v16861_v36 = vld [vmem:[#allocation14 + $0x3a4] ss:$16 sps:$4 sm:$0xff]  }
 0x70b   : > { %v6119_v22 = vpop.f32.mrf.mxu0 }
 0x70c   : > { %v6120_v20 = vadd.f32 %v6119_v22, %v6077_v54  ;;  %v16846_v54 = vld [vmem:[#allocation14 + $0x1a4] ss:$16 sps:$4 sm:$0xff]   ;;  %v16847_v22 = vld [vmem:[#allocation14 + $0x3e0] ss:$16 sps:$4 sm:$0xff]  }
 0x70d   : > { %v6121_v31 = vpop.f32.mrf.mxu0  ;;  %12850 = vmatpush2.bf16.msra.mxu0 %v16847_v22 }
 0x70e   : > { %v6122_v26 = vadd.f32 %v6121_v31, %v6079_v63  ;;  %vm6128_vm11 = vcmp.ge.f32.partialorder %v6120_v20, 0.0  ;;  %v6132_v2 = vmul.f32 0.2, %v6120_v20  ;;  %v16852_v63 = vld [vmem:[#allocation14 + $0x184] ss:$16 sps:$4 sm:$0xff]  }
 0x70f   : > { %v6123_v39 = vpop.f32.mrf.mxu0  ;;  %v16858_v31 = vld [vmem:[#allocation14 + $0x164] ss:$16 sps:$4 sm:$0xff]  }
 0x710   : > { %v6124_v43 = vadd.f32 %v6123_v39, %v6081_v45  ;;  %v6133_v51 = vmul.f32 0.2, %v6122_v26  ;;  %vm6129_vm6 = vcmp.ge.f32.partialorder %v6122_v26, 0.0  ;;  %v6136_v29 = vsel %vm6128_vm11, %v6120_v20, %v6132_v2  ;;  %v16855_v20 = vld [vmem:[#allocation14 + $0x3c4] ss:$16 sps:$4 sm:$0xff]  }
 0x711   : > { %v6125_v40 = vpop.f32.mrf.mxu0  ;;  %12851 = vmatprep.subr.bf16.mxu0 %v16855_v20  ;;  %v16856_v45 = vld [vmem:[#allocation14 + $0x160] ss:$16 sps:$4 sm:$0xff]   ;;  %v16864_v39 = vld [vmem:[#allocation14 + $0x144] ss:$16 sps:$4 sm:$0xff]   ;;  %vm6262_vm11 = vsmask.f32 7424 }
 0x712   : > { %vm6130_vm2 = vcmp.ge.f32.partialorder %v6124_v43, 0.0  ;;  %v6134_v8 = vmul.f32 0.2, %v6124_v43  ;;  %v6126_v10 = vadd.f32 %v6125_v40, %v6083_v32  ;;  %v6137_v6 = vsel %vm6129_vm6, %v6122_v26, %v6133_v51  ;;  %12852 = vmatpush2.bf16.msra.mxu0 %v16853_v49  ;;  %v16859_v26 = vld [vmem:[#allocation14 + $0x3a0] ss:$16 sps:$4 sm:$0xff]   ;;  %v6279_v20 = vld [vmem:[#allocation7 + $0x38] sm:$0xff] }
 0x713   : > { %12853 = vmatprep.subr.bf16.mxu0 %v16861_v36  ;;  %v16867_v32 = vld [vmem:[#allocation14 + $0x384] ss:$16 sps:$4 sm:$0xff]   ;;  %v16865_v2 = vld [vmem:[#allocation14 + $0x380] ss:$16 sps:$4 sm:$0xff]  }
 0x714   : > { %v6138_v19 = vsel %vm6130_vm2, %v6124_v43, %v6134_v8  ;;  %vm6131_vm10 = vcmp.ge.f32.partialorder %v6126_v10, 0.0  ;;  %v6135_v1 = vmul.f32 0.2, %v6126_v10  ;;  %v16862_v43 = vld [vmem:[#allocation14 + $0x140] ss:$16 sps:$4 sm:$0xff]   ;;  %vm6263_vm2 = vmand %vm6261_vm1, %vm6262_vm11 }
 0x715   : > { %v6144_v38 = vpack.c.bf16 %v6138_v19, %v6136_v29  ;;  %v16870_v40 = vld [vmem:[#allocation14 + $0x124] ss:$16 sps:$4 sm:$0xff]   ;;  %v16868_v8 = vld [vmem:[#allocation14 + $0x120] ss:$16 sps:$4 sm:$0xff]   ;;  %vm20428_vm6 = vmor %vm6263_vm2, %vm20125_vm8 }
 0x716   : > { %v6139_v42 = vsel %vm6131_vm10, %v6126_v10, %v6135_v1  ;;  %12854 = vmatpush2.bf16.msra.mxu0 %v16859_v26  ;;  %v16873_v51 = vld [vmem:[#allocation14 + $0x364] ss:$16 sps:$4 sm:$0xff]   ;;  %v16871_v10 = vld [vmem:[#allocation14 + $0x360] ss:$16 sps:$4 sm:$0xff]  }
 0x717   : > { %v6145_v12 = vpack.c.bf16 %v6139_v42, %v6137_v6  ;;  %v6168_v30 = vand.u32 %v6166_v5, %v6144_v38  ;;  %12855 = vmatprep.subr.bf16.mxu0 %v16867_v32  ;;  %v16876_v19 = vld [vmem:[#allocation14 + $0x104] ss:$16 sps:$4 sm:$0xff]   ;;  %v16880_v38 = vld [vmem:[#allocation14 + $0x320] ss:$16 sps:$4 sm:$0xff]  }
 0x718   : > { %v16879_v1 = vld [vmem:[#allocation14 + $0x344] ss:$16 sps:$4 sm:$0xff]  }
 0x719   : > { %v6171_v17 = vand.u32 %v6166_v5, %v6145_v12  ;;  %v16885_v29 = vld [vmem:[#allocation14 + $0x4e4] ss:$16 sps:$4 sm:$0xff]   ;;  %v16886_v12 = vld [vmem:[#allocation14 + $0x300] ss:$16 sps:$4 sm:$0xff]  }
 0x71a   : > { %12856 = vmatpush2.bf16.msra.mxu0 %v16865_v2  ;;  %v16882_v6 = vld [vmem:[#allocation14 + $0x324] ss:$16 sps:$4 sm:$0xff]  }
 0x71b   : > { %6187 = vmatprep.subr.bf16.mxu1 %v6171_v17  ;;  %12857 = vmatprep.subr.bf16.mxu0 %v16873_v51  ;;  %v16888_v42 = vld [vmem:[#allocation14 + $0x304] ss:$16 sps:$4 sm:$0xff]  }
 0x71c   : > { %6188 = vmatpush1.bf16.msra.mxu1 %v6168_v30  ;;  %v16897_v5 = vld [vmem:[#allocation14 + $0x6e4] ss:$16 sps:$4 sm:$0xff]   ;;  %v17131_v30 = vld [vmem:[#allocation14 + $0xe00] ss:$16 sps:$4 sm:$0xff]  }
 0x71d   : > { %12792 = vmatprep.subr.bf16.mxu1 %v16792_v57  ;;  %v16900_v32 = vld [vmem:[#allocation14 + $0x484] ss:$16 sps:$4 sm:$0xff]  }
 0x71e   : > { %12858 = vmatpush2.bf16.msra.mxu0 %v16871_v10 }
 0x71f   : > { %14785 = vmatmul.mubr.msk.bf16.vlgmr.msra.gmra.mxu1 %vm6156_vm14, %v16788_v47  ;;  %12859 = vmatprep.subr.bf16.mxu0 %v16879_v1  ;;  %v6265_v47 = vld [vmem:[#allocation7] sm:$0xff] }
 0x720   : > { %6215 = vmatprep.mubr.bf16.mxu1 %v18708_v55  ;;  %12793 = vmatpush1.bf16.msra.mxu1 %v16790_v58  ;;  %v16814_v55 = vld [vmem:[#allocation14 + $0x40] ss:$16 sps:$4 sm:$0xff]  }
 0x721   : > { %12794 = vmatprep.subr.bf16.mxu1 %v16795_v23 }
 0x722   : > { %12860 = vmatpush2.bf16.msra.mxu0 %v16877_v35  ;;  %v16898_v35 = vld [vmem:[#allocation14 + $0x480] ss:$16 sps:$4 sm:$0xff]  }
 0x723   : > { %12861 = vmatprep.subr.bf16.mxu0 %v16882_v6 }
 0x724   : > { %12795 = vmatpush1.bf16.msra.mxu1 %v16793_v4 }
 0x725   : > { %12796 = vmatprep.subr.bf16.mxu1 %v16798_v16 }
 0x726   : > { %12862 = vmatpush2.bf16.msra.mxu0 %v16880_v38 }
 0x727   : > { %14786 = vmatmul.mubr.msk.bf16.gmra.mxu1 %vm6156_vm14, %v16789_v53  ;;  %12863 = vmatprep.subr.bf16.mxu0 %v16888_v42  ;;  %vm14142_vm14 = vcmask 0  }
 0x728   : > { %12797 = vmatpush1.bf16.msra.mxu1 %v16796_v15 }
 0x729   : > { %12798 = vmatprep.subr.bf16.mxu1 %v16804_v0  ;;  %v6374_v0 = vld [vmem:[#allocation7 + $0x10] sm:$0xff] }
 0x72a   : > { %12864 = vmatpush2.bf16.msra.mxu0 %v16886_v12  ;;  %v16906_v12 = vld [vmem:[#allocation14 + $0x464] ss:$16 sps:$4 sm:$0xff]  }
 0x72b   : > { %12915 = vmatprep.subr.bf16.mxu0 %v16897_v5 }
 0x72c   : > { %12799 = vmatpush1.bf16.msra.mxu1 %v16802_v44 }
 0x72d   : > { %12800 = vmatprep.subr.bf16.mxu1 %v16810_v25 }
 0x730   : > { %12801 = vmatpush1.bf16.msra.mxu1 %v16808_v3 }
 0x731   : > { %12802 = vmatprep.subr.bf16.mxu1 %v16816_v9 }
 0x734   : > { %12803 = vmatpush1.bf16.msra.mxu1 %v16814_v55 }
 0x735   : > { %12804 = vmatprep.subr.bf16.mxu1 %v16822_v28  ;;  %v16891_v28 = vld [vmem:[#allocation14 + $0x4c4] ss:$16 sps:$4 sm:$0xff]  }
 0x738   : > { %12805 = vmatpush1.bf16.msra.mxu1 %v16820_v21 }
 0x739   : > { %12806 = vmatprep.subr.bf16.mxu1 %v16828_v11 }
 0x73c   : > { %12807 = vmatpush1.bf16.msra.mxu1 %v16826_v34 }
 0x73d   : > { %12808 = vmatprep.subr.bf16.mxu1 %v16834_v41 }
 0x740   : > { %12809 = vmatpush2.bf16.msra.mxu1 %v16832_v24  ;;  %v16889_v24 = vld [vmem:[#allocation14 + $0x4c0] ss:$16 sps:$4 sm:$0xff]  }
 0x741   : > { %12810 = vmatprep.subr.bf16.mxu1 %v16840_v18 }
 0x744   : > { %12811 = vmatpush2.bf16.msra.mxu1 %v16838_v48  ;;  %v6469_v48 = vld [vmem:[#allocation7 + $0x48] sm:$0xff] }
 0x745   : > { %12812 = vmatprep.subr.bf16.mxu1 %v16846_v54 }
 0x748   : > { %12813 = vmatpush2.bf16.msra.mxu1 %v16844_v52  ;;  %v16894_v52 = vld [vmem:[#allocation14 + $0x4a4] ss:$16 sps:$4 sm:$0xff]  }
 0x749   : > { %12814 = vmatprep.subr.bf16.mxu1 %v16852_v63 }
 0x74c   : > { %12815 = vmatpush2.bf16.msra.mxu1 %v16850_v62 }
 0x74d   : > { %12816 = vmatprep.subr.bf16.mxu1 %v16858_v31 }
 0x750   : > { %12817 = vmatpush2.bf16.msra.mxu1 %v16856_v45  ;;  %v16892_v45 = vld [vmem:[#allocation14 + $0x4a0] ss:$16 sps:$4 sm:$0xff]  }
 0x751   : > { %12818 = vmatprep.subr.bf16.mxu1 %v16864_v39 }
 0x754   : > { %12819 = vmatpush2.bf16.msra.mxu1 %v16862_v43 }
 0x755   : > { %12820 = vmatprep.subr.bf16.mxu1 %v16870_v40 }
 0x758   : > { %12821 = vmatpush2.bf16.msra.mxu1 %v16868_v8 }
 0x759   : > { %12822 = vmatprep.subr.bf16.mxu1 %v16876_v19 }
 0x75c   : > { %12823 = vmatpush2.bf16.msra.mxu1 %v16874_v13 }
 0x75d   : > { %12874 = vmatprep.subr.bf16.mxu1 %v16885_v29 }
 0x7df   : > { %v6207_v17 = vpop.f32.mrf.mxu1 }
 0x7e1   : > { %v6209_v57 = vpop.f32.mrf.mxu1 }
 0x7e2   : > { %v15875_v58 = vpack.c.bf16 %v6209_v57, %v6207_v17 }
 0x7e3   : > { %v6211_v23 = vpop.f32.mrf.mxu1 }
 0x7e4   : > { %6250 = vst [vmem:[#allocation6 + $0x10] sm:$0xff] %v15875_v58  ;;  %v6266_v4 = vsel %vm20428_vm6, %v15875_v58, %v6265_v47  ;;  %v6270_v16 = vshrl.u32 %v15875_v58, 16  ;;  %v6273_v53 = vshll.u32 %v15875_v58, 16 }
 0x7e5   : > { %6267 = vst [vmem:[#allocation7] sm:$0xff] %v6266_v4  ;;  %v6213_v15 = vpop.f32.mrf.mxu1  ;;  %v20434_v44 = vcombine.low %v6266_v4, %v6266_v4  ;;  %v20436_v25 = vcombine.high %v6266_v4, %v6266_v4 }
 0x7e6   : > { %v6272_v3 = vrot.slane %v6270_v16, 4  ;;  %v6275_v9 = vrot.slane %v6273_v53, 5  ;;  %v15876_v55 = vpack.c.bf16 %v6213_v15, %v6211_v23  ;;  %v16904_v23 = vld [vmem:[#allocation14 + $0x460] ss:$16 sps:$4 sm:$0xff]  }
 0x7e7   : > { %v6217_v21 = vpop.f32.mrf.mxu1  ;;  %12824 = vmatprep.mubr.bf16.mxu1 %v20436_v25 }
 0x7e8   : > { %v6276_v11 = vor.u32 %v6275_v9, %v6272_v3  ;;  %6251 = vst [vmem:[#allocation6] sm:$0xff] %v15876_v55  ;;  %v6375_v34 = vsel %vm20428_vm6, %v15876_v55, %v6374_v0  ;;  %12825 = vmatmul.mubr.bf16.vlgmr.msra.gmra.mxu1 %v20434_v44 }
 0x7e9   : > { %6376 = vst [vmem:[#allocation7 + $0x10] sm:$0xff] %v6375_v34  ;;  %v6219_v41 = vpop.f32.mrf.mxu1  ;;  %12875 = vmatpush1.bf16.msra.mxu1 %v16883_v61 }
 0x7ea   : > { %v20442_v18 = vpack.c.bf16 %v6219_v41, %v6217_v21  ;;  %12876 = vmatprep.subr.bf16.mxu1 %v16891_v28  ;;  %v6277_v54 = vrot.slane %v6276_v11, 4  ;;  %v16912_v41 = vld [vmem:[#allocation14 + $0x444] ss:$16 sps:$4 sm:$0xff]  }
 0x7eb   : > { %v6294_v22 = vld [vmem:[#allocation6 + $0x10] sm:$0xee] }
 0x7ec   : > { %v6318_v56 = vld [vmem:[#allocation6 + $0x10] sm:$0xcc]  ;;  %v6297_v62 = vshrl.u32 %v6294_v22, 16  ;;  %v6300_v63 = vshll.u32 %v6294_v22, 16  ;;  %6252 = vst [vmem:[#allocation6 + $0x18] sm:$0xff] %v20442_v18  ;;  %v6470_v36 = vsel %vm20428_vm6, %v20442_v18, %v6469_v48  ;;  %v20450_v40 = vsel %vm20428_vm6, %v6277_v54, %v6279_v20 }
 0x7ed   : > { %v6321_v49 = vshrl.u32 %v6318_v56, 16  ;;  %v6324_v31 = vshll.u32 %v6318_v56, 16  ;;  %12877 = vmatpush1.bf16.msra.mxu1 %v16889_v24  ;;  %6471 = vst [vmem:[#allocation7 + $0x48] sm:$0xff] %v6470_v36  ;;  %v6282_v43 = vld [vmem:[#allocation6 + $0x10] sm:$0xee]  ;;  %6281 = vst [vmem:[#allocation7 + $0x38] sm:$0xff] %v20450_v40 }
 0x7ee   : > { %v6299_v26 = vrot.slane %v6297_v62, 5  ;;  %v6302_v39 = vrot.slane %v6300_v63, 6  ;;  %12878 = vmatprep.subr.bf16.mxu1 %v16894_v52  ;;  %v6342_v10 = vld [vmem:[#allocation6 + $0x10] sm:$0x88]  ;;  %v14791_v5 = vrot.slane %v6282_v43, 9 }
 0x7ef   : > { %v6295_v2 = vld [vmem:[#allocation6] sm:$0x11]  ;;  %v6323_v51 = vrot.slane %v6321_v49, 6  ;;  %v6326_v8 = vrot.slane %v6324_v31, 7  ;;  %v20453_v1 = vld [vmem:[#allocation6 + $0x10] sm:$0x88] }
 0x7f0   : > { %v6319_v19 = vld [vmem:[#allocation6] sm:$0x33]  ;;  %v6303_v29 = vor.u32 %v6302_v39, %v6299_v26  ;;  %v6306_v6 = vshrl.u32 %v6295_v2, 16  ;;  %v6309_v38 = vshll.u32 %v6295_v2, 16  ;;  %v14792_v17 = vrot.slane %v6342_v10, 11 }
 0x7f1   : > { %v6283_v13 = vld [vmem:[#allocation6] sm:$0x11]  ;;  %12879 = vmatpush1.bf16.msra.mxu1 %v16892_v45  ;;  %v6330_v57 = vshrl.u32 %v6319_v19, 16  ;;  %v6333_v47 = vshll.u32 %v6319_v19, 16  ;;  %v6327_v4 = vor.u32 %v6326_v8, %v6323_v51  ;;  %v6357_v16 = vshrl.u32 %v20453_v1, 16 }
 0x7f2   : > { %v6355_v42 = vld [vmem:[#allocation6] sm:$0x77]  ;;  %12880 = vmatprep.subr.bf16.mxu1 %v16900_v32  ;;  %v6288_v53 = vrot.slane %v6283_v13, 5  ;;  %v6304_v28 = vrot.slane %v6303_v29, 4  ;;  %v6308_v21 = vrot.slane %v6306_v6, 5  ;;  %v6311_v11 = vrot.slane %v6309_v38, 6 }
 0x7f3   : > { %v6343_v58 = vld [vmem:[#allocation6] sm:$0x77]  ;;  %v6362_v15 = vshrl.u32 %v6355_v42, 16  ;;  %v20458_v24 = vrot.slane %v6330_v57, 6  ;;  %v20460_v48 = vrot.slane %v6333_v47, 7  ;;  %v6328_v56 = vrot.slane %v6327_v4, 4 }
 0x7f4   : > { %v6389_v0 = vld [vmem:[#allocation6] sm:$0xee]  ;;  %v6348_v34 = vrot.slane %v6343_v58, 7  ;;  %v6365_v63 = vshll.u32 %v6355_v42, 16  ;;  %v6390_v20 = vld [vmem:[#allocation6 + $0x18] sm:$0x11]  ;;  %v6289_v43 = vsel %vm19374_vm13, %v14791_v5, %v6288_v53  ;;  %v6312_v2 = vor.u32 %v6311_v11, %v6308_v21 }
 0x7f5   : > { %v20456_v61 = vld [vmem:[#allocation6] sm:$0xee]  ;;  %v6392_v3 = vshrl.u32 %v6389_v0, 16  ;;  %v6395_v9 = vshll.u32 %v6389_v0, 16  ;;  %12881 = vmatpush1.bf16.msra.mxu1 %v16898_v35  ;;  %v6364_v62 = vrot.slane %v6362_v15, 7  ;;  %v6401_v39 = vshrl.u32 %v6390_v20, 16 }
 0x7f6   : > { %v6425_v55 = vld [vmem:[#allocation6] sm:$0xcc]  ;;  %12882 = vmatprep.subr.bf16.mxu1 %v16906_v12  ;;  %v14794_v49 = vrot.slane %v20456_v61, 9  ;;  %v6404_v32 = vshll.u32 %v6390_v20, 16  ;;  %v6349_v51 = vsel %vm19584_vm5, %v14792_v17, %v6348_v34  ;;  %v6378_v8 = vld [vmem:[#allocation6 + $0x18] sm:$0x11]  ;;  %v6336_v13 = vor.u32 %v20460_v48, %v20458_v24 }
 0x7f7   : > { %v6428_v52 = vshrl.u32 %v6425_v55, 16  ;;  %v6431_v54 = vshll.u32 %v6425_v55, 16  ;;  %v16910_v22 = vld [vmem:[#allocation14 + $0x440] ss:$16 sps:$4 sm:$0xff]   ;;  %v16918_v31 = vld [vmem:[#allocation14 + $0x424] ss:$16 sps:$4 sm:$0xff]   ;;  %v20483_v17 = vor.u32 %v6365_v63, %v6364_v62  ;;  %v20498_v34 = vcombine.high %v20450_v40, %v20450_v40 }
 0x7f8   : > { %v20463_v36 = vrot.slane %v6392_v3, 5  ;;  %v20465_v45 = vrot.slane %v6395_v9, 6  ;;  %v20467_v26 = vld [vmem:[#allocation6] sm:$0x88]  ;;  %v6426_v10 = vld [vmem:[#allocation6 + $0x18] sm:$0x33]  ;;  %v20494_v3 = vcombine.low %v20450_v40, %v20450_v40  ;;  %v6313_v24 = vsel %vm19010_vm0, %v6304_v28, %v6312_v2 }
 0x7f9   : > { %12883 = vmatpush1.bf16.msra.mxu1 %v16904_v23  ;;  %v6450_v19 = vld [vmem:[#allocation6 + $0x18] sm:$0x77]  ;;  %v20475_v35 = vrot.slane %v6428_v52, 6  ;;  %v20477_v29 = vrot.slane %v6431_v54, 7  ;;  %v6437_v6 = vshrl.u32 %v6426_v10, 16  ;;  %v20479_v38 = vrot.slane %v6401_v39, 5  ;;  %12865 = vmatprep.mubr.bf16.mxu0 %v20498_v34 }
 0x7fa   : > { %12884 = vmatprep.subr.bf16.mxu1 %v16912_v41  ;;  %v20481_v42 = vrot.slane %v6404_v32, 6  ;;  %v6440_v12 = vshll.u32 %v6426_v10, 16  ;;  %v6457_v5 = vshrl.u32 %v6450_v19, 16  ;;  %v6398_v57 = vor.u32 %v20465_v45, %v20463_v36  ;;  %v6414_v23 = vld [vmem:[#allocation6 + $0x18] sm:$0x33]  ;;  %v6351_v55 = vld [vmem:[#allocation7 + $0x8] sm:$0xff]  ;;  %12866 = vmatmul.mubr.bf16.vlgmr.msra.gmra.mxu0 %v20494_v3 }
 0x7fb   : > { %v6452_v47 = vshrl.u32 %v20467_v26, 16  ;;  %v6383_v58 = vrot.slane %v6378_v8, 5  ;;  %v16895_v4 = vld [vmem:[#allocation14 + $0x6e0] ss:$16 sps:$4 sm:$0xff]   ;;  %v20488_v15 = vrot.slane %v6437_v6, 6  ;;  %v6460_v61 = vshll.u32 %v6450_v19, 16 }
 0x7fc   : > { %v16916_v53 = vld [vmem:[#allocation14 + $0x420] ss:$16 sps:$4 sm:$0xff]   ;;  %v20490_v0 = vrot.slane %v6440_v12, 7  ;;  %v6315_v9 = vld [vmem:[#allocation7 + $0x58] sm:$0xff]  ;;  %v6459_v11 = vrot.slane %v6457_v5, 7  ;;  %v20502_v41 = vsel %vm20428_vm6, %v6289_v43, %v6291_v27  ;;  %v6434_v54 = vor.u32 %v20477_v29, %v20475_v35  ;;  %12916 = vmatpush1.bf16.msra.mxu0 %v16895_v4  ;;  %v6422_v6 = vld [vmem:[#allocation7 + $0x68] sm:$0xff] }
 0x7fd   : > { %12885 = vmatpush1.bf16.msra.mxu1 %v16910_v22  ;;  %v6413_v21 = vld [vmem:[#allocation6] sm:$0xcc]  ;;  %v6407_v22 = vor.u32 %v20481_v42, %v20479_v38  ;;  %v6419_v62 = vrot.slane %v6414_v23, 6  ;;  %6293 = vst [vmem:[#allocation7 + $0x78] sm:$0xff] %v20502_v41  ;;  %v20513_v40 = vcombine.high %v20502_v41, %v20502_v41  ;;  %v14793_v20 = vrot.slane %v6357_v16, 11  ;;  %v6370_v32 = vld [vmem:[#allocation7 + $0x70] sm:$0xff] }
 0x7fe   : > { %12886 = vmatprep.subr.bf16.mxu1 %v16918_v31  ;;  %v16924_v48 = vld [vmem:[#allocation14 + $0x404] ss:$16 sps:$4 sm:$0xff]   ;;  %v20520_v28 = vsel %vm20428_vm6, %v6313_v24, %v6315_v9  ;;  %v16922_v31 = vld [vmem:[#allocation14 + $0x400] ss:$16 sps:$4 sm:$0xff]   ;;  %v6337_v36 = vsel %vm19053_vm4, %v6328_v56, %v6336_v13  ;;  %v20526_v45 = vsel %vm20428_vm6, %v6349_v51, %v6351_v55  ;;  %v14795_v26 = vrot.slane %v6413_v21, 10 }
 0x7ff   : > { %v6339_v52 = vld [vmem:[#allocation7 + $0x20] sm:$0xff]  ;;  %v6384_v1 = vsel %vm19374_vm13, %v14794_v49, %v6383_v58  ;;  %12906 = vmatprep.mubr.bf16.mxu1 %v20513_v40  ;;  %6317 = vst [vmem:[#allocation7 + $0x58] sm:$0xff] %v20520_v28  ;;  %v20535_v16 = vcombine.high %v20520_v28, %v20520_v28  ;;  %6353 = vst [vmem:[#allocation7 + $0x8] sm:$0xff] %v20526_v45  ;;  %v6399_v49 = vrot.slane %v6398_v57, 4  ;;  %v14796_v10 = vrot.slane %v6452_v47, 11  ;;  %v6410_v29 = vld [vmem:[#allocation7 + $0x30] sm:$0xff] }
 0x800   : > { %v16903_v63 = vld [vmem:[#allocation14 + $0x6c4] ss:$16 sps:$4 sm:$0xff]   ;;  %v20539_v56 = vsel %vm20428_vm6, %v6337_v36, %v6339_v52  ;;  %v6443_v2 = vor.u32 %v20490_v0, %v20488_v15  ;;  %v6462_v51 = vor.u32 %v6460_v61, %v6459_v11  ;;  %v16901_v8 = vld [vmem:[#allocation14 + $0x6c0] ss:$16 sps:$4 sm:$0xff]   ;;  %v6420_v19 = vsel %vm19474_vm9, %v14795_v26, %v6419_v62 }
 0x801   : > { %12887 = vmatpush1.bf16.msra.mxu1 %v16916_v53  ;;  %v16930_v39 = vld [vmem:[#allocation14 + $0x5e4] ss:$16 sps:$4 sm:$0xff]   ;;  %6341 = vst [vmem:[#allocation7 + $0x20] sm:$0xff] %v20539_v56  ;;  %12917 = vmatprep.subr.bf16.mxu0 %v16903_v63  ;;  %v6368_v35 = vsel %vm19111_vm7, %v14793_v20, %v20483_v17  ;;  %v6435_v38 = vrot.slane %v6434_v54, 4  ;;  %v16928_v42 = vld [vmem:[#allocation14 + $0x5e0] ss:$16 sps:$4 sm:$0xff]   ;;  %v6408_v5 = vsel %vm19010_vm0, %v6399_v49, %v6407_v22 }
 0x802   : > { %v6386_v43 = vld [vmem:[#allocation7 + $0x40] sm:$0xff]  ;;  %12888 = vmatprep.subr.bf16.mxu1 %v16924_v48  ;;  %12947 = vmatprep.mubr.bf16.mxu0 %v20535_v16  ;;  %v20553_v12 = vsel %vm20428_vm6, %v6368_v35, %v6370_v32  ;;  %v6446_v17 = vld [vmem:[#allocation7 + $0x28] sm:$0xff]  ;;  %v20565_v58 = vsel %vm20428_vm6, %v6408_v5, %v6410_v29  ;;  %v6423_v23 = vsel %vm20428_vm6, %v6420_v19, %v6422_v6  ;;  %vm20947_vm0 = vsmask.f32 256 }
 0x803   : > { %v16909_v13 = vld [vmem:[#allocation14 + $0x6a4] ss:$16 sps:$4 sm:$0xff]   ;;  %v20557_v46 = vsel %vm20428_vm6, %v6384_v1, %v6386_v43  ;;  %6372 = vst [vmem:[#allocation7 + $0x70] sm:$0xff] %v20553_v12  ;;  %12918 = vmatpush1.bf16.msra.mxu0 %v16901_v8  ;;  %v16907_v47 = vld [vmem:[#allocation14 + $0x6a0] ss:$16 sps:$4 sm:$0xff]   ;;  %v6444_v59 = vsel %vm19053_vm4, %v6435_v38, %v6443_v2  ;;  %v6463_v4 = vsel %vm19111_vm7, %v14796_v10, %v6462_v51  ;;  %6412 = vst [vmem:[#allocation7 + $0x30] sm:$0xff] %v20565_v58 }
 0x804   : > { %v16936_v27 = vld [vmem:[#allocation14 + $0x5c4] ss:$16 sps:$4 sm:$0xff]   ;;  %6388 = vst [vmem:[#allocation7 + $0x40] sm:$0xff] %v20557_v46  ;;  %12919 = vmatprep.subr.bf16.mxu0 %v16909_v13  ;;  %6424 = vst [vmem:[#allocation7 + $0x68] sm:$0xff] %v6423_v23  ;;  %v16934_v15 = vld [vmem:[#allocation14 + $0x5c0] ss:$16 sps:$4 sm:$0xff]   ;;  %v6447_v0 = vsel %vm20428_vm6, %v6444_v59, %v6446_v17  ;;  %v20580_v35 = vcombine.low %v20502_v41, %v20502_v41  ;;  %v20584_v38 = vcombine.high %v20539_v56, %v20539_v56 }
 0x805   : > { %12889 = vmatpush1.bf16.msra.mxu1 %v16922_v31  ;;  %v6465_v57 = vld [vmem:[#allocation7 + $0x60] sm:$0xff]  ;;  %6448 = vst [vmem:[#allocation7 + $0x28] sm:$0xff] %v6447_v0  ;;  %vm20600_vm4 = vmand %vm2024_vm12, %vm20947_vm0  ;;  %vm6254_vm5 = vsmask.f32 4352  ;;  %vm20950_vm7 = vcmask 1044484  }
 0x806   : > { %12890 = vmatprep.subr.bf16.mxu1 %v16930_v39  ;;  %v16915_v53 = vld [vmem:[#allocation14 + $0x684] ss:$16 sps:$4 sm:$0xff]   ;;  %v6466_v61 = vsel %vm20428_vm6, %v6463_v4, %v6465_v57  ;;  %v16940_v55 = vld [vmem:[#allocation14 + $0x5a0] ss:$16 sps:$4 sm:$0xff]   ;;  %vm6255_vm9 = vmand %vm20950_vm7, %vm6254_vm5 }
 0x807   : > { %v16942_v9 = vld [vmem:[#allocation14 + $0x5a4] ss:$16 sps:$4 sm:$0xff]   ;;  %6467 = vst [vmem:[#allocation7 + $0x60] sm:$0xff] %v6466_v61  ;;  %12920 = vmatpush1.bf16.msra.mxu0 %v16907_v47  ;;  %v16919_v11 = vld [vmem:[#allocation14 + $0x660] ss:$16 sps:$4 sm:$0xff]   ;;  %vm6256_vm8 = vmor %vm6255_vm9, %vm20600_vm4 }
 0x808   : > { %12921 = vmatprep.subr.bf16.mxu0 %v16915_v53  ;;  %v16948_v21 = vld [vmem:[#allocation14 + $0x584] ss:$16 sps:$4 sm:$0xff]   ;;  %v16946_v48 = vld [vmem:[#allocation14 + $0x580] ss:$16 sps:$4 sm:$0xff]  }
 0x809   : > { %12891 = vmatpush2.bf16.msra.mxu1 %v16928_v42  ;;  %v16927_v24 = vld [vmem:[#allocation14 + $0x644] ss:$16 sps:$4 sm:$0xff]   ;;  %v16925_v54 = vld [vmem:[#allocation14 + $0x640] ss:$16 sps:$4 sm:$0xff]  }
 0x80a   : > { %12892 = vmatprep.subr.bf16.mxu1 %v16936_v27  ;;  %v16954_v52 = vld [vmem:[#allocation14 + $0x564] ss:$16 sps:$4 sm:$0xff]   ;;  %v16952_v62 = vld [vmem:[#allocation14 + $0x560] ss:$16 sps:$4 sm:$0xff]  }
 0x80b   : > { %12922 = vmatpush1.bf16.msra.mxu0 %v16913_v7  ;;  %v16933_v22 = vld [vmem:[#allocation14 + $0x624] ss:$16 sps:$4 sm:$0xff]   ;;  %v16931_v20 = vld [vmem:[#allocation14 + $0x620] ss:$16 sps:$4 sm:$0xff]  }
 0x80c   : > { %12923 = vmatprep.subr.bf16.mxu0 %v16921_v37  ;;  %v16960_v63 = vld [vmem:[#allocation14 + $0x544] ss:$16 sps:$4 sm:$0xff]   ;;  %v16958_v36 = vld [vmem:[#allocation14 + $0x540] ss:$16 sps:$4 sm:$0xff]  }
 0x80d   : > { %12893 = vmatpush2.bf16.msra.mxu1 %v16934_v15  ;;  %v16939_v31 = vld [vmem:[#allocation14 + $0x604] ss:$16 sps:$4 sm:$0xff]   ;;  %v16937_v1 = vld [vmem:[#allocation14 + $0x600] ss:$16 sps:$4 sm:$0xff]  }
 0x80e   : > { %12894 = vmatprep.subr.bf16.mxu1 %v16942_v9  ;;  %v16966_v26 = vld [vmem:[#allocation14 + $0x524] ss:$16 sps:$4 sm:$0xff]   ;;  %v16964_v32 = vld [vmem:[#allocation14 + $0x520] ss:$16 sps:$4 sm:$0xff]  }
 0x80f   : > { %12924 = vmatpush1.bf16.msra.mxu0 %v16919_v11  ;;  %v16945_v39 = vld [vmem:[#allocation14 + $0x7e4] ss:$16 sps:$4 sm:$0xff]   ;;  %v16943_v49 = vld [vmem:[#allocation14 + $0x7e0] ss:$16 sps:$4 sm:$0xff]  }
 0x810   : > { %12925 = vmatprep.subr.bf16.mxu0 %v16927_v24  ;;  %v16972_v43 = vld [vmem:[#allocation14 + $0x504] ss:$16 sps:$4 sm:$0xff]   ;;  %v16970_v51 = vld [vmem:[#allocation14 + $0x500] ss:$16 sps:$4 sm:$0xff]  }
 0x811   : > { %12895 = vmatpush2.bf16.msra.mxu1 %v16940_v55  ;;  %v16951_v2 = vld [vmem:[#allocation14 + $0x7c4] ss:$16 sps:$4 sm:$0xff]   ;;  %v16949_v10 = vld [vmem:[#allocation14 + $0x7c0] ss:$16 sps:$4 sm:$0xff]  }
 0x812   : > { %12896 = vmatprep.subr.bf16.mxu1 %v16948_v21  ;;  %v16981_v8 = vld [vmem:[#allocation14 + $0x8e4] ss:$16 sps:$4 sm:$0xff]   ;;  %v16979_v13 = vld [vmem:[#allocation14 + $0x8e0] ss:$16 sps:$4 sm:$0xff]  }
 0x813   : > { %12926 = vmatpush1.bf16.msra.mxu0 %v16925_v54  ;;  %v16957_v19 = vld [vmem:[#allocation14 + $0x7a4] ss:$16 sps:$4 sm:$0xff]   ;;  %v16955_v6 = vld [vmem:[#allocation14 + $0x7a0] ss:$16 sps:$4 sm:$0xff]  }
 0x814   : > { %12927 = vmatprep.subr.bf16.mxu0 %v16933_v22  ;;  %v16987_v29 = vld [vmem:[#allocation14 + $0x8c4] ss:$16 sps:$4 sm:$0xff]   ;;  %v16985_v5 = vld [vmem:[#allocation14 + $0x8c0] ss:$16 sps:$4 sm:$0xff]   ;;  %v20590_v22 = vcombine.low %v20520_v28, %v20520_v28 }
 0x815   : > { %12897 = vmatpush2.bf16.msra.mxu1 %v16946_v48  ;;  %v16963_v42 = vld [vmem:[#allocation14 + $0x784] ss:$16 sps:$4 sm:$0xff]   ;;  %v16961_v41 = vld [vmem:[#allocation14 + $0x780] ss:$16 sps:$4 sm:$0xff]  }
 0x816   : > { %12898 = vmatprep.subr.bf16.mxu1 %v16954_v52  ;;  %v16990_v27 = vld [vmem:[#allocation14 + $0x8a4] ss:$16 sps:$4 sm:$0xff]   ;;  %v16988_v57 = vld [vmem:[#allocation14 + $0x8a0] ss:$16 sps:$4 sm:$0xff]  }
 0x817   : > { %12928 = vmatpush1.bf16.msra.mxu0 %v16931_v20  ;;  %v16969_v17 = vld [vmem:[#allocation14 + $0x764] ss:$16 sps:$4 sm:$0xff]   ;;  %v16967_v23 = vld [vmem:[#allocation14 + $0x760] ss:$16 sps:$4 sm:$0xff]  }
 0x818   : > { %12929 = vmatprep.subr.bf16.mxu0 %v16939_v31  ;;  %v16996_v47 = vld [vmem:[#allocation14 + $0x884] ss:$16 sps:$4 sm:$0xff]   ;;  %v16994_v4 = vld [vmem:[#allocation14 + $0x880] ss:$16 sps:$4 sm:$0xff]  }
 0x819   : > { %12899 = vmatpush2.bf16.msra.mxu1 %v16952_v62  ;;  %v16975_v59 = vld [vmem:[#allocation14 + $0x744] ss:$16 sps:$4 sm:$0xff]   ;;  %v16973_v15 = vld [vmem:[#allocation14 + $0x740] ss:$16 sps:$4 sm:$0xff]  }
 0x81a   : > { %12900 = vmatprep.subr.bf16.mxu1 %v16960_v63  ;;  %v17002_v53 = vld [vmem:[#allocation14 + $0x864] ss:$16 sps:$4 sm:$0xff]   ;;  %v17000_v61 = vld [vmem:[#allocation14 + $0x860] ss:$16 sps:$4 sm:$0xff]   ;;  %v20594_v63 = vcombine.high %v20526_v45, %v20526_v45 }
 0x81b   : > { %12930 = vmatpush1.bf16.msra.mxu0 %v16937_v1  ;;  %v16978_v0 = vld [vmem:[#allocation14 + $0x724] ss:$16 sps:$4 sm:$0xff]   ;;  %v16976_v7 = vld [vmem:[#allocation14 + $0x720] ss:$16 sps:$4 sm:$0xff]  }
 0x81c   : > { %12931 = vmatprep.subr.bf16.mxu0 %v16945_v39  ;;  %v17008_v9 = vld [vmem:[#allocation14 + $0x844] ss:$16 sps:$4 sm:$0xff]   ;;  %v17006_v55 = vld [vmem:[#allocation14 + $0x840] ss:$16 sps:$4 sm:$0xff]  }
 0x81d   : > { %12901 = vmatpush2.bf16.msra.mxu1 %v16958_v36  ;;  %v16984_v37 = vld [vmem:[#allocation14 + $0x704] ss:$16 sps:$4 sm:$0xff]   ;;  %v16982_v11 = vld [vmem:[#allocation14 + $0x700] ss:$16 sps:$4 sm:$0xff]   ;;  %v6221_v36 = vpop.f32.mrf.mxu1 }
 0x81e   : > { %12902 = vmatprep.subr.bf16.mxu1 %v16966_v26  ;;  %v17014_v21 = vld [vmem:[#allocation14 + $0x824] ss:$16 sps:$4 sm:$0xff]   ;;  %v17012_v48 = vld [vmem:[#allocation14 + $0x820] ss:$16 sps:$4 sm:$0xff]  }
 0x81f   : > { %12932 = vmatpush2.bf16.msra.mxu0 %v16943_v49  ;;  %v16993_v24 = vld [vmem:[#allocation14 + $0xae4] ss:$16 sps:$4 sm:$0xff]   ;;  %v16991_v54 = vld [vmem:[#allocation14 + $0xae0] ss:$16 sps:$4 sm:$0xff]   ;;  %v6223_v39 = vpop.f32.mrf.mxu1 }
 0x820   : > { %12933 = vmatprep.subr.bf16.mxu0 %v16951_v2  ;;  %v17020_v52 = vld [vmem:[#allocation14 + $0x804] ss:$16 sps:$4 sm:$0xff]   ;;  %v17018_v20 = vld [vmem:[#allocation14 + $0x800] ss:$16 sps:$4 sm:$0xff]   ;;  %v15878_v49 = vpack.c.bf16 %v6223_v39, %v6221_v36 }
 0x821   : > { %12903 = vmatpush2.bf16.msra.mxu1 %v16964_v32  ;;  %v16999_v62 = vld [vmem:[#allocation14 + $0xac4] ss:$16 sps:$4 sm:$0xff]   ;;  %v16997_v26 = vld [vmem:[#allocation14 + $0xac0] ss:$16 sps:$4 sm:$0xff]  }
 0x822   : > { %12904 = vmatprep.subr.bf16.mxu1 %v16972_v43  ;;  %v17026_v31 = vld [vmem:[#allocation14 + $0x9e4] ss:$16 sps:$4 sm:$0xff]   ;;  %v17024_v43 = vld [vmem:[#allocation14 + $0x9e0] ss:$16 sps:$4 sm:$0xff]  }
 0x823   : > { %12934 = vmatpush2.bf16.msra.mxu0 %v16949_v10  ;;  %v17005_v1 = vld [vmem:[#allocation14 + $0xaa4] ss:$16 sps:$4 sm:$0xff]   ;;  %v17051_v36 = vld [vmem:[#allocation14 + $0xba0] ss:$16 sps:$4 sm:$0xff]  }
 0x824   : > { %12935 = vmatprep.subr.bf16.mxu0 %v16957_v19  ;;  %v6257_v32 = vld [vmem:[#allocation6 + $0x8] sm:$0x11]  ;;  %v17030_v19 = vld [vmem:[#allocation14 + $0x9c0] ss:$16 sps:$4 sm:$0xff]  }
 0x825   : > { %12905 = vmatpush2.bf16.msra.mxu1 %v16970_v51  ;;  %v17032_v2 = vld [vmem:[#allocation14 + $0x9c4] ss:$16 sps:$4 sm:$0xff]   ;;  %v17003_v51 = vld [vmem:[#allocation14 + $0xaa0] ss:$16 sps:$4 sm:$0xff]  }
 0x826   : > { %12956 = vmatprep.subr.bf16.mxu1 %v16981_v8  ;;  %v6258_v8 = vsel %vm6256_vm8, %v15878_v49, %v6257_v32  ;;  %v17011_v10 = vld [vmem:[#allocation14 + $0xa84] ss:$16 sps:$4 sm:$0xff]  }
 0x827   : > { %12936 = vmatpush2.bf16.msra.mxu0 %v16955_v6  ;;  %6259 = vst [vmem:[#allocation6 + $0x8] sm:$0x11] %v6258_v8  ;;  %v17017_v6 = vld [vmem:[#allocation14 + $0xa64] ss:$16 sps:$4 sm:$0xff]   ;;  %v17092_v8 = vld [vmem:[#allocation14 + $0xc80] ss:$16 sps:$4 sm:$0xff]  }
 0x828   : > { %12907 = vmatmul.mubr.bf16.vlgmr.msra.gmra.mxu1 %v20580_v35  ;;  %12937 = vmatprep.subr.bf16.mxu0 %v16963_v42  ;;  %v17036_v42 = vld [vmem:[#allocation14 + $0x9a0] ss:$16 sps:$4 sm:$0xff]   ;;  %v17059_v28 = vld [vmem:[#allocation14 + $0xb84] ss:$16 sps:$4 sm:$0xff]  }
 0x829   : > { %12957 = vmatpush1.bf16.msra.mxu1 %v16979_v13  ;;  %12988 = vmatprep.mubr.bf16.mxu1 %v20584_v38  ;;  %v17038_v13 = vld [vmem:[#allocation14 + $0x9a4] ss:$16 sps:$4 sm:$0xff]  }
 0x82a   : > { %12958 = vmatprep.subr.bf16.mxu1 %v16987_v29  ;;  %v17009_v29 = vld [vmem:[#allocation14 + $0xa80] ss:$16 sps:$4 sm:$0xff]   ;;  %v17086_v39 = vld [vmem:[#allocation14 + $0xca4] ss:$16 sps:$4 sm:$0xff]  }
 0x82b   : > { %12938 = vmatpush2.bf16.msra.mxu0 %v16961_v41  ;;  %v17023_v41 = vld [vmem:[#allocation14 + $0xa44] ss:$16 sps:$4 sm:$0xff]  }
 0x82c   : > { %12939 = vmatprep.subr.bf16.mxu0 %v16969_v17  ;;  %v17042_v17 = vld [vmem:[#allocation14 + $0x980] ss:$16 sps:$4 sm:$0xff]   ;;  %v17065_v32 = vld [vmem:[#allocation14 + $0xb64] ss:$16 sps:$4 sm:$0xff]  }
 0x82d   : > { %12959 = vmatpush1.bf16.msra.mxu1 %v16985_v5  ;;  %v17044_v5 = vld [vmem:[#allocation14 + $0x984] ss:$16 sps:$4 sm:$0xff]  }
 0x82e   : > { %12960 = vmatprep.subr.bf16.mxu1 %v16990_v27  ;;  %v17015_v27 = vld [vmem:[#allocation14 + $0xa60] ss:$16 sps:$4 sm:$0xff]   ;;  %v17094_v49 = vld [vmem:[#allocation14 + $0xc84] ss:$16 sps:$4 sm:$0xff]  }
 0x82f   : > { %12940 = vmatpush2.bf16.msra.mxu0 %v16967_v23  ;;  %v17029_v23 = vld [vmem:[#allocation14 + $0xa24] ss:$16 sps:$4 sm:$0xff]  }
 0x830   : > { %12941 = vmatprep.subr.bf16.mxu0 %v16975_v59  ;;  %v17048_v59 = vld [vmem:[#allocation14 + $0x960] ss:$16 sps:$4 sm:$0xff]  }
 0x831   : > { %12961 = vmatpush1.bf16.msra.mxu1 %v16988_v57  ;;  %v17050_v57 = vld [vmem:[#allocation14 + $0x964] ss:$16 sps:$4 sm:$0xff]  }
 0x832   : > { %12962 = vmatprep.subr.bf16.mxu1 %v16996_v47  ;;  %v17021_v47 = vld [vmem:[#allocation14 + $0xa40] ss:$16 sps:$4 sm:$0xff]  }
 0x833   : > { %12942 = vmatpush2.bf16.msra.mxu0 %v16973_v15  ;;  %v17035_v15 = vld [vmem:[#allocation14 + $0xa04] ss:$16 sps:$4 sm:$0xff]  }
 0x834   : > { %12943 = vmatprep.subr.bf16.mxu0 %v16978_v0  ;;  %v17054_v0 = vld [vmem:[#allocation14 + $0x940] ss:$16 sps:$4 sm:$0xff]  }
 0x835   : > { %12963 = vmatpush1.bf16.msra.mxu1 %v16994_v4  ;;  %v17056_v4 = vld [vmem:[#allocation14 + $0x944] ss:$16 sps:$4 sm:$0xff]  }
 0x836   : > { %12964 = vmatprep.subr.bf16.mxu1 %v17002_v53  ;;  %v17027_v53 = vld [vmem:[#allocation14 + $0xa20] ss:$16 sps:$4 sm:$0xff]  }
 0x837   : > { %12944 = vmatpush2.bf16.msra.mxu0 %v16976_v7  ;;  %v17041_v7 = vld [vmem:[#allocation14 + $0xbe4] ss:$16 sps:$4 sm:$0xff]  }
 0x838   : > { %12945 = vmatprep.subr.bf16.mxu0 %v16984_v37  ;;  %v17060_v37 = vld [vmem:[#allocation14 + $0x920] ss:$16 sps:$4 sm:$0xff]  }
 0x839   : > { %12965 = vmatpush1.bf16.msra.mxu1 %v17000_v61  ;;  %v17062_v61 = vld [vmem:[#allocation14 + $0x924] ss:$16 sps:$4 sm:$0xff]  }
 0x83a   : > { %12966 = vmatprep.subr.bf16.mxu1 %v17008_v9  ;;  %v17033_v9 = vld [vmem:[#allocation14 + $0xa00] ss:$16 sps:$4 sm:$0xff]  }
 0x83b   : > { %12946 = vmatpush2.bf16.msra.mxu0 %v16982_v11  ;;  %v17047_v11 = vld [vmem:[#allocation14 + $0xbc4] ss:$16 sps:$4 sm:$0xff]  }
 0x83c   : > { %12997 = vmatprep.subr.bf16.mxu0 %v16993_v24  ;;  %v17066_v24 = vld [vmem:[#allocation14 + $0x900] ss:$16 sps:$4 sm:$0xff]  }
 0x83d   : > { %12967 = vmatpush1.bf16.msra.mxu1 %v17006_v55  ;;  %v17068_v55 = vld [vmem:[#allocation14 + $0x904] ss:$16 sps:$4 sm:$0xff]  }
 0x83e   : > { %12968 = vmatprep.subr.bf16.mxu1 %v17014_v21  ;;  %12948 = vmatmul.mubr.bf16.vlgmr.msra.gmra.mxu0 %v20590_v22  ;;  %v17039_v21 = vld [vmem:[#allocation14 + $0xbe0] ss:$16 sps:$4 sm:$0xff]  }
 0x83f   : > { %12998 = vmatpush1.bf16.msra.mxu0 %v16991_v54  ;;  %13029 = vmatprep.mubr.bf16.mxu0 %v20594_v63  ;;  %v17053_v54 = vld [vmem:[#allocation14 + $0xba4] ss:$16 sps:$4 sm:$0xff]  }
 0x840   : > { %12999 = vmatprep.subr.bf16.mxu0 %v16999_v62  ;;  %v17075_v62 = vld [vmem:[#allocation14 + $0xce0] ss:$16 sps:$4 sm:$0xff]  }
 0x841   : > { %12969 = vmatpush1.bf16.msra.mxu1 %v17012_v48  ;;  %v17077_v48 = vld [vmem:[#allocation14 + $0xce4] ss:$16 sps:$4 sm:$0xff]  }
 0x842   : > { %12970 = vmatprep.subr.bf16.mxu1 %v17020_v52  ;;  %v17045_v52 = vld [vmem:[#allocation14 + $0xbc0] ss:$16 sps:$4 sm:$0xff]  }
 0x843   : > { %13000 = vmatpush1.bf16.msra.mxu0 %v16997_v26  ;;  %v20613_v26 = vcombine.high %v20553_v12, %v20553_v12 }
 0x844   : > { %13001 = vmatprep.subr.bf16.mxu0 %v17005_v1  ;;  %v17081_v1 = vld [vmem:[#allocation14 + $0xcc0] ss:$16 sps:$4 sm:$0xff]  }
 0x845   : > { %12971 = vmatpush1.bf16.msra.mxu1 %v17018_v20  ;;  %v20609_v20 = vcombine.low %v20539_v56, %v20539_v56  ;;  %v17057_v56 = vld [vmem:[#allocation14 + $0xb80] ss:$16 sps:$4 sm:$0xff]  }
 0x846   : > { %12972 = vmatprep.subr.bf16.mxu1 %v17026_v31  ;;  %v17083_v31 = vld [vmem:[#allocation14 + $0xcc4] ss:$16 sps:$4 sm:$0xff]  }
 0x847   : > { %13002 = vmatpush1.bf16.msra.mxu0 %v17003_v51  ;;  %v17071_v51 = vld [vmem:[#allocation14 + $0xb44] ss:$16 sps:$4 sm:$0xff]  }
 0x848   : > { %13003 = vmatprep.subr.bf16.mxu0 %v17011_v10  ;;  %v17100_v10 = vld [vmem:[#allocation14 + $0xc64] ss:$16 sps:$4 sm:$0xff]  }
 0x849   : > { %12973 = vmatpush2.bf16.msra.mxu1 %v17024_v43  ;;  %v17084_v43 = vld [vmem:[#allocation14 + $0xca0] ss:$16 sps:$4 sm:$0xff]  }
 0x84a   : > { %12974 = vmatprep.subr.bf16.mxu1 %v17032_v2  ;;  %v17063_v2 = vld [vmem:[#allocation14 + $0xb60] ss:$16 sps:$4 sm:$0xff]  }
 0x84b   : > { %13004 = vmatpush1.bf16.msra.mxu0 %v17009_v29  ;;  %v17098_v29 = vld [vmem:[#allocation14 + $0xc60] ss:$16 sps:$4 sm:$0xff]  }
 0x84c   : > { %13005 = vmatprep.subr.bf16.mxu0 %v17017_v6  ;;  %v17106_v6 = vld [vmem:[#allocation14 + $0xc44] ss:$16 sps:$4 sm:$0xff]  }
 0x84d   : > { %12975 = vmatpush2.bf16.msra.mxu1 %v17030_v19  ;;  %v17069_v19 = vld [vmem:[#allocation14 + $0xb40] ss:$16 sps:$4 sm:$0xff]  }
 0x84e   : > { %12976 = vmatprep.subr.bf16.mxu1 %v17038_v13  ;;  %v17074_v13 = vld [vmem:[#allocation14 + $0xb24] ss:$16 sps:$4 sm:$0xff]  }
 0x84f   : > { %13006 = vmatpush1.bf16.msra.mxu0 %v17015_v27  ;;  %v17104_v27 = vld [vmem:[#allocation14 + $0xc40] ss:$16 sps:$4 sm:$0xff]  }
 0x850   : > { %13007 = vmatprep.subr.bf16.mxu0 %v17023_v41  ;;  %v17112_v41 = vld [vmem:[#allocation14 + $0xc24] ss:$16 sps:$4 sm:$0xff]  }
 0x851   : > { %12977 = vmatpush2.bf16.msra.mxu1 %v17036_v42  ;;  %v17072_v42 = vld [vmem:[#allocation14 + $0xb20] ss:$16 sps:$4 sm:$0xff]  }
 0x852   : > { %12978 = vmatprep.subr.bf16.mxu1 %v17044_v5  ;;  %v17080_v5 = vld [vmem:[#allocation14 + $0xb04] ss:$16 sps:$4 sm:$0xff]  }
 0x853   : > { %13008 = vmatpush1.bf16.msra.mxu0 %v17021_v47  ;;  %v17110_v47 = vld [vmem:[#allocation14 + $0xc20] ss:$16 sps:$4 sm:$0xff]  }
 0x854   : > { %13009 = vmatprep.subr.bf16.mxu0 %v17029_v23  ;;  %v20617_v23 = vld [vmem:[#allocation7 + $0x10] sm:$0xff] }
 0x855   : > { %12979 = vmatpush2.bf16.msra.mxu1 %v17042_v17  ;;  %v17078_v17 = vld [vmem:[#allocation14 + $0xb00] ss:$16 sps:$4 sm:$0xff]  }
 0x856   : > { %12980 = vmatprep.subr.bf16.mxu1 %v17050_v57  ;;  %v17089_v57 = vld [vmem:[#allocation14 + $0xee4] ss:$16 sps:$4 sm:$0xff]  }
 0x857   : > { %13010 = vmatpush1.bf16.msra.mxu0 %v17027_v53  ;;  %v6477_v53 = vshll.u32 %v20442_v18, 16 }
 0x858   : > { %13011 = vmatprep.subr.bf16.mxu0 %v17035_v15  ;;  %v17087_v15 = vld [vmem:[#allocation14 + $0xee0] ss:$16 sps:$4 sm:$0xff]  }
 0x859   : > { %12981 = vmatpush2.bf16.msra.mxu1 %v17048_v59  ;;  %v17118_v59 = vld [vmem:[#allocation14 + $0xc04] ss:$16 sps:$4 sm:$0xff]  }
 0x85a   : > { %12982 = vmatprep.subr.bf16.mxu1 %v17056_v4  ;;  %v6474_v4 = vshrl.u32 %v20442_v18, 16  ;;  %v6479_v18 = vrot.slane %v6477_v53, 5  ;;  %v17139_v53 = vld [vmem:[#allocation14 + $0xfe4] ss:$16 sps:$4 sm:$0xff]  }
 0x85b   : > { %13012 = vmatpush1.bf16.msra.mxu0 %v17033_v9  ;;  %v20627_v9 = vcombine.high %v20617_v23, %v20617_v23 }
 0x85c   : > { %13013 = vmatprep.subr.bf16.mxu0 %v17041_v7  ;;  %v17116_v7 = vld [vmem:[#allocation14 + $0xc00] ss:$16 sps:$4 sm:$0xff]  }
 0x85d   : > { %12983 = vmatpush2.bf16.msra.mxu1 %v17054_v0  ;;  %v20623_v0 = vcombine.low %v20526_v45, %v20526_v45  ;;  %v17103_v45 = vld [vmem:[#allocation14 + $0xea4] ss:$16 sps:$4 sm:$0xff]  }
 0x85e   : > { %12984 = vmatprep.subr.bf16.mxu1 %v17062_v61  ;;  %v17097_v61 = vld [vmem:[#allocation14 + $0xec4] ss:$16 sps:$4 sm:$0xff]  }
 0x85f   : > { %13014 = vmatpush2.bf16.msra.mxu0 %v17039_v21  ;;  %v17095_v21 = vld [vmem:[#allocation14 + $0xec0] ss:$16 sps:$4 sm:$0xff]  }
 0x860   : > { %13015 = vmatprep.subr.bf16.mxu0 %v17047_v11  ;;  %v17122_v11 = vld [vmem:[#allocation14 + $0xde0] ss:$16 sps:$4 sm:$0xff]  }
 0x861   : > { %12985 = vmatpush2.bf16.msra.mxu1 %v17060_v37  ;;  %v17124_v37 = vld [vmem:[#allocation14 + $0xde4] ss:$16 sps:$4 sm:$0xff]  }
 0x862   : > { %12986 = vmatprep.subr.bf16.mxu1 %v17068_v55  ;;  %v6476_v55 = vrot.slane %v6474_v4, 4  ;;  %v17160_v4 = vld [vmem:[#allocation14 + $0xd24] ss:$16 sps:$4 sm:$0xff]  }
 0x863   : > { %13016 = vmatpush2.bf16.msra.mxu0 %v17045_v52  ;;  %v17101_v52 = vld [vmem:[#allocation14 + $0xea0] ss:$16 sps:$4 sm:$0xff]  }
 0x864   : > { %13017 = vmatprep.subr.bf16.mxu0 %v17053_v54  ;;  %v17109_v54 = vld [vmem:[#allocation14 + $0xe84] ss:$16 sps:$4 sm:$0xff]  }
 0x865   : > { %12987 = vmatpush2.bf16.msra.mxu1 %v17066_v24  ;;  %v17130_v24 = vld [vmem:[#allocation14 + $0xdc4] ss:$16 sps:$4 sm:$0xff]  }
 0x866   : > { %13038 = vmatprep.subr.bf16.mxu1 %v17077_v48  ;;  %v6480_v48 = vor.u32 %v6479_v18, %v6476_v55  ;;  %v17164_v55 = vld [vmem:[#allocation14 + $0xd00] ss:$16 sps:$4 sm:$0xff]   ;;  %v17175_v18 = vld [vmem:[#allocation14 + $0x10e4] ss:$16 sps:$4 sm:$0xff]  }
 0x867   : > { %13018 = vmatpush2.bf16.msra.mxu0 %v17051_v36  ;;  %v17136_v36 = vld [vmem:[#allocation14 + $0xda4] ss:$16 sps:$4 sm:$0xff]  }
 0x868   : > { %12989 = vmatmul.mubr.bf16.vlgmr.msra.gmra.mxu1 %v20609_v20  ;;  %13019 = vmatprep.subr.bf16.mxu0 %v17059_v28  ;;  %v6487_v28 = vld [vmem:[#allocation6 + $0x8] sm:$0x11] }
 0x869   : > { %13039 = vmatpush1.bf16.msra.mxu1 %v17075_v62  ;;  %13070 = vmatprep.mubr.bf16.mxu1 %v20613_v26  ;;  %v17128_v62 = vld [vmem:[#allocation14 + $0xdc0] ss:$16 sps:$4 sm:$0xff]  }
 0x86a   : > { %13040 = vmatprep.subr.bf16.mxu1 %v17083_v31  ;;  %v6486_v31 = vld [vmem:[#allocation6 + $0x18] sm:$0xee] }
 0x86b   : > { %13020 = vmatpush2.bf16.msra.mxu0 %v17057_v56  ;;  %v17115_v56 = vld [vmem:[#allocation14 + $0xe64] ss:$16 sps:$4 sm:$0xff]  }
 0x86c   : > { %13021 = vmatprep.subr.bf16.mxu0 %v17065_v32  ;;  %v14797_v32 = vrot.slane %v6486_v31, 9 }
 0x86d   : > { %13041 = vmatpush1.bf16.msra.mxu1 %v17081_v1  ;;  %v6481_v1 = vrot.slane %v6480_v48, 4  ;;  %v17181_v48 = vld [vmem:[#allocation14 + $0x10c4] ss:$16 sps:$4 sm:$0xff]  }
 0x86e   : > { %13042 = vmatprep.subr.bf16.mxu1 %v17086_v39  ;;  %v17107_v39 = vld [vmem:[#allocation14 + $0xe80] ss:$16 sps:$4 sm:$0xff]  }
 0x86f   : > { %13022 = vmatpush2.bf16.msra.mxu0 %v17063_v2  ;;  %v17142_v2 = vld [vmem:[#allocation14 + $0xd84] ss:$16 sps:$4 sm:$0xff]  }
 0x870   : > { %13023 = vmatprep.subr.bf16.mxu0 %v17071_v51  ;;  %v6483_v51 = vld [vmem:[#allocation7 + $0x18] sm:$0xff] }
 0x871   : > { %13043 = vmatpush1.bf16.msra.mxu1 %v17084_v43  ;;  %v17134_v43 = vld [vmem:[#allocation14 + $0xda0] ss:$16 sps:$4 sm:$0xff]  }
 0x872   : > { %13044 = vmatprep.subr.bf16.mxu1 %v17094_v49  ;;  %v6492_v49 = vrot.slane %v6487_v28, 5 }
 0x873   : > { %13024 = vmatpush2.bf16.msra.mxu0 %v17069_v19  ;;  %v17121_v19 = vld [vmem:[#allocation14 + $0xe44] ss:$16 sps:$4 sm:$0xff]  }
 0x874   : > { %13025 = vmatprep.subr.bf16.mxu0 %v17074_v13  ;;  %v17140_v13 = vld [vmem:[#allocation14 + $0xd80] ss:$16 sps:$4 sm:$0xff]  }
 0x875   : > { %13045 = vmatpush1.bf16.msra.mxu1 %v17092_v8  ;;  %v17113_v8 = vld [vmem:[#allocation14 + $0xe60] ss:$16 sps:$4 sm:$0xff]  }
 0x876   : > { %13046 = vmatprep.subr.bf16.mxu1 %v17100_v10  ;;  %v20633_v10 = vsel %vm20428_vm6, %v6481_v1, %v6483_v51  ;;  %v17155_v1 = vld [vmem:[#allocation14 + $0xf80] ss:$16 sps:$4 sm:$0xff]  }
 0x877   : > { %13026 = vmatpush2.bf16.msra.mxu0 %v17072_v42  ;;  %6485 = vst [vmem:[#allocation7 + $0x18] sm:$0xff] %v20633_v10  ;;  %v17148_v42 = vld [vmem:[#allocation14 + $0xd64] ss:$16 sps:$4 sm:$0xff]   ;;  %v17188_v51 = vld [vmem:[#allocation14 + $0x1080] ss:$16 sps:$4 sm:$0xff]  }
 0x878   : > { %13027 = vmatprep.subr.bf16.mxu0 %v17080_v5 }
 0x879   : > { %13047 = vmatpush1.bf16.msra.mxu1 %v17098_v29  ;;  %v6493_v29 = vsel %vm19374_vm13, %v14797_v32, %v6492_v49  ;;  %v17190_v32 = vld [vmem:[#allocation14 + $0x1084] ss:$16 sps:$4 sm:$0xff]   ;;  %v17161_v49 = vld [vmem:[#allocation14 + $0xf60] ss:$16 sps:$4 sm:$0xff]  }
 0x87a   : > { %13048 = vmatprep.subr.bf16.mxu1 %v17106_v6  ;;  %v6495_v6 = vld [vmem:[#allocation7 + $0x50] sm:$0xff] }
 0x87b   : > { %13028 = vmatpush2.bf16.msra.mxu0 %v17078_v17  ;;  %v6496_v5 = vsel %vm20428_vm6, %v6493_v29, %v6495_v6  ;;  %v17146_v17 = vld [vmem:[#allocation14 + $0xd60] ss:$16 sps:$4 sm:$0xff]   ;;  %v17202_v6 = vld [vmem:[#allocation14 + $0x1044] ss:$16 sps:$4 sm:$0xff]  }
 0x87c   : > { %13079 = vmatprep.subr.bf16.mxu0 %v17089_v57  ;;  %6497 = vst [vmem:[#allocation7 + $0x50] sm:$0xff] %v6496_v5  ;;  %v17154_v57 = vld [vmem:[#allocation14 + $0xd44] ss:$16 sps:$4 sm:$0xff]   ;;  %v17194_v29 = vld [vmem:[#allocation14 + $0x1060] ss:$16 sps:$4 sm:$0xff]  }
 0x87d   : > { %13049 = vmatpush1.bf16.msra.mxu1 %v17104_v27  ;;  %v17119_v27 = vld [vmem:[#allocation14 + $0xe40] ss:$16 sps:$4 sm:$0xff]   ;;  %v17178_v5 = vld [vmem:[#allocation14 + $0xf04] ss:$16 sps:$4 sm:$0xff]  }
 0x87e   : > { %13050 = vmatprep.subr.bf16.mxu1 %v17112_v41  ;;  %13030 = vmatmul.mubr.bf16.vlgmr.msra.gmra.mxu0 %v20623_v0  ;;  %v17127_v41 = vld [vmem:[#allocation14 + $0xe24] ss:$16 sps:$4 sm:$0xff]  }
 0x87f   : > { %13080 = vmatpush1.bf16.msra.mxu0 %v17087_v15  ;;  %13111 = vmatprep.mubr.bf16.mxu0 %v20627_v9  ;;  %v17158_v15 = vld [vmem:[#allocation14 + $0xd20] ss:$16 sps:$4 sm:$0xff]  }
 0x880   : > { %13081 = vmatprep.subr.bf16.mxu0 %v17097_v61  ;;  %v17166_v61 = vld [vmem:[#allocation14 + $0xd04] ss:$16 sps:$4 sm:$0xff]  }
 0x881   : > { %13051 = vmatpush1.bf16.msra.mxu1 %v17110_v47  ;;  %v17125_v47 = vld [vmem:[#allocation14 + $0xe20] ss:$16 sps:$4 sm:$0xff]  }
 0x882   : > { %13052 = vmatprep.subr.bf16.mxu1 %v17118_v59  ;;  %v17152_v59 = vld [vmem:[#allocation14 + $0xd40] ss:$16 sps:$4 sm:$0xff]  }
 0x883   : > { %13082 = vmatpush1.bf16.msra.mxu0 %v17095_v21  ;;  %v17143_v21 = vld [vmem:[#allocation14 + $0xfc0] ss:$16 sps:$4 sm:$0xff]  }
 0x884   : > { %13083 = vmatprep.subr.bf16.mxu0 %v17103_v45  ;;  %v17151_v45 = vld [vmem:[#allocation14 + $0xfa4] ss:$16 sps:$4 sm:$0xff]  }
 0x885   : > { %13053 = vmatpush1.bf16.msra.mxu1 %v17116_v7  ;;  %v17137_v7 = vld [vmem:[#allocation14 + $0xfe0] ss:$16 sps:$4 sm:$0xff]  }
 0x886   : > { %13054 = vmatprep.subr.bf16.mxu1 %v17124_v37  ;;  %v17145_v37 = vld [vmem:[#allocation14 + $0xfc4] ss:$16 sps:$4 sm:$0xff]  }
 0x887   : > { %13084 = vmatpush1.bf16.msra.mxu0 %v17101_v52  ;;  %v17149_v52 = vld [vmem:[#allocation14 + $0xfa0] ss:$16 sps:$4 sm:$0xff]  }
 0x888   : > { %13085 = vmatprep.subr.bf16.mxu0 %v17109_v54  ;;  %v20646_v54 = vcombine.high %v20557_v46, %v20557_v46  ;;  %v17182_v46 = vld [vmem:[#allocation14 + $0x10a0] ss:$16 sps:$4 sm:$0xff]  }
 0x889   : > { %13055 = vmatpush2.bf16.msra.mxu1 %v17122_v11  ;;  %v17173_v11 = vld [vmem:[#allocation14 + $0x10e0] ss:$16 sps:$4 sm:$0xff]  }
 0x88a   : > { %13056 = vmatprep.subr.bf16.mxu1 %v17130_v24  ;;  %v20642_v24 = vcombine.low %v20553_v12, %v20553_v12  ;;  %v17184_v12 = vld [vmem:[#allocation14 + $0x10a4] ss:$16 sps:$4 sm:$0xff]  }
 0x88b   : > { %13086 = vmatpush1.bf16.msra.mxu0 %v17107_v39  ;;  %v17163_v39 = vld [vmem:[#allocation14 + $0xf64] ss:$16 sps:$4 sm:$0xff]  }
 0x88c   : > { %13087 = vmatprep.subr.bf16.mxu0 %v17115_v56 }
 0x88d   : > { %13057 = vmatpush2.bf16.msra.mxu1 %v17128_v62  ;;  %v17157_v62 = vld [vmem:[#allocation14 + $0xf84] ss:$16 sps:$4 sm:$0xff]  }
 0x88e   : > { %13058 = vmatprep.subr.bf16.mxu1 %v17136_v36  ;;  %v17179_v36 = vld [vmem:[#allocation14 + $0x10c0] ss:$16 sps:$4 sm:$0xff]  }
 0x88f   : > { %13088 = vmatpush1.bf16.msra.mxu0 %v17113_v8  ;;  %v17196_v8 = vld [vmem:[#allocation14 + $0x1064] ss:$16 sps:$4 sm:$0xff]  }
 0x890   : > { %13089 = vmatprep.subr.bf16.mxu0 %v17121_v19  ;;  %v17167_v19 = vld [vmem:[#allocation14 + $0xf40] ss:$16 sps:$4 sm:$0xff]  }
 0x891   : > { %13059 = vmatpush2.bf16.msra.mxu1 %v17134_v43 }
 0x892   : > { %13060 = vmatprep.subr.bf16.mxu1 %v17142_v2  ;;  %v17169_v2 = vld [vmem:[#allocation14 + $0xf44] ss:$16 sps:$4 sm:$0xff]  }
 0x893   : > { %13090 = vmatpush1.bf16.msra.mxu0 %v17119_v27  ;;  %v17200_v27 = vld [vmem:[#allocation14 + $0x1040] ss:$16 sps:$4 sm:$0xff]  }
 0x894   : > { %13091 = vmatprep.subr.bf16.mxu0 %v17127_v41  ;;  %v7538_v41 = vld [vmem:[#allocation20] sm:$0xf] }
 0x895   : > { %13061 = vmatpush2.bf16.msra.mxu1 %v17140_v13  ;;  %v17172_v13 = vld [vmem:[#allocation14 + $0xf24] ss:$16 sps:$4 sm:$0xff]  }
 0x896   : > { %13062 = vmatprep.subr.bf16.mxu1 %v17148_v42  ;;  %v17170_v42 = vld [vmem:[#allocation14 + $0xf20] ss:$16 sps:$4 sm:$0xff]  }
 0x897   : > { %13092 = vmatpush1.bf16.msra.mxu0 %v17125_v47  ;;  %v17187_v47 = vld [vmem:[#allocation14 + $0x12e4] ss:$16 sps:$4 sm:$0xff]  }
 0x898   : > { %13093 = vmatprep.subr.bf16.mxu0 %v17133_v14  ;;  %v7543_v14 = vrot.slane %v7538_v41, %v4416_v60 }
 0x899   : > { %13063 = vmatpush2.bf16.msra.mxu1 %v17146_v17  ;;  %v17208_v17 = vld [vmem:[#allocation14 + $0x1024] ss:$16 sps:$4 sm:$0xff]  }
 0x89a   : > { %13064 = vmatprep.subr.bf16.mxu1 %v17154_v57  ;;  %v17176_v57 = vld [vmem:[#allocation14 + $0xf00] ss:$16 sps:$4 sm:$0xff]  }
 0x89b   : > { %13094 = vmatpush1.bf16.msra.mxu0 %v17131_v30  ;;  %v17185_v30 = vld [vmem:[#allocation14 + $0x12e0] ss:$16 sps:$4 sm:$0xff]  }
 0x89c   : > { %13095 = vmatprep.subr.bf16.mxu0 %v17139_v53  ;;  %v7547_v53 = vrot.slane %v7538_v41, %v4420_v33  ;;  %v17191_v33 = vld [vmem:[#allocation14 + $0x12c0] ss:$16 sps:$4 sm:$0xff]  }
 0x89d   : > { %13065 = vmatpush2.bf16.msra.mxu1 %v17152_v59  ;;  %v17206_v59 = vld [vmem:[#allocation14 + $0x1020] ss:$16 sps:$4 sm:$0xff]  }
 0x89e   : > { %13066 = vmatprep.subr.bf16.mxu1 %v17160_v4  ;;  %v17214_v4 = vld [vmem:[#allocation14 + $0x1004] ss:$16 sps:$4 sm:$0xff]   ;;  %v17227_v41 = vld [vmem:[#allocation14 + $0x1200] ss:$16 sps:$4 sm:$0xff]  }
 0x89f   : > { %13096 = vmatpush2.bf16.msra.mxu0 %v17137_v7  ;;  %v20660_v7 = vcombine.high %v20565_v58, %v20565_v58 }
 0x8a0   : > { %13097 = vmatprep.subr.bf16.mxu0 %v17145_v37  ;;  %v17212_v37 = vld [vmem:[#allocation14 + $0x1000] ss:$16 sps:$4 sm:$0xff]  }
 0x8a1   : > { %13067 = vmatpush2.bf16.msra.mxu1 %v17158_v15  ;;  %v20656_v15 = vcombine.low %v20617_v23, %v20617_v23 }
 0x8a2   : > { %13068 = vmatprep.subr.bf16.mxu1 %v17166_v61  ;;  %v17193_v61 = vld [vmem:[#allocation14 + $0x12c4] ss:$16 sps:$4 sm:$0xff]  }
 0x8a3   : > { %13098 = vmatpush2.bf16.msra.mxu0 %v17143_v21 }
 0x8a4   : > { %13099 = vmatprep.subr.bf16.mxu0 %v17151_v45  ;;  %v17199_v45 = vld [vmem:[#allocation14 + $0x12a4] ss:$16 sps:$4 sm:$0xff]  }
 0x8a5   : > { %13069 = vmatpush2.bf16.msra.mxu1 %v17164_v55 }
 0x8a6   : > { %13120 = vmatprep.subr.bf16.mxu1 %v17175_v18  ;;  %v17220_v18 = vld [vmem:[#allocation14 + $0x11e4] ss:$16 sps:$4 sm:$0xff]  }
 0x8a7   : > { %13100 = vmatpush2.bf16.msra.mxu0 %v17149_v52 }
 0x8a8   : > { %13071 = vmatmul.mubr.bf16.vlgmr.msra.gmra.mxu1 %v20642_v24  ;;  %v12826_v31 = vpop.f32.mrf.mxu1  ;;  %13101 = vmatprep.subr.bf16.mxu0 %v17157_v62  ;;  %v17226_v62 = vld [vmem:[#allocation14 + $0x11c4] ss:$16 sps:$4 sm:$0xff]  }
 0x8a9   : > { %13121 = vmatpush1.bf16.msra.mxu1 %v17173_v11  ;;  %13152 = vmatprep.mubr.bf16.mxu1 %v20646_v54  ;;  %v12827_v60 = vadd.f32 %v12826_v31, %v7543_v14  ;;  %v17197_v31 = vld [vmem:[#allocation14 + $0x12a0] ss:$16 sps:$4 sm:$0xff]  }
 0x8aa   : > { %13122 = vmatprep.subr.bf16.mxu1 %v17181_v48  ;;  %v12828_v28 = vpop.f32.mrf.mxu1  ;;  %v17218_v48 = vld [vmem:[#allocation14 + $0x11e0] ss:$16 sps:$4 sm:$0xff]  }
 0x8ab   : > { %13102 = vmatpush2.bf16.msra.mxu0 %v17155_v1  ;;  %v12829_v23 = vadd.f32 %v12828_v28, %v7547_v53  ;;  %v17224_v1 = vld [vmem:[#allocation14 + $0x11c0] ss:$16 sps:$4 sm:$0xff]   ;;  %v17232_v28 = vld [vmem:[#allocation14 + $0x11a4] ss:$16 sps:$4 sm:$0xff]  }
 0x8ac   : > { %v12830_v56 = vpop.f32.mrf.mxu1  ;;  %13103 = vmatprep.subr.bf16.mxu0 %v17163_v39  ;;  %v17203_v39 = vld [vmem:[#allocation14 + $0x1280] ss:$16 sps:$4 sm:$0xff]  }
 0x8ad   : > { %13123 = vmatpush1.bf16.msra.mxu1 %v17179_v36  ;;  %v17205_v36 = vld [vmem:[#allocation14 + $0x1284] ss:$16 sps:$4 sm:$0xff]   ;;  %v17233_v14 = vld [vmem:[#allocation14 + $0x13e0] ss:$16 sps:$4 sm:$0xff]  }
 0x8ae   : > { %13124 = vmatprep.subr.bf16.mxu1 %v17184_v12  ;;  %v12831_v43 = vpop.f32.mrf.mxu1  ;;  %v17211_v56 = vld [vmem:[#allocation14 + $0x1264] ss:$16 sps:$4 sm:$0xff]   ;;  %v17239_v53 = vld [vmem:[#allocation14 + $0x13c0] ss:$16 sps:$4 sm:$0xff]  }
 0x8af   : > { %13104 = vmatpush2.bf16.msra.mxu0 %v17161_v49  ;;  %v17209_v43 = vld [vmem:[#allocation14 + $0x1260] ss:$16 sps:$4 sm:$0xff]   ;;  %v17217_v49 = vld [vmem:[#allocation14 + $0x1244] ss:$16 sps:$4 sm:$0xff]  }
 0x8b0   : > { %13105 = vmatprep.subr.bf16.mxu0 %v17169_v2  ;;  %v17236_v2 = vld [vmem:[#allocation14 + $0x1180] ss:$16 sps:$4 sm:$0xff]  }
 0x8b1   : > { %13125 = vmatpush1.bf16.msra.mxu1 %v17182_v46  ;;  %v17230_v46 = vld [vmem:[#allocation14 + $0x11a0] ss:$16 sps:$4 sm:$0xff]  }
 0x8b2   : > { %13126 = vmatprep.subr.bf16.mxu1 %v17190_v32  ;;  %v17238_v32 = vld [vmem:[#allocation14 + $0x1184] ss:$16 sps:$4 sm:$0xff]  }
 0x8b3   : > { %13106 = vmatpush2.bf16.msra.mxu0 %v17167_v19  ;;  %v17223_v19 = vld [vmem:[#allocation14 + $0x1224] ss:$16 sps:$4 sm:$0xff]  }
 0x8b4   : > { %13107 = vmatprep.subr.bf16.mxu0 %v17172_v13  ;;  %v17242_v13 = vld [vmem:[#allocation14 + $0x1160] ss:$16 sps:$4 sm:$0xff]  }
 0x8b5   : > { %13127 = vmatpush1.bf16.msra.mxu1 %v17188_v51  ;;  %v17244_v51 = vld [vmem:[#allocation14 + $0x1164] ss:$16 sps:$4 sm:$0xff]  }
 0x8b6   : > { %13128 = vmatprep.subr.bf16.mxu1 %v17196_v8  ;;  %v17215_v8 = vld [vmem:[#allocation14 + $0x1240] ss:$16 sps:$4 sm:$0xff]  }
 0x8b7   : > { %13108 = vmatpush2.bf16.msra.mxu0 %v17170_v42  ;;  %v17229_v42 = vld [vmem:[#allocation14 + $0x1204] ss:$16 sps:$4 sm:$0xff]  }
 0x8b8   : > { %13109 = vmatprep.subr.bf16.mxu0 %v17178_v5  ;;  %v17248_v5 = vld [vmem:[#allocation14 + $0x1140] ss:$16 sps:$4 sm:$0xff]  }
 0x8b9   : > { %13129 = vmatpush1.bf16.msra.mxu1 %v17194_v29  ;;  %v17250_v29 = vld [vmem:[#allocation14 + $0x1144] ss:$16 sps:$4 sm:$0xff]  }
 0x8ba   : > { %13130 = vmatprep.subr.bf16.mxu1 %v17202_v6  ;;  %v12867_v55 = vpop.f32.mrf.mxu0  ;;  %v17221_v6 = vld [vmem:[#allocation14 + $0x1220] ss:$16 sps:$4 sm:$0xff]  }
 0x8bb   : > { %13110 = vmatpush2.bf16.msra.mxu0 %v17176_v57  ;;  %v20664_v21 = vadd.f32 %v12867_v55, %v12827_v60  ;;  %v17254_v57 = vld [vmem:[#allocation14 + $0x1120] ss:$16 sps:$4 sm:$0xff]  }
 0x8bc   : > { %13161 = vmatprep.subr.bf16.mxu0 %v17187_v47  ;;  %v12869_v11 = vpop.f32.mrf.mxu0  ;;  %v17262_v47 = vld [vmem:[#allocation14 + $0x1104] ss:$16 sps:$4 sm:$0xff]   ;;  %v17269_v60 = vld [vmem:[#allocation14 + $0x14e0] ss:$16 sps:$4 sm:$0xff]  }
 0x8bd   : > { %13131 = vmatpush1.bf16.msra.mxu1 %v17200_v27  ;;  %v20666_v58 = vadd.f32 %v12869_v11, %v12829_v23  ;;  %v17256_v27 = vld [vmem:[#allocation14 + $0x1124] ss:$16 sps:$4 sm:$0xff]  }
 0x8be   : > { %13132 = vmatprep.subr.bf16.mxu1 %v17208_v17  ;;  %13112 = vmatmul.mubr.bf16.vlgmr.msra.gmra.mxu0 %v20656_v15  ;;  %v12871_v52 = vpop.f32.mrf.mxu0  ;;  %v17235_v17 = vld [vmem:[#allocation14 + $0x13e4] ss:$16 sps:$4 sm:$0xff]  }
 0x8bf   : > { %13162 = vmatpush1.bf16.msra.mxu0 %v17185_v30  ;;  %13193 = vmatprep.mubr.bf16.mxu0 %v20660_v7  ;;  %v17271_v30 = vld [vmem:[#allocation14 + $0x14e4] ss:$16 sps:$4 sm:$0xff]  }
 0x8c0   : > { %13163 = vmatprep.subr.bf16.mxu0 %v17193_v61  ;;  %v12872_v12 = vpop.f32.mrf.mxu0  ;;  %v17247_v61 = vld [vmem:[#allocation14 + $0x13a4] ss:$16 sps:$4 sm:$0xff]  }
 0x8c1   : > { %13133 = vmatpush1.bf16.msra.mxu1 %v17206_v59  ;;  %v17241_v59 = vld [vmem:[#allocation14 + $0x13c4] ss:$16 sps:$4 sm:$0xff]   ;;  %v17251_v12 = vld [vmem:[#allocation14 + $0x1380] ss:$16 sps:$4 sm:$0xff]  }
 0x8c2   : > { %13134 = vmatprep.subr.bf16.mxu1 %v17214_v4  ;;  %v17260_v4 = vld [vmem:[#allocation14 + $0x1100] ss:$16 sps:$4 sm:$0xff]   ;;  %v20670_v23 = vld [vmem:[#allocation7 + $0x68] sm:$0xff] }
 0x8c3   : > { %13164 = vmatpush1.bf16.msra.mxu0 %v17191_v33  ;;  %v17245_v33 = vld [vmem:[#allocation14 + $0x13a0] ss:$16 sps:$4 sm:$0xff]   ;;  %v17253_v11 = vld [vmem:[#allocation14 + $0x1384] ss:$16 sps:$4 sm:$0xff]  }
 0x8c4   : > { %13165 = vmatprep.subr.bf16.mxu0 %v17199_v45  ;;  %v20674_v45 = vcombine.high %v20670_v23, %v20670_v23 }
 0x8c5   : > { %13135 = vmatpush1.bf16.msra.mxu1 %v17212_v37  ;;  %v18330_v37 = vld [vmem:[#allocation7 + $0x40] sm:$0xff] }
 0x8c6   : > { %13136 = vmatprep.subr.bf16.mxu1 %v17220_v18  ;;  %v20668_v55 = vcombine.low %v18330_v37, %v18330_v37  ;;  %v17277_v18 = vld [vmem:[#allocation14 + $0x14c4] ss:$16 sps:$4 sm:$0xff]  }
 0x8c7   : > { %13166 = vmatpush1.bf16.msra.mxu0 %v17197_v31 }
 0x8c8   : > { %13167 = vmatprep.subr.bf16.mxu0 %v17205_v36  ;;  %v17280_v36 = vld [vmem:[#allocation14 + $0x14a4] ss:$16 sps:$4 sm:$0xff]  }
 0x8c9   : > { %13137 = vmatpush2.bf16.msra.mxu1 %v17218_v48 }
 0x8ca   : > { %13138 = vmatprep.subr.bf16.mxu1 %v17226_v62  ;;  %v17275_v62 = vld [vmem:[#allocation14 + $0x14c0] ss:$16 sps:$4 sm:$0xff]  }
 0x8cb   : > { %13168 = vmatpush1.bf16.msra.mxu0 %v17203_v39 }
 0x8cc   : > { %13169 = vmatprep.subr.bf16.mxu0 %v17211_v56  ;;  %v17278_v56 = vld [vmem:[#allocation14 + $0x14a0] ss:$16 sps:$4 sm:$0xff]  }
 0x8cd   : > { %13139 = vmatpush2.bf16.msra.mxu1 %v17224_v1 }
 0x8ce   : > { %13140 = vmatprep.subr.bf16.mxu1 %v17232_v28  ;;  %v17259_v28 = vld [vmem:[#allocation14 + $0x1364] ss:$16 sps:$4 sm:$0xff]  }
 0x8cf   : > { %13170 = vmatpush1.bf16.msra.mxu0 %v17209_v43  ;;  %v17265_v43 = vld [vmem:[#allocation14 + $0x1344] ss:$16 sps:$4 sm:$0xff]  }
 0x8d0   : > { %13171 = vmatprep.subr.bf16.mxu0 %v17217_v49  ;;  %v17284_v49 = vld [vmem:[#allocation14 + $0x1480] ss:$16 sps:$4 sm:$0xff]  }
 0x8d1   : > { %13141 = vmatpush2.bf16.msra.mxu1 %v17230_v46 }
 0x8d2   : > { %13142 = vmatprep.subr.bf16.mxu1 %v17238_v32  ;;  %v17257_v32 = vld [vmem:[#allocation14 + $0x1360] ss:$16 sps:$4 sm:$0xff]  }
 0x8d3   : > { %13172 = vmatpush1.bf16.msra.mxu0 %v17215_v8  ;;  %v17290_v8 = vld [vmem:[#allocation14 + $0x1460] ss:$16 sps:$4 sm:$0xff]  }
 0x8d4   : > { %13173 = vmatprep.subr.bf16.mxu0 %v17223_v19  ;;  %v17298_v19 = vld [vmem:[#allocation14 + $0x1444] ss:$16 sps:$4 sm:$0xff]  }
 0x8d5   : > { %13143 = vmatpush2.bf16.msra.mxu1 %v17236_v2  ;;  %v17292_v2 = vld [vmem:[#allocation14 + $0x1464] ss:$16 sps:$4 sm:$0xff]  }
 0x8d6   : > { %13144 = vmatprep.subr.bf16.mxu1 %v17244_v51  ;;  %v17263_v51 = vld [vmem:[#allocation14 + $0x1340] ss:$16 sps:$4 sm:$0xff]  }
 0x8d7   : > { %13174 = vmatpush1.bf16.msra.mxu0 %v17221_v6  ;;  %v17296_v6 = vld [vmem:[#allocation14 + $0x1440] ss:$16 sps:$4 sm:$0xff]  }
 0x8d8   : > { %13175 = vmatprep.subr.bf16.mxu0 %v17229_v42  ;;  %v17304_v42 = vld [vmem:[#allocation14 + $0x1424] ss:$16 sps:$4 sm:$0xff]  }
 0x8d9   : > { %13145 = vmatpush2.bf16.msra.mxu1 %v17242_v13  ;;  %v17266_v13 = vld [vmem:[#allocation14 + $0x1320] ss:$16 sps:$4 sm:$0xff]  }
 0x8da   : > { %13146 = vmatprep.subr.bf16.mxu1 %v17250_v29  ;;  %v17274_v29 = vld [vmem:[#allocation14 + $0x1304] ss:$16 sps:$4 sm:$0xff]  }
 0x8db   : > { %13176 = vmatpush1.bf16.msra.mxu0 %v17227_v41  ;;  %v17302_v41 = vld [vmem:[#allocation14 + $0x1420] ss:$16 sps:$4 sm:$0xff]  }
 0x8dc   : > { %13177 = vmatprep.subr.bf16.mxu0 %v17235_v17  ;;  %v17310_v17 = vld [vmem:[#allocation14 + $0x1404] ss:$16 sps:$4 sm:$0xff]  }
 0x8dd   : > { %13147 = vmatpush2.bf16.msra.mxu1 %v17248_v5  ;;  %v17272_v5 = vld [vmem:[#allocation14 + $0x1300] ss:$16 sps:$4 sm:$0xff]  }
 0x8de   : > { %13148 = vmatprep.subr.bf16.mxu1 %v17256_v27  ;;  %v17283_v27 = vld [vmem:[#allocation14 + $0x16e4] ss:$16 sps:$4 sm:$0xff]  }
 0x8df   : > { %13178 = vmatpush2.bf16.msra.mxu0 %v17233_v14 }
 0x8e0   : > { %13179 = vmatprep.subr.bf16.mxu0 %v17241_v59  ;;  %v17289_v59 = vld [vmem:[#allocation14 + $0x16c4] ss:$16 sps:$4 sm:$0xff]  }
 0x8e1   : > { %13149 = vmatpush2.bf16.msra.mxu1 %v17254_v57  ;;  %v17281_v57 = vld [vmem:[#allocation14 + $0x16e0] ss:$16 sps:$4 sm:$0xff]  }
 0x8e2   : > { %13150 = vmatprep.subr.bf16.mxu1 %v17262_v47  ;;  %v18332_v47 = vld [vmem:[#allocation7 + $0x30] sm:$0xff] }
 0x8e3   : > { %13180 = vmatpush2.bf16.msra.mxu0 %v17239_v53  ;;  %v20682_v14 = vcombine.low %v18332_v47, %v18332_v47  ;;  %v17308_v53 = vld [vmem:[#allocation14 + $0x1400] ss:$16 sps:$4 sm:$0xff]  }
 0x8e4   : > { %13181 = vmatprep.subr.bf16.mxu0 %v17247_v61  ;;  %v17329_v47 = vld [vmem:[#allocation14 + $0x17e0] ss:$16 sps:$4 sm:$0xff]  }
 0x8e5   : > { %13151 = vmatpush2.bf16.msra.mxu1 %v17260_v4  ;;  %v20684_v4 = vld [vmem:[#allocation7 + $0x28] sm:$0xff] }
 0x8e6   : > { %13202 = vmatprep.subr.bf16.mxu1 %v17271_v30  ;;  %v20688_v30 = vcombine.high %v20684_v4, %v20684_v4 }
 0x8e7   : > { %13182 = vmatpush2.bf16.msra.mxu0 %v17245_v33 }
 0x8e8   : > { %v12908_v48 = vpop.f32.mrf.mxu1  ;;  %13153 = vmatmul.mubr.bf16.vlgmr.msra.gmra.mxu1 %v20668_v55  ;;  %13183 = vmatprep.subr.bf16.mxu0 %v17253_v11  ;;  %v17295_v11 = vld [vmem:[#allocation14 + $0x16a4] ss:$16 sps:$4 sm:$0xff]  }
 0x8e9   : > { %v20678_v52 = vadd.f32 %v12908_v48, %v20664_v21  ;;  %13203 = vmatpush1.bf16.msra.mxu1 %v17269_v60  ;;  %13234 = vmatprep.mubr.bf16.mxu1 %v20674_v45  ;;  %v17286_v21 = vld [vmem:[#allocation14 + $0x1484] ss:$16 sps:$4 sm:$0xff]  }
 0x8ea   : > { %v12910_v31 = vpop.f32.mrf.mxu1  ;;  %13204 = vmatprep.subr.bf16.mxu1 %v17277_v18  ;;  %v17316_v60 = vld [vmem:[#allocation14 + $0x15e4] ss:$16 sps:$4 sm:$0xff]   ;;  %v17287_v18 = vld [vmem:[#allocation14 + $0x16c0] ss:$16 sps:$4 sm:$0xff]  }
 0x8eb   : > { %v12911_v1 = vadd.f32 %v12910_v31, %v20666_v58  ;;  %13184 = vmatpush2.bf16.msra.mxu0 %v17251_v12  ;;  %v17268_v58 = vld [vmem:[#allocation14 + $0x1324] ss:$16 sps:$4 sm:$0xff]   ;;  %v17293_v12 = vld [vmem:[#allocation14 + $0x16a0] ss:$16 sps:$4 sm:$0xff]  }
 0x8ec   : > { %v12912_v39 = vpop.f32.mrf.mxu1  ;;  %13185 = vmatprep.subr.bf16.mxu0 %v17259_v28 }
 0x8ed   : > { %13205 = vmatpush1.bf16.msra.mxu1 %v17275_v62  ;;  %v17314_v62 = vld [vmem:[#allocation14 + $0x15e0] ss:$16 sps:$4 sm:$0xff]  }
 0x8ee   : > { %v12913_v46 = vpop.f32.mrf.mxu1  ;;  %13206 = vmatprep.subr.bf16.mxu1 %v17280_v36  ;;  %v17322_v36 = vld [vmem:[#allocation14 + $0x15c4] ss:$16 sps:$4 sm:$0xff]   ;;  %v17320_v39 = vld [vmem:[#allocation14 + $0x15c0] ss:$16 sps:$4 sm:$0xff]  }
 0x8ef   : > { %13186 = vmatpush2.bf16.msra.mxu0 %v17257_v32  ;;  %v17299_v46 = vld [vmem:[#allocation14 + $0x1680] ss:$16 sps:$4 sm:$0xff]   ;;  %v17334_v32 = vld [vmem:[#allocation14 + $0x1584] ss:$16 sps:$4 sm:$0xff]  }
 0x8f0   : > { %13187 = vmatprep.subr.bf16.mxu0 %v17265_v43  ;;  %v17305_v43 = vld [vmem:[#allocation14 + $0x1660] ss:$16 sps:$4 sm:$0xff]  }
 0x8f1   : > { %13207 = vmatpush1.bf16.msra.mxu1 %v17278_v56  ;;  %v17328_v56 = vld [vmem:[#allocation14 + $0x15a4] ss:$16 sps:$4 sm:$0xff]  }
 0x8f2   : > { %13208 = vmatprep.subr.bf16.mxu1 %v17286_v21  ;;  %v17307_v21 = vld [vmem:[#allocation14 + $0x1664] ss:$16 sps:$4 sm:$0xff]  }
 0x8f3   : > { %13188 = vmatpush2.bf16.msra.mxu0 %v17263_v51  ;;  %v17340_v51 = vld [vmem:[#allocation14 + $0x1564] ss:$16 sps:$4 sm:$0xff]  }
 0x8f4   : > { %13189 = vmatprep.subr.bf16.mxu0 %v17268_v58  ;;  %v17311_v58 = vld [vmem:[#allocation14 + $0x1640] ss:$16 sps:$4 sm:$0xff]  }
 0x8f5   : > { %13209 = vmatpush1.bf16.msra.mxu1 %v17284_v49  ;;  %v17313_v49 = vld [vmem:[#allocation14 + $0x1644] ss:$16 sps:$4 sm:$0xff]  }
 0x8f6   : > { %13210 = vmatprep.subr.bf16.mxu1 %v17292_v2  ;;  %v17332_v2 = vld [vmem:[#allocation14 + $0x1580] ss:$16 sps:$4 sm:$0xff]  }
 0x8f7   : > { %13190 = vmatpush2.bf16.msra.mxu0 %v17266_v13  ;;  %v17346_v13 = vld [vmem:[#allocation14 + $0x1544] ss:$16 sps:$4 sm:$0xff]  }
 0x8f8   : > { %13191 = vmatprep.subr.bf16.mxu0 %v17274_v29  ;;  %v17317_v29 = vld [vmem:[#allocation14 + $0x1620] ss:$16 sps:$4 sm:$0xff]  }
 0x8f9   : > { %13211 = vmatpush1.bf16.msra.mxu1 %v17290_v8  ;;  %v17319_v8 = vld [vmem:[#allocation14 + $0x1624] ss:$16 sps:$4 sm:$0xff]  }
 0x8fa   : > { %13212 = vmatprep.subr.bf16.mxu1 %v17298_v19  ;;  %v17338_v19 = vld [vmem:[#allocation14 + $0x1560] ss:$16 sps:$4 sm:$0xff]  }
 0x8fb   : > { %13192 = vmatpush2.bf16.msra.mxu0 %v17272_v5  ;;  %v17352_v5 = vld [vmem:[#allocation14 + $0x1524] ss:$16 sps:$4 sm:$0xff]  }
 0x8fc   : > { %13243 = vmatprep.subr.bf16.mxu0 %v17283_v27  ;;  %v17323_v27 = vld [vmem:[#allocation14 + $0x1600] ss:$16 sps:$4 sm:$0xff]  }
 0x8fd   : > { %13213 = vmatpush1.bf16.msra.mxu1 %v17296_v6  ;;  %v17325_v6 = vld [vmem:[#allocation14 + $0x1604] ss:$16 sps:$4 sm:$0xff]  }
 0x8fe   : > { %13214 = vmatprep.subr.bf16.mxu1 %v17304_v42  ;;  %v12949_v61 = vpop.f32.mrf.mxu0  ;;  %13194 = vmatmul.mubr.bf16.vlgmr.msra.gmra.mxu0 %v20682_v14  ;;  %v17344_v42 = vld [vmem:[#allocation14 + $0x1540] ss:$16 sps:$4 sm:$0xff]  }
 0x8ff   : > { %v20692_v37 = vadd.f32 %v12949_v61, %v20678_v52  ;;  %13244 = vmatpush1.bf16.msra.mxu0 %v17281_v57  ;;  %13275 = vmatprep.mubr.bf16.mxu0 %v20688_v30  ;;  %v17301_v52 = vld [vmem:[#allocation14 + $0x1684] ss:$16 sps:$4 sm:$0xff]  }
 0x900   : > { %v12951_v33 = vpop.f32.mrf.mxu0  ;;  %13245 = vmatprep.subr.bf16.mxu0 %v17289_v59  ;;  %v17358_v57 = vld [vmem:[#allocation14 + $0x1504] ss:$16 sps:$4 sm:$0xff]  }
 0x901   : > { %13215 = vmatpush1.bf16.msra.mxu1 %v17302_v41  ;;  %v20695_v48 = vadd.f32 %v12951_v33, %v12911_v1  ;;  %v17326_v1 = vld [vmem:[#allocation14 + $0x15a0] ss:$16 sps:$4 sm:$0xff]   ;;  %v17331_v41 = vld [vmem:[#allocation14 + $0x17e4] ss:$16 sps:$4 sm:$0xff]  }
 0x902   : > { %13216 = vmatprep.subr.bf16.mxu1 %v17310_v17  ;;  %v12953_v31 = vpop.f32.mrf.mxu0  ;;  %v17350_v17 = vld [vmem:[#allocation14 + $0x1520] ss:$16 sps:$4 sm:$0xff]   ;;  %v17337_v59 = vld [vmem:[#allocation14 + $0x17c4] ss:$16 sps:$4 sm:$0xff]  }
 0x903   : > { %13246 = vmatpush1.bf16.msra.mxu0 %v17287_v18  ;;  %v17367_v61 = vld [vmem:[#allocation14 + $0x18e4] ss:$16 sps:$4 sm:$0xff]   ;;  %v17365_v33 = vld [vmem:[#allocation14 + $0x18e0] ss:$16 sps:$4 sm:$0xff]  }
 0x904   : > { %v12954_v28 = vpop.f32.mrf.mxu0  ;;  %13247 = vmatprep.subr.bf16.mxu0 %v17295_v11  ;;  %v17343_v18 = vld [vmem:[#allocation14 + $0x17a4] ss:$16 sps:$4 sm:$0xff]   ;;  %v20699_v11 = vcombine.low %v20670_v23, %v20670_v23  ;;  %v17341_v31 = vld [vmem:[#allocation14 + $0x17a0] ss:$16 sps:$4 sm:$0xff]  }
 0x905   : > { %13217 = vmatpush1.bf16.msra.mxu1 %v17308_v53  ;;  %v17356_v53 = vld [vmem:[#allocation14 + $0x1500] ss:$16 sps:$4 sm:$0xff]   ;;  %v17349_v28 = vld [vmem:[#allocation14 + $0x1784] ss:$16 sps:$4 sm:$0xff]  }
 0x906   : > { %13218 = vmatprep.subr.bf16.mxu1 %v17316_v60  ;;  %v17335_v60 = vld [vmem:[#allocation14 + $0x17c0] ss:$16 sps:$4 sm:$0xff]  }
 0x907   : > { %13248 = vmatpush1.bf16.msra.mxu0 %v17293_v12  ;;  %v17371_v23 = vld [vmem:[#allocation14 + $0x18c0] ss:$16 sps:$4 sm:$0xff]  }
 0x908   : > { %13249 = vmatprep.subr.bf16.mxu0 %v17301_v52 }
 0x909   : > { %13219 = vmatpush2.bf16.msra.mxu1 %v17314_v62  ;;  %v17373_v62 = vld [vmem:[#allocation14 + $0x18c4] ss:$16 sps:$4 sm:$0xff]  }
 0x90a   : > { %13220 = vmatprep.subr.bf16.mxu1 %v17322_v36  ;;  %v20701_v36 = vld [vmem:[#allocation7 + $0x60] sm:$0xff] }
 0x90b   : > { %13250 = vmatpush1.bf16.msra.mxu0 %v17299_v46  ;;  %v20705_v12 = vcombine.high %v20701_v36, %v20701_v36  ;;  %v17376_v46 = vld [vmem:[#allocation14 + $0x18a4] ss:$16 sps:$4 sm:$0xff]  }
 0x90c   : > { %13251 = vmatprep.subr.bf16.mxu0 %v17307_v21  ;;  %v17347_v21 = vld [vmem:[#allocation14 + $0x1780] ss:$16 sps:$4 sm:$0xff]  }
 0x90d   : > { %13221 = vmatpush2.bf16.msra.mxu1 %v17320_v39 }
 0x90e   : > { %13222 = vmatprep.subr.bf16.mxu1 %v17328_v56 }
 0x90f   : > { %13252 = vmatpush1.bf16.msra.mxu0 %v17305_v43 }
 0x910   : > { %13253 = vmatprep.subr.bf16.mxu0 %v17313_v49  ;;  %v17374_v49 = vld [vmem:[#allocation14 + $0x18a0] ss:$16 sps:$4 sm:$0xff]  }
 0x911   : > { %13223 = vmatpush2.bf16.msra.mxu1 %v17326_v1 }
 0x912   : > { %13224 = vmatprep.subr.bf16.mxu1 %v17334_v32  ;;  %v17355_v32 = vld [vmem:[#allocation14 + $0x1764] ss:$16 sps:$4 sm:$0xff]  }
 0x913   : > { %13254 = vmatpush1.bf16.msra.mxu0 %v17311_v58  ;;  %v17361_v58 = vld [vmem:[#allocation14 + $0x1744] ss:$16 sps:$4 sm:$0xff]  }
 0x914   : > { %13255 = vmatprep.subr.bf16.mxu0 %v17319_v8  ;;  %v17382_v8 = vld [vmem:[#allocation14 + $0x1880] ss:$16 sps:$4 sm:$0xff]  }
 0x915   : > { %13225 = vmatpush2.bf16.msra.mxu1 %v17332_v2 }
 0x916   : > { %13226 = vmatprep.subr.bf16.mxu1 %v17340_v51  ;;  %v17353_v51 = vld [vmem:[#allocation14 + $0x1760] ss:$16 sps:$4 sm:$0xff]  }
 0x917   : > { %13256 = vmatpush1.bf16.msra.mxu0 %v17317_v29  ;;  %v17388_v29 = vld [vmem:[#allocation14 + $0x1860] ss:$16 sps:$4 sm:$0xff]  }
 0x918   : > { %13257 = vmatprep.subr.bf16.mxu0 %v17325_v6  ;;  %v17396_v6 = vld [vmem:[#allocation14 + $0x1844] ss:$16 sps:$4 sm:$0xff]  }
 0x919   : > { %13227 = vmatpush2.bf16.msra.mxu1 %v17338_v19  ;;  %v17390_v19 = vld [vmem:[#allocation14 + $0x1864] ss:$16 sps:$4 sm:$0xff]  }
 0x91a   : > { %13228 = vmatprep.subr.bf16.mxu1 %v17346_v13  ;;  %v17359_v13 = vld [vmem:[#allocation14 + $0x1740] ss:$16 sps:$4 sm:$0xff]  }
 0x91b   : > { %13258 = vmatpush1.bf16.msra.mxu0 %v17323_v27  ;;  %v17394_v27 = vld [vmem:[#allocation14 + $0x1840] ss:$16 sps:$4 sm:$0xff]  }
 0x91c   : > { %13259 = vmatprep.subr.bf16.mxu0 %v17331_v41  ;;  %v17402_v41 = vld [vmem:[#allocation14 + $0x1824] ss:$16 sps:$4 sm:$0xff]  }
 0x91d   : > { %13229 = vmatpush2.bf16.msra.mxu1 %v17344_v42  ;;  %v17362_v42 = vld [vmem:[#allocation14 + $0x1720] ss:$16 sps:$4 sm:$0xff]  }
 0x91e   : > { %13230 = vmatprep.subr.bf16.mxu1 %v17352_v5  ;;  %v17370_v5 = vld [vmem:[#allocation14 + $0x1704] ss:$16 sps:$4 sm:$0xff]  }
 0x91f   : > { %13260 = vmatpush2.bf16.msra.mxu0 %v17329_v47  ;;  %v17400_v47 = vld [vmem:[#allocation14 + $0x1820] ss:$16 sps:$4 sm:$0xff]  }
 0x920   : > { %13261 = vmatprep.subr.bf16.mxu0 %v17337_v59  ;;  %v20713_v59 = vld [vmem:[#allocation7 + $0x48] sm:$0xff] }
 0x921   : > { %13231 = vmatpush2.bf16.msra.mxu1 %v17350_v17  ;;  %v17368_v17 = vld [vmem:[#allocation14 + $0x1700] ss:$16 sps:$4 sm:$0xff]  }
 0x922   : > { %13232 = vmatprep.subr.bf16.mxu1 %v17358_v57  ;;  %v17379_v57 = vld [vmem:[#allocation14 + $0x1ae4] ss:$16 sps:$4 sm:$0xff]  }
 0x923   : > { %13262 = vmatpush2.bf16.msra.mxu0 %v17335_v60  ;;  %v20717_v60 = vcombine.low %v20684_v4, %v20684_v4  ;;  %v17385_v4 = vld [vmem:[#allocation14 + $0x1ac0] ss:$16 sps:$4 sm:$0xff]  }
 0x924   : > { %13263 = vmatprep.subr.bf16.mxu0 %v17343_v18  ;;  %v17387_v18 = vld [vmem:[#allocation14 + $0x1ac4] ss:$16 sps:$4 sm:$0xff]  }
 0x925   : > { %13233 = vmatpush2.bf16.msra.mxu1 %v17356_v53  ;;  %v17408_v53 = vld [vmem:[#allocation14 + $0x1804] ss:$16 sps:$4 sm:$0xff]  }
 0x926   : > { %13284 = vmatprep.subr.bf16.mxu1 %v17367_v61  ;;  %v17377_v61 = vld [vmem:[#allocation14 + $0x1ae0] ss:$16 sps:$4 sm:$0xff]  }
 0x927   : > { %13264 = vmatpush2.bf16.msra.mxu0 %v17341_v31 }
 0x928   : > { %v12990_v52 = vpop.f32.mrf.mxu1  ;;  %13235 = vmatmul.mubr.bf16.vlgmr.msra.gmra.mxu1 %v20699_v11  ;;  %13265 = vmatprep.subr.bf16.mxu0 %v17349_v28  ;;  %v17414_v28 = vld [vmem:[#allocation14 + $0x19e4] ss:$16 sps:$4 sm:$0xff]  }
 0x929   : > { %v20709_v39 = vadd.f32 %v12990_v52, %v20692_v37  ;;  %13285 = vmatpush1.bf16.msra.mxu1 %v17365_v33  ;;  %13316 = vmatprep.mubr.bf16.mxu1 %v20705_v12  ;;  %v17384_v37 = vld [vmem:[#allocation14 + $0x1884] ss:$16 sps:$4 sm:$0xff]   ;;  %v20721_v33 = vcombine.high %v20713_v59, %v20713_v59 }
 0x92a   : > { %v12992_v56 = vpop.f32.mrf.mxu1  ;;  %13286 = vmatprep.subr.bf16.mxu1 %v17373_v62  ;;  %v17406_v62 = vld [vmem:[#allocation14 + $0x1800] ss:$16 sps:$4 sm:$0xff]  }
 0x92b   : > { %v12993_v1 = vadd.f32 %v12992_v56, %v20695_v48  ;;  %13266 = vmatpush2.bf16.msra.mxu0 %v17347_v21  ;;  %v17364_v48 = vld [vmem:[#allocation14 + $0x1724] ss:$16 sps:$4 sm:$0xff]   ;;  %v17412_v21 = vld [vmem:[#allocation14 + $0x19e0] ss:$16 sps:$4 sm:$0xff]  }
 0x92c   : > { %v12994_v43 = vpop.f32.mrf.mxu1  ;;  %13267 = vmatprep.subr.bf16.mxu0 %v17355_v32  ;;  %v17393_v56 = vld [vmem:[#allocation14 + $0x1aa4] ss:$16 sps:$4 sm:$0xff]  }
 0x92d   : > { %13287 = vmatpush1.bf16.msra.mxu1 %v17371_v23  ;;  %v17420_v43 = vld [vmem:[#allocation14 + $0x19c4] ss:$16 sps:$4 sm:$0xff]  }
 0x92e   : > { %v12995_v2 = vpop.f32.mrf.mxu1  ;;  %13288 = vmatprep.subr.bf16.mxu1 %v17376_v46 }
 0x92f   : > { %13268 = vmatpush2.bf16.msra.mxu0 %v17353_v51  ;;  %v17426_v51 = vld [vmem:[#allocation14 + $0x19a4] ss:$16 sps:$4 sm:$0xff]  }
 0x930   : > { %13269 = vmatprep.subr.bf16.mxu0 %v17361_v58  ;;  %v17397_v58 = vld [vmem:[#allocation14 + $0x1a80] ss:$16 sps:$4 sm:$0xff]  }
 0x931   : > { %13289 = vmatpush1.bf16.msra.mxu1 %v17374_v49  ;;  %v17391_v49 = vld [vmem:[#allocation14 + $0x1aa0] ss:$16 sps:$4 sm:$0xff]  }
 0x932   : > { %13290 = vmatprep.subr.bf16.mxu1 %v17384_v37  ;;  %v17418_v37 = vld [vmem:[#allocation14 + $0x19c0] ss:$16 sps:$4 sm:$0xff]  }
 0x933   : > { %13270 = vmatpush2.bf16.msra.mxu0 %v17359_v13  ;;  %v17403_v13 = vld [vmem:[#allocation14 + $0x1a60] ss:$16 sps:$4 sm:$0xff]  }
 0x934   : > { %13271 = vmatprep.subr.bf16.mxu0 %v17364_v48  ;;  %v17411_v48 = vld [vmem:[#allocation14 + $0x1a44] ss:$16 sps:$4 sm:$0xff]  }
 0x935   : > { %13291 = vmatpush1.bf16.msra.mxu1 %v17382_v8  ;;  %v17405_v8 = vld [vmem:[#allocation14 + $0x1a64] ss:$16 sps:$4 sm:$0xff]  }
 0x936   : > { %13292 = vmatprep.subr.bf16.mxu1 %v17390_v19  ;;  %v17432_v19 = vld [vmem:[#allocation14 + $0x1984] ss:$16 sps:$4 sm:$0xff]  }
 0x937   : > { %13272 = vmatpush2.bf16.msra.mxu0 %v17362_v42  ;;  %v17409_v42 = vld [vmem:[#allocation14 + $0x1a40] ss:$16 sps:$4 sm:$0xff]  }
 0x938   : > { %13273 = vmatprep.subr.bf16.mxu0 %v17370_v5  ;;  %v17417_v5 = vld [vmem:[#allocation14 + $0x1a24] ss:$16 sps:$4 sm:$0xff]  }
 0x939   : > { %13293 = vmatpush1.bf16.msra.mxu1 %v17388_v29  ;;  %v17430_v29 = vld [vmem:[#allocation14 + $0x1980] ss:$16 sps:$4 sm:$0xff]  }
 0x93a   : > { %13294 = vmatprep.subr.bf16.mxu1 %v17396_v6  ;;  %v17438_v6 = vld [vmem:[#allocation14 + $0x1964] ss:$16 sps:$4 sm:$0xff]  }
 0x93b   : > { %13274 = vmatpush2.bf16.msra.mxu0 %v17368_v17  ;;  %v17415_v17 = vld [vmem:[#allocation14 + $0x1a20] ss:$16 sps:$4 sm:$0xff]  }
 0x93c   : > { %13325 = vmatprep.subr.bf16.mxu0 %v17379_v57  ;;  %v17423_v57 = vld [vmem:[#allocation14 + $0x1a04] ss:$16 sps:$4 sm:$0xff]  }
 0x93d   : > { %13295 = vmatpush1.bf16.msra.mxu1 %v17394_v27  ;;  %v17436_v27 = vld [vmem:[#allocation14 + $0x1960] ss:$16 sps:$4 sm:$0xff]  }
 0x93e   : > { %13296 = vmatprep.subr.bf16.mxu1 %v17402_v41  ;;  %v13031_v31 = vpop.f32.mrf.mxu0  ;;  %13276 = vmatmul.mubr.bf16.vlgmr.msra.gmra.mxu0 %v20717_v60  ;;  %v17444_v41 = vld [vmem:[#allocation14 + $0x1944] ss:$16 sps:$4 sm:$0xff]  }
 0x93f   : > { %v20725_v52 = vadd.f32 %v13031_v31, %v20709_v39  ;;  %13326 = vmatpush1.bf16.msra.mxu0 %v17377_v61  ;;  %13357 = vmatprep.mubr.bf16.mxu0 %v20721_v33  ;;  %v17399_v39 = vld [vmem:[#allocation14 + $0x1a84] ss:$16 sps:$4 sm:$0xff]   ;;  %v17421_v61 = vld [vmem:[#allocation14 + $0x1a00] ss:$16 sps:$4 sm:$0xff]  }
 0x940   : > { %v13033_v23 = vpop.f32.mrf.mxu0  ;;  %13327 = vmatprep.subr.bf16.mxu0 %v17387_v18  ;;  %v17429_v18 = vld [vmem:[#allocation14 + $0x1be4] ss:$16 sps:$4 sm:$0xff]  }
 0x941   : > { %13297 = vmatpush1.bf16.msra.mxu1 %v17400_v47  ;;  %v20728_v46 = vadd.f32 %v13033_v23, %v12993_v1  ;;  %v17424_v1 = vld [vmem:[#allocation14 + $0x19a0] ss:$16 sps:$4 sm:$0xff]   ;;  %v17456_v31 = vld [vmem:[#allocation14 + $0x1904] ss:$16 sps:$4 sm:$0xff]  }
 0x942   : > { %13298 = vmatprep.subr.bf16.mxu1 %v17408_v53  ;;  %v13035_v32 = vpop.f32.mrf.mxu0  ;;  %v17442_v47 = vld [vmem:[#allocation14 + $0x1940] ss:$16 sps:$4 sm:$0xff]   ;;  %v17450_v53 = vld [vmem:[#allocation14 + $0x1924] ss:$16 sps:$4 sm:$0xff]  }
 0x943   : > { %13328 = vmatpush1.bf16.msra.mxu0 %v17385_v4  ;;  %v17435_v4 = vld [vmem:[#allocation14 + $0x1bc4] ss:$16 sps:$4 sm:$0xff]   ;;  %v17454_v23 = vld [vmem:[#allocation14 + $0x1900] ss:$16 sps:$4 sm:$0xff]  }
 0x944   : > { %v13036_v2 = vpop.f32.mrf.mxu0  ;;  %13329 = vmatprep.subr.bf16.mxu0 %v17393_v56  ;;  %v17465_v56 = vld [vmem:[#allocation14 + $0x1ce4] ss:$16 sps:$4 sm:$0xff]  }
 0x945   : > { %13299 = vmatpush1.bf16.msra.mxu1 %v17406_v62  ;;  %v17448_v62 = vld [vmem:[#allocation14 + $0x1920] ss:$16 sps:$4 sm:$0xff]   ;;  %v17441_v32 = vld [vmem:[#allocation14 + $0x1ba4] ss:$16 sps:$4 sm:$0xff]  }
 0x946   : > { %13300 = vmatprep.subr.bf16.mxu1 %v17414_v28  ;;  %v17427_v28 = vld [vmem:[#allocation14 + $0x1be0] ss:$16 sps:$4 sm:$0xff]   ;;  %v17471_v2 = vld [vmem:[#allocation14 + $0x1cc4] ss:$16 sps:$4 sm:$0xff]  }
 0x947   : > { %13330 = vmatpush1.bf16.msra.mxu0 %v17391_v49  ;;  %v20732_v49 = vcombine.low %v20701_v36, %v20701_v36  ;;  %v17469_v36 = vld [vmem:[#allocation14 + $0x1cc0] ss:$16 sps:$4 sm:$0xff]  }
 0x948   : > { %13331 = vmatprep.subr.bf16.mxu0 %v17399_v39  ;;  %v17439_v39 = vld [vmem:[#allocation14 + $0x1ba0] ss:$16 sps:$4 sm:$0xff]  }
 0x949   : > { %13301 = vmatpush2.bf16.msra.mxu1 %v17412_v21  ;;  %v17433_v21 = vld [vmem:[#allocation14 + $0x1bc0] ss:$16 sps:$4 sm:$0xff]  }
 0x94a   : > { %13302 = vmatprep.subr.bf16.mxu1 %v17420_v43  ;;  %v17463_v43 = vld [vmem:[#allocation14 + $0x1ce0] ss:$16 sps:$4 sm:$0xff]  }
 0x94b   : > { %13332 = vmatpush1.bf16.msra.mxu0 %v17397_v58 }
 0x94c   : > { %13333 = vmatprep.subr.bf16.mxu0 %v17405_v8 }
 0x94d   : > { %13303 = vmatpush2.bf16.msra.mxu1 %v17418_v37  ;;  %v20736_v37 = vcombine.high %v20633_v10, %v20633_v10 }
 0x94e   : > { %13304 = vmatprep.subr.bf16.mxu1 %v17426_v51  ;;  %v17447_v51 = vld [vmem:[#allocation14 + $0x1b84] ss:$16 sps:$4 sm:$0xff]  }
 0x94f   : > { %13334 = vmatpush1.bf16.msra.mxu0 %v17403_v13  ;;  %v17445_v13 = vld [vmem:[#allocation14 + $0x1b80] ss:$16 sps:$4 sm:$0xff]  }
 0x950   : > { %13335 = vmatprep.subr.bf16.mxu0 %v17411_v48  ;;  %v17453_v48 = vld [vmem:[#allocation14 + $0x1b64] ss:$16 sps:$4 sm:$0xff]  }
 0x951   : > { %13305 = vmatpush2.bf16.msra.mxu1 %v17424_v1 }
 0x952   : > { %13306 = vmatprep.subr.bf16.mxu1 %v17432_v19  ;;  %v17474_v19 = vld [vmem:[#allocation14 + $0x1ca4] ss:$16 sps:$4 sm:$0xff]  }
 0x953   : > { %13336 = vmatpush1.bf16.msra.mxu0 %v17409_v42 }
 0x954   : > { %13337 = vmatprep.subr.bf16.mxu0 %v17417_v5  ;;  %v17451_v5 = vld [vmem:[#allocation14 + $0x1b60] ss:$16 sps:$4 sm:$0xff]  }
 0x955   : > { %13307 = vmatpush2.bf16.msra.mxu1 %v17430_v29 }
 0x956   : > { %13308 = vmatprep.subr.bf16.mxu1 %v17438_v6  ;;  %v17472_v6 = vld [vmem:[#allocation14 + $0x1ca0] ss:$16 sps:$4 sm:$0xff]  }
 0x957   : > { %13338 = vmatpush1.bf16.msra.mxu0 %v17415_v17  ;;  %v17486_v17 = vld [vmem:[#allocation14 + $0x1c64] ss:$16 sps:$4 sm:$0xff]  }
 0x958   : > { %13339 = vmatprep.subr.bf16.mxu0 %v17423_v57  ;;  %v17457_v57 = vld [vmem:[#allocation14 + $0x1b40] ss:$16 sps:$4 sm:$0xff]  }
 0x959   : > { %13309 = vmatpush2.bf16.msra.mxu1 %v17436_v27  ;;  %v17459_v27 = vld [vmem:[#allocation14 + $0x1b44] ss:$16 sps:$4 sm:$0xff]  }
 0x95a   : > { %13310 = vmatprep.subr.bf16.mxu1 %v17444_v41  ;;  %v17478_v41 = vld [vmem:[#allocation14 + $0x1c80] ss:$16 sps:$4 sm:$0xff]  }
 0x95b   : > { %13340 = vmatpush1.bf16.msra.mxu0 %v17421_v61  ;;  %v17460_v61 = vld [vmem:[#allocation14 + $0x1b20] ss:$16 sps:$4 sm:$0xff]  }
 0x95c   : > { %13341 = vmatprep.subr.bf16.mxu0 %v17429_v18  ;;  %v17468_v18 = vld [vmem:[#allocation14 + $0x1b04] ss:$16 sps:$4 sm:$0xff]  }
 0x95d   : > { %13311 = vmatpush2.bf16.msra.mxu1 %v17442_v47  ;;  %v17484_v47 = vld [vmem:[#allocation14 + $0x1c60] ss:$16 sps:$4 sm:$0xff]  }
 0x95e   : > { %13312 = vmatprep.subr.bf16.mxu1 %v17450_v53  ;;  %v17492_v53 = vld [vmem:[#allocation14 + $0x1c44] ss:$16 sps:$4 sm:$0xff]  }
 0x95f   : > { %13342 = vmatpush2.bf16.msra.mxu0 %v17427_v28  ;;  %v17466_v28 = vld [vmem:[#allocation14 + $0x1b00] ss:$16 sps:$4 sm:$0xff]  }
 0x960   : > { %13343 = vmatprep.subr.bf16.mxu0 %v17435_v4  ;;  %v17477_v4 = vld [vmem:[#allocation14 + $0x1ee4] ss:$16 sps:$4 sm:$0xff]  }
 0x961   : > { %13313 = vmatpush2.bf16.msra.mxu1 %v17448_v62  ;;  %v17490_v62 = vld [vmem:[#allocation14 + $0x1c40] ss:$16 sps:$4 sm:$0xff]  }
 0x962   : > { %13314 = vmatprep.subr.bf16.mxu1 %v17456_v31  ;;  %v17498_v31 = vld [vmem:[#allocation14 + $0x1c24] ss:$16 sps:$4 sm:$0xff]  }
 0x963   : > { %13344 = vmatpush2.bf16.msra.mxu0 %v17433_v21  ;;  %v17475_v21 = vld [vmem:[#allocation14 + $0x1ee0] ss:$16 sps:$4 sm:$0xff]  }
 0x964   : > { %13345 = vmatprep.subr.bf16.mxu0 %v17441_v32  ;;  %v20746_v32 = vcombine.low %v20713_v59, %v20713_v59  ;;  %v17481_v59 = vld [vmem:[#allocation14 + $0x1ec0] ss:$16 sps:$4 sm:$0xff]  }
 0x965   : > { %13315 = vmatpush2.bf16.msra.mxu1 %v17454_v23  ;;  %v17496_v23 = vld [vmem:[#allocation14 + $0x1c20] ss:$16 sps:$4 sm:$0xff]  }
 0x966   : > { %13366 = vmatprep.subr.bf16.mxu1 %v17465_v56  ;;  %v17504_v56 = vld [vmem:[#allocation14 + $0x1c04] ss:$16 sps:$4 sm:$0xff]  }
 0x967   : > { %13346 = vmatpush2.bf16.msra.mxu0 %v17439_v39 }
 0x968   : > { %v13072_v58 = vpop.f32.mrf.mxu1  ;;  %13317 = vmatmul.mubr.bf16.vlgmr.msra.gmra.mxu1 %v20732_v49  ;;  %13347 = vmatprep.subr.bf16.mxu0 %v17447_v51  ;;  %v17502_v51 = vld [vmem:[#allocation14 + $0x1c00] ss:$16 sps:$4 sm:$0xff]  }
 0x969   : > { %v20740_v8 = vadd.f32 %v13072_v58, %v20725_v52  ;;  %13367 = vmatpush1.bf16.msra.mxu1 %v17463_v43  ;;  %13398 = vmatprep.mubr.bf16.mxu1 %v20736_v37  ;;  %v17480_v52 = vld [vmem:[#allocation14 + $0x1c84] ss:$16 sps:$4 sm:$0xff]  }
 0x96a   : > { %v13074_v1 = vpop.f32.mrf.mxu1  ;;  %13368 = vmatprep.subr.bf16.mxu1 %v17471_v2  ;;  %v17483_v43 = vld [vmem:[#allocation14 + $0x1ec4] ss:$16 sps:$4 sm:$0xff]  }
 0x96b   : > { %v13075_v10 = vadd.f32 %v13074_v1, %v20728_v46  ;;  %13348 = vmatpush2.bf16.msra.mxu0 %v17445_v13  ;;  %v17462_v46 = vld [vmem:[#allocation14 + $0x1b24] ss:$16 sps:$4 sm:$0xff]  }
 0x96c   : > { %v13076_v29 = vpop.f32.mrf.mxu1  ;;  %13349 = vmatprep.subr.bf16.mxu0 %v17453_v48  ;;  %v20748_v2 = vld [vmem:[#allocation7 + $0x50] sm:$0xff] }
 0x96d   : > { %13369 = vmatpush1.bf16.msra.mxu1 %v17469_v36  ;;  %v20752_v39 = vcombine.high %v20748_v2, %v20748_v2  ;;  %v17510_v36 = vld [vmem:[#allocation14 + $0x1de4] ss:$16 sps:$4 sm:$0xff]   ;;  %v17508_v29 = vld [vmem:[#allocation14 + $0x1de0] ss:$16 sps:$4 sm:$0xff]  }
 0x96e   : > { %v13077_v42 = vpop.f32.mrf.mxu1  ;;  %13370 = vmatprep.subr.bf16.mxu1 %v17474_v19  ;;  %v17489_v13 = vld [vmem:[#allocation14 + $0x1ea4] ss:$16 sps:$4 sm:$0xff]  }
 0x96f   : > { %13350 = vmatpush2.bf16.msra.mxu0 %v17451_v5  ;;  %v17516_v42 = vld [vmem:[#allocation14 + $0x1dc4] ss:$16 sps:$4 sm:$0xff]  }
 0x970   : > { %13351 = vmatprep.subr.bf16.mxu0 %v17459_v27  ;;  %v17514_v27 = vld [vmem:[#allocation14 + $0x1dc0] ss:$16 sps:$4 sm:$0xff]  }
 0x971   : > { %13371 = vmatpush1.bf16.msra.mxu1 %v17472_v6 }
 0x972   : > { %13372 = vmatprep.subr.bf16.mxu1 %v17480_v52  ;;  %v17487_v52 = vld [vmem:[#allocation14 + $0x1ea0] ss:$16 sps:$4 sm:$0xff]  }
 0x973   : > { %13352 = vmatpush2.bf16.msra.mxu0 %v17457_v57  ;;  %v17501_v57 = vld [vmem:[#allocation14 + $0x1e64] ss:$16 sps:$4 sm:$0xff]  }
 0x974   : > { %13353 = vmatprep.subr.bf16.mxu0 %v17462_v46  ;;  %v17528_v46 = vld [vmem:[#allocation14 + $0x1d84] ss:$16 sps:$4 sm:$0xff]  }
 0x975   : > { %13373 = vmatpush1.bf16.msra.mxu1 %v17478_v41  ;;  %v17522_v41 = vld [vmem:[#allocation14 + $0x1da4] ss:$16 sps:$4 sm:$0xff]  }
 0x976   : > { %13374 = vmatprep.subr.bf16.mxu1 %v17486_v17  ;;  %v17493_v17 = vld [vmem:[#allocation14 + $0x1e80] ss:$16 sps:$4 sm:$0xff]  }
 0x977   : > { %13354 = vmatpush2.bf16.msra.mxu0 %v17460_v61  ;;  %v17526_v61 = vld [vmem:[#allocation14 + $0x1d80] ss:$16 sps:$4 sm:$0xff]  }
 0x978   : > { %13355 = vmatprep.subr.bf16.mxu0 %v17468_v18  ;;  %v17534_v18 = vld [vmem:[#allocation14 + $0x1d64] ss:$16 sps:$4 sm:$0xff]  }
 0x979   : > { %13375 = vmatpush1.bf16.msra.mxu1 %v17484_v47  ;;  %v17499_v47 = vld [vmem:[#allocation14 + $0x1e60] ss:$16 sps:$4 sm:$0xff]  }
 0x97a   : > { %13376 = vmatprep.subr.bf16.mxu1 %v17492_v53  ;;  %v17507_v53 = vld [vmem:[#allocation14 + $0x1e44] ss:$16 sps:$4 sm:$0xff]  }
 0x97b   : > { %13356 = vmatpush2.bf16.msra.mxu0 %v17466_v28  ;;  %v17532_v28 = vld [vmem:[#allocation14 + $0x1d60] ss:$16 sps:$4 sm:$0xff]  }
 0x97c   : > { %13407 = vmatprep.subr.bf16.mxu0 %v17477_v4  ;;  %v17540_v4 = vld [vmem:[#allocation14 + $0x1d44] ss:$16 sps:$4 sm:$0xff]  }
 0x97d   : > { %13377 = vmatpush1.bf16.msra.mxu1 %v17490_v62  ;;  %v17505_v62 = vld [vmem:[#allocation14 + $0x1e40] ss:$16 sps:$4 sm:$0xff]  }
 0x97e   : > { %13378 = vmatprep.subr.bf16.mxu1 %v17498_v31  ;;  %v13113_v58 = vpop.f32.mrf.mxu0  ;;  %13358 = vmatmul.mubr.bf16.vlgmr.msra.gmra.mxu0 %v20746_v32  ;;  %v17513_v31 = vld [vmem:[#allocation14 + $0x1e24] ss:$16 sps:$4 sm:$0xff]  }
 0x97f   : > { %v20756_v1 = vadd.f32 %v13113_v58, %v20740_v8  ;;  %13408 = vmatpush1.bf16.msra.mxu0 %v17475_v21  ;;  %13439 = vmatprep.mubr.bf16.mxu0 %v20752_v39  ;;  %v17495_v8 = vld [vmem:[#allocation14 + $0x1e84] ss:$16 sps:$4 sm:$0xff]   ;;  %v17538_v21 = vld [vmem:[#allocation14 + $0x1d40] ss:$16 sps:$4 sm:$0xff]  }
 0x980   : > { %v13115_v19 = vpop.f32.mrf.mxu0  ;;  %13409 = vmatprep.subr.bf16.mxu0 %v17483_v43  ;;  %v17546_v43 = vld [vmem:[#allocation14 + $0x1d24] ss:$16 sps:$4 sm:$0xff]  }
 0x981   : > { %13379 = vmatpush1.bf16.msra.mxu1 %v17496_v23  ;;  %v20759_v48 = vadd.f32 %v13115_v19, %v13075_v10  ;;  %v17520_v10 = vld [vmem:[#allocation14 + $0x1da0] ss:$16 sps:$4 sm:$0xff]   ;;  %v17525_v58 = vld [vmem:[#allocation14 + $0x1fe4] ss:$16 sps:$4 sm:$0xff]  }
 0x982   : > { %13380 = vmatprep.subr.bf16.mxu1 %v17504_v56  ;;  %v13117_v6 = vpop.f32.mrf.mxu0  ;;  %v17511_v23 = vld [vmem:[#allocation14 + $0x1e20] ss:$16 sps:$4 sm:$0xff]   ;;  %v17519_v56 = vld [vmem:[#allocation14 + $0x1e04] ss:$16 sps:$4 sm:$0xff]  }
 0x983   : > { %13410 = vmatpush1.bf16.msra.mxu0 %v17481_v59  ;;  %v17552_v59 = vld [vmem:[#allocation14 + $0x1d04] ss:$16 sps:$4 sm:$0xff]   ;;  %v17523_v19 = vld [vmem:[#allocation14 + $0x1fe0] ss:$16 sps:$4 sm:$0xff]   ;;  %v17561_v6 = vld [vmem:[#allocation14 + $0xec] ss:$16 sps:$4 sm:$0xff]  }
 0x984   : > { %v13118_v5 = vpop.f32.mrf.mxu0  ;;  %13411 = vmatprep.subr.bf16.mxu0 %v17489_v13  ;;  %v17531_v13 = vld [vmem:[#allocation14 + $0x1fc4] ss:$16 sps:$4 sm:$0xff]  }
 0x985   : > { %13381 = vmatpush1.bf16.msra.mxu1 %v17502_v51  ;;  %v17517_v51 = vld [vmem:[#allocation14 + $0x1e00] ss:$16 sps:$4 sm:$0xff]   ;;  %v17559_v5 = vld [vmem:[#allocation14 + $0xe8] ss:$16 sps:$4 sm:$0xff]  }
 0x986   : > { %13382 = vmatprep.subr.bf16.mxu1 %v17510_v36  ;;  %v17544_v36 = vld [vmem:[#allocation14 + $0x1d20] ss:$16 sps:$4 sm:$0xff]  }
 0x987   : > { %13412 = vmatpush1.bf16.msra.mxu0 %v17487_v52  ;;  %v17537_v52 = vld [vmem:[#allocation14 + $0x1fa4] ss:$16 sps:$4 sm:$0xff]  }
 0x988   : > { %13413 = vmatprep.subr.bf16.mxu0 %v17495_v8  ;;  %v18336_v8 = vld [vmem:[#allocation7 + $0x18] sm:$0xff] }
 0x989   : > { %13383 = vmatpush2.bf16.msra.mxu1 %v17508_v29  ;;  %v17550_v29 = vld [vmem:[#allocation14 + $0x1d00] ss:$16 sps:$4 sm:$0xff]  }
 0x98a   : > { %13384 = vmatprep.subr.bf16.mxu1 %v17516_v42  ;;  %v17529_v42 = vld [vmem:[#allocation14 + $0x1fc0] ss:$16 sps:$4 sm:$0xff]  }
 0x98b   : > { %13414 = vmatpush1.bf16.msra.mxu0 %v17493_v17  ;;  %v17535_v17 = vld [vmem:[#allocation14 + $0x1fa0] ss:$16 sps:$4 sm:$0xff]  }
 0x98c   : > { %13415 = vmatprep.subr.bf16.mxu0 %v17501_v57  ;;  %v17543_v57 = vld [vmem:[#allocation14 + $0x1f84] ss:$16 sps:$4 sm:$0xff]  }
 0x98d   : > { %13385 = vmatpush2.bf16.msra.mxu1 %v17514_v27  ;;  %v20761_v27 = vcombine.low %v18336_v8, %v18336_v8  ;;  %v17571_v8 = vld [vmem:[#allocation14 + $0x2e8] ss:$16 sps:$4 sm:$0xff]  }
 0x98e   : > { %13386 = vmatprep.subr.bf16.mxu1 %v17522_v41  ;;  %v17567_v41 = vld [vmem:[#allocation14 + $0xcc] ss:$16 sps:$4 sm:$0xff]  }
 0x98f   : > { %13416 = vmatpush1.bf16.msra.mxu0 %v17499_v47  ;;  %v17565_v47 = vld [vmem:[#allocation14 + $0xc8] ss:$16 sps:$4 sm:$0xff]  }
 0x990   : > { %13417 = vmatprep.subr.bf16.mxu0 %v17507_v53 }
 0x991   : > { %13387 = vmatpush2.bf16.msra.mxu1 %v17520_v10 }
 0x992   : > { %13388 = vmatprep.subr.bf16.mxu1 %v17528_v46 }
 0x993   : > { %13418 = vmatpush1.bf16.msra.mxu0 %v17505_v62 }
 0x994   : > { %13419 = vmatprep.subr.bf16.mxu0 %v17513_v31  ;;  %v17549_v31 = vld [vmem:[#allocation14 + $0x1f64] ss:$16 sps:$4 sm:$0xff]  }
 0x995   : > { %13389 = vmatpush2.bf16.msra.mxu1 %v17526_v61  ;;  %v17570_v61 = vld [vmem:[#allocation14 + $0xac] ss:$16 sps:$4 sm:$0xff]  }
 0x996   : > { %13390 = vmatprep.subr.bf16.mxu1 %v17534_v18  ;;  %v17541_v18 = vld [vmem:[#allocation14 + $0x1f80] ss:$16 sps:$4 sm:$0xff]  }
 0x997   : > { %13420 = vmatpush1.bf16.msra.mxu0 %v17511_v23 }
 0x998   : > { %13421 = vmatprep.subr.bf16.mxu0 %v17519_v56  ;;  %v17576_v56 = vld [vmem:[#allocation14 + $0x8c] ss:$16 sps:$4 sm:$0xff]  }
 0x999   : > { %13391 = vmatpush2.bf16.msra.mxu1 %v17532_v28 }
 0x99a   : > { %13392 = vmatprep.subr.bf16.mxu1 %v17540_v4  ;;  %v17568_v4 = vld [vmem:[#allocation14 + $0xa8] ss:$16 sps:$4 sm:$0xff]  }
 0x99b   : > { %13422 = vmatpush1.bf16.msra.mxu0 %v17517_v51  ;;  %v17553_v51 = vld [vmem:[#allocation14 + $0x1f40] ss:$16 sps:$4 sm:$0xff]  }
 0x99c   : > { %13423 = vmatprep.subr.bf16.mxu0 %v17525_v58  ;;  %v17580_v58 = vld [vmem:[#allocation14 + $0x68] ss:$16 sps:$4 sm:$0xff]  }
 0x99d   : > { %13393 = vmatpush2.bf16.msra.mxu1 %v17538_v21  ;;  %v17574_v21 = vld [vmem:[#allocation14 + $0x88] ss:$16 sps:$4 sm:$0xff]  }
 0x99e   : > { %13394 = vmatprep.subr.bf16.mxu1 %v17546_v43  ;;  %v17582_v43 = vld [vmem:[#allocation14 + $0x6c] ss:$16 sps:$4 sm:$0xff]  }
 0x99f   : > { %13424 = vmatpush2.bf16.msra.mxu0 %v17523_v19  ;;  %v17564_v19 = vld [vmem:[#allocation14 + $0x1f04] ss:$16 sps:$4 sm:$0xff]  }
 0x9a0   : > { %13425 = vmatprep.subr.bf16.mxu0 %v17531_v13  ;;  %v17586_v13 = vld [vmem:[#allocation14 + $0x48] ss:$16 sps:$4 sm:$0xff]  }
 0x9a1   : > { %13395 = vmatpush2.bf16.msra.mxu1 %v17544_v36  ;;  %v17588_v36 = vld [vmem:[#allocation14 + $0x4c] ss:$16 sps:$4 sm:$0xff]  }
 0x9a2   : > { %13396 = vmatprep.subr.bf16.mxu1 %v17552_v59  ;;  %v17556_v59 = vld [vmem:[#allocation14 + $0x1f20] ss:$16 sps:$4 sm:$0xff]  }
 0x9a3   : > { %13426 = vmatpush2.bf16.msra.mxu0 %v17529_v42  ;;  %v17573_v42 = vld [vmem:[#allocation14 + $0x2ec] ss:$16 sps:$4 sm:$0xff]  }
 0x9a4   : > { %13427 = vmatprep.subr.bf16.mxu0 %v17537_v52  ;;  %v17592_v52 = vld [vmem:[#allocation14 + $0x28] ss:$16 sps:$4 sm:$0xff]  }
 0x9a5   : > { %13397 = vmatpush2.bf16.msra.mxu1 %v17550_v29  ;;  %v17594_v29 = vld [vmem:[#allocation14 + $0x2c] ss:$16 sps:$4 sm:$0xff]  }
 0x9a6   : > { %13448 = vmatprep.subr.bf16.mxu1 %v17561_v6  ;;  %v17562_v6 = vld [vmem:[#allocation14 + $0x1f00] ss:$16 sps:$4 sm:$0xff]  }
 0x9a7   : > { %13428 = vmatpush2.bf16.msra.mxu0 %v17535_v17  ;;  %v17579_v17 = vld [vmem:[#allocation14 + $0x2cc] ss:$16 sps:$4 sm:$0xff]  }
 0x9a8   : > { %v13154_v10 = vpop.f32.mrf.mxu1  ;;  %13399 = vmatmul.mubr.bf16.vlgmr.msra.gmra.mxu1 %v20761_v27  ;;  %13429 = vmatprep.subr.bf16.mxu0 %v17543_v57  ;;  %v17598_v57 = vld [vmem:[#allocation14 + $0x8] ss:$16 sps:$4 sm:$0xff]  }
 0x9a9   : > { %v13155_v46 = vadd.f32 %v13154_v10, %v20756_v1  ;;  %13449 = vmatpush1.bf16.msra.mxu1 %v17559_v5  ;;  %13480 = vmatprep.mubr.bf16.mxu1 %v20436_v25  ;;  %v17547_v1 = vld [vmem:[#allocation14 + $0x1f60] ss:$16 sps:$4 sm:$0xff]   ;;  %v17555_v25 = vld [vmem:[#allocation14 + $0x1f44] ss:$16 sps:$4 sm:$0xff]   ;;  %v17600_v5 = vld [vmem:[#allocation14 + $0xc] ss:$16 sps:$4 sm:$0xff]  }
 0x9aa   : > { %v13156_v53 = vpop.f32.mrf.mxu1  ;;  %13450 = vmatprep.subr.bf16.mxu1 %v17567_v41  ;;  %v20769_v41 = vcombine.low %v20748_v2, %v20748_v2 }
 0x9ab   : > { %v13157_v62 = vadd.f32 %v13156_v53, %v20759_v48  ;;  %13430 = vmatpush2.bf16.msra.mxu0 %v17541_v18  ;;  %v17558_v48 = vld [vmem:[#allocation14 + $0x1f24] ss:$16 sps:$4 sm:$0xff]  }
 0x9ac   : > { %v13158_v28 = vpop.f32.mrf.mxu1  ;;  %13431 = vmatprep.subr.bf16.mxu0 %v17549_v31  ;;  %v17585_v31 = vld [vmem:[#allocation14 + $0x2ac] ss:$16 sps:$4 sm:$0xff]  }
 0x9ad   : > { %13451 = vmatpush1.bf16.msra.mxu1 %v17565_v47  ;;  %v17606_v47 = vld [vmem:[#allocation14 + $0x1ec] ss:$16 sps:$4 sm:$0xff]   ;;  %v17604_v28 = vld [vmem:[#allocation14 + $0x1e8] ss:$16 sps:$4 sm:$0xff]  }
 0x9ae   : > { %v13159_v23 = vpop.f32.mrf.mxu1  ;;  %13452 = vmatprep.subr.bf16.mxu1 %v17570_v61  ;;  %v17577_v61 = vld [vmem:[#allocation14 + $0x2c8] ss:$16 sps:$4 sm:$0xff]  }
 0x9af   : > { %13432 = vmatpush2.bf16.msra.mxu0 %v17547_v1  ;;  %v17612_v23 = vld [vmem:[#allocation14 + $0x1cc] ss:$16 sps:$4 sm:$0xff]  }
 0x9b0   : > { %13433 = vmatprep.subr.bf16.mxu0 %v17555_v25  ;;  %v17610_v25 = vld [vmem:[#allocation14 + $0x1c8] ss:$16 sps:$4 sm:$0xff]  }
 0x9b1   : > { %13453 = vmatpush1.bf16.msra.mxu1 %v17568_v4 }
 0x9b2   : > { %13454 = vmatprep.subr.bf16.mxu1 %v17576_v56  ;;  %v17583_v56 = vld [vmem:[#allocation14 + $0x2a8] ss:$16 sps:$4 sm:$0xff]  }
 0x9b3   : > { %13434 = vmatpush2.bf16.msra.mxu0 %v17553_v51  ;;  %v17624_v51 = vld [vmem:[#allocation14 + $0x18c] ss:$16 sps:$4 sm:$0xff]  }
 0x9b4   : > { %13435 = vmatprep.subr.bf16.mxu0 %v17558_v48  ;;  %v17595_v48 = vld [vmem:[#allocation14 + $0x268] ss:$16 sps:$4 sm:$0xff]  }
 0x9b5   : > { %13455 = vmatpush1.bf16.msra.mxu1 %v17574_v21  ;;  %v17589_v21 = vld [vmem:[#allocation14 + $0x288] ss:$16 sps:$4 sm:$0xff]  }
 0x9b6   : > { %13456 = vmatprep.subr.bf16.mxu1 %v17582_v43  ;;  %v17597_v43 = vld [vmem:[#allocation14 + $0x26c] ss:$16 sps:$4 sm:$0xff]  }
 0x9b7   : > { %13436 = vmatpush2.bf16.msra.mxu0 %v17556_v59  ;;  %v17630_v59 = vld [vmem:[#allocation14 + $0x16c] ss:$16 sps:$4 sm:$0xff]  }
 0x9b8   : > { %13437 = vmatprep.subr.bf16.mxu0 %v17564_v19  ;;  %v17601_v19 = vld [vmem:[#allocation14 + $0x248] ss:$16 sps:$4 sm:$0xff]  }
 0x9b9   : > { %13457 = vmatpush1.bf16.msra.mxu1 %v17580_v58  ;;  %v17603_v58 = vld [vmem:[#allocation14 + $0x24c] ss:$16 sps:$4 sm:$0xff]  }
 0x9ba   : > { %13458 = vmatprep.subr.bf16.mxu1 %v17588_v36  ;;  %v17622_v36 = vld [vmem:[#allocation14 + $0x188] ss:$16 sps:$4 sm:$0xff]  }
 0x9bb   : > { %13438 = vmatpush2.bf16.msra.mxu0 %v17562_v6  ;;  %v17636_v6 = vld [vmem:[#allocation14 + $0x14c] ss:$16 sps:$4 sm:$0xff]  }
 0x9bc   : > { %13489 = vmatprep.subr.bf16.mxu0 %v17573_v42  ;;  %v17607_v42 = vld [vmem:[#allocation14 + $0x228] ss:$16 sps:$4 sm:$0xff]  }
 0x9bd   : > { %13459 = vmatpush1.bf16.msra.mxu1 %v17586_v13  ;;  %v17609_v13 = vld [vmem:[#allocation14 + $0x22c] ss:$16 sps:$4 sm:$0xff]  }
 0x9be   : > { %13460 = vmatprep.subr.bf16.mxu1 %v17594_v29  ;;  %v13195_v10 = vpop.f32.mrf.mxu0  ;;  %13440 = vmatmul.mubr.bf16.vlgmr.msra.gmra.mxu0 %v20769_v41  ;;  %v17628_v29 = vld [vmem:[#allocation14 + $0x168] ss:$16 sps:$4 sm:$0xff]  }
 0x9bf   : > { %v20772_v53 = vadd.f32 %v13195_v10, %v13155_v46  ;;  %13490 = vmatpush1.bf16.msra.mxu0 %v17571_v8  ;;  %13521 = vmatprep.mubr.bf16.mxu0 %v20498_v34  ;;  %v17591_v46 = vld [vmem:[#allocation14 + $0x28c] ss:$16 sps:$4 sm:$0xff]   ;;  %v17640_v10 = vld [vmem:[#allocation14 + $0x128] ss:$16 sps:$4 sm:$0xff]  }
 0x9c0   : > { %v13197_v18 = vpop.f32.mrf.mxu0  ;;  %13491 = vmatprep.subr.bf16.mxu0 %v17579_v17  ;;  %v17618_v34 = vld [vmem:[#allocation14 + $0x1ac] ss:$16 sps:$4 sm:$0xff]   ;;  %v17613_v17 = vld [vmem:[#allocation14 + $0x208] ss:$16 sps:$4 sm:$0xff]  }
 0x9c1   : > { %13461 = vmatpush1.bf16.msra.mxu1 %v17592_v52  ;;  %v20775_v2 = vadd.f32 %v13197_v18, %v13157_v62  ;;  %v17616_v62 = vld [vmem:[#allocation14 + $0x1a8] ss:$16 sps:$4 sm:$0xff]   ;;  %v17615_v52 = vld [vmem:[#allocation14 + $0x20c] ss:$16 sps:$4 sm:$0xff]  }
 0x9c2   : > { %13462 = vmatprep.subr.bf16.mxu1 %v17600_v5  ;;  %v13199_v4 = vpop.f32.mrf.mxu0  ;;  %v17634_v5 = vld [vmem:[#allocation14 + $0x148] ss:$16 sps:$4 sm:$0xff]   ;;  %v17642_v8 = vld [vmem:[#allocation14 + $0x12c] ss:$16 sps:$4 sm:$0xff]  }
 0x9c3   : > { %13492 = vmatpush1.bf16.msra.mxu0 %v17577_v61  ;;  %v17619_v61 = vld [vmem:[#allocation14 + $0x3e8] ss:$16 sps:$4 sm:$0xff]   ;;  %v17627_v18 = vld [vmem:[#allocation14 + $0x3cc] ss:$16 sps:$4 sm:$0xff]  }
 0x9c4   : > { %v13200_v1 = vpop.f32.mrf.mxu0  ;;  %13493 = vmatprep.subr.bf16.mxu0 %v17585_v31  ;;  %v17646_v31 = vld [vmem:[#allocation14 + $0x108] ss:$16 sps:$4 sm:$0xff]  }
 0x9c5   : > { %13463 = vmatpush1.bf16.msra.mxu1 %v17598_v57  ;;  %v17621_v57 = vld [vmem:[#allocation14 + $0x3ec] ss:$16 sps:$4 sm:$0xff]   ;;  %v17625_v4 = vld [vmem:[#allocation14 + $0x3c8] ss:$16 sps:$4 sm:$0xff]  }
 0x9c6   : > { %13464 = vmatprep.subr.bf16.mxu1 %v17606_v47  ;;  %v17648_v47 = vld [vmem:[#allocation14 + $0x10c] ss:$16 sps:$4 sm:$0xff]  }
 0x9c7   : > { %13494 = vmatpush1.bf16.msra.mxu0 %v17583_v56  ;;  %v17655_v56 = vld [vmem:[#allocation14 + $0x4e8] ss:$16 sps:$4 sm:$0xff]   ;;  %v17663_v1 = vld [vmem:[#allocation14 + $0x4cc] ss:$16 sps:$4 sm:$0xff]  }
 0x9c8   : > { %13495 = vmatprep.subr.bf16.mxu0 %v17591_v46  ;;  %v17631_v46 = vld [vmem:[#allocation14 + $0x3a8] ss:$16 sps:$4 sm:$0xff]  }
 0x9c9   : > { %13465 = vmatpush2.bf16.msra.mxu1 %v17604_v28  ;;  %v17657_v28 = vld [vmem:[#allocation14 + $0x4ec] ss:$16 sps:$4 sm:$0xff]  }
 0x9ca   : > { %13466 = vmatprep.subr.bf16.mxu1 %v17612_v23  ;;  %v17633_v23 = vld [vmem:[#allocation14 + $0x3ac] ss:$16 sps:$4 sm:$0xff]  }
 0x9cb   : > { %13496 = vmatpush1.bf16.msra.mxu0 %v17589_v21 }
 0x9cc   : > { %13497 = vmatprep.subr.bf16.mxu0 %v17597_v43  ;;  %v17661_v43 = vld [vmem:[#allocation14 + $0x4c8] ss:$16 sps:$4 sm:$0xff]  }
 0x9cd   : > { %13467 = vmatpush2.bf16.msra.mxu1 %v17610_v25  ;;  %v17639_v25 = vld [vmem:[#allocation14 + $0x38c] ss:$16 sps:$4 sm:$0xff]  }
 0x9ce   : > { %13468 = vmatprep.subr.bf16.mxu1 %v17618_v34 }
 0x9cf   : > { %13498 = vmatpush1.bf16.msra.mxu0 %v17595_v48  ;;  %v17637_v48 = vld [vmem:[#allocation14 + $0x388] ss:$16 sps:$4 sm:$0xff]  }
 0x9d0   : > { %13499 = vmatprep.subr.bf16.mxu0 %v17603_v58 }
 0x9d1   : > { %13469 = vmatpush2.bf16.msra.mxu1 %v17616_v62 }
 0x9d2   : > { %13470 = vmatprep.subr.bf16.mxu1 %v17624_v51  ;;  %v17666_v51 = vld [vmem:[#allocation14 + $0x4ac] ss:$16 sps:$4 sm:$0xff]  }
 0x9d3   : > { %13500 = vmatpush1.bf16.msra.mxu0 %v17601_v19  ;;  %v17664_v19 = vld [vmem:[#allocation14 + $0x4a8] ss:$16 sps:$4 sm:$0xff]  }
 0x9d4   : > { %13501 = vmatprep.subr.bf16.mxu0 %v17609_v13 }
 0x9d5   : > { %13471 = vmatpush2.bf16.msra.mxu1 %v17622_v36  ;;  %v17645_v36 = vld [vmem:[#allocation14 + $0x36c] ss:$16 sps:$4 sm:$0xff]  }
 0x9d6   : > { %13472 = vmatprep.subr.bf16.mxu1 %v17630_v59 }
 0x9d7   : > { %13502 = vmatpush1.bf16.msra.mxu0 %v17607_v42  ;;  %v17649_v42 = vld [vmem:[#allocation14 + $0x348] ss:$16 sps:$4 sm:$0xff]  }
 0x9d8   : > { %13503 = vmatprep.subr.bf16.mxu0 %v17615_v52  ;;  %v17676_v52 = vld [vmem:[#allocation14 + $0x468] ss:$16 sps:$4 sm:$0xff]  }
 0x9d9   : > { %13473 = vmatpush2.bf16.msra.mxu1 %v17628_v29  ;;  %v17670_v29 = vld [vmem:[#allocation14 + $0x488] ss:$16 sps:$4 sm:$0xff]  }
 0x9da   : > { %13474 = vmatprep.subr.bf16.mxu1 %v17636_v6  ;;  %v17678_v6 = vld [vmem:[#allocation14 + $0x46c] ss:$16 sps:$4 sm:$0xff]  }
 0x9db   : > { %13504 = vmatpush1.bf16.msra.mxu0 %v17613_v17  ;;  %v17660_v17 = vld [vmem:[#allocation14 + $0x30c] ss:$16 sps:$4 sm:$0xff]  }
 0x9dc   : > { %13505 = vmatprep.subr.bf16.mxu0 %v17621_v57  ;;  %v17682_v57 = vld [vmem:[#allocation14 + $0x448] ss:$16 sps:$4 sm:$0xff]  }
 0x9dd   : > { %13475 = vmatpush2.bf16.msra.mxu1 %v17634_v5  ;;  %v17684_v5 = vld [vmem:[#allocation14 + $0x44c] ss:$16 sps:$4 sm:$0xff]  }
 0x9de   : > { %13476 = vmatprep.subr.bf16.mxu1 %v17642_v8  ;;  %v17652_v8 = vld [vmem:[#allocation14 + $0x328] ss:$16 sps:$4 sm:$0xff]  }
 0x9df   : > { %13506 = vmatpush2.bf16.msra.mxu0 %v17619_v61  ;;  %v17669_v61 = vld [vmem:[#allocation14 + $0x6ec] ss:$16 sps:$4 sm:$0xff]  }
 0x9e0   : > { %13507 = vmatprep.subr.bf16.mxu0 %v17627_v18  ;;  %v17688_v18 = vld [vmem:[#allocation14 + $0x428] ss:$16 sps:$4 sm:$0xff]  }
 0x9e1   : > { %13477 = vmatpush2.bf16.msra.mxu1 %v17640_v10  ;;  %v17690_v10 = vld [vmem:[#allocation14 + $0x42c] ss:$16 sps:$4 sm:$0xff]  }
 0x9e2   : > { %13478 = vmatprep.subr.bf16.mxu1 %v17648_v47  ;;  %v17658_v47 = vld [vmem:[#allocation14 + $0x308] ss:$16 sps:$4 sm:$0xff]  }
 0x9e3   : > { %13508 = vmatpush2.bf16.msra.mxu0 %v17625_v4  ;;  %v17675_v4 = vld [vmem:[#allocation14 + $0x6cc] ss:$16 sps:$4 sm:$0xff]  }
 0x9e4   : > { %13509 = vmatprep.subr.bf16.mxu0 %v17633_v23  ;;  %v17694_v23 = vld [vmem:[#allocation14 + $0x408] ss:$16 sps:$4 sm:$0xff]  }
 0x9e5   : > { %13479 = vmatpush2.bf16.msra.mxu1 %v17646_v31  ;;  %v17696_v31 = vld [vmem:[#allocation14 + $0x40c] ss:$16 sps:$4 sm:$0xff]  }
 0x9e6   : > { %13530 = vmatprep.subr.bf16.mxu1 %v17657_v28  ;;  %v17667_v28 = vld [vmem:[#allocation14 + $0x6e8] ss:$16 sps:$4 sm:$0xff]  }
 0x9e7   : > { %13510 = vmatpush2.bf16.msra.mxu0 %v17631_v46 }
 0x9e8   : > { %v13236_v34 = vpop.f32.mrf.mxu1  ;;  %13481 = vmatmul.mubr.bf16.vlgmr.msra.gmra.mxu1 %v20434_v44  ;;  %13511 = vmatprep.subr.bf16.mxu0 %v17639_v25  ;;  %v17672_v44 = vld [vmem:[#allocation14 + $0x48c] ss:$16 sps:$4 sm:$0xff]   ;;  %v17673_v25 = vld [vmem:[#allocation14 + $0x6c8] ss:$16 sps:$4 sm:$0xff]  }
 0x9e9   : > { %v13237_v21 = vadd.f32 %v13236_v34, %v20772_v53  ;;  %13531 = vmatpush1.bf16.msra.mxu1 %v17655_v56  ;;  %13562 = vmatprep.mubr.bf16.mxu1 %v20513_v40  ;;  %v17643_v53 = vld [vmem:[#allocation14 + $0x368] ss:$16 sps:$4 sm:$0xff]   ;;  %v17651_v40 = vld [vmem:[#allocation14 + $0x34c] ss:$16 sps:$4 sm:$0xff]  }
 0x9ea   : > { %v13238_v62 = vpop.f32.mrf.mxu1  ;;  %13532 = vmatprep.subr.bf16.mxu1 %v17663_v1  ;;  %v17702_v1 = vld [vmem:[#allocation14 + $0x5ec] ss:$16 sps:$4 sm:$0xff]  }
 0x9eb   : > { %v13239_v58 = vadd.f32 %v13238_v62, %v20775_v2  ;;  %13512 = vmatpush2.bf16.msra.mxu0 %v17637_v48  ;;  %v17654_v2 = vld [vmem:[#allocation14 + $0x32c] ss:$16 sps:$4 sm:$0xff]  }
 0x9ec   : > { %v13240_v59 = vpop.f32.mrf.mxu1  ;;  %13513 = vmatprep.subr.bf16.mxu0 %v17645_v36  ;;  %v17708_v36 = vld [vmem:[#allocation14 + $0x5cc] ss:$16 sps:$4 sm:$0xff]  }
 0x9ed   : > { %13533 = vmatpush1.bf16.msra.mxu1 %v17661_v43  ;;  %v17681_v43 = vld [vmem:[#allocation14 + $0x6ac] ss:$16 sps:$4 sm:$0xff]  }
 0x9ee   : > { %v13241_v13 = vpop.f32.mrf.mxu1  ;;  %13534 = vmatprep.subr.bf16.mxu1 %v17666_v51  ;;  %v17700_v51 = vld [vmem:[#allocation14 + $0x5e8] ss:$16 sps:$4 sm:$0xff]  }
 0x9ef   : > { %13514 = vmatpush2.bf16.msra.mxu0 %v17643_v53  ;;  %v17685_v13 = vld [vmem:[#allocation14 + $0x688] ss:$16 sps:$4 sm:$0xff]   ;;  %v17720_v53 = vld [vmem:[#allocation14 + $0x58c] ss:$16 sps:$4 sm:$0xff]  }
 0x9f0   : > { %13515 = vmatprep.subr.bf16.mxu0 %v17651_v40  ;;  %v17691_v40 = vld [vmem:[#allocation14 + $0x668] ss:$16 sps:$4 sm:$0xff]  }
 0x9f1   : > { %13535 = vmatpush1.bf16.msra.mxu1 %v17664_v19  ;;  %v17706_v19 = vld [vmem:[#allocation14 + $0x5c8] ss:$16 sps:$4 sm:$0xff]  }
 0x9f2   : > { %13536 = vmatprep.subr.bf16.mxu1 %v17672_v44  ;;  %v17693_v44 = vld [vmem:[#allocation14 + $0x66c] ss:$16 sps:$4 sm:$0xff]  }
 0x9f3   : > { %13516 = vmatpush2.bf16.msra.mxu0 %v17649_v42  ;;  %v17726_v42 = vld [vmem:[#allocation14 + $0x56c] ss:$16 sps:$4 sm:$0xff]  }
 0x9f4   : > { %13517 = vmatprep.subr.bf16.mxu0 %v17654_v2  ;;  %v17697_v2 = vld [vmem:[#allocation14 + $0x648] ss:$16 sps:$4 sm:$0xff]  }
 0x9f5   : > { %13537 = vmatpush1.bf16.msra.mxu1 %v17670_v29  ;;  %v17699_v29 = vld [vmem:[#allocation14 + $0x64c] ss:$16 sps:$4 sm:$0xff]  }
 0x9f6   : > { %13538 = vmatprep.subr.bf16.mxu1 %v17678_v6  ;;  %v17718_v6 = vld [vmem:[#allocation14 + $0x588] ss:$16 sps:$4 sm:$0xff]  }
 0x9f7   : > { %13518 = vmatpush2.bf16.msra.mxu0 %v17652_v8  ;;  %v17732_v8 = vld [vmem:[#allocation14 + $0x54c] ss:$16 sps:$4 sm:$0xff]  }
 0x9f8   : > { %13519 = vmatprep.subr.bf16.mxu0 %v17660_v17  ;;  %v17703_v17 = vld [vmem:[#allocation14 + $0x628] ss:$16 sps:$4 sm:$0xff]  }
 0x9f9   : > { %13539 = vmatpush1.bf16.msra.mxu1 %v17676_v52  ;;  %v17705_v52 = vld [vmem:[#allocation14 + $0x62c] ss:$16 sps:$4 sm:$0xff]  }
 0x9fa   : > { %13540 = vmatprep.subr.bf16.mxu1 %v17684_v5  ;;  %v17724_v5 = vld [vmem:[#allocation14 + $0x568] ss:$16 sps:$4 sm:$0xff]  }
 0x9fb   : > { %13520 = vmatpush2.bf16.msra.mxu0 %v17658_v47  ;;  %v17738_v47 = vld [vmem:[#allocation14 + $0x52c] ss:$16 sps:$4 sm:$0xff]  }
 0x9fc   : > { %13571 = vmatprep.subr.bf16.mxu0 %v17669_v61  ;;  %v17709_v61 = vld [vmem:[#allocation14 + $0x608] ss:$16 sps:$4 sm:$0xff]  }
 0x9fd   : > { %13541 = vmatpush1.bf16.msra.mxu1 %v17682_v57  ;;  %v17711_v57 = vld [vmem:[#allocation14 + $0x60c] ss:$16 sps:$4 sm:$0xff]  }
 0x9fe   : > { %13542 = vmatprep.subr.bf16.mxu1 %v17690_v10  ;;  %v13277_v56 = vpop.f32.mrf.mxu0  ;;  %13522 = vmatmul.mubr.bf16.vlgmr.msra.gmra.mxu0 %v20494_v3  ;;  %v17679_v3 = vld [vmem:[#allocation14 + $0x6a8] ss:$16 sps:$4 sm:$0xff]  }
 0x9ff   : > { %v20782_v46 = vadd.f32 %v13277_v56, %v13237_v21  ;;  %13572 = vmatpush1.bf16.msra.mxu0 %v17667_v28  ;;  %13603 = vmatprep.mubr.bf16.mxu0 %v20535_v16  ;;  %v17687_v21 = vld [vmem:[#allocation14 + $0x68c] ss:$16 sps:$4 sm:$0xff]   ;;  %v17730_v10 = vld [vmem:[#allocation14 + $0x548] ss:$16 sps:$4 sm:$0xff]  }
 0xa00   : > { %v13279_v34 = vpop.f32.mrf.mxu0  ;;  %13573 = vmatprep.subr.bf16.mxu0 %v17675_v4  ;;  %v17714_v16 = vld [vmem:[#allocation14 + $0x5ac] ss:$16 sps:$4 sm:$0xff]   ;;  %v17715_v4 = vld [vmem:[#allocation14 + $0x7e8] ss:$16 sps:$4 sm:$0xff]  }
 0xa01   : > { %13543 = vmatpush1.bf16.msra.mxu1 %v17688_v18  ;;  %v20785_v62 = vadd.f32 %v13279_v34, %v13239_v58  ;;  %v17712_v58 = vld [vmem:[#allocation14 + $0x5a8] ss:$16 sps:$4 sm:$0xff]   ;;  %v17717_v18 = vld [vmem:[#allocation14 + $0x7ec] ss:$16 sps:$4 sm:$0xff]  }
 0xa02   : > { %13544 = vmatprep.subr.bf16.mxu1 %v17696_v31  ;;  %v13281_v48 = vpop.f32.mrf.mxu0  ;;  %v17736_v31 = vld [vmem:[#allocation14 + $0x528] ss:$16 sps:$4 sm:$0xff]   ;;  %v17744_v28 = vld [vmem:[#allocation14 + $0x50c] ss:$16 sps:$4 sm:$0xff]  }
 0xa03   : > { %13574 = vmatpush1.bf16.msra.mxu0 %v17673_v25  ;;  %v17742_v56 = vld [vmem:[#allocation14 + $0x508] ss:$16 sps:$4 sm:$0xff]   ;;  %v17729_v34 = vld [vmem:[#allocation14 + $0x7ac] ss:$16 sps:$4 sm:$0xff]  }
 0xa04   : > { %v13282_v59 = vpop.f32.mrf.mxu0  ;;  %13575 = vmatprep.subr.bf16.mxu0 %v17681_v43  ;;  %v17721_v25 = vld [vmem:[#allocation14 + $0x7c8] ss:$16 sps:$4 sm:$0xff]  }
 0xa05   : > { %13545 = vmatpush1.bf16.msra.mxu1 %v17694_v23  ;;  %v17723_v23 = vld [vmem:[#allocation14 + $0x7cc] ss:$16 sps:$4 sm:$0xff]   ;;  %v17751_v43 = vld [vmem:[#allocation14 + $0x8e8] ss:$16 sps:$4 sm:$0xff]  }
 0xa06   : > { %13546 = vmatprep.subr.bf16.mxu1 %v17702_v1  ;;  %v17753_v1 = vld [vmem:[#allocation14 + $0x8ec] ss:$16 sps:$4 sm:$0xff]   ;;  %v17727_v48 = vld [vmem:[#allocation14 + $0x7a8] ss:$16 sps:$4 sm:$0xff]  }
 0xa07   : > { %13576 = vmatpush1.bf16.msra.mxu0 %v17679_v3 }
 0xa08   : > { %13577 = vmatprep.subr.bf16.mxu0 %v17687_v21  ;;  %v17757_v21 = vld [vmem:[#allocation14 + $0x8c8] ss:$16 sps:$4 sm:$0xff]  }
 0xa09   : > { %13547 = vmatpush2.bf16.msra.mxu1 %v17700_v51  ;;  %v17759_v51 = vld [vmem:[#allocation14 + $0x8cc] ss:$16 sps:$4 sm:$0xff]  }
 0xa0a   : > { %13548 = vmatprep.subr.bf16.mxu1 %v17708_v36  ;;  %v17735_v36 = vld [vmem:[#allocation14 + $0x78c] ss:$16 sps:$4 sm:$0xff]  }
 0xa0b   : > { %13578 = vmatpush1.bf16.msra.mxu0 %v17685_v13  ;;  %v17733_v13 = vld [vmem:[#allocation14 + $0x788] ss:$16 sps:$4 sm:$0xff]  }
 0xa0c   : > { %13579 = vmatprep.subr.bf16.mxu0 %v17693_v44 }
 0xa0d   : > { %13549 = vmatpush2.bf16.msra.mxu1 %v17706_v19 }
 0xa0e   : > { %13550 = vmatprep.subr.bf16.mxu1 %v17714_v16  ;;  %v17762_v16 = vld [vmem:[#allocation14 + $0x8ac] ss:$16 sps:$4 sm:$0xff]  }
 0xa0f   : > { %13580 = vmatpush1.bf16.msra.mxu0 %v17691_v40  ;;  %v17760_v40 = vld [vmem:[#allocation14 + $0x8a8] ss:$16 sps:$4 sm:$0xff]  }
 0xa10   : > { %13581 = vmatprep.subr.bf16.mxu0 %v17699_v29 }
 0xa11   : > { %13551 = vmatpush2.bf16.msra.mxu1 %v17712_v58  ;;  %v17741_v58 = vld [vmem:[#allocation14 + $0x76c] ss:$16 sps:$4 sm:$0xff]  }
 0xa12   : > { %13552 = vmatprep.subr.bf16.mxu1 %v17720_v53 }
 0xa13   : > { %13582 = vmatpush1.bf16.msra.mxu0 %v17697_v2  ;;  %v17745_v2 = vld [vmem:[#allocation14 + $0x748] ss:$16 sps:$4 sm:$0xff]  }
 0xa14   : > { %13583 = vmatprep.subr.bf16.mxu0 %v17705_v52  ;;  %v17772_v52 = vld [vmem:[#allocation14 + $0x868] ss:$16 sps:$4 sm:$0xff]  }
 0xa15   : > { %13553 = vmatpush2.bf16.msra.mxu1 %v17718_v6  ;;  %v17766_v6 = vld [vmem:[#allocation14 + $0x888] ss:$16 sps:$4 sm:$0xff]  }
 0xa16   : > { %13554 = vmatprep.subr.bf16.mxu1 %v17726_v42  ;;  %v17774_v42 = vld [vmem:[#allocation14 + $0x86c] ss:$16 sps:$4 sm:$0xff]  }
 0xa17   : > { %13584 = vmatpush1.bf16.msra.mxu0 %v17703_v17  ;;  %v17756_v17 = vld [vmem:[#allocation14 + $0x70c] ss:$16 sps:$4 sm:$0xff]  }
 0xa18   : > { %13585 = vmatprep.subr.bf16.mxu0 %v17711_v57  ;;  %v17778_v57 = vld [vmem:[#allocation14 + $0x848] ss:$16 sps:$4 sm:$0xff]  }
 0xa19   : > { %13555 = vmatpush2.bf16.msra.mxu1 %v17724_v5  ;;  %v17780_v5 = vld [vmem:[#allocation14 + $0x84c] ss:$16 sps:$4 sm:$0xff]  }
 0xa1a   : > { %13556 = vmatprep.subr.bf16.mxu1 %v17732_v8  ;;  %v17748_v8 = vld [vmem:[#allocation14 + $0x728] ss:$16 sps:$4 sm:$0xff]  }
 0xa1b   : > { %13586 = vmatpush1.bf16.msra.mxu0 %v17709_v61  ;;  %v17765_v61 = vld [vmem:[#allocation14 + $0xaec] ss:$16 sps:$4 sm:$0xff]  }
 0xa1c   : > { %13587 = vmatprep.subr.bf16.mxu0 %v17717_v18  ;;  %v17784_v18 = vld [vmem:[#allocation14 + $0x828] ss:$16 sps:$4 sm:$0xff]  }
 0xa1d   : > { %13557 = vmatpush2.bf16.msra.mxu1 %v17730_v10  ;;  %v17786_v10 = vld [vmem:[#allocation14 + $0x82c] ss:$16 sps:$4 sm:$0xff]  }
 0xa1e   : > { %13558 = vmatprep.subr.bf16.mxu1 %v17738_v47  ;;  %v17754_v47 = vld [vmem:[#allocation14 + $0x708] ss:$16 sps:$4 sm:$0xff]  }
 0xa1f   : > { %13588 = vmatpush2.bf16.msra.mxu0 %v17715_v4  ;;  %v17771_v4 = vld [vmem:[#allocation14 + $0xacc] ss:$16 sps:$4 sm:$0xff]  }
 0xa20   : > { %13589 = vmatprep.subr.bf16.mxu0 %v17723_v23  ;;  %v17790_v23 = vld [vmem:[#allocation14 + $0x808] ss:$16 sps:$4 sm:$0xff]  }
 0xa21   : > { %13559 = vmatpush2.bf16.msra.mxu1 %v17736_v31  ;;  %v17792_v31 = vld [vmem:[#allocation14 + $0x80c] ss:$16 sps:$4 sm:$0xff]  }
 0xa22   : > { %13560 = vmatprep.subr.bf16.mxu1 %v17744_v28  ;;  %v17763_v28 = vld [vmem:[#allocation14 + $0xae8] ss:$16 sps:$4 sm:$0xff]  }
 0xa23   : > { %13590 = vmatpush2.bf16.msra.mxu0 %v17721_v25 }
 0xa24   : > { %13591 = vmatprep.subr.bf16.mxu0 %v17729_v34  ;;  %v17769_v34 = vld [vmem:[#allocation14 + $0xac8] ss:$16 sps:$4 sm:$0xff]  }
 0xa25   : > { %13561 = vmatpush2.bf16.msra.mxu1 %v17742_v56 }
 0xa26   : > { %13612 = vmatprep.subr.bf16.mxu1 %v17753_v1  ;;  %v17798_v1 = vld [vmem:[#allocation14 + $0x9ec] ss:$16 sps:$4 sm:$0xff]  }
 0xa27   : > { %13592 = vmatpush2.bf16.msra.mxu0 %v17727_v48 }
 0xa28   : > { %v13318_v3 = vpop.f32.mrf.mxu1  ;;  %13563 = vmatmul.mubr.bf16.vlgmr.msra.gmra.mxu1 %v20580_v35  ;;  %13593 = vmatprep.subr.bf16.mxu0 %v17735_v36  ;;  %v17768_v35 = vld [vmem:[#allocation14 + $0x88c] ss:$16 sps:$4 sm:$0xff]   ;;  %v17796_v36 = vld [vmem:[#allocation14 + $0x9e8] ss:$16 sps:$4 sm:$0xff]  }
 0xa29   : > { %v13319_v59 = vadd.f32 %v13318_v3, %v20782_v46  ;;  %13613 = vmatpush1.bf16.msra.mxu1 %v17751_v43  ;;  %13644 = vmatprep.mubr.bf16.mxu1 %v20584_v38  ;;  %v17739_v46 = vld [vmem:[#allocation14 + $0x768] ss:$16 sps:$4 sm:$0xff]   ;;  %v17747_v38 = vld [vmem:[#allocation14 + $0x74c] ss:$16 sps:$4 sm:$0xff]  }
 0xa2a   : > { %v13320_v19 = vpop.f32.mrf.mxu1  ;;  %13614 = vmatprep.subr.bf16.mxu1 %v17759_v51  ;;  %v17777_v51 = vld [vmem:[#allocation14 + $0xaac] ss:$16 sps:$4 sm:$0xff]  }
 0xa2b   : > { %v13321_v44 = vadd.f32 %v13320_v19, %v20785_v62  ;;  %13594 = vmatpush2.bf16.msra.mxu0 %v17733_v13  ;;  %v17750_v62 = vld [vmem:[#allocation14 + $0x72c] ss:$16 sps:$4 sm:$0xff]   ;;  %v17781_v13 = vld [vmem:[#allocation14 + $0xa88] ss:$16 sps:$4 sm:$0xff]  }
 0xa2c   : > { %v13322_v53 = vpop.f32.mrf.mxu1  ;;  %13595 = vmatprep.subr.bf16.mxu0 %v17741_v58  ;;  %v17789_v58 = vld [vmem:[#allocation14 + $0xa6c] ss:$16 sps:$4 sm:$0xff]  }
 0xa2d   : > { %13615 = vmatpush1.bf16.msra.mxu1 %v17757_v21  ;;  %v17804_v21 = vld [vmem:[#allocation14 + $0x9cc] ss:$16 sps:$4 sm:$0xff]  }
 0xa2e   : > { %v13323_v29 = vpop.f32.mrf.mxu1  ;;  %13616 = vmatprep.subr.bf16.mxu1 %v17762_v16  ;;  %v17802_v16 = vld [vmem:[#allocation14 + $0x9c8] ss:$16 sps:$4 sm:$0xff]   ;;  %v17816_v53 = vld [vmem:[#allocation14 + $0x98c] ss:$16 sps:$4 sm:$0xff]  }
 0xa2f   : > { %13596 = vmatpush2.bf16.msra.mxu0 %v17739_v46  ;;  %v17795_v29 = vld [vmem:[#allocation14 + $0xa4c] ss:$16 sps:$4 sm:$0xff]  }
 0xa30   : > { %13597 = vmatprep.subr.bf16.mxu0 %v17747_v38  ;;  %v17822_v46 = vld [vmem:[#allocation14 + $0x96c] ss:$16 sps:$4 sm:$0xff]   ;;  %v17793_v38 = vld [vmem:[#allocation14 + $0xa48] ss:$16 sps:$4 sm:$0xff]  }
 0xa31   : > { %13617 = vmatpush1.bf16.msra.mxu1 %v17760_v40  ;;  %v17787_v40 = vld [vmem:[#allocation14 + $0xa68] ss:$16 sps:$4 sm:$0xff]  }
 0xa32   : > { %13618 = vmatprep.subr.bf16.mxu1 %v17768_v35  ;;  %v17814_v35 = vld [vmem:[#allocation14 + $0x988] ss:$16 sps:$4 sm:$0xff]  }
 0xa33   : > { %13598 = vmatpush2.bf16.msra.mxu0 %v17745_v2  ;;  %v17828_v2 = vld [vmem:[#allocation14 + $0x94c] ss:$16 sps:$4 sm:$0xff]  }
 0xa34   : > { %13599 = vmatprep.subr.bf16.mxu0 %v17750_v62  ;;  %v17799_v62 = vld [vmem:[#allocation14 + $0xa28] ss:$16 sps:$4 sm:$0xff]  }
 0xa35   : > { %13619 = vmatpush1.bf16.msra.mxu1 %v17766_v6  ;;  %v17801_v6 = vld [vmem:[#allocation14 + $0xa2c] ss:$16 sps:$4 sm:$0xff]  }
 0xa36   : > { %13620 = vmatprep.subr.bf16.mxu1 %v17774_v42  ;;  %v17820_v42 = vld [vmem:[#allocation14 + $0x968] ss:$16 sps:$4 sm:$0xff]  }
 0xa37   : > { %13600 = vmatpush2.bf16.msra.mxu0 %v17748_v8  ;;  %v17834_v8 = vld [vmem:[#allocation14 + $0x92c] ss:$16 sps:$4 sm:$0xff]  }
 0xa38   : > { %13601 = vmatprep.subr.bf16.mxu0 %v17756_v17  ;;  %v17805_v17 = vld [vmem:[#allocation14 + $0xa08] ss:$16 sps:$4 sm:$0xff]  }
 0xa39   : > { %13621 = vmatpush1.bf16.msra.mxu1 %v17772_v52  ;;  %v17807_v52 = vld [vmem:[#allocation14 + $0xa0c] ss:$16 sps:$4 sm:$0xff]  }
 0xa3a   : > { %13622 = vmatprep.subr.bf16.mxu1 %v17780_v5  ;;  %v17826_v5 = vld [vmem:[#allocation14 + $0x948] ss:$16 sps:$4 sm:$0xff]  }
 0xa3b   : > { %13602 = vmatpush2.bf16.msra.mxu0 %v17754_v47  ;;  %v17840_v47 = vld [vmem:[#allocation14 + $0x90c] ss:$16 sps:$4 sm:$0xff]  }
 0xa3c   : > { %13653 = vmatprep.subr.bf16.mxu0 %v17765_v61  ;;  %v17811_v61 = vld [vmem:[#allocation14 + $0xbe8] ss:$16 sps:$4 sm:$0xff]  }
 0xa3d   : > { %13623 = vmatpush1.bf16.msra.mxu1 %v17778_v57  ;;  %v17813_v57 = vld [vmem:[#allocation14 + $0xbec] ss:$16 sps:$4 sm:$0xff]  }
 0xa3e   : > { %13624 = vmatprep.subr.bf16.mxu1 %v17786_v10  ;;  %v13359_v56 = vpop.f32.mrf.mxu0  ;;  %13604 = vmatmul.mubr.bf16.vlgmr.msra.gmra.mxu0 %v20590_v22  ;;  %v17775_v22 = vld [vmem:[#allocation14 + $0xaa8] ss:$16 sps:$4 sm:$0xff]  }
 0xa3f   : > { %v20792_v25 = vadd.f32 %v13359_v56, %v13319_v59  ;;  %13654 = vmatpush1.bf16.msra.mxu0 %v17763_v28  ;;  %13685 = vmatprep.mubr.bf16.mxu0 %v20594_v63  ;;  %v17783_v59 = vld [vmem:[#allocation14 + $0xa8c] ss:$16 sps:$4 sm:$0xff]   ;;  %v17832_v10 = vld [vmem:[#allocation14 + $0x928] ss:$16 sps:$4 sm:$0xff]  }
 0xa40   : > { %v13361_v43 = vpop.f32.mrf.mxu0  ;;  %13655 = vmatprep.subr.bf16.mxu0 %v17771_v4  ;;  %v17810_v63 = vld [vmem:[#allocation14 + $0x9ac] ss:$16 sps:$4 sm:$0xff]   ;;  %v17817_v4 = vld [vmem:[#allocation14 + $0xbc8] ss:$16 sps:$4 sm:$0xff]  }
 0xa41   : > { %13625 = vmatpush1.bf16.msra.mxu1 %v17784_v18  ;;  %v20795_v48 = vadd.f32 %v13361_v43, %v13321_v44  ;;  %v17808_v44 = vld [vmem:[#allocation14 + $0x9a8] ss:$16 sps:$4 sm:$0xff]   ;;  %v17819_v18 = vld [vmem:[#allocation14 + $0xbcc] ss:$16 sps:$4 sm:$0xff]  }
 0xa42   : > { %13626 = vmatprep.subr.bf16.mxu1 %v17792_v31  ;;  %v13363_v3 = vpop.f32.mrf.mxu0  ;;  %v17838_v31 = vld [vmem:[#allocation14 + $0x908] ss:$16 sps:$4 sm:$0xff]   ;;  %v17849_v28 = vld [vmem:[#allocation14 + $0xcec] ss:$16 sps:$4 sm:$0xff]  }
 0xa43   : > { %13656 = vmatpush1.bf16.msra.mxu0 %v17769_v34  ;;  %v17847_v56 = vld [vmem:[#allocation14 + $0xce8] ss:$16 sps:$4 sm:$0xff]   ;;  %v17831_v43 = vld [vmem:[#allocation14 + $0xb8c] ss:$16 sps:$4 sm:$0xff]  }
 0xa44   : > { %v13364_v19 = vpop.f32.mrf.mxu0  ;;  %13657 = vmatprep.subr.bf16.mxu0 %v17777_v51  ;;  %v17823_v34 = vld [vmem:[#allocation14 + $0xba8] ss:$16 sps:$4 sm:$0xff]  }
 0xa45   : > { %13627 = vmatpush1.bf16.msra.mxu1 %v17790_v23  ;;  %v17825_v23 = vld [vmem:[#allocation14 + $0xbac] ss:$16 sps:$4 sm:$0xff]   ;;  %v17853_v3 = vld [vmem:[#allocation14 + $0xcc8] ss:$16 sps:$4 sm:$0xff]  }
 0xa46   : > { %13628 = vmatprep.subr.bf16.mxu1 %v17798_v1  ;;  %v17855_v1 = vld [vmem:[#allocation14 + $0xccc] ss:$16 sps:$4 sm:$0xff]   ;;  %v17829_v19 = vld [vmem:[#allocation14 + $0xb88] ss:$16 sps:$4 sm:$0xff]  }
 0xa47   : > { %13658 = vmatpush1.bf16.msra.mxu0 %v17775_v22  ;;  %v17858_v22 = vld [vmem:[#allocation14 + $0xcac] ss:$16 sps:$4 sm:$0xff]  }
 0xa48   : > { %13659 = vmatprep.subr.bf16.mxu0 %v17783_v59 }
 0xa49   : > { %13629 = vmatpush2.bf16.msra.mxu1 %v17796_v36 }
 0xa4a   : > { %13630 = vmatprep.subr.bf16.mxu1 %v17804_v21 }
 0xa4b   : > { %13660 = vmatpush1.bf16.msra.mxu0 %v17781_v13  ;;  %v17856_v13 = vld [vmem:[#allocation14 + $0xca8] ss:$16 sps:$4 sm:$0xff]  }
 0xa4c   : > { %13661 = vmatprep.subr.bf16.mxu0 %v17789_v58 }
 0xa4d   : > { %13631 = vmatpush2.bf16.msra.mxu1 %v17802_v16  ;;  %v17837_v16 = vld [vmem:[#allocation14 + $0xb6c] ss:$16 sps:$4 sm:$0xff]  }
 0xa4e   : > { %13632 = vmatprep.subr.bf16.mxu1 %v17810_v63 }
 0xa4f   : > { %13662 = vmatpush1.bf16.msra.mxu0 %v17787_v40  ;;  %v17841_v40 = vld [vmem:[#allocation14 + $0xb48] ss:$16 sps:$4 sm:$0xff]  }
 0xa50   : > { %13663 = vmatprep.subr.bf16.mxu0 %v17795_v29  ;;  %v17868_v29 = vld [vmem:[#allocation14 + $0xc68] ss:$16 sps:$4 sm:$0xff]  }
 0xa51   : > { %13633 = vmatpush2.bf16.msra.mxu1 %v17808_v44  ;;  %v17862_v44 = vld [vmem:[#allocation14 + $0xc88] ss:$16 sps:$4 sm:$0xff]  }
 0xa52   : > { %13634 = vmatprep.subr.bf16.mxu1 %v17816_v53  ;;  %v17870_v53 = vld [vmem:[#allocation14 + $0xc6c] ss:$16 sps:$4 sm:$0xff]  }
 0xa53   : > { %13664 = vmatpush1.bf16.msra.mxu0 %v17793_v38  ;;  %v17852_v38 = vld [vmem:[#allocation14 + $0xb0c] ss:$16 sps:$4 sm:$0xff]  }
 0xa54   : > { %13665 = vmatprep.subr.bf16.mxu0 %v17801_v6  ;;  %v17874_v6 = vld [vmem:[#allocation14 + $0xc48] ss:$16 sps:$4 sm:$0xff]  }
 0xa55   : > { %13635 = vmatpush2.bf16.msra.mxu1 %v17814_v35  ;;  %v17876_v35 = vld [vmem:[#allocation14 + $0xc4c] ss:$16 sps:$4 sm:$0xff]  }
 0xa56   : > { %13636 = vmatprep.subr.bf16.mxu1 %v17822_v46  ;;  %v17844_v46 = vld [vmem:[#allocation14 + $0xb28] ss:$16 sps:$4 sm:$0xff]  }
 0xa57   : > { %13666 = vmatpush1.bf16.msra.mxu0 %v17799_v62  ;;  %v17861_v62 = vld [vmem:[#allocation14 + $0xeec] ss:$16 sps:$4 sm:$0xff]  }
 0xa58   : > { %13667 = vmatprep.subr.bf16.mxu0 %v17807_v52  ;;  %v17880_v52 = vld [vmem:[#allocation14 + $0xc28] ss:$16 sps:$4 sm:$0xff]  }
 0xa59   : > { %13637 = vmatpush2.bf16.msra.mxu1 %v17820_v42  ;;  %v17882_v42 = vld [vmem:[#allocation14 + $0xc2c] ss:$16 sps:$4 sm:$0xff]  }
 0xa5a   : > { %13638 = vmatprep.subr.bf16.mxu1 %v17828_v2  ;;  %v17850_v2 = vld [vmem:[#allocation14 + $0xb08] ss:$16 sps:$4 sm:$0xff]  }
 0xa5b   : > { %13668 = vmatpush1.bf16.msra.mxu0 %v17805_v17  ;;  %v17867_v17 = vld [vmem:[#allocation14 + $0xecc] ss:$16 sps:$4 sm:$0xff]  }
 0xa5c   : > { %13669 = vmatprep.subr.bf16.mxu0 %v17813_v57  ;;  %v17886_v57 = vld [vmem:[#allocation14 + $0xc08] ss:$16 sps:$4 sm:$0xff]  }
 0xa5d   : > { %13639 = vmatpush2.bf16.msra.mxu1 %v17826_v5  ;;  %v17888_v5 = vld [vmem:[#allocation14 + $0xc0c] ss:$16 sps:$4 sm:$0xff]  }
 0xa5e   : > { %13640 = vmatprep.subr.bf16.mxu1 %v17834_v8  ;;  %v17859_v8 = vld [vmem:[#allocation14 + $0xee8] ss:$16 sps:$4 sm:$0xff]  }
 0xa5f   : > { %13670 = vmatpush2.bf16.msra.mxu0 %v17811_v61 }
 0xa60   : > { %13671 = vmatprep.subr.bf16.mxu0 %v17819_v18  ;;  %v17865_v18 = vld [vmem:[#allocation14 + $0xec8] ss:$16 sps:$4 sm:$0xff]  }
 0xa61   : > { %13641 = vmatpush2.bf16.msra.mxu1 %v17832_v10 }
 0xa62   : > { %13642 = vmatprep.subr.bf16.mxu1 %v17840_v47  ;;  %v17894_v47 = vld [vmem:[#allocation14 + $0xdec] ss:$16 sps:$4 sm:$0xff]  }
 0xa63   : > { %13672 = vmatpush2.bf16.msra.mxu0 %v17817_v4  ;;  %v17873_v4 = vld [vmem:[#allocation14 + $0xeac] ss:$16 sps:$4 sm:$0xff]  }
 0xa64   : > { %13673 = vmatprep.subr.bf16.mxu0 %v17825_v23 }
 0xa65   : > { %13643 = vmatpush2.bf16.msra.mxu1 %v17838_v31  ;;  %v14116_v31 = vld [vmem:[#allocation26] sm:$0x7f] }
 0xa66   : > { %13694 = vmatprep.subr.bf16.mxu1 %v17849_v28 }
 0xa67   : > { %13674 = vmatpush2.bf16.msra.mxu0 %v17823_v34  ;;  %v14117_v34 = vld [vmem:[#allocation26 + $0x8] sm:$0x7f] }
 0xa68   : > { %v13400_v51 = vpop.f32.mrf.mxu1  ;;  %13645 = vmatmul.mubr.bf16.vlgmr.msra.gmra.mxu1 %v20609_v20  ;;  %13675 = vmatprep.subr.bf16.mxu0 %v17831_v43  ;;  %v17864_v20 = vld [vmem:[#allocation14 + $0xc8c] ss:$16 sps:$4 sm:$0xff]  }
 0xa69   : > { %v13401_v36 = vadd.f32 %v13400_v51, %v20792_v25  ;;  %13695 = vmatpush1.bf16.msra.mxu1 %v17847_v56  ;;  %13726 = vmatprep.mubr.bf16.mxu1 %v20613_v26  ;;  %v17835_v25 = vld [vmem:[#allocation14 + $0xb68] ss:$16 sps:$4 sm:$0xff]   ;;  %v17843_v26 = vld [vmem:[#allocation14 + $0xb4c] ss:$16 sps:$4 sm:$0xff]  }
 0xa6a   : > { %v13402_v21 = vpop.f32.mrf.mxu1  ;;  %13696 = vmatprep.subr.bf16.mxu1 %v17855_v1  ;;  %v17892_v1 = vld [vmem:[#allocation14 + $0xde8] ss:$16 sps:$4 sm:$0xff]  }
 0xa6b   : > { %v13403_v59 = vadd.f32 %v13402_v21, %v20795_v48  ;;  %13676 = vmatpush2.bf16.msra.mxu0 %v17829_v19  ;;  %v17846_v48 = vld [vmem:[#allocation14 + $0xb2c] ss:$16 sps:$4 sm:$0xff]  }
 0xa6c   : > { %v13404_v63 = vpop.f32.mrf.mxu1  ;;  %13677 = vmatprep.subr.bf16.mxu0 %v17837_v16  ;;  %v17898_v16 = vld [vmem:[#allocation14 + $0xdc8] ss:$16 sps:$4 sm:$0xff]  }
 0xa6d   : > { %13697 = vmatpush1.bf16.msra.mxu1 %v17853_v3  ;;  %v17871_v3 = vld [vmem:[#allocation14 + $0xea8] ss:$16 sps:$4 sm:$0xff]  }
 0xa6e   : > { %v13405_v58 = vpop.f32.mrf.mxu1  ;;  %13698 = vmatprep.subr.bf16.mxu1 %v17858_v22  ;;  %v17879_v22 = vld [vmem:[#allocation14 + $0xe8c] ss:$16 sps:$4 sm:$0xff]  }
 0xa6f   : > { %13678 = vmatpush2.bf16.msra.mxu0 %v17835_v25  ;;  %v17885_v58 = vld [vmem:[#allocation14 + $0xe6c] ss:$16 sps:$4 sm:$0xff]  }
 0xa70   : > { %13679 = vmatprep.subr.bf16.mxu0 %v17843_v26  ;;  %v17904_v26 = vld [vmem:[#allocation14 + $0xda8] ss:$16 sps:$4 sm:$0xff]  }
 0xa71   : > { %13699 = vmatpush1.bf16.msra.mxu1 %v17856_v13  ;;  %v17877_v13 = vld [vmem:[#allocation14 + $0xe88] ss:$16 sps:$4 sm:$0xff]  }
 0xa72   : > { %13700 = vmatprep.subr.bf16.mxu1 %v17864_v20 }
 0xa73   : > { %13680 = vmatpush2.bf16.msra.mxu0 %v17841_v40  ;;  %v17883_v40 = vld [vmem:[#allocation14 + $0xe68] ss:$16 sps:$4 sm:$0xff]  }
 0xa74   : > { %13681 = vmatprep.subr.bf16.mxu0 %v17846_v48  ;;  %v17891_v48 = vld [vmem:[#allocation14 + $0xe4c] ss:$16 sps:$4 sm:$0xff]  }
 0xa75   : > { %13701 = vmatpush1.bf16.msra.mxu1 %v17862_v44 }
 0xa76   : > { %13702 = vmatprep.subr.bf16.mxu1 %v17870_v53  ;;  %v17912_v53 = vld [vmem:[#allocation14 + $0xd8c] ss:$16 sps:$4 sm:$0xff]  }
 0xa77   : > { %13682 = vmatpush2.bf16.msra.mxu0 %v17844_v46  ;;  %v17889_v46 = vld [vmem:[#allocation14 + $0xe48] ss:$16 sps:$4 sm:$0xff]  }
 0xa78   : > { %13683 = vmatprep.subr.bf16.mxu0 %v17852_v38  ;;  %v17897_v38 = vld [vmem:[#allocation14 + $0xe2c] ss:$16 sps:$4 sm:$0xff]  }
 0xa79   : > { %13703 = vmatpush1.bf16.msra.mxu1 %v17868_v29  ;;  %v17910_v29 = vld [vmem:[#allocation14 + $0xd88] ss:$16 sps:$4 sm:$0xff]  }
 0xa7a   : > { %13704 = vmatprep.subr.bf16.mxu1 %v17876_v35  ;;  %v17918_v35 = vld [vmem:[#allocation14 + $0xd6c] ss:$16 sps:$4 sm:$0xff]  }
 0xa7b   : > { %13684 = vmatpush2.bf16.msra.mxu0 %v17850_v2  ;;  %v17895_v2 = vld [vmem:[#allocation14 + $0xe28] ss:$16 sps:$4 sm:$0xff]  }
 0xa7c   : > { %13735 = vmatprep.subr.bf16.mxu0 %v17861_v62  ;;  %v17903_v62 = vld [vmem:[#allocation14 + $0xe0c] ss:$16 sps:$4 sm:$0xff]  }
 0xa7d   : > { %13705 = vmatpush1.bf16.msra.mxu1 %v17874_v6  ;;  %v17916_v6 = vld [vmem:[#allocation14 + $0xd68] ss:$16 sps:$4 sm:$0xff]  }
 0xa7e   : > { %13706 = vmatprep.subr.bf16.mxu1 %v17882_v42  ;;  %v13441_v10 = vpop.f32.mrf.mxu0  ;;  %13686 = vmatmul.mubr.bf16.vlgmr.msra.gmra.mxu0 %v20623_v0  ;;  %v17900_v0 = vld [vmem:[#allocation14 + $0xdcc] ss:$16 sps:$4 sm:$0xff]  }
 0xa7f   : > { %v13442_v61 = vadd.f32 %v13441_v10, %v13401_v36  ;;  %13736 = vmatpush1.bf16.msra.mxu0 %v17859_v8  ;;  %13767 = vmatprep.mubr.bf16.mxu0 %v20627_v9  ;;  %v17924_v42 = vld [vmem:[#allocation14 + $0xd4c] ss:$16 sps:$4 sm:$0xff]   ;;  %v17901_v8 = vld [vmem:[#allocation14 + $0xe08] ss:$16 sps:$4 sm:$0xff]  }
 0xa80   : > { %v13443_v28 = vpop.f32.mrf.mxu0  ;;  %13737 = vmatprep.subr.bf16.mxu0 %v17867_v17  ;;  %v17909_v17 = vld [vmem:[#allocation14 + $0xfec] ss:$16 sps:$4 sm:$0xff]  }
 0xa81   : > { %13707 = vmatpush1.bf16.msra.mxu1 %v17880_v52  ;;  %vm14104_vm13 = vcmp.ge.f32.partialorder %v13442_v61, 0.0  ;;  %v14108_v23 = vmul.f32 0.2, %v13442_v61  ;;  %v13444_v56 = vadd.f32 %v13443_v28, %v13403_v59  ;;  %v17906_v59 = vld [vmem:[#allocation14 + $0xdac] ss:$16 sps:$4 sm:$0xff]  }
 0xa82   : > { %13708 = vmatprep.subr.bf16.mxu1 %v17888_v5  ;;  %v13445_v43 = vpop.f32.mrf.mxu0  ;;  %v17922_v52 = vld [vmem:[#allocation14 + $0xd48] ss:$16 sps:$4 sm:$0xff]   ;;  %v17930_v5 = vld [vmem:[#allocation14 + $0xd2c] ss:$16 sps:$4 sm:$0xff]  }
 0xa83   : > { %v14112_v51 = vsel %vm14104_vm13, %v13442_v61, %v14108_v23  ;;  %vm14105_vm12 = vcmp.ge.f32.partialorder %v13444_v56, 0.0  ;;  %v14109_v36 = vmul.f32 0.2, %v13444_v56  ;;  %13738 = vmatpush1.bf16.msra.mxu0 %v17865_v18  ;;  %v17936_v10 = vld [vmem:[#allocation14 + $0xd0c] ss:$16 sps:$4 sm:$0xff]  }
 0xa84   : > { %v14120_v9 = vmul.f32 %v14116_v31, %v14112_v51  ;;  %v13446_v21 = vpop.f32.mrf.mxu0  ;;  %13739 = vmatprep.subr.bf16.mxu0 %v17873_v4  ;;  %v17915_v61 = vld [vmem:[#allocation14 + $0xfcc] ss:$16 sps:$4 sm:$0xff]   ;;  %v17934_v18 = vld [vmem:[#allocation14 + $0xd08] ss:$16 sps:$4 sm:$0xff]  }
 0xa85   : > { %13709 = vmatpush1.bf16.msra.mxu1 %v17886_v57  ;;  %v14113_v19 = vsel %vm14105_vm12, %v13444_v56, %v14109_v36  ;;  %v17928_v57 = vld [vmem:[#allocation14 + $0xd28] ss:$16 sps:$4 sm:$0xff]   ;;  %v17945_v31 = vld [vmem:[#allocation14 + $0x10ec] ss:$16 sps:$4 sm:$0xff]  }
 0xa86   : > { %13710 = vmatprep.subr.bf16.mxu1 %v17894_v47  ;;  %v14121_v63 = vmul.f32 %v14117_v34, %v14113_v19  ;;  %v14124_v20 = vsel %vm6163_vm15, %v14120_v9, 0.0  ;;  %v17907_v47 = vld [vmem:[#allocation14 + $0xfe8] ss:$16 sps:$4 sm:$0xff]   ;;  %v17921_v4 = vld [vmem:[#allocation14 + $0xfac] ss:$16 sps:$4 sm:$0xff]  }
 0xa87   : > { %13740 = vmatpush1.bf16.msra.mxu0 %v17871_v3  ;;  %v17913_v28 = vld [vmem:[#allocation14 + $0xfc8] ss:$16 sps:$4 sm:$0xff]   ;;  %v17951_v56 = vld [vmem:[#allocation14 + $0x10cc] ss:$16 sps:$4 sm:$0xff]  }
 0xa88   : > { %13741 = vmatprep.subr.bf16.mxu0 %v17879_v22  ;;  %v14125_v25 = vsel %vm6163_vm15, %v14121_v63, 0.0  ;;  %v17943_v23 = vld [vmem:[#allocation14 + $0x10e8] ss:$16 sps:$4 sm:$0xff]   ;;  %v17927_v34 = vld [vmem:[#allocation14 + $0xf8c] ss:$16 sps:$4 sm:$0xff]  }
 0xa89   : > { %13711 = vmatpush2.bf16.msra.mxu1 %v17892_v1  ;;  %v20805_v44 = vadd.f32 %v14125_v25, %v14124_v20  ;;  %v17919_v1 = vld [vmem:[#allocation14 + $0xfa8] ss:$16 sps:$4 sm:$0xff]   ;;  %v17954_v36 = vld [vmem:[#allocation14 + $0x10ac] ss:$16 sps:$4 sm:$0xff]  }
 0xa8a   : > { %13712 = vmatprep.subr.bf16.mxu1 %v17900_v0  ;;  %v17949_v0 = vld [vmem:[#allocation14 + $0x10c8] ss:$16 sps:$4 sm:$0xff]   ;;  %v17933_v9 = vld [vmem:[#allocation14 + $0xf6c] ss:$16 sps:$4 sm:$0xff]  }
 0xa8b   : > { %13742 = vmatpush1.bf16.msra.mxu0 %v17877_v13  ;;  %v17925_v3 = vld [vmem:[#allocation14 + $0xf88] ss:$16 sps:$4 sm:$0xff]   ;;  %v17972_v25 = vld [vmem:[#allocation14 + $0x104c] ss:$16 sps:$4 sm:$0xff]  }
 0xa8c   : > { %13743 = vmatprep.subr.bf16.mxu0 %v17885_v58  ;;  %v17952_v22 = vld [vmem:[#allocation14 + $0x10a8] ss:$16 sps:$4 sm:$0xff]   ;;  %v17942_v58 = vld [vmem:[#allocation14 + $0xf2c] ss:$16 sps:$4 sm:$0xff]  }
 0xa8d   : > { %13713 = vmatpush2.bf16.msra.mxu1 %v17898_v16  ;;  %v17960_v16 = vld [vmem:[#allocation14 + $0x108c] ss:$16 sps:$4 sm:$0xff]   ;;  %v17931_v63 = vld [vmem:[#allocation14 + $0xf68] ss:$16 sps:$4 sm:$0xff]  }
 0xa8e   : > { %13714 = vmatprep.subr.bf16.mxu1 %v17906_v59  ;;  %v17966_v59 = vld [vmem:[#allocation14 + $0x106c] ss:$16 sps:$4 sm:$0xff]   ;;  %v17937_v13 = vld [vmem:[#allocation14 + $0xf48] ss:$16 sps:$4 sm:$0xff]  }
 0xa8f   : > { %13744 = vmatpush1.bf16.msra.mxu0 %v17883_v40  ;;  %v17964_v20 = vld [vmem:[#allocation14 + $0x1068] ss:$16 sps:$4 sm:$0xff]   ;;  %v7550_v40 = vsub.s32 2, %v20415_v50 }
 0xa90   : > { %13745 = vmatprep.subr.bf16.mxu0 %v17891_v48  ;;  %v17970_v48 = vld [vmem:[#allocation14 + $0x1048] ss:$16 sps:$4 sm:$0xff]  }
 0xa91   : > { %13715 = vmatpush2.bf16.msra.mxu1 %v17904_v26  ;;  %v17940_v26 = vld [vmem:[#allocation14 + $0xf28] ss:$16 sps:$4 sm:$0xff]  }
 0xa92   : > { %13716 = vmatprep.subr.bf16.mxu1 %v17912_v53  ;;  %v17948_v53 = vld [vmem:[#allocation14 + $0xf0c] ss:$16 sps:$4 sm:$0xff]  }
 0xa93   : > { %13746 = vmatpush1.bf16.msra.mxu0 %v17889_v46  ;;  %v17946_v46 = vld [vmem:[#allocation14 + $0xf08] ss:$16 sps:$4 sm:$0xff]  }
 0xa94   : > { %13747 = vmatprep.subr.bf16.mxu0 %v17897_v38  ;;  %v17957_v38 = vld [vmem:[#allocation14 + $0x12ec] ss:$16 sps:$4 sm:$0xff]  }
 0xa95   : > { %13717 = vmatpush2.bf16.msra.mxu1 %v17910_v29  ;;  %v17978_v29 = vld [vmem:[#allocation14 + $0x102c] ss:$16 sps:$4 sm:$0xff]  }
 0xa96   : > { %13718 = vmatprep.subr.bf16.mxu1 %v17918_v35  ;;  %v7554_v35 = vsub.s32 3, %v20415_v50  ;;  %v17990_v50 = vld [vmem:[#allocation14 + $0x11ec] ss:$16 sps:$4 sm:$0xff]  }
 0xa97   : > { %13748 = vmatpush1.bf16.msra.mxu0 %v17895_v2  ;;  %v17976_v2 = vld [vmem:[#allocation14 + $0x1028] ss:$16 sps:$4 sm:$0xff]  }
 0xa98   : > { %13749 = vmatprep.subr.bf16.mxu0 %v17903_v62  ;;  %v17984_v62 = vld [vmem:[#allocation14 + $0x100c] ss:$16 sps:$4 sm:$0xff]  }
 0xa99   : > { %13719 = vmatpush2.bf16.msra.mxu1 %v17916_v6  ;;  %v18337_v6 = vld [vmem:[#allocation20] sm:$0xf] }
 0xa9a   : > { %13720 = vmatprep.subr.bf16.mxu1 %v17924_v42  ;;  %v7551_v42 = vrot.slane %v18337_v6, %v7550_v40  ;;  %v18024_v40 = vld [vmem:[#allocation14 + $0x1128] ss:$16 sps:$4 sm:$0xff]  }
 0xa9b   : > { %13750 = vmatpush1.bf16.msra.mxu0 %v17901_v8  ;;  %v17963_v8 = vld [vmem:[#allocation14 + $0x12cc] ss:$16 sps:$4 sm:$0xff]  }
 0xa9c   : > { %13751 = vmatprep.subr.bf16.mxu0 %v17909_v17 }
 0xa9d   : > { %13721 = vmatpush2.bf16.msra.mxu1 %v17922_v52  ;;  %v7555_v52 = vrot.slane %v18337_v6, %v7554_v35  ;;  %v18011_v35 = vld [vmem:[#allocation14 + $0x13cc] ss:$16 sps:$4 sm:$0xff]   ;;  %v18009_v6 = vld [vmem:[#allocation14 + $0x13c8] ss:$16 sps:$4 sm:$0xff]  }
 0xa9e   : > { %13722 = vmatprep.subr.bf16.mxu1 %v17930_v5  ;;  %v17955_v5 = vld [vmem:[#allocation14 + $0x12e8] ss:$16 sps:$4 sm:$0xff]  }
 0xa9f   : > { %13752 = vmatpush2.bf16.msra.mxu0 %v17907_v47 }
 0xaa0   : > { %13753 = vmatprep.subr.bf16.mxu0 %v17915_v61 }
 0xaa1   : > { %13723 = vmatpush2.bf16.msra.mxu1 %v17928_v57  ;;  %v17982_v57 = vld [vmem:[#allocation14 + $0x1008] ss:$16 sps:$4 sm:$0xff]  }
 0xaa2   : > { %13724 = vmatprep.subr.bf16.mxu1 %v17936_v10 }
 0xaa3   : > { %13754 = vmatpush2.bf16.msra.mxu0 %v17913_v28  ;;  %v17969_v28 = vld [vmem:[#allocation14 + $0x12ac] ss:$16 sps:$4 sm:$0xff]  }
 0xaa4   : > { %13755 = vmatprep.subr.bf16.mxu0 %v17921_v4 }
 0xaa5   : > { %13725 = vmatpush2.bf16.msra.mxu1 %v17934_v18  ;;  %v17961_v18 = vld [vmem:[#allocation14 + $0x12c8] ss:$16 sps:$4 sm:$0xff]  }
 0xaa6   : > { %13776 = vmatprep.subr.bf16.mxu1 %v17945_v31 }
 0xaa7   : > { %13756 = vmatpush2.bf16.msra.mxu0 %v17919_v1  ;;  %v17996_v1 = vld [vmem:[#allocation14 + $0x11cc] ss:$16 sps:$4 sm:$0xff]  }
 0xaa8   : > { %v13482_v43 = vpop.f32.mrf.mxu1  ;;  %13727 = vmatmul.mubr.bf16.vlgmr.msra.gmra.mxu1 %v20642_v24  ;;  %13757 = vmatprep.subr.bf16.mxu0 %v17927_v34  ;;  %v17939_v24 = vld [vmem:[#allocation14 + $0xf4c] ss:$16 sps:$4 sm:$0xff]  }
 0xaa9   : > { %13777 = vmatpush1.bf16.msra.mxu1 %v17943_v23  ;;  %13808 = vmatprep.mubr.bf16.mxu1 %v20646_v54  ;;  %v17958_v54 = vld [vmem:[#allocation14 + $0x1088] ss:$16 sps:$4 sm:$0xff]   ;;  %v13483_v17 = vadd.f32 %v13482_v43, %v7551_v42  ;;  %v17975_v43 = vld [vmem:[#allocation14 + $0x128c] ss:$16 sps:$4 sm:$0xff]  }
 0xaaa   : > { %v13484_v51 = vpop.f32.mrf.mxu1  ;;  %13778 = vmatprep.subr.bf16.mxu1 %v17951_v56  ;;  %v17988_v23 = vld [vmem:[#allocation14 + $0x11e8] ss:$16 sps:$4 sm:$0xff]   ;;  %v18017_v42 = vld [vmem:[#allocation14 + $0x13ac] ss:$16 sps:$4 sm:$0xff]  }
 0xaab   : > { %13758 = vmatpush2.bf16.msra.mxu0 %v17925_v3  ;;  %v13485_v47 = vadd.f32 %v13484_v51, %v7555_v52  ;;  %v17973_v51 = vld [vmem:[#allocation14 + $0x1288] ss:$16 sps:$4 sm:$0xff]  }
 0xaac   : > { %v13486_v21 = vpop.f32.mrf.mxu1  ;;  %13759 = vmatprep.subr.bf16.mxu0 %v17933_v9  ;;  %v18000_v3 = vld [vmem:[#allocation14 + $0x11a8] ss:$16 sps:$4 sm:$0xff]   ;;  %v18008_v9 = vld [vmem:[#allocation14 + $0x118c] ss:$16 sps:$4 sm:$0xff]  }
 0xaad   : > { %13779 = vmatpush1.bf16.msra.mxu1 %v17949_v0  ;;  %v17994_v0 = vld [vmem:[#allocation14 + $0x11c8] ss:$16 sps:$4 sm:$0xff]  }
 0xaae   : > { %v13487_v19 = vpop.f32.mrf.mxu1  ;;  %13780 = vmatprep.subr.bf16.mxu1 %v17954_v36  ;;  %v17981_v36 = vld [vmem:[#allocation14 + $0x126c] ss:$16 sps:$4 sm:$0xff]   ;;  %v17979_v21 = vld [vmem:[#allocation14 + $0x1268] ss:$16 sps:$4 sm:$0xff]  }
 0xaaf   : > { %13760 = vmatpush2.bf16.msra.mxu0 %v17931_v63  ;;  %v18006_v19 = vld [vmem:[#allocation14 + $0x1188] ss:$16 sps:$4 sm:$0xff]  }
 0xab0   : > { %13761 = vmatprep.subr.bf16.mxu0 %v17939_v24  ;;  %v17985_v63 = vld [vmem:[#allocation14 + $0x1248] ss:$16 sps:$4 sm:$0xff]   ;;  %v17993_v24 = vld [vmem:[#allocation14 + $0x122c] ss:$16 sps:$4 sm:$0xff]  }
 0xab1   : > { %13781 = vmatpush1.bf16.msra.mxu1 %v17952_v22  ;;  %v17987_v22 = vld [vmem:[#allocation14 + $0x124c] ss:$16 sps:$4 sm:$0xff]   ;;  %v18015_v52 = vld [vmem:[#allocation14 + $0x13a8] ss:$16 sps:$4 sm:$0xff]  }
 0xab2   : > { %13782 = vmatprep.subr.bf16.mxu1 %v17960_v16  ;;  %v18014_v16 = vld [vmem:[#allocation14 + $0x116c] ss:$16 sps:$4 sm:$0xff]  }
 0xab3   : > { %13762 = vmatpush2.bf16.msra.mxu0 %v17937_v13  ;;  %v17991_v13 = vld [vmem:[#allocation14 + $0x1228] ss:$16 sps:$4 sm:$0xff]  }
 0xab4   : > { %13763 = vmatprep.subr.bf16.mxu0 %v17942_v58  ;;  %v17999_v58 = vld [vmem:[#allocation14 + $0x120c] ss:$16 sps:$4 sm:$0xff]  }
 0xab5   : > { %13783 = vmatpush1.bf16.msra.mxu1 %v17958_v54  ;;  %v18012_v54 = vld [vmem:[#allocation14 + $0x1168] ss:$16 sps:$4 sm:$0xff]  }
 0xab6   : > { %13784 = vmatprep.subr.bf16.mxu1 %v17966_v59  ;;  %v18020_v59 = vld [vmem:[#allocation14 + $0x114c] ss:$16 sps:$4 sm:$0xff]  }
 0xab7   : > { %13764 = vmatpush2.bf16.msra.mxu0 %v17940_v26  ;;  %v17997_v26 = vld [vmem:[#allocation14 + $0x1208] ss:$16 sps:$4 sm:$0xff]  }
 0xab8   : > { %13765 = vmatprep.subr.bf16.mxu0 %v17948_v53  ;;  %v18005_v53 = vld [vmem:[#allocation14 + $0x13ec] ss:$16 sps:$4 sm:$0xff]  }
 0xab9   : > { %13785 = vmatpush1.bf16.msra.mxu1 %v17964_v20  ;;  %v18018_v20 = vld [vmem:[#allocation14 + $0x1148] ss:$16 sps:$4 sm:$0xff]  }
 0xaba   : > { %13786 = vmatprep.subr.bf16.mxu1 %v17972_v25  ;;  %v18026_v25 = vld [vmem:[#allocation14 + $0x112c] ss:$16 sps:$4 sm:$0xff]  }
 0xabb   : > { %13766 = vmatpush2.bf16.msra.mxu0 %v17946_v46  ;;  %v18030_v46 = vld [vmem:[#allocation14 + $0x1108] ss:$16 sps:$4 sm:$0xff]  }
 0xabc   : > { %13817 = vmatprep.subr.bf16.mxu0 %v17957_v38  ;;  %v18041_v38 = vld [vmem:[#allocation14 + $0x14ec] ss:$16 sps:$4 sm:$0xff]  }
 0xabd   : > { %13787 = vmatpush1.bf16.msra.mxu1 %v17970_v48  ;;  %v18032_v48 = vld [vmem:[#allocation14 + $0x110c] ss:$16 sps:$4 sm:$0xff]  }
 0xabe   : > { %13788 = vmatprep.subr.bf16.mxu1 %v17978_v29  ;;  %v13523_v10 = vpop.f32.mrf.mxu0  ;;  %13768 = vmatmul.mubr.bf16.vlgmr.msra.gmra.mxu0 %v20656_v15  ;;  %v17967_v15 = vld [vmem:[#allocation14 + $0x12a8] ss:$16 sps:$4 sm:$0xff]  }
 0xabf   : > { %v20812_v61 = vadd.f32 %v13523_v10, %v13483_v17  ;;  %13818 = vmatpush1.bf16.msra.mxu0 %v17955_v5  ;;  %13849 = vmatprep.mubr.bf16.mxu0 %v20660_v7  ;;  %v18002_v7 = vld [vmem:[#allocation14 + $0x11ac] ss:$16 sps:$4 sm:$0xff]   ;;  %v18003_v29 = vld [vmem:[#allocation14 + $0x13e8] ss:$16 sps:$4 sm:$0xff]  }
 0xac0   : > { %v13525_v31 = vpop.f32.mrf.mxu0  ;;  %13819 = vmatprep.subr.bf16.mxu0 %v17963_v8  ;;  %v18023_v5 = vld [vmem:[#allocation14 + $0x138c] ss:$16 sps:$4 sm:$0xff]  }
 0xac1   : > { %13789 = vmatpush1.bf16.msra.mxu1 %v17976_v2  ;;  %v20815_v4 = vadd.f32 %v13525_v31, %v13485_v47  ;;  %v18039_v2 = vld [vmem:[#allocation14 + $0x14e8] ss:$16 sps:$4 sm:$0xff]   ;;  %v18029_v31 = vld [vmem:[#allocation14 + $0x136c] ss:$16 sps:$4 sm:$0xff]  }
 0xac2   : > { %13790 = vmatprep.subr.bf16.mxu1 %v17984_v62  ;;  %v13527_v56 = vpop.f32.mrf.mxu0  ;;  %v18047_v62 = vld [vmem:[#allocation14 + $0x14cc] ss:$16 sps:$4 sm:$0xff]   ;;  %v18021_v47 = vld [vmem:[#allocation14 + $0x1388] ss:$16 sps:$4 sm:$0xff]  }
 0xac3   : > { %13820 = vmatpush1.bf16.msra.mxu0 %v17961_v18 }
 0xac4   : > { %v13528_v34 = vpop.f32.mrf.mxu0  ;;  %13821 = vmatprep.subr.bf16.mxu0 %v17969_v28 }
 0xac5   : > { %13791 = vmatpush1.bf16.msra.mxu1 %v17982_v57  ;;  %v18045_v57 = vld [vmem:[#allocation14 + $0x14c8] ss:$16 sps:$4 sm:$0xff]  }
 0xac6   : > { %13792 = vmatprep.subr.bf16.mxu1 %v17990_v50  ;;  %v18050_v50 = vld [vmem:[#allocation14 + $0x14ac] ss:$16 sps:$4 sm:$0xff]   ;;  %v18033_v34 = vld [vmem:[#allocation14 + $0x1348] ss:$16 sps:$4 sm:$0xff]  }
 0xac7   : > { %13822 = vmatpush1.bf16.msra.mxu0 %v17967_v15  ;;  %v18062_v15 = vld [vmem:[#allocation14 + $0x146c] ss:$16 sps:$4 sm:$0xff]  }
 0xac8   : > { %13823 = vmatprep.subr.bf16.mxu0 %v17975_v43  ;;  %v18060_v43 = vld [vmem:[#allocation14 + $0x1468] ss:$16 sps:$4 sm:$0xff]  }
 0xac9   : > { %13793 = vmatpush2.bf16.msra.mxu1 %v17988_v23  ;;  %v18048_v23 = vld [vmem:[#allocation14 + $0x14a8] ss:$16 sps:$4 sm:$0xff]  }
 0xaca   : > { %13794 = vmatprep.subr.bf16.mxu1 %v17996_v1  ;;  %v18054_v1 = vld [vmem:[#allocation14 + $0x1488] ss:$16 sps:$4 sm:$0xff]  }
 0xacb   : > { %13824 = vmatpush1.bf16.msra.mxu0 %v17973_v51  ;;  %v18044_v51 = vld [vmem:[#allocation14 + $0x130c] ss:$16 sps:$4 sm:$0xff]  }
 0xacc   : > { %13825 = vmatprep.subr.bf16.mxu0 %v17981_v36  ;;  %v18066_v36 = vld [vmem:[#allocation14 + $0x1448] ss:$16 sps:$4 sm:$0xff]  }
 0xacd   : > { %13795 = vmatpush2.bf16.msra.mxu1 %v17994_v0  ;;  %v18068_v0 = vld [vmem:[#allocation14 + $0x144c] ss:$16 sps:$4 sm:$0xff]  }
 0xace   : > { %13796 = vmatprep.subr.bf16.mxu1 %v18002_v7  ;;  %v18036_v7 = vld [vmem:[#allocation14 + $0x1328] ss:$16 sps:$4 sm:$0xff]  }
 0xacf   : > { %13826 = vmatpush1.bf16.msra.mxu0 %v17979_v21  ;;  %v18053_v21 = vld [vmem:[#allocation14 + $0x16ec] ss:$16 sps:$4 sm:$0xff]  }
 0xad0   : > { %13827 = vmatprep.subr.bf16.mxu0 %v17987_v22  ;;  %v18072_v22 = vld [vmem:[#allocation14 + $0x1428] ss:$16 sps:$4 sm:$0xff]  }
 0xad1   : > { %13797 = vmatpush2.bf16.msra.mxu1 %v18000_v3  ;;  %v18074_v3 = vld [vmem:[#allocation14 + $0x142c] ss:$16 sps:$4 sm:$0xff]  }
 0xad2   : > { %13798 = vmatprep.subr.bf16.mxu1 %v18008_v9  ;;  %v18042_v9 = vld [vmem:[#allocation14 + $0x1308] ss:$16 sps:$4 sm:$0xff]  }
 0xad3   : > { %13828 = vmatpush1.bf16.msra.mxu0 %v17985_v63  ;;  %v18059_v63 = vld [vmem:[#allocation14 + $0x16cc] ss:$16 sps:$4 sm:$0xff]  }
 0xad4   : > { %13829 = vmatprep.subr.bf16.mxu0 %v17993_v24  ;;  %v18078_v24 = vld [vmem:[#allocation14 + $0x1408] ss:$16 sps:$4 sm:$0xff]  }
 0xad5   : > { %13799 = vmatpush2.bf16.msra.mxu1 %v18006_v19  ;;  %v18080_v19 = vld [vmem:[#allocation14 + $0x140c] ss:$16 sps:$4 sm:$0xff]  }
 0xad6   : > { %13800 = vmatprep.subr.bf16.mxu1 %v18014_v16  ;;  %v18051_v16 = vld [vmem:[#allocation14 + $0x16e8] ss:$16 sps:$4 sm:$0xff]  }
 0xad7   : > { %13830 = vmatpush1.bf16.msra.mxu0 %v17991_v13 }
 0xad8   : > { %13831 = vmatprep.subr.bf16.mxu0 %v17999_v58  ;;  %v18057_v58 = vld [vmem:[#allocation14 + $0x16c8] ss:$16 sps:$4 sm:$0xff]  }
 0xad9   : > { %13801 = vmatpush2.bf16.msra.mxu1 %v18012_v54 }
 0xada   : > { %13802 = vmatprep.subr.bf16.mxu1 %v18020_v59  ;;  %v18086_v59 = vld [vmem:[#allocation14 + $0x15ec] ss:$16 sps:$4 sm:$0xff]  }
 0xadb   : > { %13832 = vmatpush1.bf16.msra.mxu0 %v17997_v26 }
 0xadc   : > { %13833 = vmatprep.subr.bf16.mxu0 %v18005_v53  ;;  %v18084_v53 = vld [vmem:[#allocation14 + $0x15e8] ss:$16 sps:$4 sm:$0xff]  }
 0xadd   : > { %13803 = vmatpush2.bf16.msra.mxu1 %v18018_v20 }
 0xade   : > { %13804 = vmatprep.subr.bf16.mxu1 %v18026_v25  ;;  %v18065_v25 = vld [vmem:[#allocation14 + $0x16ac] ss:$16 sps:$4 sm:$0xff]  }
 0xadf   : > { %13834 = vmatpush2.bf16.msra.mxu0 %v18003_v29 }
 0xae0   : > { %13835 = vmatprep.subr.bf16.mxu0 %v18011_v35  ;;  %v18071_v35 = vld [vmem:[#allocation14 + $0x168c] ss:$16 sps:$4 sm:$0xff]  }
 0xae1   : > { %13805 = vmatpush2.bf16.msra.mxu1 %v18024_v40 }
 0xae2   : > { %13806 = vmatprep.subr.bf16.mxu1 %v18032_v48  ;;  %v18092_v48 = vld [vmem:[#allocation14 + $0x15cc] ss:$16 sps:$4 sm:$0xff]  }
 0xae3   : > { %13836 = vmatpush2.bf16.msra.mxu0 %v18009_v6  ;;  %v18077_v6 = vld [vmem:[#allocation14 + $0x166c] ss:$16 sps:$4 sm:$0xff]  }
 0xae4   : > { %13837 = vmatprep.subr.bf16.mxu0 %v18017_v42  ;;  %v18096_v42 = vld [vmem:[#allocation14 + $0x15a8] ss:$16 sps:$4 sm:$0xff]  }
 0xae5   : > { %13807 = vmatpush2.bf16.msra.mxu1 %v18030_v46  ;;  %v18090_v46 = vld [vmem:[#allocation14 + $0x15c8] ss:$16 sps:$4 sm:$0xff]  }
 0xae6   : > { %13858 = vmatprep.subr.bf16.mxu1 %v18041_v38  ;;  %v18069_v38 = vld [vmem:[#allocation14 + $0x1688] ss:$16 sps:$4 sm:$0xff]  }
 0xae7   : > { %13838 = vmatpush2.bf16.msra.mxu0 %v18015_v52  ;;  %v18083_v52 = vld [vmem:[#allocation14 + $0x164c] ss:$16 sps:$4 sm:$0xff]  }
 0xae8   : > { %v13564_v8 = vpop.f32.mrf.mxu1  ;;  %13809 = vmatmul.mubr.bf16.vlgmr.msra.gmra.mxu1 %v20668_v55  ;;  %13839 = vmatprep.subr.bf16.mxu0 %v18023_v5  ;;  %v18056_v55 = vld [vmem:[#allocation14 + $0x148c] ss:$16 sps:$4 sm:$0xff]   ;;  %v18102_v5 = vld [vmem:[#allocation14 + $0x1588] ss:$16 sps:$4 sm:$0xff]  }
 0xae9   : > { %v13565_v17 = vadd.f32 %v13564_v8, %v20812_v61  ;;  %13859 = vmatpush1.bf16.msra.mxu1 %v18039_v2  ;;  %13890 = vmatprep.mubr.bf16.mxu1 %v20674_v45  ;;  %v18027_v61 = vld [vmem:[#allocation14 + $0x1368] ss:$16 sps:$4 sm:$0xff]   ;;  %v18035_v45 = vld [vmem:[#allocation14 + $0x134c] ss:$16 sps:$4 sm:$0xff]  }
 0xaea   : > { %v13566_v10 = vpop.f32.mrf.mxu1  ;;  %13860 = vmatprep.subr.bf16.mxu1 %v18047_v62  ;;  %v18104_v2 = vld [vmem:[#allocation14 + $0x158c] ss:$16 sps:$4 sm:$0xff]   ;;  %v18075_v62 = vld [vmem:[#allocation14 + $0x1668] ss:$16 sps:$4 sm:$0xff]  }
 0xaeb   : > { %v13567_v18 = vadd.f32 %v13566_v10, %v20815_v4  ;;  %13840 = vmatpush2.bf16.msra.mxu0 %v18021_v47  ;;  %v18038_v4 = vld [vmem:[#allocation14 + $0x132c] ss:$16 sps:$4 sm:$0xff]   ;;  %v18108_v10 = vld [vmem:[#allocation14 + $0x1568] ss:$16 sps:$4 sm:$0xff]  }
 0xaec   : > { %v13568_v28 = vpop.f32.mrf.mxu1  ;;  %13841 = vmatprep.subr.bf16.mxu0 %v18029_v31  ;;  %v18110_v8 = vld [vmem:[#allocation14 + $0x156c] ss:$16 sps:$4 sm:$0xff]   ;;  %v18087_v47 = vld [vmem:[#allocation14 + $0x1628] ss:$16 sps:$4 sm:$0xff]  }
 0xaed   : > { %13861 = vmatpush1.bf16.msra.mxu1 %v18045_v57  ;;  %v18089_v57 = vld [vmem:[#allocation14 + $0x162c] ss:$16 sps:$4 sm:$0xff]   ;;  %v18114_v31 = vld [vmem:[#allocation14 + $0x1548] ss:$16 sps:$4 sm:$0xff]  }
 0xaee   : > { %v13569_v56 = vpop.f32.mrf.mxu1  ;;  %13862 = vmatprep.subr.bf16.mxu1 %v18050_v50  ;;  %v18116_v50 = vld [vmem:[#allocation14 + $0x154c] ss:$16 sps:$4 sm:$0xff]  }
 0xaef   : > { %13842 = vmatpush2.bf16.msra.mxu0 %v18027_v61  ;;  %v18122_v28 = vld [vmem:[#allocation14 + $0x152c] ss:$16 sps:$4 sm:$0xff]  }
 0xaf0   : > { %13843 = vmatprep.subr.bf16.mxu0 %v18035_v45  ;;  %v18101_v56 = vld [vmem:[#allocation14 + $0x17ec] ss:$16 sps:$4 sm:$0xff]   ;;  %v18099_v45 = vld [vmem:[#allocation14 + $0x17e8] ss:$16 sps:$4 sm:$0xff]  }
 0xaf1   : > { %13863 = vmatpush1.bf16.msra.mxu1 %v18048_v23  ;;  %v18093_v23 = vld [vmem:[#allocation14 + $0x1608] ss:$16 sps:$4 sm:$0xff]   ;;  %v18128_v61 = vld [vmem:[#allocation14 + $0x150c] ss:$16 sps:$4 sm:$0xff]  }
 0xaf2   : > { %13864 = vmatprep.subr.bf16.mxu1 %v18056_v55  ;;  %v18120_v55 = vld [vmem:[#allocation14 + $0x1528] ss:$16 sps:$4 sm:$0xff]  }
 0xaf3   : > { %13844 = vmatpush2.bf16.msra.mxu0 %v18033_v34  ;;  %v18137_v34 = vld [vmem:[#allocation14 + $0x18ec] ss:$16 sps:$4 sm:$0xff]  }
 0xaf4   : > { %13845 = vmatprep.subr.bf16.mxu0 %v18038_v4  ;;  %v18105_v4 = vld [vmem:[#allocation14 + $0x17c8] ss:$16 sps:$4 sm:$0xff]  }
 0xaf5   : > { %13865 = vmatpush1.bf16.msra.mxu1 %v18054_v1  ;;  %v18107_v1 = vld [vmem:[#allocation14 + $0x17cc] ss:$16 sps:$4 sm:$0xff]  }
 0xaf6   : > { %13866 = vmatprep.subr.bf16.mxu1 %v18062_v15  ;;  %v18126_v15 = vld [vmem:[#allocation14 + $0x1508] ss:$16 sps:$4 sm:$0xff]  }
 0xaf7   : > { %13846 = vmatpush2.bf16.msra.mxu0 %v18036_v7  ;;  %v18143_v7 = vld [vmem:[#allocation14 + $0x18cc] ss:$16 sps:$4 sm:$0xff]  }
 0xaf8   : > { %13847 = vmatprep.subr.bf16.mxu0 %v18044_v51  ;;  %v18111_v51 = vld [vmem:[#allocation14 + $0x17a8] ss:$16 sps:$4 sm:$0xff]  }
 0xaf9   : > { %13867 = vmatpush1.bf16.msra.mxu1 %v18060_v43  ;;  %v18113_v43 = vld [vmem:[#allocation14 + $0x17ac] ss:$16 sps:$4 sm:$0xff]  }
 0xafa   : > { %13868 = vmatprep.subr.bf16.mxu1 %v18068_v0  ;;  %v18135_v0 = vld [vmem:[#allocation14 + $0x18e8] ss:$16 sps:$4 sm:$0xff]  }
 0xafb   : > { %13848 = vmatpush2.bf16.msra.mxu0 %v18042_v9 }
 0xafc   : > { %13899 = vmatprep.subr.bf16.mxu0 %v18053_v21  ;;  %v18141_v21 = vld [vmem:[#allocation14 + $0x18c8] ss:$16 sps:$4 sm:$0xff]  }
 0xafd   : > { %13869 = vmatpush1.bf16.msra.mxu1 %v18066_v36  ;;  %v18119_v36 = vld [vmem:[#allocation14 + $0x178c] ss:$16 sps:$4 sm:$0xff]  }
 0xafe   : > { %13870 = vmatprep.subr.bf16.mxu1 %v18074_v3  ;;  %v13605_v54 = vpop.f32.mrf.mxu0  ;;  %13850 = vmatmul.mubr.bf16.vlgmr.msra.gmra.mxu0 %v20682_v14  ;;  %v18063_v14 = vld [vmem:[#allocation14 + $0x16a8] ss:$16 sps:$4 sm:$0xff]  }
 0xaff   : > { %v20822_v13 = vadd.f32 %v13605_v54, %v13565_v17  ;;  %13900 = vmatpush1.bf16.msra.mxu0 %v18051_v16  ;;  %13931 = vmatprep.mubr.bf16.mxu0 %v20688_v30  ;;  %v18098_v30 = vld [vmem:[#allocation14 + $0x15ac] ss:$16 sps:$4 sm:$0xff]   ;;  %v18081_v17 = vld [vmem:[#allocation14 + $0x1648] ss:$16 sps:$4 sm:$0xff]  }
 0xb00   : > { %v13607_v20 = vpop.f32.mrf.mxu0  ;;  %13901 = vmatprep.subr.bf16.mxu0 %v18059_v63  ;;  %v18117_v16 = vld [vmem:[#allocation14 + $0x1788] ss:$16 sps:$4 sm:$0xff]  }
 0xb01   : > { %13871 = vmatpush1.bf16.msra.mxu1 %v18072_v22  ;;  %v20825_v26 = vadd.f32 %v13607_v20, %v13567_v18  ;;  %v18095_v18 = vld [vmem:[#allocation14 + $0x160c] ss:$16 sps:$4 sm:$0xff]   ;;  %v18150_v20 = vld [vmem:[#allocation14 + $0x1888] ss:$16 sps:$4 sm:$0xff]  }
 0xb02   : > { %13872 = vmatprep.subr.bf16.mxu1 %v18080_v19  ;;  %v13609_v40 = vpop.f32.mrf.mxu0  ;;  %v18146_v19 = vld [vmem:[#allocation14 + $0x18ac] ss:$16 sps:$4 sm:$0xff]  }
 0xb03   : > { %13902 = vmatpush1.bf16.msra.mxu0 %v18057_v58  ;;  %v18156_v40 = vld [vmem:[#allocation14 + $0x1868] ss:$16 sps:$4 sm:$0xff]  }
 0xb04   : > { %v13610_v29 = vpop.f32.mrf.mxu0  ;;  %13903 = vmatprep.subr.bf16.mxu0 %v18065_v25  ;;  %v18158_v25 = vld [vmem:[#allocation14 + $0x186c] ss:$16 sps:$4 sm:$0xff]  }
 0xb05   : > { %13873 = vmatpush1.bf16.msra.mxu1 %v18078_v24  ;;  %v18125_v24 = vld [vmem:[#allocation14 + $0x176c] ss:$16 sps:$4 sm:$0xff]  }
 0xb06   : > { %13874 = vmatprep.subr.bf16.mxu1 %v18086_v59  ;;  %v18144_v59 = vld [vmem:[#allocation14 + $0x18a8] ss:$16 sps:$4 sm:$0xff]   ;;  %v18140_v29 = vld [vmem:[#allocation14 + $0x170c] ss:$16 sps:$4 sm:$0xff]  }
 0xb07   : > { %13904 = vmatpush1.bf16.msra.mxu0 %v18063_v14  ;;  %v18132_v14 = vld [vmem:[#allocation14 + $0x1728] ss:$16 sps:$4 sm:$0xff]  }
 0xb08   : > { %13905 = vmatprep.subr.bf16.mxu0 %v18071_v35  ;;  %v18162_v35 = vld [vmem:[#allocation14 + $0x1848] ss:$16 sps:$4 sm:$0xff]  }
 0xb09   : > { %13875 = vmatpush2.bf16.msra.mxu1 %v18084_v53  ;;  %v18129_v53 = vld [vmem:[#allocation14 + $0x1748] ss:$16 sps:$4 sm:$0xff]  }
 0xb0a   : > { %13876 = vmatprep.subr.bf16.mxu1 %v18092_v48  ;;  %v18164_v48 = vld [vmem:[#allocation14 + $0x184c] ss:$16 sps:$4 sm:$0xff]  }
 0xb0b   : > { %13906 = vmatpush1.bf16.msra.mxu0 %v18069_v38  ;;  %v18149_v38 = vld [vmem:[#allocation14 + $0x1aec] ss:$16 sps:$4 sm:$0xff]  }
 0xb0c   : > { %13907 = vmatprep.subr.bf16.mxu0 %v18077_v6  ;;  %v18168_v6 = vld [vmem:[#allocation14 + $0x1828] ss:$16 sps:$4 sm:$0xff]  }
 0xb0d   : > { %13877 = vmatpush2.bf16.msra.mxu1 %v18090_v46  ;;  %v18170_v46 = vld [vmem:[#allocation14 + $0x182c] ss:$16 sps:$4 sm:$0xff]  }
 0xb0e   : > { %13878 = vmatprep.subr.bf16.mxu1 %v18098_v30  ;;  %v18138_v30 = vld [vmem:[#allocation14 + $0x1708] ss:$16 sps:$4 sm:$0xff]  }
 0xb0f   : > { %13908 = vmatpush1.bf16.msra.mxu0 %v18075_v62  ;;  %v18155_v62 = vld [vmem:[#allocation14 + $0x1acc] ss:$16 sps:$4 sm:$0xff]  }
 0xb10   : > { %13909 = vmatprep.subr.bf16.mxu0 %v18083_v52  ;;  %v18174_v52 = vld [vmem:[#allocation14 + $0x1808] ss:$16 sps:$4 sm:$0xff]  }
 0xb11   : > { %13879 = vmatpush2.bf16.msra.mxu1 %v18096_v42  ;;  %v18176_v42 = vld [vmem:[#allocation14 + $0x180c] ss:$16 sps:$4 sm:$0xff]  }
 0xb12   : > { %13880 = vmatprep.subr.bf16.mxu1 %v18104_v2  ;;  %v18147_v2 = vld [vmem:[#allocation14 + $0x1ae8] ss:$16 sps:$4 sm:$0xff]  }
 0xb13   : > { %13910 = vmatpush1.bf16.msra.mxu0 %v18081_v17 }
 0xb14   : > { %13911 = vmatprep.subr.bf16.mxu0 %v18089_v57  ;;  %v18153_v57 = vld [vmem:[#allocation14 + $0x1ac8] ss:$16 sps:$4 sm:$0xff]  }
 0xb15   : > { %13881 = vmatpush2.bf16.msra.mxu1 %v18102_v5 }
 0xb16   : > { %13882 = vmatprep.subr.bf16.mxu1 %v18110_v8  ;;  %v18182_v8 = vld [vmem:[#allocation14 + $0x19ec] ss:$16 sps:$4 sm:$0xff]  }
 0xb17   : > { %13912 = vmatpush1.bf16.msra.mxu0 %v18087_v47 }
 0xb18   : > { %13913 = vmatprep.subr.bf16.mxu0 %v18095_v18  ;;  %v18180_v18 = vld [vmem:[#allocation14 + $0x19e8] ss:$16 sps:$4 sm:$0xff]  }
 0xb19   : > { %13883 = vmatpush2.bf16.msra.mxu1 %v18108_v10 }
 0xb1a   : > { %13884 = vmatprep.subr.bf16.mxu1 %v18116_v50  ;;  %v18161_v50 = vld [vmem:[#allocation14 + $0x1aac] ss:$16 sps:$4 sm:$0xff]  }
 0xb1b   : > { %13914 = vmatpush1.bf16.msra.mxu0 %v18093_v23 }
 0xb1c   : > { %13915 = vmatprep.subr.bf16.mxu0 %v18101_v56  ;;  %v18167_v56 = vld [vmem:[#allocation14 + $0x1a8c] ss:$16 sps:$4 sm:$0xff]  }
 0xb1d   : > { %13885 = vmatpush2.bf16.msra.mxu1 %v18114_v31 }
 0xb1e   : > { %13886 = vmatprep.subr.bf16.mxu1 %v18122_v28  ;;  %v18188_v28 = vld [vmem:[#allocation14 + $0x19cc] ss:$16 sps:$4 sm:$0xff]  }
 0xb1f   : > { %13916 = vmatpush2.bf16.msra.mxu0 %v18099_v45  ;;  %v18173_v45 = vld [vmem:[#allocation14 + $0x1a6c] ss:$16 sps:$4 sm:$0xff]  }
 0xb20   : > { %13917 = vmatprep.subr.bf16.mxu0 %v18107_v1  ;;  %v18192_v1 = vld [vmem:[#allocation14 + $0x19a8] ss:$16 sps:$4 sm:$0xff]  }
 0xb21   : > { %13887 = vmatpush2.bf16.msra.mxu1 %v18120_v55  ;;  %v18186_v55 = vld [vmem:[#allocation14 + $0x19c8] ss:$16 sps:$4 sm:$0xff]  }
 0xb22   : > { %13888 = vmatprep.subr.bf16.mxu1 %v18128_v61  ;;  %v18165_v61 = vld [vmem:[#allocation14 + $0x1a88] ss:$16 sps:$4 sm:$0xff]  }
 0xb23   : > { %13918 = vmatpush2.bf16.msra.mxu0 %v18105_v4  ;;  %v18179_v4 = vld [vmem:[#allocation14 + $0x1a4c] ss:$16 sps:$4 sm:$0xff]  }
 0xb24   : > { %13919 = vmatprep.subr.bf16.mxu0 %v18113_v43  ;;  %v18198_v43 = vld [vmem:[#allocation14 + $0x1988] ss:$16 sps:$4 sm:$0xff]  }
 0xb25   : > { %13889 = vmatpush2.bf16.msra.mxu1 %v18126_v15  ;;  %v18200_v15 = vld [vmem:[#allocation14 + $0x198c] ss:$16 sps:$4 sm:$0xff]  }
 0xb26   : > { %13940 = vmatprep.subr.bf16.mxu1 %v18137_v34  ;;  %v18171_v34 = vld [vmem:[#allocation14 + $0x1a68] ss:$16 sps:$4 sm:$0xff]  }
 0xb27   : > { %13920 = vmatpush2.bf16.msra.mxu0 %v18111_v51  ;;  %v18185_v51 = vld [vmem:[#allocation14 + $0x1a2c] ss:$16 sps:$4 sm:$0xff]  }
 0xb28   : > { %v13646_v3 = vpop.f32.mrf.mxu1  ;;  %13891 = vmatmul.mubr.bf16.vlgmr.msra.gmra.mxu1 %v20699_v11  ;;  %13921 = vmatprep.subr.bf16.mxu0 %v18119_v36  ;;  %v18152_v11 = vld [vmem:[#allocation14 + $0x188c] ss:$16 sps:$4 sm:$0xff]   ;;  %v18204_v36 = vld [vmem:[#allocation14 + $0x1968] ss:$16 sps:$4 sm:$0xff]  }
 0xb29   : > { %v13647_v9 = vadd.f32 %v13646_v3, %v20822_v13  ;;  %13941 = vmatpush1.bf16.msra.mxu1 %v18135_v0  ;;  %13972 = vmatprep.mubr.bf16.mxu1 %v20705_v12  ;;  %v18123_v13 = vld [vmem:[#allocation14 + $0x1768] ss:$16 sps:$4 sm:$0xff]   ;;  %v18131_v12 = vld [vmem:[#allocation14 + $0x174c] ss:$16 sps:$4 sm:$0xff]  }
 0xb2a   : > { %v13648_v22 = vpop.f32.mrf.mxu1  ;;  %13942 = vmatprep.subr.bf16.mxu1 %v18143_v7  ;;  %v18206_v0 = vld [vmem:[#allocation14 + $0x196c] ss:$16 sps:$4 sm:$0xff]   ;;  %v18177_v7 = vld [vmem:[#allocation14 + $0x1a48] ss:$16 sps:$4 sm:$0xff]  }
 0xb2b   : > { %v13649_v63 = vadd.f32 %v13648_v22, %v20825_v26  ;;  %13922 = vmatpush2.bf16.msra.mxu0 %v18117_v16  ;;  %v18134_v26 = vld [vmem:[#allocation14 + $0x172c] ss:$16 sps:$4 sm:$0xff]   ;;  %v18210_v22 = vld [vmem:[#allocation14 + $0x1948] ss:$16 sps:$4 sm:$0xff]  }
 0xb2c   : > { %v13650_v54 = vpop.f32.mrf.mxu1  ;;  %13923 = vmatprep.subr.bf16.mxu0 %v18125_v24  ;;  %v18212_v3 = vld [vmem:[#allocation14 + $0x194c] ss:$16 sps:$4 sm:$0xff]   ;;  %v18189_v16 = vld [vmem:[#allocation14 + $0x1a08] ss:$16 sps:$4 sm:$0xff]  }
 0xb2d   : > { %13943 = vmatpush1.bf16.msra.mxu1 %v18141_v21  ;;  %v18191_v21 = vld [vmem:[#allocation14 + $0x1a0c] ss:$16 sps:$4 sm:$0xff]   ;;  %v18216_v24 = vld [vmem:[#allocation14 + $0x1928] ss:$16 sps:$4 sm:$0xff]  }
 0xb2e   : > { %v13651_v58 = vpop.f32.mrf.mxu1  ;;  %13944 = vmatprep.subr.bf16.mxu1 %v18146_v19  ;;  %v18218_v19 = vld [vmem:[#allocation14 + $0x192c] ss:$16 sps:$4 sm:$0xff]  }
 0xb2f   : > { %13924 = vmatpush2.bf16.msra.mxu0 %v18123_v13  ;;  %v18224_v54 = vld [vmem:[#allocation14 + $0x190c] ss:$16 sps:$4 sm:$0xff]  }
 0xb30   : > { %13925 = vmatprep.subr.bf16.mxu0 %v18131_v12  ;;  %v18203_v58 = vld [vmem:[#allocation14 + $0x1bcc] ss:$16 sps:$4 sm:$0xff]   ;;  %v18201_v12 = vld [vmem:[#allocation14 + $0x1bc8] ss:$16 sps:$4 sm:$0xff]  }
 0xb31   : > { %13945 = vmatpush1.bf16.msra.mxu1 %v18144_v59  ;;  %v18195_v59 = vld [vmem:[#allocation14 + $0x1be8] ss:$16 sps:$4 sm:$0xff]   ;;  %v18233_v13 = vld [vmem:[#allocation14 + $0x1cec] ss:$16 sps:$4 sm:$0xff]  }
 0xb32   : > { %13946 = vmatprep.subr.bf16.mxu1 %v18152_v11  ;;  %v18222_v11 = vld [vmem:[#allocation14 + $0x1908] ss:$16 sps:$4 sm:$0xff]  }
 0xb33   : > { %13926 = vmatpush2.bf16.msra.mxu0 %v18129_v53  ;;  %v18239_v53 = vld [vmem:[#allocation14 + $0x1ccc] ss:$16 sps:$4 sm:$0xff]  }
 0xb34   : > { %13927 = vmatprep.subr.bf16.mxu0 %v18134_v26  ;;  %v18207_v26 = vld [vmem:[#allocation14 + $0x1ba8] ss:$16 sps:$4 sm:$0xff]  }
 0xb35   : > { %13947 = vmatpush1.bf16.msra.mxu1 %v18150_v20  ;;  %v18209_v20 = vld [vmem:[#allocation14 + $0x1bac] ss:$16 sps:$4 sm:$0xff]  }
 0xb36   : > { %13948 = vmatprep.subr.bf16.mxu1 %v18158_v25  ;;  %v18231_v25 = vld [vmem:[#allocation14 + $0x1ce8] ss:$16 sps:$4 sm:$0xff]  }
 0xb37   : > { %13928 = vmatpush2.bf16.msra.mxu0 %v18132_v14 }
 0xb38   : > { %13929 = vmatprep.subr.bf16.mxu0 %v18140_v29  ;;  %v18237_v29 = vld [vmem:[#allocation14 + $0x1cc8] ss:$16 sps:$4 sm:$0xff]  }
 0xb39   : > { %13949 = vmatpush1.bf16.msra.mxu1 %v18156_v40  ;;  %v18215_v40 = vld [vmem:[#allocation14 + $0x1b8c] ss:$16 sps:$4 sm:$0xff]  }
 0xb3a   : > { %13950 = vmatprep.subr.bf16.mxu1 %v18164_v48 }
 0xb3b   : > { %13930 = vmatpush2.bf16.msra.mxu0 %v18138_v30  ;;  %v18213_v30 = vld [vmem:[#allocation14 + $0x1b88] ss:$16 sps:$4 sm:$0xff]  }
 0xb3c   : > { %13981 = vmatprep.subr.bf16.mxu0 %v18149_v38 }
 0xb3d   : > { %13951 = vmatpush1.bf16.msra.mxu1 %v18162_v35 }
 0xb3e   : > { %13952 = vmatprep.subr.bf16.mxu1 %v18170_v46  ;;  %v13687_v5 = vpop.f32.mrf.mxu0  ;;  %13932 = vmatmul.mubr.bf16.vlgmr.msra.gmra.mxu0 %v20717_v60  ;;  %v18159_v60 = vld [vmem:[#allocation14 + $0x1aa8] ss:$16 sps:$4 sm:$0xff]   ;;  %v18242_v46 = vld [vmem:[#allocation14 + $0x1cac] ss:$16 sps:$4 sm:$0xff]  }
 0xb3f   : > { %v20832_v17 = vadd.f32 %v13687_v5, %v13647_v9  ;;  %13982 = vmatpush1.bf16.msra.mxu0 %v18147_v2  ;;  %14013 = vmatprep.mubr.bf16.mxu0 %v20721_v33  ;;  %v18194_v33 = vld [vmem:[#allocation14 + $0x19ac] ss:$16 sps:$4 sm:$0xff]   ;;  %v18183_v9 = vld [vmem:[#allocation14 + $0x1a28] ss:$16 sps:$4 sm:$0xff]  }
 0xb40   : > { %v13689_v10 = vpop.f32.mrf.mxu0  ;;  %13983 = vmatprep.subr.bf16.mxu0 %v18155_v62  ;;  %v18240_v2 = vld [vmem:[#allocation14 + $0x1ca8] ss:$16 sps:$4 sm:$0xff]  }
 0xb41   : > { %13953 = vmatpush1.bf16.msra.mxu1 %v18168_v6  ;;  %v20835_v47 = vadd.f32 %v13689_v10, %v13649_v63  ;;  %v18197_v63 = vld [vmem:[#allocation14 + $0x1bec] ss:$16 sps:$4 sm:$0xff]   ;;  %v18246_v5 = vld [vmem:[#allocation14 + $0x1c88] ss:$16 sps:$4 sm:$0xff]  }
 0xb42   : > { %13954 = vmatprep.subr.bf16.mxu1 %v18176_v42  ;;  %v13691_v31 = vpop.f32.mrf.mxu0  ;;  %v18221_v6 = vld [vmem:[#allocation14 + $0x1b6c] ss:$16 sps:$4 sm:$0xff]   ;;  %v18252_v10 = vld [vmem:[#allocation14 + $0x1c68] ss:$16 sps:$4 sm:$0xff]  }
 0xb43   : > { %13984 = vmatpush1.bf16.msra.mxu0 %v18153_v57  ;;  %v18230_v57 = vld [vmem:[#allocation14 + $0x1b2c] ss:$16 sps:$4 sm:$0xff]   ;;  %v18258_v31 = vld [vmem:[#allocation14 + $0x1c48] ss:$16 sps:$4 sm:$0xff]  }
 0xb44   : > { %v13692_v23 = vpop.f32.mrf.mxu0  ;;  %13985 = vmatprep.subr.bf16.mxu0 %v18161_v50  ;;  %v18260_v50 = vld [vmem:[#allocation14 + $0x1c4c] ss:$16 sps:$4 sm:$0xff]  }
 0xb45   : > { %13955 = vmatpush1.bf16.msra.mxu1 %v18174_v52  ;;  %v18219_v52 = vld [vmem:[#allocation14 + $0x1b68] ss:$16 sps:$4 sm:$0xff]   ;;  %v18245_v23 = vld [vmem:[#allocation14 + $0x1eec] ss:$16 sps:$4 sm:$0xff]  }
 0xb46   : > { %13956 = vmatprep.subr.bf16.mxu1 %v18182_v8  ;;  %v18254_v8 = vld [vmem:[#allocation14 + $0x1c6c] ss:$16 sps:$4 sm:$0xff]  }
 0xb47   : > { %13986 = vmatpush1.bf16.msra.mxu0 %v18159_v60  ;;  %v18234_v60 = vld [vmem:[#allocation14 + $0x1b08] ss:$16 sps:$4 sm:$0xff]  }
 0xb48   : > { %13987 = vmatprep.subr.bf16.mxu0 %v18167_v56  ;;  %v18264_v56 = vld [vmem:[#allocation14 + $0x1c28] ss:$16 sps:$4 sm:$0xff]  }
 0xb49   : > { %13957 = vmatpush2.bf16.msra.mxu1 %v18180_v18  ;;  %v18236_v18 = vld [vmem:[#allocation14 + $0x1b0c] ss:$16 sps:$4 sm:$0xff]  }
 0xb4a   : > { %13958 = vmatprep.subr.bf16.mxu1 %v18188_v28  ;;  %v18266_v28 = vld [vmem:[#allocation14 + $0x1c2c] ss:$16 sps:$4 sm:$0xff]  }
 0xb4b   : > { %13988 = vmatpush1.bf16.msra.mxu0 %v18165_v61  ;;  %v18251_v61 = vld [vmem:[#allocation14 + $0x1ecc] ss:$16 sps:$4 sm:$0xff]  }
 0xb4c   : > { %13989 = vmatprep.subr.bf16.mxu0 %v18173_v45  ;;  %v18270_v45 = vld [vmem:[#allocation14 + $0x1c08] ss:$16 sps:$4 sm:$0xff]  }
 0xb4d   : > { %13959 = vmatpush2.bf16.msra.mxu1 %v18186_v55  ;;  %v18272_v55 = vld [vmem:[#allocation14 + $0x1c0c] ss:$16 sps:$4 sm:$0xff]  }
 0xb4e   : > { %13960 = vmatprep.subr.bf16.mxu1 %v18194_v33  ;;  %v18243_v33 = vld [vmem:[#allocation14 + $0x1ee8] ss:$16 sps:$4 sm:$0xff]  }
 0xb4f   : > { %13990 = vmatpush1.bf16.msra.mxu0 %v18171_v34 }
 0xb50   : > { %13991 = vmatprep.subr.bf16.mxu0 %v18179_v4  ;;  %v18249_v4 = vld [vmem:[#allocation14 + $0x1ec8] ss:$16 sps:$4 sm:$0xff]  }
 0xb51   : > { %13961 = vmatpush2.bf16.msra.mxu1 %v18192_v1 }
 0xb52   : > { %13962 = vmatprep.subr.bf16.mxu1 %v18200_v15  ;;  %v18278_v15 = vld [vmem:[#allocation14 + $0x1dec] ss:$16 sps:$4 sm:$0xff]  }
 0xb53   : > { %13992 = vmatpush1.bf16.msra.mxu0 %v18177_v7 }
 0xb54   : > { %13993 = vmatprep.subr.bf16.mxu0 %v18185_v51  ;;  %v18276_v51 = vld [vmem:[#allocation14 + $0x1de8] ss:$16 sps:$4 sm:$0xff]  }
 0xb55   : > { %13963 = vmatpush2.bf16.msra.mxu1 %v18198_v43 }
 0xb56   : > { %13964 = vmatprep.subr.bf16.mxu1 %v18206_v0  ;;  %v18257_v0 = vld [vmem:[#allocation14 + $0x1eac] ss:$16 sps:$4 sm:$0xff]  }
 0xb57   : > { %13994 = vmatpush1.bf16.msra.mxu0 %v18183_v9 }
 0xb58   : > { %13995 = vmatprep.subr.bf16.mxu0 %v18191_v21  ;;  %v18263_v21 = vld [vmem:[#allocation14 + $0x1e8c] ss:$16 sps:$4 sm:$0xff]  }
 0xb59   : > { %13965 = vmatpush2.bf16.msra.mxu1 %v18204_v36 }
 0xb5a   : > { %13966 = vmatprep.subr.bf16.mxu1 %v18212_v3  ;;  %v18284_v3 = vld [vmem:[#allocation14 + $0x1dcc] ss:$16 sps:$4 sm:$0xff]  }
 0xb5b   : > { %13996 = vmatpush1.bf16.msra.mxu0 %v18189_v16  ;;  %v18269_v16 = vld [vmem:[#allocation14 + $0x1e6c] ss:$16 sps:$4 sm:$0xff]  }
 0xb5c   : > { %13997 = vmatprep.subr.bf16.mxu0 %v18197_v63  ;;  %v18288_v63 = vld [vmem:[#allocation14 + $0x1da8] ss:$16 sps:$4 sm:$0xff]  }
 0xb5d   : > { %13967 = vmatpush2.bf16.msra.mxu1 %v18210_v22  ;;  %v18282_v22 = vld [vmem:[#allocation14 + $0x1dc8] ss:$16 sps:$4 sm:$0xff]  }
 0xb5e   : > { %13968 = vmatprep.subr.bf16.mxu1 %v18218_v19  ;;  %v18261_v19 = vld [vmem:[#allocation14 + $0x1e88] ss:$16 sps:$4 sm:$0xff]  }
 0xb5f   : > { %13998 = vmatpush2.bf16.msra.mxu0 %v18195_v59  ;;  %v18275_v59 = vld [vmem:[#allocation14 + $0x1e4c] ss:$16 sps:$4 sm:$0xff]  }
 0xb60   : > { %13999 = vmatprep.subr.bf16.mxu0 %v18203_v58  ;;  %v18294_v58 = vld [vmem:[#allocation14 + $0x1d88] ss:$16 sps:$4 sm:$0xff]  }
 0xb61   : > { %13969 = vmatpush2.bf16.msra.mxu1 %v18216_v24  ;;  %v18296_v24 = vld [vmem:[#allocation14 + $0x1d8c] ss:$16 sps:$4 sm:$0xff]  }
 0xb62   : > { %13970 = vmatprep.subr.bf16.mxu1 %v18224_v54  ;;  %v18267_v54 = vld [vmem:[#allocation14 + $0x1e68] ss:$16 sps:$4 sm:$0xff]  }
 0xb63   : > { %14000 = vmatpush2.bf16.msra.mxu0 %v18201_v12  ;;  %v18281_v12 = vld [vmem:[#allocation14 + $0x1e2c] ss:$16 sps:$4 sm:$0xff]  }
 0xb64   : > { %14001 = vmatprep.subr.bf16.mxu0 %v18209_v20  ;;  %v18300_v20 = vld [vmem:[#allocation14 + $0x1d68] ss:$16 sps:$4 sm:$0xff]  }
 0xb65   : > { %13971 = vmatpush2.bf16.msra.mxu1 %v18222_v11  ;;  %v18302_v11 = vld [vmem:[#allocation14 + $0x1d6c] ss:$16 sps:$4 sm:$0xff]  }
 0xb66   : > { %14022 = vmatprep.subr.bf16.mxu1 %v18233_v13  ;;  %v18273_v13 = vld [vmem:[#allocation14 + $0x1e48] ss:$16 sps:$4 sm:$0xff]  }
 0xb67   : > { %14002 = vmatpush2.bf16.msra.mxu0 %v18207_v26  ;;  %v18287_v26 = vld [vmem:[#allocation14 + $0x1e0c] ss:$16 sps:$4 sm:$0xff]  }
 0xb68   : > { %v13728_v48 = vpop.f32.mrf.mxu1  ;;  %13973 = vmatmul.mubr.bf16.vlgmr.msra.gmra.mxu1 %v20732_v49  ;;  %14003 = vmatprep.subr.bf16.mxu0 %v18215_v40  ;;  %v18248_v49 = vld [vmem:[#allocation14 + $0x1c8c] ss:$16 sps:$4 sm:$0xff]   ;;  %v18306_v40 = vld [vmem:[#allocation14 + $0x1d48] ss:$16 sps:$4 sm:$0xff]  }
 0xb69   : > { %v13729_v14 = vadd.f32 %v13728_v48, %v20832_v17  ;;  %14023 = vmatpush1.bf16.msra.mxu1 %v18231_v25  ;;  %14054 = vmatprep.mubr.bf16.mxu1 %v20736_v37  ;;  %v18227_v37 = vld [vmem:[#allocation14 + $0x1b4c] ss:$16 sps:$4 sm:$0xff]   ;;  %v18225_v17 = vld [vmem:[#allocation14 + $0x1b48] ss:$16 sps:$4 sm:$0xff]  }
 0xb6a   : > { %v13730_v35 = vpop.f32.mrf.mxu1  ;;  %14024 = vmatprep.subr.bf16.mxu1 %v18239_v53  ;;  %v18308_v25 = vld [vmem:[#allocation14 + $0x1d4c] ss:$16 sps:$4 sm:$0xff]   ;;  %v18279_v53 = vld [vmem:[#allocation14 + $0x1e28] ss:$16 sps:$4 sm:$0xff]  }
 0xb6b   : > { %v13731_v38 = vadd.f32 %v13730_v35, %v20835_v47  ;;  %14004 = vmatpush2.bf16.msra.mxu0 %v18213_v30  ;;  %v18228_v47 = vld [vmem:[#allocation14 + $0x1b28] ss:$16 sps:$4 sm:$0xff]   ;;  %v18314_v48 = vld [vmem:[#allocation14 + $0x1d2c] ss:$16 sps:$4 sm:$0xff]  }
 0xb6c   : > { %v13732_v42 = vpop.f32.mrf.mxu1  ;;  %14005 = vmatprep.subr.bf16.mxu0 %v18221_v6  ;;  %v18312_v35 = vld [vmem:[#allocation14 + $0x1d28] ss:$16 sps:$4 sm:$0xff]  }
 0xb6d   : > { %14025 = vmatpush1.bf16.msra.mxu1 %v18237_v29  ;;  %v18293_v29 = vld [vmem:[#allocation14 + $0x1fec] ss:$16 sps:$4 sm:$0xff]   ;;  %v18291_v30 = vld [vmem:[#allocation14 + $0x1fe8] ss:$16 sps:$4 sm:$0xff]  }
 0xb6e   : > { %v13733_v62 = vpop.f32.mrf.mxu1  ;;  %14026 = vmatprep.subr.bf16.mxu1 %v18242_v46  ;;  %v18320_v46 = vld [vmem:[#allocation14 + $0x1d0c] ss:$16 sps:$4 sm:$0xff]   ;;  %v18318_v6 = vld [vmem:[#allocation14 + $0x1d08] ss:$16 sps:$4 sm:$0xff]  }
 0xb6f   : > { %14006 = vmatpush2.bf16.msra.mxu0 %v18219_v52  ;;  %v18297_v42 = vld [vmem:[#allocation14 + $0x1fc8] ss:$16 sps:$4 sm:$0xff]  }
 0xb70   : > { %14007 = vmatprep.subr.bf16.mxu0 %v18227_v37  ;;  %v18303_v62 = vld [vmem:[#allocation14 + $0x1fa8] ss:$16 sps:$4 sm:$0xff]  }
 0xb71   : > { %14027 = vmatpush1.bf16.msra.mxu1 %v18240_v2  ;;  %v18305_v2 = vld [vmem:[#allocation14 + $0x1fac] ss:$16 sps:$4 sm:$0xff]  }
 0xb72   : > { %14028 = vmatprep.subr.bf16.mxu1 %v18248_v49  ;;  %v18311_v49 = vld [vmem:[#allocation14 + $0x1f8c] ss:$16 sps:$4 sm:$0xff]  }
 0xb73   : > { %14008 = vmatpush2.bf16.msra.mxu0 %v18225_v17 }
 0xb74   : > { %14009 = vmatprep.subr.bf16.mxu0 %v18230_v57  ;;  %v18317_v57 = vld [vmem:[#allocation14 + $0x1f6c] ss:$16 sps:$4 sm:$0xff]  }
 0xb75   : > { %14029 = vmatpush1.bf16.msra.mxu1 %v18246_v5 }
 0xb76   : > { %14030 = vmatprep.subr.bf16.mxu1 %v18254_v8  ;;  %v18309_v8 = vld [vmem:[#allocation14 + $0x1f88] ss:$16 sps:$4 sm:$0xff]  }
 0xb77   : > { %14010 = vmatpush2.bf16.msra.mxu0 %v18228_v47  ;;  %v18315_v47 = vld [vmem:[#allocation14 + $0x1f68] ss:$16 sps:$4 sm:$0xff]  }
 0xb78   : > { %14011 = vmatprep.subr.bf16.mxu0 %v18236_v18  ;;  %v18323_v18 = vld [vmem:[#allocation14 + $0x1f4c] ss:$16 sps:$4 sm:$0xff]  }
 0xb79   : > { %14031 = vmatpush1.bf16.msra.mxu1 %v18252_v10 }
 0xb7a   : > { %14032 = vmatprep.subr.bf16.mxu1 %v18260_v50 }
 0xb7b   : > { %14012 = vmatpush2.bf16.msra.mxu0 %v18234_v60  ;;  %v18329_v60 = vld [vmem:[#allocation14 + $0x1f0c] ss:$16 sps:$4 sm:$0xff]  }
 0xb7c   : > { %14063 = vmatprep.subr.bf16.mxu0 %v18245_v23  ;;  %v18327_v23 = vld [vmem:[#allocation14 + $0x1f08] ss:$16 sps:$4 sm:$0xff]  }
 0xb7d   : > { %14033 = vmatpush1.bf16.msra.mxu1 %v18258_v31  ;;  %v18321_v31 = vld [vmem:[#allocation14 + $0x1f48] ss:$16 sps:$4 sm:$0xff]  }
 0xb7e   : > { %14034 = vmatprep.subr.bf16.mxu1 %v18266_v28  ;;  %v13769_v1 = vpop.f32.mrf.mxu0  ;;  %14014 = vmatmul.mubr.bf16.vlgmr.msra.gmra.mxu0 %v20746_v32  ;;  %v18255_v32 = vld [vmem:[#allocation14 + $0x1ea8] ss:$16 sps:$4 sm:$0xff]   ;;  %v18326_v28 = vld [vmem:[#allocation14 + $0x1f2c] ss:$16 sps:$4 sm:$0xff]  }
 0xb7f   : > { %v20842_v34 = vadd.f32 %v13769_v1, %v13729_v14  ;;  %14064 = vmatpush1.bf16.msra.mxu0 %v18243_v33  ;;  %14095 = vmatprep.mubr.bf16.mxu0 %v20752_v39  ;;  %v18290_v39 = vld [vmem:[#allocation14 + $0x1dac] ss:$16 sps:$4 sm:$0xff]   ;;  %v18285_v14 = vld [vmem:[#allocation14 + $0x1e08] ss:$16 sps:$4 sm:$0xff]  }
 0xb80   : > { %v13771_v43 = vpop.f32.mrf.mxu0  ;;  %14065 = vmatprep.subr.bf16.mxu0 %v18251_v61 }
 0xb81   : > { %14035 = vmatpush1.bf16.msra.mxu1 %v18264_v56  ;;  %v20845_v7 = vadd.f32 %v13771_v43, %v13731_v38  ;;  %v18299_v38 = vld [vmem:[#allocation14 + $0x1fcc] ss:$16 sps:$4 sm:$0xff]  }
 0xb82   : > { %14036 = vmatprep.subr.bf16.mxu1 %v18272_v55  ;;  %v13773_v36 = vpop.f32.mrf.mxu0 }
 0xb83   : > { %14066 = vmatpush1.bf16.msra.mxu0 %v18249_v4 }
 0xb84   : > { %v13774_v9 = vpop.f32.mrf.mxu0  ;;  %14067 = vmatprep.subr.bf16.mxu0 %v18257_v0 }
 0xb85   : > { %14037 = vmatpush1.bf16.msra.mxu1 %v18270_v45 }
 0xb86   : > { %14038 = vmatprep.subr.bf16.mxu1 %v18278_v15 }
 0xb87   : > { %14068 = vmatpush1.bf16.msra.mxu0 %v18255_v32 }
 0xb88   : > { %14069 = vmatprep.subr.bf16.mxu0 %v18263_v21 }
 0xb89   : > { %14039 = vmatpush2.bf16.msra.mxu1 %v18276_v51 }
 0xb8a   : > { %14040 = vmatprep.subr.bf16.mxu1 %v18284_v3 }
 0xb8b   : > { %14070 = vmatpush1.bf16.msra.mxu0 %v18261_v19 }
 0xb8c   : > { %14071 = vmatprep.subr.bf16.mxu0 %v18269_v16 }
 0xb8d   : > { %14041 = vmatpush2.bf16.msra.mxu1 %v18282_v22 }
 0xb8e   : > { %14042 = vmatprep.subr.bf16.mxu1 %v18290_v39 }
 0xb8f   : > { %14072 = vmatpush1.bf16.msra.mxu0 %v18267_v54 }
 0xb90   : > { %14073 = vmatprep.subr.bf16.mxu0 %v18275_v59 }
 0xb91   : > { %14043 = vmatpush2.bf16.msra.mxu1 %v18288_v63 }
 0xb92   : > { %14044 = vmatprep.subr.bf16.mxu1 %v18296_v24 }
 0xb93   : > { %14074 = vmatpush1.bf16.msra.mxu0 %v18273_v13 }
 0xb94   : > { %14075 = vmatprep.subr.bf16.mxu0 %v18281_v12 }
 0xb95   : > { %14045 = vmatpush2.bf16.msra.mxu1 %v18294_v58 }
 0xb96   : > { %14046 = vmatprep.subr.bf16.mxu1 %v18302_v11 }
 0xb97   : > { %14076 = vmatpush1.bf16.msra.mxu0 %v18279_v53 }
 0xb98   : > { %14077 = vmatprep.subr.bf16.mxu0 %v18287_v26 }
 0xb99   : > { %14047 = vmatpush2.bf16.msra.mxu1 %v18300_v20 }
 0xb9a   : > { %14048 = vmatprep.subr.bf16.mxu1 %v18308_v25 }
 0xb9b   : > { %14078 = vmatpush1.bf16.msra.mxu0 %v18285_v14 }
 0xb9c   : > { %14079 = vmatprep.subr.bf16.mxu0 %v18293_v29 }
 0xb9d   : > { %14049 = vmatpush2.bf16.msra.mxu1 %v18306_v40 }
 0xb9e   : > { %14050 = vmatprep.subr.bf16.mxu1 %v18314_v48 }
 0xb9f   : > { %14080 = vmatpush2.bf16.msra.mxu0 %v18291_v30 }
 0xba0   : > { %14081 = vmatprep.subr.bf16.mxu0 %v18299_v38 }
 0xba1   : > { %14051 = vmatpush2.bf16.msra.mxu1 %v18312_v35 }
 0xba2   : > { %14052 = vmatprep.subr.bf16.mxu1 %v18320_v46  ;;  %v14118_v46 = vld [vmem:[#allocation26 + $0x10] sm:$0x7f] }
 0xba3   : > { %14082 = vmatpush2.bf16.msra.mxu0 %v18297_v42 }
 0xba4   : > { %14083 = vmatprep.subr.bf16.mxu0 %v18305_v2  ;;  %v14119_v2 = vld [vmem:[#allocation26 + $0x18] sm:$0x7f] }
 0xba5   : > { %14053 = vmatpush2.bf16.msra.mxu1 %v18318_v6 }
 0xba7   : > { %14084 = vmatpush2.bf16.msra.mxu0 %v18303_v62 }
 0xba8   : > { %v13810_v52 = vpop.f32.mrf.mxu1  ;;  %14055 = vmatmul.mubr.bf16.vlgmr.msra.gmra.mxu1 %v20761_v27  ;;  %14085 = vmatprep.subr.bf16.mxu0 %v18311_v49  ;;  %v18324_v27 = vld [vmem:[#allocation14 + $0x1f28] ss:$16 sps:$4 sm:$0xff]  }
 0xba9   : > { %v13811_v37 = vadd.f32 %v13810_v52, %v20842_v34 }
 0xbaa   : > { %v13812_v5 = vpop.f32.mrf.mxu1 }
 0xbab   : > { %v13813_v17 = vadd.f32 %v13812_v5, %v20845_v7  ;;  %14086 = vmatpush2.bf16.msra.mxu0 %v18309_v8 }
 0xbac   : > { %v13814_v10 = vpop.f32.mrf.mxu1  ;;  %14087 = vmatprep.subr.bf16.mxu0 %v18317_v57 }
 0xbae   : > { %v13815_v50 = vpop.f32.mrf.mxu1 }
 0xbaf   : > { %14088 = vmatpush2.bf16.msra.mxu0 %v18315_v47 }
 0xbb0   : > { %14089 = vmatprep.subr.bf16.mxu0 %v18323_v18 }
 0xbb3   : > { %14090 = vmatpush2.bf16.msra.mxu0 %v18321_v31 }
 0xbb4   : > { %14091 = vmatprep.subr.bf16.mxu0 %v18326_v28 }
 0xbb7   : > { %14092 = vmatpush2.bf16.msra.mxu0 %v18324_v27 }
 0xbb8   : > { %14093 = vmatprep.subr.bf16.mxu0 %v18329_v60  ;;  %v14140_v60 = vld [vmem:[#allocation8] sm:$0x1] }
 0xbbb   : > { %14094 = vmatpush2.bf16.msra.mxu0 %v18327_v23 }
 0xbbe   : > { %v13851_v56 = vpop.f32.mrf.mxu0  ;;  %14096 = vmatmul.mubr.bf16.vlgmr.msra.gmra.mxu0 %v20769_v41 }
 0xbbf   : > { %v13852_v55 = vadd.f32 %v13851_v56, %v13811_v37 }
 0xbc0   : > { %v13853_v33 = vpop.f32.mrf.mxu0 }
 0xbc1   : > { %v13854_v61 = vadd.f32 %v13853_v33, %v13813_v17 }
 0xbc2   : > { %v13855_v45 = vpop.f32.mrf.mxu0 }
 0xbc4   : > { %v13856_v1 = vpop.f32.mrf.mxu0 }
 0xbe8   : > { %v13892_v15 = vpop.f32.mrf.mxu1 }
 0xbe9   : > { %v13893_v34 = vadd.f32 %v13892_v15, %v13852_v55 }
 0xbea   : > { %v13894_v4 = vpop.f32.mrf.mxu1 }
 0xbeb   : > { %v13895_v43 = vadd.f32 %v13894_v4, %v13854_v61 }
 0xbec   : > { %v13896_v0 = vpop.f32.mrf.mxu1 }
 0xbee   : > { %v13897_v7 = vpop.f32.mrf.mxu1 }
 0xbfe   : > { %v13933_v51 = vpop.f32.mrf.mxu0 }
 0xbff   : > { %v13934_v36 = vadd.f32 %v13933_v51, %v13893_v34 }
 0xc00   : > { %v13935_v3 = vpop.f32.mrf.mxu0 }
 0xc01   : > { %v13936_v32 = vadd.f32 %v13935_v3, %v13895_v43 }
 0xc02   : > { %v13937_v9 = vpop.f32.mrf.mxu0 }
 0xc04   : > { %v13938_v21 = vpop.f32.mrf.mxu0 }
 0xc28   : > { %v13974_v22 = vpop.f32.mrf.mxu1 }
 0xc29   : > { %v13975_v39 = vadd.f32 %v13974_v22, %v13934_v36 }
 0xc2a   : > { %v13976_v41 = vpop.f32.mrf.mxu1 }
 0xc2b   : > { %v13977_v19 = vadd.f32 %v13976_v41, %v13936_v32 }
 0xc2c   : > { %v13978_v16 = vpop.f32.mrf.mxu1 }
 0xc2e   : > { %v13979_v63 = vpop.f32.mrf.mxu1 }
 0xc3e   : > { %v14015_v24 = vpop.f32.mrf.mxu0 }
 0xc3f   : > { %v14016_v25 = vadd.f32 %v14015_v24, %v13975_v39 }
 0xc40   : > { %v14017_v54 = vpop.f32.mrf.mxu0 }
 0xc41   : > { %v14018_v53 = vadd.f32 %v14017_v54, %v13977_v19 }
 0xc42   : > { %v14019_v59 = vpop.f32.mrf.mxu0 }
 0xc44   : > { %v14020_v58 = vpop.f32.mrf.mxu0 }
 0xc68   : > { %v14056_v11 = vpop.f32.mrf.mxu1 }
 0xc69   : > { %v14057_v26 = vadd.f32 %v14056_v11, %v14016_v25 }
 0xc6a   : > { %v14058_v13 = vpop.f32.mrf.mxu1 }
 0xc6b   : > { %v14059_v48 = vadd.f32 %v14058_v13, %v14018_v53 }
 0xc6c   : > { %v14060_v12 = vpop.f32.mrf.mxu1 }
 0xc6e   : > { %v14061_v20 = vpop.f32.mrf.mxu1 }
 0xc7e   : > { %v14097_v40 = vpop.f32.mrf.mxu0 }
 0xc7f   : > { %v14098_v14 = vadd.f32 %v14097_v40, %v14057_v26 }
 0xc80   : > { %v14099_v29 = vpop.f32.mrf.mxu0 }
 0xc81   : > { %vm14106_vm3 = vcmp.ge.f32.partialorder %v14098_v14, 0.0  ;;  %v14110_v35 = vmul.f32 0.2, %v14098_v14  ;;  %v14100_v30 = vadd.f32 %v14099_v29, %v14059_v48 }
 0xc82   : > { %v14101_v38 = vpop.f32.mrf.mxu0 }
 0xc83   : > { %v14114_v6 = vsel %vm14106_vm3, %v14098_v14, %v14110_v35  ;;  %vm14107_vm10 = vcmp.ge.f32.partialorder %v14100_v30, 0.0  ;;  %v14111_v42 = vmul.f32 0.2, %v14100_v30 }
 0xc84   : > { %v14122_v62 = vmul.f32 %v14118_v46, %v14114_v6  ;;  %v14102_v49 = vpop.f32.mrf.mxu0 }
 0xc85   : > { %v14115_v52 = vsel %vm14107_vm10, %v14100_v30, %v14111_v42 }
 0xc86   : > { %v14123_v37 = vmul.f32 %v14119_v2, %v14115_v52  ;;  %v14127_v5 = vsel %vm6163_vm15, %v14122_v62, 0.0 }
 0xc87   : > { %v14128_v8 = vadd.f32 %v14127_v5, %v20805_v44 }
 0xc88   : > { %v14129_v17 = vsel %vm6163_vm15, %v14123_v37, 0.0 }
 0xc89   : > { %v14130_v57 = vadd.f32 %v14129_v17, %v14128_v8 }
 0xc8b   : > { %14131 = vadd.xlane.f32.xlu0 %v14130_v57 }
 0xd14   : > { %v14132_v10 = vpop.xlane.xlu0 %14131 }
 0xd15   : > { %v14133_v50 = vsel %vm6163_vm15, %v14132_v10, 0.0 }
 0xd16   : > { %v14134_v47 = vrot.slane %v14133_v50, 4 }
 0xd18   : > { %v14135_v18 = vadd.f32 %v14134_v47, %v14133_v50 }
 0xd1a   : > { %v14136_v31 = vrot.slane %v14135_v18, 2 }
 0xd1c   : > { %v14137_v28 = vadd.f32 %v14136_v31, %v14135_v18 }
 0xd1e   : > { %v14138_v27 = vrot.slane %v14137_v28, 1 }
 0xd20   : > { %v14139_v23 = vadd.f32 %v14138_v27, %v14137_v28 }
 0xd22   : > { %v14141_v44 = vadd.f32 %v14140_v60, %v14139_v23 }
 0xd24   : > { %14143 = vst.msk [vmem:[%s630_s23] sm:$0x1] %vm14142_vm14, %v14141_v44 }
 0xd25 PF: > { %s33_s15 = sadd.s32 1, %s18684_s15  }
 0xd26   : > { %p30_p6 = scmp.ge.s32.totalorder %s33_s15, 4  }
 0xd28   :  { %32 = sbr.rel (!%p30_p6) target bundleno = 10 (0xa), region = 155 }
 0xd2d   :  { %14161 = vsyncpa [#allocation10], 1 }
 0xd2e   :  { %14163 = vsyncpa [#allocation10 + $0x1], 1 }
 0xd2f   :  { %14164 = vsyncpa [#allocation12], 1 }
 0xd30   :  { %14165 = vsyncpa [#allocation15], 1 }
 0xd31   :  { %14166 = vsyncpa [#allocation18], 1 }
 0xd32   :  { %14167 = vsyncpa [#allocation21], 1 }
 0xd33   :  { %14168 = vsyncpa [#allocation24], 1 }
 0xd34   :  { %14169 = vsyncpa [#allocation27], 1 }

</bundles_post_ra>
